<compile_context>
chip_gen: v7x
topology: tpu7x:2x2x1
jax: 0.10.0
libtpu: 0.0.40
codegen_flags: <defaults>
</compile_context>

<pallas_src>
import jax
import jax.numpy as jnp
from jax.experimental import pallas as pl
from jax.experimental.pallas import tpu as pltpu


# ----------------------------- static geometry ------------------------------
C_IN = 32
C_MID = 64                 # conv1 out channels == conv2 in channels
C_OUT = 64                 # conv2 out channels
K1H, K1W = 6, 3
K2H, K2W = 100, 3
PAD2, DIL2 = 18, 4

H_IN, W_IN = 366, 3        # smallest valid input spatial size
OH1, OW1 = H_IN - K1H + 1, W_IN - K1W + 1                 # 361, 1
EFF_K2H = DIL2 * (K2H - 1) + 1                            # 397
EFF_K2W = DIL2 * (K2W - 1) + 1                            # 9
OH2 = OH1 + 2 * PAD2 - EFF_K2H + 1                        # 1
OW2 = OW1 + 2 * PAD2 - EFF_K2W + 1                        # 29

# conv2 taps that can touch non-padded data:
#   height: 0 <= DIL2*kh - PAD2 < OH1  ->  kh in [5, 95)
KH_LO = -(-PAD2 // DIL2)                                  # 5
KH_HI = (OH1 - 1 + PAD2) // DIL2 + 1                      # 95
NJ = KH_HI - KH_LO                                        # 90 valid taps
NJ_PAD = 96                                               # tap padding in w2 / flat lhs
NJ_GEMM = 128                                             # conv1 GEMM N (lane tile)
ROW0 = DIL2 * KH_LO - PAD2                                # 2: first conv1 row used
#   width: with OW1 == 1 each kw feeds exactly one output column ow = PAD2 - DIL2*kw
OW_OF_KW = tuple(PAD2 - DIL2 * kw for kw in range(K2W))   # (18, 14, 10)

K1 = K1H * C_IN * K1W      # 576  conv1 joint contraction (kh, ic, kw)
K1P = 640                  # padded to a multiple of 128
K2 = C_MID * NJ_PAD        # 6144 conv2 joint contraction (c, j)
N2 = K2W * C_OUT           # 192  kw folded into conv2 output channels
OUT_ROWS = 32              # sublane-padded OW2 used while assembling

assert OW1 == 1 and OH2 == 1
assert all(0 <= ow < OW2 for ow in OW_OF_KW)
assert ROW0 + DIL2 * (NJ - 1) + (K1H - 1) < H_IN
assert NJ <= NJ_PAD and K1 <= K1P


# ------------------------------- Pallas kernel ------------------------------
def _fused_conv_kernel(g_ref, w1_ref, b1_ref, w2_hbm, b2_ref, o_ref,
                       w2_vmem, aflat_ref, sem):
    # g_ref  : (640, 128) bf16   conv1 patches   [kh*96+ic*3+kw, j]
    # w1_ref : (64, 640)  bf16   conv1 weights   [oc, kh*96+ic*3+kw]
    # b1_ref : (64, 1)    f32
    # w2_hbm : (6144, 192) bf16  conv2 weights in HBM  [c*96+j, kw*64+oc]
    # b2_ref : (1, 64)    f32
    # o_ref  : (64, 29)   f32    [oc, ow]  -- final layout, no wrapper epilogue
    # w2_vmem: (6144, 192) bf16  VMEM scratch for the streamed conv2 weight
    # aflat_ref: (1, 6144) f32   flattened conv1 activation (fully overwritten)

    # ---- start streaming conv2's weight; it overlaps conv1 + the flatten ----
    w2_cp = pltpu.make_async_copy(w2_hbm, w2_vmem, sem)
    w2_cp.start()

    # ---- conv1 as one implicit GEMM (bf16 operands, f32 accumulation) ----
    pre = jnp.dot(w1_ref[...], g_ref[...],
                  preferred_element_type=jnp.float32)          # (64, 128)
    act = jax.nn.sigmoid(pre + b1_ref[...])                    # (64, 128) f32
    # columns j >= NJ are sigmoid(bias) garbage; the matching w2 rows are zero.

    # ---- flatten (c, j<96) onto the lane axis of the scratch row ----
    # 64 static masked stores; every lane of row 0 is written before it is read.
    for c in range(C_MID):
        aflat_ref[0:1, c * NJ_PAD:(c + 1) * NJ_PAD] = act[c:c + 1, 0:NJ_PAD]

    # ---- conv2 as one GEMM over the joint (c, j) contraction ----
    w2_cp.wait()
    lhs = aflat_ref[...].astype(jnp.bfloat16)                           # (1, 6144)
    cols = jnp.dot(lhs, w2_vmem[...],
                   preferred_element_type=jnp.float32)                  # (1, 192)

    # ---- assemble: bias-only background + 3 data columns, sigmoid ----
    res = jnp.broadcast_to(b2_ref[...], (OUT_ROWS, C_OUT))              # (32, 64)
    row_ids = jax.lax.broadcasted_iota(jnp.int32, (OUT_ROWS, C_OUT), 0)
    for kw in range(K2W):
        contrib = jnp.broadcast_to(cols[:, kw * C_OUT:(kw + 1) * C_OUT],
                                   (OUT_ROWS, C_OUT))
        res = jnp.where(row_ids == OW_OF_KW[kw], res + contrib, res)
    res = jax.nn.sigmoid(res)
    # final layout: channels on sublanes, ow on lanes, sliced to the 29 columns
    o_ref[...] = res.T[:, :OW2]


# ------------------------------ parameter prep ------------------------------
def init_params(key):
    """PyTorch-style Conv2d init (U(-1/sqrt(fan_in), 1/sqrt(fan_in)))."""
    k1, k2, k3, k4 = jax.random.split(key, 4)
    lim1 = 1.0 / jnp.sqrt(C_IN * K1H * K1W)
    w1 = jax.random.uniform(k1, (C_MID, C_IN, K1H, K1W), jnp.float32, -lim1, lim1)
    b1 = jax.random.uniform(k2, (C_MID,), jnp.float32, -lim1, lim1)
    lim2 = 1.0 / jnp.sqrt(C_MID * K2H * K2W)
    w2 = jax.random.uniform(k3, (C_OUT, C_MID, K2H, K2W), jnp.float32, -lim2, lim2)
    b2 = jax.random.uniform(k4, (C_OUT,), jnp.float32, -lim2, lim2)
    return (w1, b1), (w2, b2)


def prepare_params(params):
    """One-time repack of PyTorch-layout weights into the kernel layout."""
    (w1, b1), (w2, b2) = params
    # conv1: (oc, ic, kh, kw) -> (oc, kh*96 + ic*3 + kw), padded 576 -> 640, bf16.
    w1t = jnp.transpose(w1, (0, 2, 1, 3)).reshape(C_MID, K1)
    w1t = jnp.pad(w1t, ((0, 0), (0, K1P - K1))).astype(jnp.bfloat16)
    b1c = b1.reshape(C_MID, 1).astype(jnp.float32)
    # conv2: keep only taps kh in [5, 95), fold kw into the output dim, pad the
    # tap axis 90 -> 96, cast to bf16:
    #   w2m[c*96 + j, kw*64 + oc] = w2[oc, c, j + KH_LO, kw]
    w2v = jnp.transpose(w2[:, :, KH_LO:KH_HI, :], (1, 2, 3, 0))   # (c, j, kw, oc)
    w2v = jnp.pad(w2v, ((0, 0), (0, NJ_PAD - NJ), (0, 0), (0, 0)))
    w2m = w2v.reshape(K2, N2).astype(jnp.bfloat16)
    b2r = b2.reshape(1, C_OUT).astype(jnp.float32)
    return w1t, b1c, w2m, b2r


# ------------------------------- forward pass -------------------------------
def _gather_conv1_patches(x):
    """Only conv1 rows h = 4*j + ROW0 (j < NJ) are ever read by conv2, so we
    gather exactly those windows, in bf16:
        g[kh*96 + ic*3 + kw, j] = x[0, ic, 4*j + ROW0 + kh, kw]."""
    xs = x[0]                                                    # (32, 366, 3)
    rows = [xs[:, ROW0 + kh: ROW0 + kh + DIL2 * (NJ - 1) + 1: DIL2, :]
            for kh in range(K1H)]                                # each (32, 90, 3)
    g = jnp.stack(rows, axis=0)                                  # (6, 32, 90, 3)
    g = jnp.transpose(g, (0, 1, 3, 2)).reshape(K1, NJ)           # (576, 90)
    g = jnp.pad(g, ((0, K1P - K1), (0, NJ_GEMM - NJ)))           # (640, 128)
    return g.astype(jnp.bfloat16)


@jax.jit
def model_forward(x, prepared):
    assert x.shape == (1, C_IN, H_IN, W_IN), x.shape
    w1t, b1c, w2m, b2r = prepared
    g = _gather_conv1_patches(x)
    out = pl.pallas_call(
        _fused_conv_kernel,
        out_shape=jax.ShapeDtypeStruct((C_OUT, OW2), jnp.float32),
        in_specs=[
            pl.BlockSpec(memory_space=pltpu.MemorySpace.VMEM),   # g
            pl.BlockSpec(memory_space=pltpu.MemorySpace.VMEM),   # w1
            pl.BlockSpec(memory_space=pltpu.MemorySpace.VMEM),   # b1
            pl.BlockSpec(memory_space=pl.ANY),                   # w2 stays in HBM
            pl.BlockSpec(memory_space=pltpu.MemorySpace.VMEM),   # b2
        ],
        out_specs=pl.BlockSpec(memory_space=pltpu.MemorySpace.VMEM),
        scratch_shapes=[
            pltpu.VMEM((K2, N2), jnp.bfloat16),                  # streamed w2
            pltpu.VMEM((1, K2), jnp.float32),                    # flat activation
            pltpu.SemaphoreType.DMA,                             # w2 copy sem
        ],
    )(g, w1t, b1c, w2m, b2r)
    # (64, 29) -> NCHW (1, 64, 1, 29): pure metadata reshape, no transpose/slice.
    return out.reshape(1, C_OUT, OH2, OW2)


# ------------------------------ pure-JAX reference --------------------------
@jax.jit
def _reference_forward(x, params):
    (w1, b1), (w2, b2) = params

    def conv(inp, w, b, pad, dil):
        out = jax.lax.conv_general_dilated(
            inp, w, window_strides=(1, 1),
            padding=((pad, pad), (pad, pad)),
            rhs_dilation=(dil, dil),
            dimension_numbers=("NCHW", "OIHW", "NCHW"))
        return out + b.reshape(1, -1, 1, 1)

    v2 = jax.nn.sigmoid(conv(x, w1, b1, 0, 1))
    v4 = jax.nn.sigmoid(conv(v2, w2, b2, PAD2, DIL2))
    return v4


if __name__ == "__main__":
    key = jax.random.PRNGKey(0)
    kx, kp = jax.random.split(key)

    x = jax.random.normal(kx, (1, C_IN, H_IN, W_IN), dtype=jnp.float32)
    params = init_params(kp)
    prepared = prepare_params(params)

    out = jax.block_until_ready(model_forward(x, prepared))
    assert out.shape == (1, C_OUT, OH2, OW2), out.shape

    ref = jax.block_until_ready(_reference_forward(x, params))
    # bf16 operands on both convs (f32 accumulation) vs f32 reference.
    assert jnp.allclose(out, ref, rtol=2e-3, atol=2e-3), (
        "max abs diff = %s" % float(jnp.max(jnp.abs(out - ref))))

    print("KERNEL_OK")
</pallas_src>

<mosaic_0001>
module attributes {stable_mosaic.version = 11 : i64} {
  func.func @_fused_conv_kernel(%arg0: memref<640x128xbf16, #tpu.memory_space<vmem>>, %arg1: memref<64x640xbf16, #tpu.memory_space<vmem>>, %arg2: memref<64x1xf32, #tpu.memory_space<vmem>>, %arg3: memref<6144x192xbf16, #tpu.memory_space<any>>, %arg4: memref<1x64xf32, #tpu.memory_space<vmem>>, %arg5: memref<64x29xf32, #tpu.memory_space<vmem>>, %arg6: memref<6144x192xbf16, #tpu.memory_space<vmem>>, %arg7: memref<1x6144xf32, #tpu.memory_space<vmem>>, %arg8: memref<!tpu.dma_semaphore, #tpu.memory_space<semaphore_mem>>) attributes {dimension_semantics = [], scalar_prefetch = 0 : i64, scratch_operands = 3 : i64, tpu.core_type = #tpu.core_type<tc>} {
    tpu.enqueue_dma source(%arg3 : memref<6144x192xbf16, #tpu.memory_space<any>>) target(%arg6 : memref<6144x192xbf16, #tpu.memory_space<vmem>>) target_semaphore(%arg8 : memref<!tpu.dma_semaphore, #tpu.memory_space<semaphore_mem>>)
    %c0 = arith.constant 0 : index
    %c0_0 = arith.constant 0 : index
    %0 = vector.load %arg1[%c0, %c0_0] : memref<64x640xbf16, #tpu.memory_space<vmem>>, vector<64x640xbf16>
    %c0_1 = arith.constant 0 : index
    %c0_2 = arith.constant 0 : index
    %1 = vector.load %arg0[%c0_1, %c0_2] : memref<640x128xbf16, #tpu.memory_space<vmem>>, vector<640x128xbf16>
    %cst = arith.constant dense<0.000000e+00> : vector<64x128xf32>
    %2 = tpu.matmul %0, %1, %cst {dimension_numbers = #tpu.dot_dimension_numbers<[1], [0], [0], [1], [0, 0, 1, 1], [], []>} : vector<64x640xbf16>, vector<640x128xbf16>, vector<64x128xf32> -> vector<64x128xf32>
    %c0_3 = arith.constant 0 : index
    %c0_4 = arith.constant 0 : index
    %3 = vector.load %arg2[%c0_3, %c0_4] : memref<64x1xf32, #tpu.memory_space<vmem>>, vector<64x1xf32>
    %4 = vector.broadcast %3 : vector<64x1xf32> to vector<64x128xf32>
    %5 = arith.addf %2, %4 : vector<64x128xf32>
    %6 = arith.negf %5 : vector<64x128xf32>
    %7 = math.exp %6 : vector<64x128xf32>
    %cst_5 = arith.constant 1.000000e+00 : f32
    %8 = vector.broadcast %cst_5 : f32 to vector<64x128xf32>
    %9 = arith.addf %8, %7 : vector<64x128xf32>
    %10 = arith.divf %8, %9 : vector<64x128xf32>
    %11 = vector.extract_strided_slice %10 {offsets = [0, 0], sizes = [1, 96], strides = [1, 1]} : vector<64x128xf32> to vector<1x96xf32>
    %c0_6 = arith.constant 0 : index
    %c0_7 = arith.constant 0 : index
    %12 = vector.load %arg7[%c0_6, %c0_7] : memref<1x6144xf32, #tpu.memory_space<vmem>>, vector<1x96xf32>
    tpu.vector_store %arg7[%c0_6, %c0_7], %11 {strides = array<i32>} : memref<1x6144xf32, #tpu.memory_space<vmem>>, vector<1x96xf32>,
    %13 = vector.extract_strided_slice %10 {offsets = [1, 0], sizes = [1, 96], strides = [1, 1]} : vector<64x128xf32> to vector<1x96xf32>
    %c0_8 = arith.constant 0 : index
    %c96 = arith.constant 96 : index
    %14 = vector.load %arg7[%c0_8, %c96] : memref<1x6144xf32, #tpu.memory_space<vmem>>, vector<1x96xf32>
    tpu.vector_store %arg7[%c0_8, %c96], %13 {strides = array<i32>} : memref<1x6144xf32, #tpu.memory_space<vmem>>, vector<1x96xf32>,
    %15 = vector.extract_strided_slice %10 {offsets = [2, 0], sizes = [1, 96], strides = [1, 1]} : vector<64x128xf32> to vector<1x96xf32>
    %c0_9 = arith.constant 0 : index
    %c192 = arith.constant 192 : index
    %16 = vector.load %arg7[%c0_9, %c192] : memref<1x6144xf32, #tpu.memory_space<vmem>>, vector<1x96xf32>
    tpu.vector_store %arg7[%c0_9, %c192], %15 {strides = array<i32>} : memref<1x6144xf32, #tpu.memory_space<vmem>>, vector<1x96xf32>,
    %17 = vector.extract_strided_slice %10 {offsets = [3, 0], sizes = [1, 96], strides = [1, 1]} : vector<64x128xf32> to vector<1x96xf32>
    %c0_10 = arith.constant 0 : index
    %c288 = arith.constant 288 : index
    %18 = vector.load %arg7[%c0_10, %c288] : memref<1x6144xf32, #tpu.memory_space<vmem>>, vector<1x96xf32>
    tpu.vector_store %arg7[%c0_10, %c288], %17 {strides = array<i32>} : memref<1x6144xf32, #tpu.memory_space<vmem>>, vector<1x96xf32>,
    %19 = vector.extract_strided_slice %10 {offsets = [4, 0], sizes = [1, 96], strides = [1, 1]} : vector<64x128xf32> to vector<1x96xf32>
    %c0_11 = arith.constant 0 : index
    %c384 = arith.constant 384 : index
    %20 = vector.load %arg7[%c0_11, %c384] : memref<1x6144xf32, #tpu.memory_space<vmem>>, vector<1x96xf32>
    tpu.vector_store %arg7[%c0_11, %c384], %19 {strides = array<i32>} : memref<1x6144xf32, #tpu.memory_space<vmem>>, vector<1x96xf32>,
    %21 = vector.extract_strided_slice %10 {offsets = [5, 0], sizes = [1, 96], strides = [1, 1]} : vector<64x128xf32> to vector<1x96xf32>
    %c0_12 = arith.constant 0 : index
    %c480 = arith.constant 480 : index
    %22 = vector.load %arg7[%c0_12, %c480] : memref<1x6144xf32, #tpu.memory_space<vmem>>, vector<1x96xf32>
    tpu.vector_store %arg7[%c0_12, %c480], %21 {strides = array<i32>} : memref<1x6144xf32, #tpu.memory_space<vmem>>, vector<1x96xf32>,
    %23 = vector.extract_strided_slice %10 {offsets = [6, 0], sizes = [1, 96], strides = [1, 1]} : vector<64x128xf32> to vector<1x96xf32>
    %c0_13 = arith.constant 0 : index
    %c576 = arith.constant 576 : index
    %24 = vector.load %arg7[%c0_13, %c576] : memref<1x6144xf32, #tpu.memory_space<vmem>>, vector<1x96xf32>
    tpu.vector_store %arg7[%c0_13, %c576], %23 {strides = array<i32>} : memref<1x6144xf32, #tpu.memory_space<vmem>>, vector<1x96xf32>,
    %25 = vector.extract_strided_slice %10 {offsets = [7, 0], sizes = [1, 96], strides = [1, 1]} : vector<64x128xf32> to vector<1x96xf32>
    %c0_14 = arith.constant 0 : index
    %c672 = arith.constant 672 : index
    %26 = vector.load %arg7[%c0_14, %c672] : memref<1x6144xf32, #tpu.memory_space<vmem>>, vector<1x96xf32>
    tpu.vector_store %arg7[%c0_14, %c672], %25 {strides = array<i32>} : memref<1x6144xf32, #tpu.memory_space<vmem>>, vector<1x96xf32>,
    %27 = vector.extract_strided_slice %10 {offsets = [8, 0], sizes = [1, 96], strides = [1, 1]} : vector<64x128xf32> to vector<1x96xf32>
    %c0_15 = arith.constant 0 : index
    %c768 = arith.constant 768 : index
    %28 = vector.load %arg7[%c0_15, %c768] : memref<1x6144xf32, #tpu.memory_space<vmem>>, vector<1x96xf32>
    tpu.vector_store %arg7[%c0_15, %c768], %27 {strides = array<i32>} : memref<1x6144xf32, #tpu.memory_space<vmem>>, vector<1x96xf32>,
    %29 = vector.extract_strided_slice %10 {offsets = [9, 0], sizes = [1, 96], strides = [1, 1]} : vector<64x128xf32> to vector<1x96xf32>
    %c0_16 = arith.constant 0 : index
    %c864 = arith.constant 864 : index
    %30 = vector.load %arg7[%c0_16, %c864] : memref<1x6144xf32, #tpu.memory_space<vmem>>, vector<1x96xf32>
    tpu.vector_store %arg7[%c0_16, %c864], %29 {strides = array<i32>} : memref<1x6144xf32, #tpu.memory_space<vmem>>, vector<1x96xf32>,
    %31 = vector.extract_strided_slice %10 {offsets = [10, 0], sizes = [1, 96], strides = [1, 1]} : vector<64x128xf32> to vector<1x96xf32>
    %c0_17 = arith.constant 0 : index
    %c960 = arith.constant 960 : index
    %32 = vector.load %arg7[%c0_17, %c960] : memref<1x6144xf32, #tpu.memory_space<vmem>>, vector<1x96xf32>
    tpu.vector_store %arg7[%c0_17, %c960], %31 {strides = array<i32>} : memref<1x6144xf32, #tpu.memory_space<vmem>>, vector<1x96xf32>,
    %33 = vector.extract_strided_slice %10 {offsets = [11, 0], sizes = [1, 96], strides = [1, 1]} : vector<64x128xf32> to vector<1x96xf32>
    %c0_18 = arith.constant 0 : index
    %c1056 = arith.constant 1056 : index
    %34 = vector.load %arg7[%c0_18, %c1056] : memref<1x6144xf32, #tpu.memory_space<vmem>>, vector<1x96xf32>
    tpu.vector_store %arg7[%c0_18, %c1056], %33 {strides = array<i32>} : memref<1x6144xf32, #tpu.memory_space<vmem>>, vector<1x96xf32>,
    %35 = vector.extract_strided_slice %10 {offsets = [12, 0], sizes = [1, 96], strides = [1, 1]} : vector<64x128xf32> to vector<1x96xf32>
    %c0_19 = arith.constant 0 : index
    %c1152 = arith.constant 1152 : index
    %36 = vector.load %arg7[%c0_19, %c1152] : memref<1x6144xf32, #tpu.memory_space<vmem>>, vector<1x96xf32>
    tpu.vector_store %arg7[%c0_19, %c1152], %35 {strides = array<i32>} : memref<1x6144xf32, #tpu.memory_space<vmem>>, vector<1x96xf32>,
    %37 = vector.extract_strided_slice %10 {offsets = [13, 0], sizes = [1, 96], strides = [1, 1]} : vector<64x128xf32> to vector<1x96xf32>
    %c0_20 = arith.constant 0 : index
    %c1248 = arith.constant 1248 : index
    %38 = vector.load %arg7[%c0_20, %c1248] : memref<1x6144xf32, #tpu.memory_space<vmem>>, vector<1x96xf32>
    tpu.vector_store %arg7[%c0_20, %c1248], %37 {strides = array<i32>} : memref<1x6144xf32, #tpu.memory_space<vmem>>, vector<1x96xf32>,
    %39 = vector.extract_strided_slice %10 {offsets = [14, 0], sizes = [1, 96], strides = [1, 1]} : vector<64x128xf32> to vector<1x96xf32>
    %c0_21 = arith.constant 0 : index
    %c1344 = arith.constant 1344 : index
    %40 = vector.load %arg7[%c0_21, %c1344] : memref<1x6144xf32, #tpu.memory_space<vmem>>, vector<1x96xf32>
    tpu.vector_store %arg7[%c0_21, %c1344], %39 {strides = array<i32>} : memref<1x6144xf32, #tpu.memory_space<vmem>>, vector<1x96xf32>,
    %41 = vector.extract_strided_slice %10 {offsets = [15, 0], sizes = [1, 96], strides = [1, 1]} : vector<64x128xf32> to vector<1x96xf32>
    %c0_22 = arith.constant 0 : index
    %c1440 = arith.constant 1440 : index
    %42 = vector.load %arg7[%c0_22, %c1440] : memref<1x6144xf32, #tpu.memory_space<vmem>>, vector<1x96xf32>
    tpu.vector_store %arg7[%c0_22, %c1440], %41 {strides = array<i32>} : memref<1x6144xf32, #tpu.memory_space<vmem>>, vector<1x96xf32>,
    %43 = vector.extract_strided_slice %10 {offsets = [16, 0], sizes = [1, 96], strides = [1, 1]} : vector<64x128xf32> to vector<1x96xf32>
    %c0_23 = arith.constant 0 : index
    %c1536 = arith.constant 1536 : index
    %44 = vector.load %arg7[%c0_23, %c1536] : memref<1x6144xf32, #tpu.memory_space<vmem>>, vector<1x96xf32>
    tpu.vector_store %arg7[%c0_23, %c1536], %43 {strides = array<i32>} : memref<1x6144xf32, #tpu.memory_space<vmem>>, vector<1x96xf32>,
    %45 = vector.extract_strided_slice %10 {offsets = [17, 0], sizes = [1, 96], strides = [1, 1]} : vector<64x128xf32> to vector<1x96xf32>
    %c0_24 = arith.constant 0 : index
    %c1632 = arith.constant 1632 : index
    %46 = vector.load %arg7[%c0_24, %c1632] : memref<1x6144xf32, #tpu.memory_space<vmem>>, vector<1x96xf32>
    tpu.vector_store %arg7[%c0_24, %c1632], %45 {strides = array<i32>} : memref<1x6144xf32, #tpu.memory_space<vmem>>, vector<1x96xf32>,
    %47 = vector.extract_strided_slice %10 {offsets = [18, 0], sizes = [1, 96], strides = [1, 1]} : vector<64x128xf32> to vector<1x96xf32>
    %c0_25 = arith.constant 0 : index
    %c1728 = arith.constant 1728 : index
    %48 = vector.load %arg7[%c0_25, %c1728] : memref<1x6144xf32, #tpu.memory_space<vmem>>, vector<1x96xf32>
    tpu.vector_store %arg7[%c0_25, %c1728], %47 {strides = array<i32>} : memref<1x6144xf32, #tpu.memory_space<vmem>>, vector<1x96xf32>,
    %49 = vector.extract_strided_slice %10 {offsets = [19, 0], sizes = [1, 96], strides = [1, 1]} : vector<64x128xf32> to vector<1x96xf32>
    %c0_26 = arith.constant 0 : index
    %c1824 = arith.constant 1824 : index
    %50 = vector.load %arg7[%c0_26, %c1824] : memref<1x6144xf32, #tpu.memory_space<vmem>>, vector<1x96xf32>
    tpu.vector_store %arg7[%c0_26, %c1824], %49 {strides = array<i32>} : memref<1x6144xf32, #tpu.memory_space<vmem>>, vector<1x96xf32>,
    %51 = vector.extract_strided_slice %10 {offsets = [20, 0], sizes = [1, 96], strides = [1, 1]} : vector<64x128xf32> to vector<1x96xf32>
    %c0_27 = arith.constant 0 : index
    %c1920 = arith.constant 1920 : index
    %52 = vector.load %arg7[%c0_27, %c1920] : memref<1x6144xf32, #tpu.memory_space<vmem>>, vector<1x96xf32>
    tpu.vector_store %arg7[%c0_27, %c1920], %51 {strides = array<i32>} : memref<1x6144xf32, #tpu.memory_space<vmem>>, vector<1x96xf32>,
    %53 = vector.extract_strided_slice %10 {offsets = [21, 0], sizes = [1, 96], strides = [1, 1]} : vector<64x128xf32> to vector<1x96xf32>
    %c0_28 = arith.constant 0 : index
    %c2016 = arith.constant 2016 : index
    %54 = vector.load %arg7[%c0_28, %c2016] : memref<1x6144xf32, #tpu.memory_space<vmem>>, vector<1x96xf32>
    tpu.vector_store %arg7[%c0_28, %c2016], %53 {strides = array<i32>} : memref<1x6144xf32, #tpu.memory_space<vmem>>, vector<1x96xf32>,
    %55 = vector.extract_strided_slice %10 {offsets = [22, 0], sizes = [1, 96], strides = [1, 1]} : vector<64x128xf32> to vector<1x96xf32>
    %c0_29 = arith.constant 0 : index
    %c2112 = arith.constant 2112 : index
    %56 = vector.load %arg7[%c0_29, %c2112] : memref<1x6144xf32, #tpu.memory_space<vmem>>, vector<1x96xf32>
    tpu.vector_store %arg7[%c0_29, %c2112], %55 {strides = array<i32>} : memref<1x6144xf32, #tpu.memory_space<vmem>>, vector<1x96xf32>,
    %57 = vector.extract_strided_slice %10 {offsets = [23, 0], sizes = [1, 96], strides = [1, 1]} : vector<64x128xf32> to vector<1x96xf32>
    %c0_30 = arith.constant 0 : index
    %c2208 = arith.constant 2208 : index
    %58 = vector.load %arg7[%c0_30, %c2208] : memref<1x6144xf32, #tpu.memory_space<vmem>>, vector<1x96xf32>
    tpu.vector_store %arg7[%c0_30, %c2208], %57 {strides = array<i32>} : memref<1x6144xf32, #tpu.memory_space<vmem>>, vector<1x96xf32>,
    %59 = vector.extract_strided_slice %10 {offsets = [24, 0], sizes = [1, 96], strides = [1, 1]} : vector<64x128xf32> to vector<1x96xf32>
    %c0_31 = arith.constant 0 : index
    %c2304 = arith.constant 2304 : index
    %60 = vector.load %arg7[%c0_31, %c2304] : memref<1x6144xf32, #tpu.memory_space<vmem>>, vector<1x96xf32>
    tpu.vector_store %arg7[%c0_31, %c2304], %59 {strides = array<i32>} : memref<1x6144xf32, #tpu.memory_space<vmem>>, vector<1x96xf32>,
    %61 = vector.extract_strided_slice %10 {offsets = [25, 0], sizes = [1, 96], strides = [1, 1]} : vector<64x128xf32> to vector<1x96xf32>
    %c0_32 = arith.constant 0 : index
    %c2400 = arith.constant 2400 : index
    %62 = vector.load %arg7[%c0_32, %c2400] : memref<1x6144xf32, #tpu.memory_space<vmem>>, vector<1x96xf32>
    tpu.vector_store %arg7[%c0_32, %c2400], %61 {strides = array<i32>} : memref<1x6144xf32, #tpu.memory_space<vmem>>, vector<1x96xf32>,
    %63 = vector.extract_strided_slice %10 {offsets = [26, 0], sizes = [1, 96], strides = [1, 1]} : vector<64x128xf32> to vector<1x96xf32>
    %c0_33 = arith.constant 0 : index
    %c2496 = arith.constant 2496 : index
    %64 = vector.load %arg7[%c0_33, %c2496] : memref<1x6144xf32, #tpu.memory_space<vmem>>, vector<1x96xf32>
    tpu.vector_store %arg7[%c0_33, %c2496], %63 {strides = array<i32>} : memref<1x6144xf32, #tpu.memory_space<vmem>>, vector<1x96xf32>,
    %65 = vector.extract_strided_slice %10 {offsets = [27, 0], sizes = [1, 96], strides = [1, 1]} : vector<64x128xf32> to vector<1x96xf32>
    %c0_34 = arith.constant 0 : index
    %c2592 = arith.constant 2592 : index
    %66 = vector.load %arg7[%c0_34, %c2592] : memref<1x6144xf32, #tpu.memory_space<vmem>>, vector<1x96xf32>
    tpu.vector_store %arg7[%c0_34, %c2592], %65 {strides = array<i32>} : memref<1x6144xf32, #tpu.memory_space<vmem>>, vector<1x96xf32>,
    %67 = vector.extract_strided_slice %10 {offsets = [28, 0], sizes = [1, 96], strides = [1, 1]} : vector<64x128xf32> to vector<1x96xf32>
    %c0_35 = arith.constant 0 : index
    %c2688 = arith.constant 2688 : index
    %68 = vector.load %arg7[%c0_35, %c2688] : memref<1x6144xf32, #tpu.memory_space<vmem>>, vector<1x96xf32>
    tpu.vector_store %arg7[%c0_35, %c2688], %67 {strides = array<i32>} : memref<1x6144xf32, #tpu.memory_space<vmem>>, vector<1x96xf32>,
    %69 = vector.extract_strided_slice %10 {offsets = [29, 0], sizes = [1, 96], strides = [1, 1]} : vector<64x128xf32> to vector<1x96xf32>
    %c0_36 = arith.constant 0 : index
    %c2784 = arith.constant 2784 : index
    %70 = vector.load %arg7[%c0_36, %c2784] : memref<1x6144xf32, #tpu.memory_space<vmem>>, vector<1x96xf32>
    tpu.vector_store %arg7[%c0_36, %c2784], %69 {strides = array<i32>} : memref<1x6144xf32, #tpu.memory_space<vmem>>, vector<1x96xf32>,
    %71 = vector.extract_strided_slice %10 {offsets = [30, 0], sizes = [1, 96], strides = [1, 1]} : vector<64x128xf32> to vector<1x96xf32>
    %c0_37 = arith.constant 0 : index
    %c2880 = arith.constant 2880 : index
    %72 = vector.load %arg7[%c0_37, %c2880] : memref<1x6144xf32, #tpu.memory_space<vmem>>, vector<1x96xf32>
    tpu.vector_store %arg7[%c0_37, %c2880], %71 {strides = array<i32>} : memref<1x6144xf32, #tpu.memory_space<vmem>>, vector<1x96xf32>,
    %73 = vector.extract_strided_slice %10 {offsets = [31, 0], sizes = [1, 96], strides = [1, 1]} : vector<64x128xf32> to vector<1x96xf32>
    %c0_38 = arith.constant 0 : index
    %c2976 = arith.constant 2976 : index
    %74 = vector.load %arg7[%c0_38, %c2976] : memref<1x6144xf32, #tpu.memory_space<vmem>>, vector<1x96xf32>
    tpu.vector_store %arg7[%c0_38, %c2976], %73 {strides = array<i32>} : memref<1x6144xf32, #tpu.memory_space<vmem>>, vector<1x96xf32>,
    %75 = vector.extract_strided_slice %10 {offsets = [32, 0], sizes = [1, 96], strides = [1, 1]} : vector<64x128xf32> to vector<1x96xf32>
    %c0_39 = arith.constant 0 : index
    %c3072 = arith.constant 3072 : index
    %76 = vector.load %arg7[%c0_39, %c3072] : memref<1x6144xf32, #tpu.memory_space<vmem>>, vector<1x96xf32>
    tpu.vector_store %arg7[%c0_39, %c3072], %75 {strides = array<i32>} : memref<1x6144xf32, #tpu.memory_space<vmem>>, vector<1x96xf32>,
    %77 = vector.extract_strided_slice %10 {offsets = [33, 0], sizes = [1, 96], strides = [1, 1]} : vector<64x128xf32> to vector<1x96xf32>
    %c0_40 = arith.constant 0 : index
    %c3168 = arith.constant 3168 : index
    %78 = vector.load %arg7[%c0_40, %c3168] : memref<1x6144xf32, #tpu.memory_space<vmem>>, vector<1x96xf32>
    tpu.vector_store %arg7[%c0_40, %c3168], %77 {strides = array<i32>} : memref<1x6144xf32, #tpu.memory_space<vmem>>, vector<1x96xf32>,
    %79 = vector.extract_strided_slice %10 {offsets = [34, 0], sizes = [1, 96], strides = [1, 1]} : vector<64x128xf32> to vector<1x96xf32>
    %c0_41 = arith.constant 0 : index
    %c3264 = arith.constant 3264 : index
    %80 = vector.load %arg7[%c0_41, %c3264] : memref<1x6144xf32, #tpu.memory_space<vmem>>, vector<1x96xf32>
    tpu.vector_store %arg7[%c0_41, %c3264], %79 {strides = array<i32>} : memref<1x6144xf32, #tpu.memory_space<vmem>>, vector<1x96xf32>,
    %81 = vector.extract_strided_slice %10 {offsets = [35, 0], sizes = [1, 96], strides = [1, 1]} : vector<64x128xf32> to vector<1x96xf32>
    %c0_42 = arith.constant 0 : index
    %c3360 = arith.constant 3360 : index
    %82 = vector.load %arg7[%c0_42, %c3360] : memref<1x6144xf32, #tpu.memory_space<vmem>>, vector<1x96xf32>
    tpu.vector_store %arg7[%c0_42, %c3360], %81 {strides = array<i32>} : memref<1x6144xf32, #tpu.memory_space<vmem>>, vector<1x96xf32>,
    %83 = vector.extract_strided_slice %10 {offsets = [36, 0], sizes = [1, 96], strides = [1, 1]} : vector<64x128xf32> to vector<1x96xf32>
    %c0_43 = arith.constant 0 : index
    %c3456 = arith.constant 3456 : index
    %84 = vector.load %arg7[%c0_43, %c3456] : memref<1x6144xf32, #tpu.memory_space<vmem>>, vector<1x96xf32>
    tpu.vector_store %arg7[%c0_43, %c3456], %83 {strides = array<i32>} : memref<1x6144xf32, #tpu.memory_space<vmem>>, vector<1x96xf32>,
    %85 = vector.extract_strided_slice %10 {offsets = [37, 0], sizes = [1, 96], strides = [1, 1]} : vector<64x128xf32> to vector<1x96xf32>
    %c0_44 = arith.constant 0 : index
    %c3552 = arith.constant 3552 : index
    %86 = vector.load %arg7[%c0_44, %c3552] : memref<1x6144xf32, #tpu.memory_space<vmem>>, vector<1x96xf32>
    tpu.vector_store %arg7[%c0_44, %c3552], %85 {strides = array<i32>} : memref<1x6144xf32, #tpu.memory_space<vmem>>, vector<1x96xf32>,
    %87 = vector.extract_strided_slice %10 {offsets = [38, 0], sizes = [1, 96], strides = [1, 1]} : vector<64x128xf32> to vector<1x96xf32>
    %c0_45 = arith.constant 0 : index
    %c3648 = arith.constant 3648 : index
    %88 = vector.load %arg7[%c0_45, %c3648] : memref<1x6144xf32, #tpu.memory_space<vmem>>, vector<1x96xf32>
    tpu.vector_store %arg7[%c0_45, %c3648], %87 {strides = array<i32>} : memref<1x6144xf32, #tpu.memory_space<vmem>>, vector<1x96xf32>,
    %89 = vector.extract_strided_slice %10 {offsets = [39, 0], sizes = [1, 96], strides = [1, 1]} : vector<64x128xf32> to vector<1x96xf32>
    %c0_46 = arith.constant 0 : index
    %c3744 = arith.constant 3744 : index
    %90 = vector.load %arg7[%c0_46, %c3744] : memref<1x6144xf32, #tpu.memory_space<vmem>>, vector<1x96xf32>
    tpu.vector_store %arg7[%c0_46, %c3744], %89 {strides = array<i32>} : memref<1x6144xf32, #tpu.memory_space<vmem>>, vector<1x96xf32>,
    %91 = vector.extract_strided_slice %10 {offsets = [40, 0], sizes = [1, 96], strides = [1, 1]} : vector<64x128xf32> to vector<1x96xf32>
    %c0_47 = arith.constant 0 : index
    %c3840 = arith.constant 3840 : index
    %92 = vector.load %arg7[%c0_47, %c3840] : memref<1x6144xf32, #tpu.memory_space<vmem>>, vector<1x96xf32>
    tpu.vector_store %arg7[%c0_47, %c3840], %91 {strides = array<i32>} : memref<1x6144xf32, #tpu.memory_space<vmem>>, vector<1x96xf32>,
    %93 = vector.extract_strided_slice %10 {offsets = [41, 0], sizes = [1, 96], strides = [1, 1]} : vector<64x128xf32> to vector<1x96xf32>
    %c0_48 = arith.constant 0 : index
    %c3936 = arith.constant 3936 : index
    %94 = vector.load %arg7[%c0_48, %c3936] : memref<1x6144xf32, #tpu.memory_space<vmem>>, vector<1x96xf32>
    tpu.vector_store %arg7[%c0_48, %c3936], %93 {strides = array<i32>} : memref<1x6144xf32, #tpu.memory_space<vmem>>, vector<1x96xf32>,
    %95 = vector.extract_strided_slice %10 {offsets = [42, 0], sizes = [1, 96], strides = [1, 1]} : vector<64x128xf32> to vector<1x96xf32>
    %c0_49 = arith.constant 0 : index
    %c4032 = arith.constant 4032 : index
    %96 = vector.load %arg7[%c0_49, %c4032] : memref<1x6144xf32, #tpu.memory_space<vmem>>, vector<1x96xf32>
    tpu.vector_store %arg7[%c0_49, %c4032], %95 {strides = array<i32>} : memref<1x6144xf32, #tpu.memory_space<vmem>>, vector<1x96xf32>,
    %97 = vector.extract_strided_slice %10 {offsets = [43, 0], sizes = [1, 96], strides = [1, 1]} : vector<64x128xf32> to vector<1x96xf32>
    %c0_50 = arith.constant 0 : index
    %c4128 = arith.constant 4128 : index
    %98 = vector.load %arg7[%c0_50, %c4128] : memref<1x6144xf32, #tpu.memory_space<vmem>>, vector<1x96xf32>
    tpu.vector_store %arg7[%c0_50, %c4128], %97 {strides = array<i32>} : memref<1x6144xf32, #tpu.memory_space<vmem>>, vector<1x96xf32>,
    %99 = vector.extract_strided_slice %10 {offsets = [44, 0], sizes = [1, 96], strides = [1, 1]} : vector<64x128xf32> to vector<1x96xf32>
    %c0_51 = arith.constant 0 : index
    %c4224 = arith.constant 4224 : index
    %100 = vector.load %arg7[%c0_51, %c4224] : memref<1x6144xf32, #tpu.memory_space<vmem>>, vector<1x96xf32>
    tpu.vector_store %arg7[%c0_51, %c4224], %99 {strides = array<i32>} : memref<1x6144xf32, #tpu.memory_space<vmem>>, vector<1x96xf32>,
    %101 = vector.extract_strided_slice %10 {offsets = [45, 0], sizes = [1, 96], strides = [1, 1]} : vector<64x128xf32> to vector<1x96xf32>
    %c0_52 = arith.constant 0 : index
    %c4320 = arith.constant 4320 : index
    %102 = vector.load %arg7[%c0_52, %c4320] : memref<1x6144xf32, #tpu.memory_space<vmem>>, vector<1x96xf32>
    tpu.vector_store %arg7[%c0_52, %c4320], %101 {strides = array<i32>} : memref<1x6144xf32, #tpu.memory_space<vmem>>, vector<1x96xf32>,
    %103 = vector.extract_strided_slice %10 {offsets = [46, 0], sizes = [1, 96], strides = [1, 1]} : vector<64x128xf32> to vector<1x96xf32>
    %c0_53 = arith.constant 0 : index
    %c4416 = arith.constant 4416 : index
    %104 = vector.load %arg7[%c0_53, %c4416] : memref<1x6144xf32, #tpu.memory_space<vmem>>, vector<1x96xf32>
    tpu.vector_store %arg7[%c0_53, %c4416], %103 {strides = array<i32>} : memref<1x6144xf32, #tpu.memory_space<vmem>>, vector<1x96xf32>,
    %105 = vector.extract_strided_slice %10 {offsets = [47, 0], sizes = [1, 96], strides = [1, 1]} : vector<64x128xf32> to vector<1x96xf32>
    %c0_54 = arith.constant 0 : index
    %c4512 = arith.constant 4512 : index
    %106 = vector.load %arg7[%c0_54, %c4512] : memref<1x6144xf32, #tpu.memory_space<vmem>>, vector<1x96xf32>
    tpu.vector_store %arg7[%c0_54, %c4512], %105 {strides = array<i32>} : memref<1x6144xf32, #tpu.memory_space<vmem>>, vector<1x96xf32>,
    %107 = vector.extract_strided_slice %10 {offsets = [48, 0], sizes = [1, 96], strides = [1, 1]} : vector<64x128xf32> to vector<1x96xf32>
    %c0_55 = arith.constant 0 : index
    %c4608 = arith.constant 4608 : index
    %108 = vector.load %arg7[%c0_55, %c4608] : memref<1x6144xf32, #tpu.memory_space<vmem>>, vector<1x96xf32>
    tpu.vector_store %arg7[%c0_55, %c4608], %107 {strides = array<i32>} : memref<1x6144xf32, #tpu.memory_space<vmem>>, vector<1x96xf32>,
    %109 = vector.extract_strided_slice %10 {offsets = [49, 0], sizes = [1, 96], strides = [1, 1]} : vector<64x128xf32> to vector<1x96xf32>
    %c0_56 = arith.constant 0 : index
    %c4704 = arith.constant 4704 : index
    %110 = vector.load %arg7[%c0_56, %c4704] : memref<1x6144xf32, #tpu.memory_space<vmem>>, vector<1x96xf32>
    tpu.vector_store %arg7[%c0_56, %c4704], %109 {strides = array<i32>} : memref<1x6144xf32, #tpu.memory_space<vmem>>, vector<1x96xf32>,
    %111 = vector.extract_strided_slice %10 {offsets = [50, 0], sizes = [1, 96], strides = [1, 1]} : vector<64x128xf32> to vector<1x96xf32>
    %c0_57 = arith.constant 0 : index
    %c4800 = arith.constant 4800 : index
    %112 = vector.load %arg7[%c0_57, %c4800] : memref<1x6144xf32, #tpu.memory_space<vmem>>, vector<1x96xf32>
    tpu.vector_store %arg7[%c0_57, %c4800], %111 {strides = array<i32>} : memref<1x6144xf32, #tpu.memory_space<vmem>>, vector<1x96xf32>,
    %113 = vector.extract_strided_slice %10 {offsets = [51, 0], sizes = [1, 96], strides = [1, 1]} : vector<64x128xf32> to vector<1x96xf32>
    %c0_58 = arith.constant 0 : index
    %c4896 = arith.constant 4896 : index
    %114 = vector.load %arg7[%c0_58, %c4896] : memref<1x6144xf32, #tpu.memory_space<vmem>>, vector<1x96xf32>
    tpu.vector_store %arg7[%c0_58, %c4896], %113 {strides = array<i32>} : memref<1x6144xf32, #tpu.memory_space<vmem>>, vector<1x96xf32>,
    %115 = vector.extract_strided_slice %10 {offsets = [52, 0], sizes = [1, 96], strides = [1, 1]} : vector<64x128xf32> to vector<1x96xf32>
    %c0_59 = arith.constant 0 : index
    %c4992 = arith.constant 4992 : index
    %116 = vector.load %arg7[%c0_59, %c4992] : memref<1x6144xf32, #tpu.memory_space<vmem>>, vector<1x96xf32>
    tpu.vector_store %arg7[%c0_59, %c4992], %115 {strides = array<i32>} : memref<1x6144xf32, #tpu.memory_space<vmem>>, vector<1x96xf32>,
    %117 = vector.extract_strided_slice %10 {offsets = [53, 0], sizes = [1, 96], strides = [1, 1]} : vector<64x128xf32> to vector<1x96xf32>
    %c0_60 = arith.constant 0 : index
    %c5088 = arith.constant 5088 : index
    %118 = vector.load %arg7[%c0_60, %c5088] : memref<1x6144xf32, #tpu.memory_space<vmem>>, vector<1x96xf32>
    tpu.vector_store %arg7[%c0_60, %c5088], %117 {strides = array<i32>} : memref<1x6144xf32, #tpu.memory_space<vmem>>, vector<1x96xf32>,
    %119 = vector.extract_strided_slice %10 {offsets = [54, 0], sizes = [1, 96], strides = [1, 1]} : vector<64x128xf32> to vector<1x96xf32>
    %c0_61 = arith.constant 0 : index
    %c5184 = arith.constant 5184 : index
    %120 = vector.load %arg7[%c0_61, %c5184] : memref<1x6144xf32, #tpu.memory_space<vmem>>, vector<1x96xf32>
    tpu.vector_store %arg7[%c0_61, %c5184], %119 {strides = array<i32>} : memref<1x6144xf32, #tpu.memory_space<vmem>>, vector<1x96xf32>,
    %121 = vector.extract_strided_slice %10 {offsets = [55, 0], sizes = [1, 96], strides = [1, 1]} : vector<64x128xf32> to vector<1x96xf32>
    %c0_62 = arith.constant 0 : index
    %c5280 = arith.constant 5280 : index
    %122 = vector.load %arg7[%c0_62, %c5280] : memref<1x6144xf32, #tpu.memory_space<vmem>>, vector<1x96xf32>
    tpu.vector_store %arg7[%c0_62, %c5280], %121 {strides = array<i32>} : memref<1x6144xf32, #tpu.memory_space<vmem>>, vector<1x96xf32>,
    %123 = vector.extract_strided_slice %10 {offsets = [56, 0], sizes = [1, 96], strides = [1, 1]} : vector<64x128xf32> to vector<1x96xf32>
    %c0_63 = arith.constant 0 : index
    %c5376 = arith.constant 5376 : index
    %124 = vector.load %arg7[%c0_63, %c5376] : memref<1x6144xf32, #tpu.memory_space<vmem>>, vector<1x96xf32>
    tpu.vector_store %arg7[%c0_63, %c5376], %123 {strides = array<i32>} : memref<1x6144xf32, #tpu.memory_space<vmem>>, vector<1x96xf32>,
    %125 = vector.extract_strided_slice %10 {offsets = [57, 0], sizes = [1, 96], strides = [1, 1]} : vector<64x128xf32> to vector<1x96xf32>
    %c0_64 = arith.constant 0 : index
    %c5472 = arith.constant 5472 : index
    %126 = vector.load %arg7[%c0_64, %c5472] : memref<1x6144xf32, #tpu.memory_space<vmem>>, vector<1x96xf32>
    tpu.vector_store %arg7[%c0_64, %c5472], %125 {strides = array<i32>} : memref<1x6144xf32, #tpu.memory_space<vmem>>, vector<1x96xf32>,
    %127 = vector.extract_strided_slice %10 {offsets = [58, 0], sizes = [1, 96], strides = [1, 1]} : vector<64x128xf32> to vector<1x96xf32>
    %c0_65 = arith.constant 0 : index
    %c5568 = arith.constant 5568 : index
    %128 = vector.load %arg7[%c0_65, %c5568] : memref<1x6144xf32, #tpu.memory_space<vmem>>, vector<1x96xf32>
    tpu.vector_store %arg7[%c0_65, %c5568], %127 {strides = array<i32>} : memref<1x6144xf32, #tpu.memory_space<vmem>>, vector<1x96xf32>,
    %129 = vector.extract_strided_slice %10 {offsets = [59, 0], sizes = [1, 96], strides = [1, 1]} : vector<64x128xf32> to vector<1x96xf32>
    %c0_66 = arith.constant 0 : index
    %c5664 = arith.constant 5664 : index
    %130 = vector.load %arg7[%c0_66, %c5664] : memref<1x6144xf32, #tpu.memory_space<vmem>>, vector<1x96xf32>
    tpu.vector_store %arg7[%c0_66, %c5664], %129 {strides = array<i32>} : memref<1x6144xf32, #tpu.memory_space<vmem>>, vector<1x96xf32>,
    %131 = vector.extract_strided_slice %10 {offsets = [60, 0], sizes = [1, 96], strides = [1, 1]} : vector<64x128xf32> to vector<1x96xf32>
    %c0_67 = arith.constant 0 : index
    %c5760 = arith.constant 5760 : index
    %132 = vector.load %arg7[%c0_67, %c5760] : memref<1x6144xf32, #tpu.memory_space<vmem>>, vector<1x96xf32>
    tpu.vector_store %arg7[%c0_67, %c5760], %131 {strides = array<i32>} : memref<1x6144xf32, #tpu.memory_space<vmem>>, vector<1x96xf32>,
    %133 = vector.extract_strided_slice %10 {offsets = [61, 0], sizes = [1, 96], strides = [1, 1]} : vector<64x128xf32> to vector<1x96xf32>
    %c0_68 = arith.constant 0 : index
    %c5856 = arith.constant 5856 : index
    %134 = vector.load %arg7[%c0_68, %c5856] : memref<1x6144xf32, #tpu.memory_space<vmem>>, vector<1x96xf32>
    tpu.vector_store %arg7[%c0_68, %c5856], %133 {strides = array<i32>} : memref<1x6144xf32, #tpu.memory_space<vmem>>, vector<1x96xf32>,
    %135 = vector.extract_strided_slice %10 {offsets = [62, 0], sizes = [1, 96], strides = [1, 1]} : vector<64x128xf32> to vector<1x96xf32>
    %c0_69 = arith.constant 0 : index
    %c5952 = arith.constant 5952 : index
    %136 = vector.load %arg7[%c0_69, %c5952] : memref<1x6144xf32, #tpu.memory_space<vmem>>, vector<1x96xf32>
    tpu.vector_store %arg7[%c0_69, %c5952], %135 {strides = array<i32>} : memref<1x6144xf32, #tpu.memory_space<vmem>>, vector<1x96xf32>,
    %137 = vector.extract_strided_slice %10 {offsets = [63, 0], sizes = [1, 96], strides = [1, 1]} : vector<64x128xf32> to vector<1x96xf32>
    %c0_70 = arith.constant 0 : index
    %c6048 = arith.constant 6048 : index
    %138 = vector.load %arg7[%c0_70, %c6048] : memref<1x6144xf32, #tpu.memory_space<vmem>>, vector<1x96xf32>
    tpu.vector_store %arg7[%c0_70, %c6048], %137 {strides = array<i32>} : memref<1x6144xf32, #tpu.memory_space<vmem>>, vector<1x96xf32>,
    tpu.wait_dma2 semaphore(%arg8 : memref<!tpu.dma_semaphore, #tpu.memory_space<semaphore_mem>>) src(%arg3 : memref<6144x192xbf16, #tpu.memory_space<any>>) dst(%arg6 : memref<6144x192xbf16, #tpu.memory_space<vmem>>)
    %c0_71 = arith.constant 0 : index
    %c0_72 = arith.constant 0 : index
    %139 = vector.load %arg7[%c0_71, %c0_72] : memref<1x6144xf32, #tpu.memory_space<vmem>>, vector<1x6144xf32>
    %140 = arith.truncf %139 : vector<1x6144xf32> to vector<1x6144xbf16>
    %c0_73 = arith.constant 0 : index
    %c0_74 = arith.constant 0 : index
    %141 = vector.load %arg6[%c0_73, %c0_74] : memref<6144x192xbf16, #tpu.memory_space<vmem>>, vector<6144x192xbf16>
    %cst_75 = arith.constant dense<0.000000e+00> : vector<1x192xf32>
    %142 = tpu.matmul %140, %141, %cst_75 {dimension_numbers = #tpu.dot_dimension_numbers<[1], [0], [0], [1], [0, 0, 1, 1], [], []>} : vector<1x6144xbf16>, vector<6144x192xbf16>, vector<1x192xf32> -> vector<1x192xf32>
    %c0_76 = arith.constant 0 : index
    %c0_77 = arith.constant 0 : index
    %143 = vector.load %arg4[%c0_76, %c0_77] : memref<1x64xf32, #tpu.memory_space<vmem>>, vector<1x64xf32>
    %144 = vector.shape_cast %143 : vector<1x64xf32> to vector<1x64xf32>
    %145 = vector.broadcast %144 : vector<1x64xf32> to vector<32x64xf32>
    %146 = tpu.iota {dimensions = array<i32: 0>} : vector<32x64xi32>
    %147 = vector.extract_strided_slice %142 {offsets = [0, 0], sizes = [1, 64], strides = [1, 1]} : vector<1x192xf32> to vector<1x64xf32>
    %148 = vector.shape_cast %147 : vector<1x64xf32> to vector<1x64xf32>
    %149 = vector.broadcast %148 : vector<1x64xf32> to vector<32x64xf32>
    %c18_i32 = arith.constant 18 : i32
    %150 = vector.broadcast %c18_i32 : i32 to vector<32x64xi32>
    %151 = arith.cmpi eq, %146, %150 : vector<32x64xi32>
    %152 = arith.addf %145, %149 : vector<32x64xf32>
    %153 = arith.select %151, %152, %145 : vector<32x64xi1>, vector<32x64xf32>
    %154 = vector.extract_strided_slice %142 {offsets = [0, 64], sizes = [1, 64], strides = [1, 1]} : vector<1x192xf32> to vector<1x64xf32>
    %155 = vector.shape_cast %154 : vector<1x64xf32> to vector<1x64xf32>
    %156 = vector.broadcast %155 : vector<1x64xf32> to vector<32x64xf32>
    %c14_i32 = arith.constant 14 : i32
    %157 = vector.broadcast %c14_i32 : i32 to vector<32x64xi32>
    %158 = arith.cmpi eq, %146, %157 : vector<32x64xi32>
    %159 = arith.addf %153, %156 : vector<32x64xf32>
    %160 = arith.select %158, %159, %153 : vector<32x64xi1>, vector<32x64xf32>
    %161 = vector.extract_strided_slice %142 {offsets = [0, 128], sizes = [1, 64], strides = [1, 1]} : vector<1x192xf32> to vector<1x64xf32>
    %162 = vector.shape_cast %161 : vector<1x64xf32> to vector<1x64xf32>
    %163 = vector.broadcast %162 : vector<1x64xf32> to vector<32x64xf32>
    %c10_i32 = arith.constant 10 : i32
    %164 = vector.broadcast %c10_i32 : i32 to vector<32x64xi32>
    %165 = arith.cmpi eq, %146, %164 : vector<32x64xi32>
    %166 = arith.addf %160, %163 : vector<32x64xf32>
    %167 = arith.select %165, %166, %160 : vector<32x64xi1>, vector<32x64xf32>
    %168 = arith.negf %167 : vector<32x64xf32>
    %169 = math.exp %168 : vector<32x64xf32>
    %cst_78 = arith.constant 1.000000e+00 : f32
    %170 = vector.broadcast %cst_78 : f32 to vector<32x64xf32>
    %171 = arith.addf %170, %169 : vector<32x64xf32>
    %172 = arith.divf %170, %171 : vector<32x64xf32>
    %173 = tpu.transpose %172, [1, 0] : vector<32x64xf32> -> vector<64x32xf32>
    %174 = vector.extract_strided_slice %173 {offsets = [0, 0], sizes = [64, 29], strides = [1, 1]} : vector<64x32xf32> to vector<64x29xf32>
    %c0_79 = arith.constant 0 : index
    %c0_80 = arith.constant 0 : index
    %175 = vector.load %arg5[%c0_79, %c0_80] : memref<64x29xf32, #tpu.memory_space<vmem>>, vector<64x29xf32>
    tpu.vector_store %arg5[%c0_79, %c0_80], %174 {strides = array<i32>} : memref<64x29xf32, #tpu.memory_space<vmem>>, vector<64x29xf32>,
    return
  }
}

</mosaic_0001>

<bundles_post_ra>
// kernel: model_forward.1
= control target key start
LH: loop header
LB: loop body
LE: loop exit
PB: predicated region body
PF: predicated region fallthrough
CT: control target
= control target key end

     0   :  { %s10515_s18 = smov [#allocation2]   ;;  %s10522_s22 = smov 0   ;;  %s12852_s0 = inlined_call_operand.vmem [shape: bf16[640,128], index: 0, kind: input, shape index: {}]   ;;  %s12853_s1 = inlined_call_operand.vmem [shape: bf16[64,640], index: 1, kind: input, shape index: {}]   ;;  %s12854_s2 = inlined_call_operand.vmem [shape: f32[64,1], index: 2, kind: input, shape index: {}]   ;;  %s12855_s3 = inlined_call_operand.vmem [shape: bf16[6144,192], index: 3, kind: input, shape index: {}]   ;;  %s12856_s4 = inlined_call_operand.vmem [shape: f32[1,64], index: 4, kind: input, shape index: {}]   ;;  %s12857_s5 = inlined_call_operand.vmem [shape: f32[64,29], index: 5, kind: output, shape index: {}]  }
   0x1   :  { %s12858_s21 = smov %s12855_s3  ;;  %s10524_s23 = smov 0  }
   0x2 LB: > { %v39_v0 = vld [vmem:[%s10470_s21] sm:$0xf]  ;;  %v41_v1 = vld [vmem:[%s10470_s21 + $0x4] sm:$0xf]  ;;  %v43_v2 = vld [vmem:[%s10470_s21 + $0x10] sm:$0xf]  ;;  %s10478_s23 = sphi %s10524_s23, %s35_s23   ;;  %s10474_s22 = sphi %s10522_s22, %s12859_s22   ;;  %s10470_s21 = sphi %s12858_s21, %s1580_s21   ;;  %s10466_s18 = sphi %s10515_s18, %s1581_s18  }
   0x3   : > { %40 = vst [vmem:[%s10466_s18] sm:$0xf] %v39_v0  ;;  %42 = vst [vmem:[%s10466_s18 + $0x8] sm:$0xf] %v41_v1  ;;  %v45_v3 = vld [vmem:[%s10470_s21 + $0x14] sm:$0xf]  ;;  %s1575_s24 = sadd.s32 1, %s10474_s22 }
   0x4   : > { %44 = vst [vmem:[%s10466_s18 + $0x10] sm:$0xf] %v43_v2  ;;  %v47_v4 = vld [vmem:[%s10470_s21 + $0x20] sm:$0xf]  ;;  %v49_v5 = vld [vmem:[%s10470_s21 + $0x24] sm:$0xf] }
   0x5   : > { %46 = vst [vmem:[%s10466_s18 + $0x18] sm:$0xf] %v45_v3  ;;  %48 = vst [vmem:[%s10466_s18 + $0x20] sm:$0xf] %v47_v4  ;;  %v51_v6 = vld [vmem:[%s10470_s21 + $0x30] sm:$0xf] }
   0x6   : > { %50 = vst [vmem:[%s10466_s18 + $0x28] sm:$0xf] %v49_v5  ;;  %v53_v7 = vld [vmem:[%s10470_s21 + $0x34] sm:$0xf]  ;;  %v55_v8 = vld [vmem:[%s10470_s21 + $0x40] sm:$0xf] }
   0x7   : > { %52 = vst [vmem:[%s10466_s18 + $0x30] sm:$0xf] %v51_v6  ;;  %54 = vst [vmem:[%s10466_s18 + $0x38] sm:$0xf] %v53_v7  ;;  %v57_v9 = vld [vmem:[%s10470_s21 + $0x44] sm:$0xf] }
   0x8   : > { %56 = vst [vmem:[%s10466_s18 + $0x40] sm:$0xf] %v55_v8  ;;  %v59_v10 = vld [vmem:[%s10470_s21 + $0x50] sm:$0xf]  ;;  %v61_v11 = vld [vmem:[%s10470_s21 + $0x54] sm:$0xf] }
   0x9   : > { %58 = vst [vmem:[%s10466_s18 + $0x48] sm:$0xf] %v57_v9  ;;  %60 = vst [vmem:[%s10466_s18 + $0x50] sm:$0xf] %v59_v10  ;;  %v63_v12 = vld [vmem:[%s10470_s21 + $0x60] sm:$0xf] }
   0xa   : > { %62 = vst [vmem:[%s10466_s18 + $0x58] sm:$0xf] %v61_v11  ;;  %v65_v13 = vld [vmem:[%s10470_s21 + $0x64] sm:$0xf]  ;;  %v67_v14 = vld [vmem:[%s10470_s21 + $0x70] sm:$0xf] }
   0xb   : > { %64 = vst [vmem:[%s10466_s18 + $0x60] sm:$0xf] %v63_v12  ;;  %66 = vst [vmem:[%s10466_s18 + $0x68] sm:$0xf] %v65_v13  ;;  %v69_v15 = vld [vmem:[%s10470_s21 + $0x74] sm:$0xf] }
   0xc   : > { %68 = vst [vmem:[%s10466_s18 + $0x70] sm:$0xf] %v67_v14  ;;  %v71_v16 = vld [vmem:[%s10470_s21 + $0x80] sm:$0xf]  ;;  %v73_v17 = vld [vmem:[%s10470_s21 + $0x84] sm:$0xf] }
   0xd   : > { %70 = vst [vmem:[%s10466_s18 + $0x78] sm:$0xf] %v69_v15  ;;  %72 = vst [vmem:[%s10466_s18 + $0x80] sm:$0xf] %v71_v16  ;;  %v75_v18 = vld [vmem:[%s10470_s21 + $0x90] sm:$0xf] }
   0xe   : > { %74 = vst [vmem:[%s10466_s18 + $0x88] sm:$0xf] %v73_v17  ;;  %v77_v19 = vld [vmem:[%s10470_s21 + $0x94] sm:$0xf]  ;;  %v79_v20 = vld [vmem:[%s10470_s21 + $0xa0] sm:$0xf] }
   0xf   : > { %76 = vst [vmem:[%s10466_s18 + $0x90] sm:$0xf] %v75_v18  ;;  %78 = vst [vmem:[%s10466_s18 + $0x98] sm:$0xf] %v77_v19  ;;  %v81_v21 = vld [vmem:[%s10470_s21 + $0xa4] sm:$0xf] }
  0x10   : > { %80 = vst [vmem:[%s10466_s18 + $0xa0] sm:$0xf] %v79_v20  ;;  %v83_v22 = vld [vmem:[%s10470_s21 + $0xb0] sm:$0xf]  ;;  %v85_v23 = vld [vmem:[%s10470_s21 + $0xb4] sm:$0xf] }
  0x11   : > { %82 = vst [vmem:[%s10466_s18 + $0xa8] sm:$0xf] %v81_v21  ;;  %84 = vst [vmem:[%s10466_s18 + $0xb0] sm:$0xf] %v83_v22  ;;  %v87_v24 = vld [vmem:[%s10470_s21 + $0xc0] sm:$0xf] }
  0x12   : > { %86 = vst [vmem:[%s10466_s18 + $0xb8] sm:$0xf] %v85_v23  ;;  %v89_v25 = vld [vmem:[%s10470_s21 + $0xc4] sm:$0xf]  ;;  %v91_v26 = vld [vmem:[%s10470_s21 + $0xd0] sm:$0xf] }
  0x13   : > { %88 = vst [vmem:[%s10466_s18 + $0xc0] sm:$0xf] %v87_v24  ;;  %90 = vst [vmem:[%s10466_s18 + $0xc8] sm:$0xf] %v89_v25  ;;  %v93_v27 = vld [vmem:[%s10470_s21 + $0xd4] sm:$0xf] }
  0x14   : > { %92 = vst [vmem:[%s10466_s18 + $0xd0] sm:$0xf] %v91_v26  ;;  %v95_v28 = vld [vmem:[%s10470_s21 + $0xe0] sm:$0xf]  ;;  %v97_v29 = vld [vmem:[%s10470_s21 + $0xe4] sm:$0xf] }
  0x15   : > { %94 = vst [vmem:[%s10466_s18 + $0xd8] sm:$0xf] %v93_v27  ;;  %96 = vst [vmem:[%s10466_s18 + $0xe0] sm:$0xf] %v95_v28  ;;  %v99_v30 = vld [vmem:[%s10470_s21 + $0xf0] sm:$0xf] }
  0x16   : > { %98 = vst [vmem:[%s10466_s18 + $0xe8] sm:$0xf] %v97_v29  ;;  %v101_v31 = vld [vmem:[%s10470_s21 + $0xf4] sm:$0xf]  ;;  %v103_v32 = vld [vmem:[%s10470_s21 + $0x100] sm:$0xf] }
  0x17   : > { %100 = vst [vmem:[%s10466_s18 + $0xf0] sm:$0xf] %v99_v30  ;;  %102 = vst [vmem:[%s10466_s18 + $0xf8] sm:$0xf] %v101_v31  ;;  %v105_v33 = vld [vmem:[%s10470_s21 + $0x104] sm:$0xf] }
  0x18   : > { %104 = vst [vmem:[%s10466_s18 + $0x100] sm:$0xf] %v103_v32  ;;  %v107_v34 = vld [vmem:[%s10470_s21 + $0x110] sm:$0xf]  ;;  %v109_v35 = vld [vmem:[%s10470_s21 + $0x114] sm:$0xf] }
  0x19   : > { %106 = vst [vmem:[%s10466_s18 + $0x108] sm:$0xf] %v105_v33  ;;  %108 = vst [vmem:[%s10466_s18 + $0x110] sm:$0xf] %v107_v34  ;;  %v111_v36 = vld [vmem:[%s10470_s21 + $0x120] sm:$0xf] }
  0x1a   : > { %110 = vst [vmem:[%s10466_s18 + $0x118] sm:$0xf] %v109_v35  ;;  %v113_v37 = vld [vmem:[%s10470_s21 + $0x124] sm:$0xf]  ;;  %v115_v38 = vld [vmem:[%s10470_s21 + $0x130] sm:$0xf] }
  0x1b   : > { %112 = vst [vmem:[%s10466_s18 + $0x120] sm:$0xf] %v111_v36  ;;  %114 = vst [vmem:[%s10466_s18 + $0x128] sm:$0xf] %v113_v37  ;;  %v117_v39 = vld [vmem:[%s10470_s21 + $0x134] sm:$0xf] }
  0x1c   : > { %116 = vst [vmem:[%s10466_s18 + $0x130] sm:$0xf] %v115_v38  ;;  %v119_v40 = vld [vmem:[%s10470_s21 + $0x140] sm:$0xf]  ;;  %v121_v41 = vld [vmem:[%s10470_s21 + $0x144] sm:$0xf] }
  0x1d   : > { %118 = vst [vmem:[%s10466_s18 + $0x138] sm:$0xf] %v117_v39  ;;  %120 = vst [vmem:[%s10466_s18 + $0x140] sm:$0xf] %v119_v40  ;;  %v123_v42 = vld [vmem:[%s10470_s21 + $0x150] sm:$0xf] }
  0x1e   : > { %122 = vst [vmem:[%s10466_s18 + $0x148] sm:$0xf] %v121_v41  ;;  %v125_v43 = vld [vmem:[%s10470_s21 + $0x154] sm:$0xf]  ;;  %v127_v44 = vld [vmem:[%s10470_s21 + $0x160] sm:$0xf] }
  0x1f   : > { %124 = vst [vmem:[%s10466_s18 + $0x150] sm:$0xf] %v123_v42  ;;  %126 = vst [vmem:[%s10466_s18 + $0x158] sm:$0xf] %v125_v43  ;;  %v129_v45 = vld [vmem:[%s10470_s21 + $0x164] sm:$0xf] }
  0x20   : > { %128 = vst [vmem:[%s10466_s18 + $0x160] sm:$0xf] %v127_v44  ;;  %v131_v46 = vld [vmem:[%s10470_s21 + $0x170] sm:$0xf]  ;;  %v133_v47 = vld [vmem:[%s10470_s21 + $0x174] sm:$0xf] }
  0x21   : > { %130 = vst [vmem:[%s10466_s18 + $0x168] sm:$0xf] %v129_v45  ;;  %132 = vst [vmem:[%s10466_s18 + $0x170] sm:$0xf] %v131_v46  ;;  %v135_v48 = vld [vmem:[%s10470_s21 + $0x180] sm:$0xf] }
  0x22   : > { %134 = vst [vmem:[%s10466_s18 + $0x178] sm:$0xf] %v133_v47  ;;  %v137_v49 = vld [vmem:[%s10470_s21 + $0x184] sm:$0xf]  ;;  %v139_v50 = vld [vmem:[%s10470_s21 + $0x190] sm:$0xf] }
  0x23   : > { %136 = vst [vmem:[%s10466_s18 + $0x180] sm:$0xf] %v135_v48  ;;  %138 = vst [vmem:[%s10466_s18 + $0x188] sm:$0xf] %v137_v49  ;;  %v141_v51 = vld [vmem:[%s10470_s21 + $0x194] sm:$0xf] }
  0x24   : > { %140 = vst [vmem:[%s10466_s18 + $0x190] sm:$0xf] %v139_v50  ;;  %v143_v52 = vld [vmem:[%s10470_s21 + $0x1a0] sm:$0xf]  ;;  %v145_v53 = vld [vmem:[%s10470_s21 + $0x1a4] sm:$0xf] }
  0x25   : > { %142 = vst [vmem:[%s10466_s18 + $0x198] sm:$0xf] %v141_v51  ;;  %144 = vst [vmem:[%s10466_s18 + $0x1a0] sm:$0xf] %v143_v52  ;;  %v147_v54 = vld [vmem:[%s10470_s21 + $0x1b0] sm:$0xf] }
  0x26   : > { %146 = vst [vmem:[%s10466_s18 + $0x1a8] sm:$0xf] %v145_v53  ;;  %v149_v55 = vld [vmem:[%s10470_s21 + $0x1b4] sm:$0xf]  ;;  %v151_v56 = vld [vmem:[%s10470_s21 + $0x1c0] sm:$0xf] }
  0x27   : > { %148 = vst [vmem:[%s10466_s18 + $0x1b0] sm:$0xf] %v147_v54  ;;  %150 = vst [vmem:[%s10466_s18 + $0x1b8] sm:$0xf] %v149_v55  ;;  %v153_v57 = vld [vmem:[%s10470_s21 + $0x1c4] sm:$0xf] }
  0x28   : > { %152 = vst [vmem:[%s10466_s18 + $0x1c0] sm:$0xf] %v151_v56  ;;  %v155_v58 = vld [vmem:[%s10470_s21 + $0x1d0] sm:$0xf]  ;;  %v157_v59 = vld [vmem:[%s10470_s21 + $0x1d4] sm:$0xf] }
  0x29   : > { %154 = vst [vmem:[%s10466_s18 + $0x1c8] sm:$0xf] %v153_v57  ;;  %156 = vst [vmem:[%s10466_s18 + $0x1d0] sm:$0xf] %v155_v58  ;;  %v159_v60 = vld [vmem:[%s10470_s21 + $0x1e0] sm:$0xf] }
  0x2a   : > { %158 = vst [vmem:[%s10466_s18 + $0x1d8] sm:$0xf] %v157_v59  ;;  %v161_v61 = vld [vmem:[%s10470_s21 + $0x1e4] sm:$0xf]  ;;  %v163_v62 = vld [vmem:[%s10470_s21 + $0x1f0] sm:$0xf] }
  0x2b   : > { %160 = vst [vmem:[%s10466_s18 + $0x1e0] sm:$0xf] %v159_v60  ;;  %162 = vst [vmem:[%s10466_s18 + $0x1e8] sm:$0xf] %v161_v61  ;;  %v165_v63 = vld [vmem:[%s10470_s21 + $0x1f4] sm:$0xf] }
  0x2c   : > { %164 = vst [vmem:[%s10466_s18 + $0x1f0] sm:$0xf] %v163_v62  ;;  %v167_v0 = vld [vmem:[%s10470_s21 + $0x200] sm:$0xf]  ;;  %v169_v1 = vld [vmem:[%s10470_s21 + $0x204] sm:$0xf] }
  0x2d   : > { %166 = vst [vmem:[%s10466_s18 + $0x1f8] sm:$0xf] %v165_v63  ;;  %168 = vst [vmem:[%s10466_s18 + $0x200] sm:$0xf] %v167_v0  ;;  %v171_v2 = vld [vmem:[%s10470_s21 + $0x210] sm:$0xf] }
  0x2e   : > { %170 = vst [vmem:[%s10466_s18 + $0x208] sm:$0xf] %v169_v1  ;;  %v173_v3 = vld [vmem:[%s10470_s21 + $0x214] sm:$0xf]  ;;  %v175_v4 = vld [vmem:[%s10470_s21 + $0x220] sm:$0xf] }
  0x2f   : > { %172 = vst [vmem:[%s10466_s18 + $0x210] sm:$0xf] %v171_v2  ;;  %174 = vst [vmem:[%s10466_s18 + $0x218] sm:$0xf] %v173_v3  ;;  %v177_v5 = vld [vmem:[%s10470_s21 + $0x224] sm:$0xf] }
  0x30   : > { %176 = vst [vmem:[%s10466_s18 + $0x220] sm:$0xf] %v175_v4  ;;  %v179_v6 = vld [vmem:[%s10470_s21 + $0x230] sm:$0xf]  ;;  %v181_v7 = vld [vmem:[%s10470_s21 + $0x234] sm:$0xf] }
  0x31   : > { %178 = vst [vmem:[%s10466_s18 + $0x228] sm:$0xf] %v177_v5  ;;  %180 = vst [vmem:[%s10466_s18 + $0x230] sm:$0xf] %v179_v6  ;;  %v183_v8 = vld [vmem:[%s10470_s21 + $0x240] sm:$0xf] }
  0x32   : > { %182 = vst [vmem:[%s10466_s18 + $0x238] sm:$0xf] %v181_v7  ;;  %v185_v9 = vld [vmem:[%s10470_s21 + $0x244] sm:$0xf]  ;;  %v187_v10 = vld [vmem:[%s10470_s21 + $0x250] sm:$0xf] }
  0x33   : > { %184 = vst [vmem:[%s10466_s18 + $0x240] sm:$0xf] %v183_v8  ;;  %186 = vst [vmem:[%s10466_s18 + $0x248] sm:$0xf] %v185_v9  ;;  %v189_v11 = vld [vmem:[%s10470_s21 + $0x254] sm:$0xf] }
  0x34   : > { %188 = vst [vmem:[%s10466_s18 + $0x250] sm:$0xf] %v187_v10  ;;  %v191_v12 = vld [vmem:[%s10470_s21 + $0x260] sm:$0xf]  ;;  %v193_v13 = vld [vmem:[%s10470_s21 + $0x264] sm:$0xf] }
  0x35   : > { %190 = vst [vmem:[%s10466_s18 + $0x258] sm:$0xf] %v189_v11  ;;  %192 = vst [vmem:[%s10466_s18 + $0x260] sm:$0xf] %v191_v12  ;;  %v195_v14 = vld [vmem:[%s10470_s21 + $0x270] sm:$0xf] }
  0x36   : > { %194 = vst [vmem:[%s10466_s18 + $0x268] sm:$0xf] %v193_v13  ;;  %v197_v15 = vld [vmem:[%s10470_s21 + $0x274] sm:$0xf]  ;;  %v199_v16 = vld [vmem:[%s10470_s21 + $0x280] sm:$0xf] }
  0x37   : > { %196 = vst [vmem:[%s10466_s18 + $0x270] sm:$0xf] %v195_v14  ;;  %198 = vst [vmem:[%s10466_s18 + $0x278] sm:$0xf] %v197_v15  ;;  %v201_v17 = vld [vmem:[%s10470_s21 + $0x284] sm:$0xf] }
  0x38   : > { %200 = vst [vmem:[%s10466_s18 + $0x280] sm:$0xf] %v199_v16  ;;  %v203_v18 = vld [vmem:[%s10470_s21 + $0x290] sm:$0xf]  ;;  %v205_v19 = vld [vmem:[%s10470_s21 + $0x294] sm:$0xf] }
  0x39   : > { %202 = vst [vmem:[%s10466_s18 + $0x288] sm:$0xf] %v201_v17  ;;  %204 = vst [vmem:[%s10466_s18 + $0x290] sm:$0xf] %v203_v18  ;;  %v207_v20 = vld [vmem:[%s10470_s21 + $0x2a0] sm:$0xf] }
  0x3a   : > { %206 = vst [vmem:[%s10466_s18 + $0x298] sm:$0xf] %v205_v19  ;;  %v209_v21 = vld [vmem:[%s10470_s21 + $0x2a4] sm:$0xf]  ;;  %v211_v22 = vld [vmem:[%s10470_s21 + $0x2b0] sm:$0xf] }
  0x3b   : > { %208 = vst [vmem:[%s10466_s18 + $0x2a0] sm:$0xf] %v207_v20  ;;  %210 = vst [vmem:[%s10466_s18 + $0x2a8] sm:$0xf] %v209_v21  ;;  %v213_v23 = vld [vmem:[%s10470_s21 + $0x2b4] sm:$0xf] }
  0x3c   : > { %212 = vst [vmem:[%s10466_s18 + $0x2b0] sm:$0xf] %v211_v22  ;;  %v215_v24 = vld [vmem:[%s10470_s21 + $0x2c0] sm:$0xf]  ;;  %v217_v25 = vld [vmem:[%s10470_s21 + $0x2c4] sm:$0xf] }
  0x3d   : > { %214 = vst [vmem:[%s10466_s18 + $0x2b8] sm:$0xf] %v213_v23  ;;  %216 = vst [vmem:[%s10466_s18 + $0x2c0] sm:$0xf] %v215_v24  ;;  %v219_v26 = vld [vmem:[%s10470_s21 + $0x2d0] sm:$0xf] }
  0x3e   : > { %218 = vst [vmem:[%s10466_s18 + $0x2c8] sm:$0xf] %v217_v25  ;;  %v221_v27 = vld [vmem:[%s10470_s21 + $0x2d4] sm:$0xf]  ;;  %v223_v28 = vld [vmem:[%s10470_s21 + $0x2e0] sm:$0xf] }
  0x3f   : > { %220 = vst [vmem:[%s10466_s18 + $0x2d0] sm:$0xf] %v219_v26  ;;  %222 = vst [vmem:[%s10466_s18 + $0x2d8] sm:$0xf] %v221_v27  ;;  %v225_v29 = vld [vmem:[%s10470_s21 + $0x2e4] sm:$0xf] }
  0x40   : > { %224 = vst [vmem:[%s10466_s18 + $0x2e0] sm:$0xf] %v223_v28  ;;  %v227_v30 = vld [vmem:[%s10470_s21 + $0x2f0] sm:$0xf]  ;;  %v229_v31 = vld [vmem:[%s10470_s21 + $0x2f4] sm:$0xf] }
  0x41   : > { %226 = vst [vmem:[%s10466_s18 + $0x2e8] sm:$0xf] %v225_v29  ;;  %228 = vst [vmem:[%s10466_s18 + $0x2f0] sm:$0xf] %v227_v30  ;;  %v231_v32 = vld [vmem:[%s10470_s21 + $0x300] sm:$0xf] }
  0x42   : > { %230 = vst [vmem:[%s10466_s18 + $0x2f8] sm:$0xf] %v229_v31  ;;  %v233_v33 = vld [vmem:[%s10470_s21 + $0x304] sm:$0xf]  ;;  %v235_v34 = vld [vmem:[%s10470_s21 + $0x310] sm:$0xf] }
  0x43   : > { %232 = vst [vmem:[%s10466_s18 + $0x300] sm:$0xf] %v231_v32  ;;  %234 = vst [vmem:[%s10466_s18 + $0x308] sm:$0xf] %v233_v33  ;;  %v237_v35 = vld [vmem:[%s10470_s21 + $0x314] sm:$0xf] }
  0x44   : > { %236 = vst [vmem:[%s10466_s18 + $0x310] sm:$0xf] %v235_v34  ;;  %v239_v36 = vld [vmem:[%s10470_s21 + $0x320] sm:$0xf]  ;;  %v241_v37 = vld [vmem:[%s10470_s21 + $0x324] sm:$0xf] }
  0x45   : > { %238 = vst [vmem:[%s10466_s18 + $0x318] sm:$0xf] %v237_v35  ;;  %240 = vst [vmem:[%s10466_s18 + $0x320] sm:$0xf] %v239_v36  ;;  %v243_v38 = vld [vmem:[%s10470_s21 + $0x330] sm:$0xf] }
  0x46   : > { %242 = vst [vmem:[%s10466_s18 + $0x328] sm:$0xf] %v241_v37  ;;  %v245_v39 = vld [vmem:[%s10470_s21 + $0x334] sm:$0xf]  ;;  %v247_v40 = vld [vmem:[%s10470_s21 + $0x340] sm:$0xf] }
  0x47   : > { %244 = vst [vmem:[%s10466_s18 + $0x330] sm:$0xf] %v243_v38  ;;  %246 = vst [vmem:[%s10466_s18 + $0x338] sm:$0xf] %v245_v39  ;;  %v249_v41 = vld [vmem:[%s10470_s21 + $0x344] sm:$0xf] }
  0x48   : > { %248 = vst [vmem:[%s10466_s18 + $0x340] sm:$0xf] %v247_v40  ;;  %v251_v42 = vld [vmem:[%s10470_s21 + $0x350] sm:$0xf]  ;;  %v253_v43 = vld [vmem:[%s10470_s21 + $0x354] sm:$0xf] }
  0x49   : > { %250 = vst [vmem:[%s10466_s18 + $0x348] sm:$0xf] %v249_v41  ;;  %252 = vst [vmem:[%s10466_s18 + $0x350] sm:$0xf] %v251_v42  ;;  %v255_v44 = vld [vmem:[%s10470_s21 + $0x360] sm:$0xf] }
  0x4a   : > { %254 = vst [vmem:[%s10466_s18 + $0x358] sm:$0xf] %v253_v43  ;;  %v257_v45 = vld [vmem:[%s10470_s21 + $0x364] sm:$0xf]  ;;  %v259_v46 = vld [vmem:[%s10470_s21 + $0x370] sm:$0xf] }
  0x4b   : > { %256 = vst [vmem:[%s10466_s18 + $0x360] sm:$0xf] %v255_v44  ;;  %258 = vst [vmem:[%s10466_s18 + $0x368] sm:$0xf] %v257_v45  ;;  %v261_v47 = vld [vmem:[%s10470_s21 + $0x374] sm:$0xf] }
  0x4c   : > { %260 = vst [vmem:[%s10466_s18 + $0x370] sm:$0xf] %v259_v46  ;;  %v263_v48 = vld [vmem:[%s10470_s21 + $0x380] sm:$0xf]  ;;  %v265_v49 = vld [vmem:[%s10470_s21 + $0x384] sm:$0xf] }
  0x4d   : > { %262 = vst [vmem:[%s10466_s18 + $0x378] sm:$0xf] %v261_v47  ;;  %264 = vst [vmem:[%s10466_s18 + $0x380] sm:$0xf] %v263_v48  ;;  %v267_v50 = vld [vmem:[%s10470_s21 + $0x390] sm:$0xf] }
  0x4e   : > { %266 = vst [vmem:[%s10466_s18 + $0x388] sm:$0xf] %v265_v49  ;;  %v269_v51 = vld [vmem:[%s10470_s21 + $0x394] sm:$0xf]  ;;  %v271_v52 = vld [vmem:[%s10470_s21 + $0x3a0] sm:$0xf] }
  0x4f   : > { %268 = vst [vmem:[%s10466_s18 + $0x390] sm:$0xf] %v267_v50  ;;  %270 = vst [vmem:[%s10466_s18 + $0x398] sm:$0xf] %v269_v51  ;;  %v273_v53 = vld [vmem:[%s10470_s21 + $0x3a4] sm:$0xf] }
  0x50   : > { %272 = vst [vmem:[%s10466_s18 + $0x3a0] sm:$0xf] %v271_v52  ;;  %v275_v54 = vld [vmem:[%s10470_s21 + $0x3b0] sm:$0xf]  ;;  %v277_v55 = vld [vmem:[%s10470_s21 + $0x3b4] sm:$0xf] }
  0x51   : > { %274 = vst [vmem:[%s10466_s18 + $0x3a8] sm:$0xf] %v273_v53  ;;  %276 = vst [vmem:[%s10466_s18 + $0x3b0] sm:$0xf] %v275_v54  ;;  %v279_v56 = vld [vmem:[%s10470_s21 + $0x3c0] sm:$0xf] }
  0x52   : > { %278 = vst [vmem:[%s10466_s18 + $0x3b8] sm:$0xf] %v277_v55  ;;  %v281_v57 = vld [vmem:[%s10470_s21 + $0x3c4] sm:$0xf]  ;;  %v283_v58 = vld [vmem:[%s10470_s21 + $0x3d0] sm:$0xf] }
  0x53   : > { %280 = vst [vmem:[%s10466_s18 + $0x3c0] sm:$0xf] %v279_v56  ;;  %282 = vst [vmem:[%s10466_s18 + $0x3c8] sm:$0xf] %v281_v57  ;;  %v285_v59 = vld [vmem:[%s10470_s21 + $0x3d4] sm:$0xf] }
  0x54   : > { %284 = vst [vmem:[%s10466_s18 + $0x3d0] sm:$0xf] %v283_v58  ;;  %v287_v60 = vld [vmem:[%s10470_s21 + $0x3e0] sm:$0xf]  ;;  %v289_v61 = vld [vmem:[%s10470_s21 + $0x3e4] sm:$0xf] }
  0x55   : > { %286 = vst [vmem:[%s10466_s18 + $0x3d8] sm:$0xf] %v285_v59  ;;  %288 = vst [vmem:[%s10466_s18 + $0x3e0] sm:$0xf] %v287_v60  ;;  %v291_v62 = vld [vmem:[%s10470_s21 + $0x3f0] sm:$0xf] }
  0x56   : > { %290 = vst [vmem:[%s10466_s18 + $0x3e8] sm:$0xf] %v289_v61  ;;  %v293_v63 = vld [vmem:[%s10470_s21 + $0x3f4] sm:$0xf]  ;;  %v295_v0 = vld [vmem:[%s10470_s21 + $0x400] sm:$0xf] }
  0x57   : > { %292 = vst [vmem:[%s10466_s18 + $0x3f0] sm:$0xf] %v291_v62  ;;  %294 = vst [vmem:[%s10466_s18 + $0x3f8] sm:$0xf] %v293_v63  ;;  %v297_v1 = vld [vmem:[%s10470_s21 + $0x404] sm:$0xf] }
  0x58   : > { %296 = vst [vmem:[%s10466_s18 + $0x400] sm:$0xf] %v295_v0  ;;  %v299_v2 = vld [vmem:[%s10470_s21 + $0x410] sm:$0xf]  ;;  %v301_v3 = vld [vmem:[%s10470_s21 + $0x414] sm:$0xf] }
  0x59   : > { %298 = vst [vmem:[%s10466_s18 + $0x408] sm:$0xf] %v297_v1  ;;  %300 = vst [vmem:[%s10466_s18 + $0x410] sm:$0xf] %v299_v2  ;;  %v303_v4 = vld [vmem:[%s10470_s21 + $0x420] sm:$0xf] }
  0x5a   : > { %302 = vst [vmem:[%s10466_s18 + $0x418] sm:$0xf] %v301_v3  ;;  %v305_v5 = vld [vmem:[%s10470_s21 + $0x424] sm:$0xf]  ;;  %v307_v6 = vld [vmem:[%s10470_s21 + $0x430] sm:$0xf] }
  0x5b   : > { %304 = vst [vmem:[%s10466_s18 + $0x420] sm:$0xf] %v303_v4  ;;  %306 = vst [vmem:[%s10466_s18 + $0x428] sm:$0xf] %v305_v5  ;;  %v309_v7 = vld [vmem:[%s10470_s21 + $0x434] sm:$0xf] }
  0x5c   : > { %308 = vst [vmem:[%s10466_s18 + $0x430] sm:$0xf] %v307_v6  ;;  %v311_v8 = vld [vmem:[%s10470_s21 + $0x440] sm:$0xf]  ;;  %v313_v9 = vld [vmem:[%s10470_s21 + $0x444] sm:$0xf] }
  0x5d   : > { %310 = vst [vmem:[%s10466_s18 + $0x438] sm:$0xf] %v309_v7  ;;  %312 = vst [vmem:[%s10466_s18 + $0x440] sm:$0xf] %v311_v8  ;;  %v315_v10 = vld [vmem:[%s10470_s21 + $0x450] sm:$0xf] }
  0x5e   : > { %314 = vst [vmem:[%s10466_s18 + $0x448] sm:$0xf] %v313_v9  ;;  %v317_v11 = vld [vmem:[%s10470_s21 + $0x454] sm:$0xf]  ;;  %v319_v12 = vld [vmem:[%s10470_s21 + $0x460] sm:$0xf] }
  0x5f   : > { %316 = vst [vmem:[%s10466_s18 + $0x450] sm:$0xf] %v315_v10  ;;  %318 = vst [vmem:[%s10466_s18 + $0x458] sm:$0xf] %v317_v11  ;;  %v321_v13 = vld [vmem:[%s10470_s21 + $0x464] sm:$0xf] }
  0x60   : > { %320 = vst [vmem:[%s10466_s18 + $0x460] sm:$0xf] %v319_v12  ;;  %v323_v14 = vld [vmem:[%s10470_s21 + $0x470] sm:$0xf]  ;;  %v325_v15 = vld [vmem:[%s10470_s21 + $0x474] sm:$0xf] }
  0x61   : > { %322 = vst [vmem:[%s10466_s18 + $0x468] sm:$0xf] %v321_v13  ;;  %324 = vst [vmem:[%s10466_s18 + $0x470] sm:$0xf] %v323_v14  ;;  %v327_v16 = vld [vmem:[%s10470_s21 + $0x480] sm:$0xf] }
  0x62   : > { %326 = vst [vmem:[%s10466_s18 + $0x478] sm:$0xf] %v325_v15  ;;  %v329_v17 = vld [vmem:[%s10470_s21 + $0x484] sm:$0xf]  ;;  %v331_v18 = vld [vmem:[%s10470_s21 + $0x490] sm:$0xf] }
  0x63   : > { %328 = vst [vmem:[%s10466_s18 + $0x480] sm:$0xf] %v327_v16  ;;  %330 = vst [vmem:[%s10466_s18 + $0x488] sm:$0xf] %v329_v17  ;;  %v333_v19 = vld [vmem:[%s10470_s21 + $0x494] sm:$0xf] }
  0x64   : > { %332 = vst [vmem:[%s10466_s18 + $0x490] sm:$0xf] %v331_v18  ;;  %v335_v20 = vld [vmem:[%s10470_s21 + $0x4a0] sm:$0xf]  ;;  %v337_v21 = vld [vmem:[%s10470_s21 + $0x4a4] sm:$0xf] }
  0x65   : > { %334 = vst [vmem:[%s10466_s18 + $0x498] sm:$0xf] %v333_v19  ;;  %336 = vst [vmem:[%s10466_s18 + $0x4a0] sm:$0xf] %v335_v20  ;;  %v339_v22 = vld [vmem:[%s10470_s21 + $0x4b0] sm:$0xf] }
  0x66   : > { %338 = vst [vmem:[%s10466_s18 + $0x4a8] sm:$0xf] %v337_v21  ;;  %v341_v23 = vld [vmem:[%s10470_s21 + $0x4b4] sm:$0xf]  ;;  %v343_v24 = vld [vmem:[%s10470_s21 + $0x4c0] sm:$0xf] }
  0x67   : > { %340 = vst [vmem:[%s10466_s18 + $0x4b0] sm:$0xf] %v339_v22  ;;  %342 = vst [vmem:[%s10466_s18 + $0x4b8] sm:$0xf] %v341_v23  ;;  %v345_v25 = vld [vmem:[%s10470_s21 + $0x4c4] sm:$0xf] }
  0x68   : > { %344 = vst [vmem:[%s10466_s18 + $0x4c0] sm:$0xf] %v343_v24  ;;  %v347_v26 = vld [vmem:[%s10470_s21 + $0x4d0] sm:$0xf]  ;;  %v349_v27 = vld [vmem:[%s10470_s21 + $0x4d4] sm:$0xf] }
  0x69   : > { %346 = vst [vmem:[%s10466_s18 + $0x4c8] sm:$0xf] %v345_v25  ;;  %348 = vst [vmem:[%s10466_s18 + $0x4d0] sm:$0xf] %v347_v26  ;;  %v351_v28 = vld [vmem:[%s10470_s21 + $0x4e0] sm:$0xf] }
  0x6a   : > { %350 = vst [vmem:[%s10466_s18 + $0x4d8] sm:$0xf] %v349_v27  ;;  %v353_v29 = vld [vmem:[%s10470_s21 + $0x4e4] sm:$0xf]  ;;  %v355_v30 = vld [vmem:[%s10470_s21 + $0x4f0] sm:$0xf] }
  0x6b   : > { %352 = vst [vmem:[%s10466_s18 + $0x4e0] sm:$0xf] %v351_v28  ;;  %354 = vst [vmem:[%s10466_s18 + $0x4e8] sm:$0xf] %v353_v29  ;;  %v357_v31 = vld [vmem:[%s10470_s21 + $0x4f4] sm:$0xf] }
  0x6c   : > { %356 = vst [vmem:[%s10466_s18 + $0x4f0] sm:$0xf] %v355_v30  ;;  %v359_v32 = vld [vmem:[%s10470_s21 + $0x500] sm:$0xf]  ;;  %v361_v33 = vld [vmem:[%s10470_s21 + $0x504] sm:$0xf] }
  0x6d   : > { %358 = vst [vmem:[%s10466_s18 + $0x4f8] sm:$0xf] %v357_v31  ;;  %360 = vst [vmem:[%s10466_s18 + $0x500] sm:$0xf] %v359_v32  ;;  %v363_v34 = vld [vmem:[%s10470_s21 + $0x510] sm:$0xf] }
  0x6e   : > { %362 = vst [vmem:[%s10466_s18 + $0x508] sm:$0xf] %v361_v33  ;;  %v365_v35 = vld [vmem:[%s10470_s21 + $0x514] sm:$0xf]  ;;  %v367_v36 = vld [vmem:[%s10470_s21 + $0x520] sm:$0xf] }
  0x6f   : > { %364 = vst [vmem:[%s10466_s18 + $0x510] sm:$0xf] %v363_v34  ;;  %366 = vst [vmem:[%s10466_s18 + $0x518] sm:$0xf] %v365_v35  ;;  %v369_v37 = vld [vmem:[%s10470_s21 + $0x524] sm:$0xf] }
  0x70   : > { %368 = vst [vmem:[%s10466_s18 + $0x520] sm:$0xf] %v367_v36  ;;  %v371_v38 = vld [vmem:[%s10470_s21 + $0x530] sm:$0xf]  ;;  %v373_v39 = vld [vmem:[%s10470_s21 + $0x534] sm:$0xf] }
  0x71   : > { %370 = vst [vmem:[%s10466_s18 + $0x528] sm:$0xf] %v369_v37  ;;  %372 = vst [vmem:[%s10466_s18 + $0x530] sm:$0xf] %v371_v38  ;;  %v375_v40 = vld [vmem:[%s10470_s21 + $0x540] sm:$0xf] }
  0x72   : > { %374 = vst [vmem:[%s10466_s18 + $0x538] sm:$0xf] %v373_v39  ;;  %v377_v41 = vld [vmem:[%s10470_s21 + $0x544] sm:$0xf]  ;;  %v379_v42 = vld [vmem:[%s10470_s21 + $0x550] sm:$0xf] }
  0x73   : > { %376 = vst [vmem:[%s10466_s18 + $0x540] sm:$0xf] %v375_v40  ;;  %378 = vst [vmem:[%s10466_s18 + $0x548] sm:$0xf] %v377_v41  ;;  %v381_v43 = vld [vmem:[%s10470_s21 + $0x554] sm:$0xf] }
  0x74   : > { %380 = vst [vmem:[%s10466_s18 + $0x550] sm:$0xf] %v379_v42  ;;  %v383_v44 = vld [vmem:[%s10470_s21 + $0x560] sm:$0xf]  ;;  %v385_v45 = vld [vmem:[%s10470_s21 + $0x564] sm:$0xf] }
  0x75   : > { %382 = vst [vmem:[%s10466_s18 + $0x558] sm:$0xf] %v381_v43  ;;  %384 = vst [vmem:[%s10466_s18 + $0x560] sm:$0xf] %v383_v44  ;;  %v387_v46 = vld [vmem:[%s10470_s21 + $0x570] sm:$0xf] }
  0x76   : > { %386 = vst [vmem:[%s10466_s18 + $0x568] sm:$0xf] %v385_v45  ;;  %v389_v47 = vld [vmem:[%s10470_s21 + $0x574] sm:$0xf]  ;;  %v391_v48 = vld [vmem:[%s10470_s21 + $0x580] sm:$0xf] }
  0x77   : > { %388 = vst [vmem:[%s10466_s18 + $0x570] sm:$0xf] %v387_v46  ;;  %390 = vst [vmem:[%s10466_s18 + $0x578] sm:$0xf] %v389_v47  ;;  %v393_v49 = vld [vmem:[%s10470_s21 + $0x584] sm:$0xf] }
  0x78   : > { %392 = vst [vmem:[%s10466_s18 + $0x580] sm:$0xf] %v391_v48  ;;  %v395_v50 = vld [vmem:[%s10470_s21 + $0x590] sm:$0xf]  ;;  %v397_v51 = vld [vmem:[%s10470_s21 + $0x594] sm:$0xf] }
  0x79   : > { %394 = vst [vmem:[%s10466_s18 + $0x588] sm:$0xf] %v393_v49  ;;  %396 = vst [vmem:[%s10466_s18 + $0x590] sm:$0xf] %v395_v50  ;;  %v399_v52 = vld [vmem:[%s10470_s21 + $0x5a0] sm:$0xf] }
  0x7a   : > { %398 = vst [vmem:[%s10466_s18 + $0x598] sm:$0xf] %v397_v51  ;;  %v401_v53 = vld [vmem:[%s10470_s21 + $0x5a4] sm:$0xf]  ;;  %v403_v54 = vld [vmem:[%s10470_s21 + $0x5b0] sm:$0xf] }
  0x7b   : > { %400 = vst [vmem:[%s10466_s18 + $0x5a0] sm:$0xf] %v399_v52  ;;  %402 = vst [vmem:[%s10466_s18 + $0x5a8] sm:$0xf] %v401_v53  ;;  %v405_v55 = vld [vmem:[%s10470_s21 + $0x5b4] sm:$0xf] }
  0x7c   : > { %404 = vst [vmem:[%s10466_s18 + $0x5b0] sm:$0xf] %v403_v54  ;;  %v407_v56 = vld [vmem:[%s10470_s21 + $0x5c0] sm:$0xf]  ;;  %v409_v57 = vld [vmem:[%s10470_s21 + $0x5c4] sm:$0xf] }
  0x7d   : > { %406 = vst [vmem:[%s10466_s18 + $0x5b8] sm:$0xf] %v405_v55  ;;  %408 = vst [vmem:[%s10466_s18 + $0x5c0] sm:$0xf] %v407_v56  ;;  %v411_v58 = vld [vmem:[%s10470_s21 + $0x5d0] sm:$0xf] }
  0x7e   : > { %410 = vst [vmem:[%s10466_s18 + $0x5c8] sm:$0xf] %v409_v57  ;;  %v413_v59 = vld [vmem:[%s10470_s21 + $0x5d4] sm:$0xf]  ;;  %v415_v60 = vld [vmem:[%s10470_s21 + $0x5e0] sm:$0xf] }
  0x7f   : > { %412 = vst [vmem:[%s10466_s18 + $0x5d0] sm:$0xf] %v411_v58  ;;  %414 = vst [vmem:[%s10466_s18 + $0x5d8] sm:$0xf] %v413_v59  ;;  %v417_v61 = vld [vmem:[%s10470_s21 + $0x5e4] sm:$0xf] }
  0x80   : > { %416 = vst [vmem:[%s10466_s18 + $0x5e0] sm:$0xf] %v415_v60  ;;  %v419_v62 = vld [vmem:[%s10470_s21 + $0x5f0] sm:$0xf]  ;;  %v421_v63 = vld [vmem:[%s10470_s21 + $0x5f4] sm:$0xf] }
  0x81   : > { %418 = vst [vmem:[%s10466_s18 + $0x5e8] sm:$0xf] %v417_v61  ;;  %420 = vst [vmem:[%s10466_s18 + $0x5f0] sm:$0xf] %v419_v62  ;;  %v423_v0 = vld [vmem:[%s10470_s21 + $0x600] sm:$0xf] }
  0x82   : > { %422 = vst [vmem:[%s10466_s18 + $0x5f8] sm:$0xf] %v421_v63  ;;  %v425_v1 = vld [vmem:[%s10470_s21 + $0x604] sm:$0xf]  ;;  %v427_v2 = vld [vmem:[%s10470_s21 + $0x610] sm:$0xf] }
  0x83   : > { %424 = vst [vmem:[%s10466_s18 + $0x600] sm:$0xf] %v423_v0  ;;  %426 = vst [vmem:[%s10466_s18 + $0x608] sm:$0xf] %v425_v1  ;;  %v429_v3 = vld [vmem:[%s10470_s21 + $0x614] sm:$0xf] }
  0x84   : > { %428 = vst [vmem:[%s10466_s18 + $0x610] sm:$0xf] %v427_v2  ;;  %v431_v4 = vld [vmem:[%s10470_s21 + $0x620] sm:$0xf]  ;;  %v433_v5 = vld [vmem:[%s10470_s21 + $0x624] sm:$0xf] }
  0x85   : > { %430 = vst [vmem:[%s10466_s18 + $0x618] sm:$0xf] %v429_v3  ;;  %432 = vst [vmem:[%s10466_s18 + $0x620] sm:$0xf] %v431_v4  ;;  %v435_v6 = vld [vmem:[%s10470_s21 + $0x630] sm:$0xf] }
  0x86   : > { %434 = vst [vmem:[%s10466_s18 + $0x628] sm:$0xf] %v433_v5  ;;  %v437_v7 = vld [vmem:[%s10470_s21 + $0x634] sm:$0xf]  ;;  %v439_v8 = vld [vmem:[%s10470_s21 + $0x640] sm:$0xf] }
  0x87   : > { %436 = vst [vmem:[%s10466_s18 + $0x630] sm:$0xf] %v435_v6  ;;  %438 = vst [vmem:[%s10466_s18 + $0x638] sm:$0xf] %v437_v7  ;;  %v441_v9 = vld [vmem:[%s10470_s21 + $0x644] sm:$0xf] }
  0x88   : > { %440 = vst [vmem:[%s10466_s18 + $0x640] sm:$0xf] %v439_v8  ;;  %v443_v10 = vld [vmem:[%s10470_s21 + $0x650] sm:$0xf]  ;;  %v445_v11 = vld [vmem:[%s10470_s21 + $0x654] sm:$0xf] }
  0x89   : > { %442 = vst [vmem:[%s10466_s18 + $0x648] sm:$0xf] %v441_v9  ;;  %444 = vst [vmem:[%s10466_s18 + $0x650] sm:$0xf] %v443_v10  ;;  %v447_v12 = vld [vmem:[%s10470_s21 + $0x660] sm:$0xf] }
  0x8a   : > { %446 = vst [vmem:[%s10466_s18 + $0x658] sm:$0xf] %v445_v11  ;;  %v449_v13 = vld [vmem:[%s10470_s21 + $0x664] sm:$0xf]  ;;  %v451_v14 = vld [vmem:[%s10470_s21 + $0x670] sm:$0xf] }
  0x8b   : > { %448 = vst [vmem:[%s10466_s18 + $0x660] sm:$0xf] %v447_v12  ;;  %450 = vst [vmem:[%s10466_s18 + $0x668] sm:$0xf] %v449_v13  ;;  %v453_v15 = vld [vmem:[%s10470_s21 + $0x674] sm:$0xf] }
  0x8c   : > { %452 = vst [vmem:[%s10466_s18 + $0x670] sm:$0xf] %v451_v14  ;;  %v455_v16 = vld [vmem:[%s10470_s21 + $0x680] sm:$0xf]  ;;  %v457_v17 = vld [vmem:[%s10470_s21 + $0x684] sm:$0xf] }
  0x8d   : > { %454 = vst [vmem:[%s10466_s18 + $0x678] sm:$0xf] %v453_v15  ;;  %456 = vst [vmem:[%s10466_s18 + $0x680] sm:$0xf] %v455_v16  ;;  %v459_v18 = vld [vmem:[%s10470_s21 + $0x690] sm:$0xf] }
  0x8e   : > { %458 = vst [vmem:[%s10466_s18 + $0x688] sm:$0xf] %v457_v17  ;;  %v461_v19 = vld [vmem:[%s10470_s21 + $0x694] sm:$0xf]  ;;  %v463_v20 = vld [vmem:[%s10470_s21 + $0x6a0] sm:$0xf] }
  0x8f   : > { %460 = vst [vmem:[%s10466_s18 + $0x690] sm:$0xf] %v459_v18  ;;  %462 = vst [vmem:[%s10466_s18 + $0x698] sm:$0xf] %v461_v19  ;;  %v465_v21 = vld [vmem:[%s10470_s21 + $0x6a4] sm:$0xf] }
  0x90   : > { %464 = vst [vmem:[%s10466_s18 + $0x6a0] sm:$0xf] %v463_v20  ;;  %v467_v22 = vld [vmem:[%s10470_s21 + $0x6b0] sm:$0xf]  ;;  %v469_v23 = vld [vmem:[%s10470_s21 + $0x6b4] sm:$0xf] }
  0x91   : > { %466 = vst [vmem:[%s10466_s18 + $0x6a8] sm:$0xf] %v465_v21  ;;  %468 = vst [vmem:[%s10466_s18 + $0x6b0] sm:$0xf] %v467_v22  ;;  %v471_v24 = vld [vmem:[%s10470_s21 + $0x6c0] sm:$0xf] }
  0x92   : > { %470 = vst [vmem:[%s10466_s18 + $0x6b8] sm:$0xf] %v469_v23  ;;  %v473_v25 = vld [vmem:[%s10470_s21 + $0x6c4] sm:$0xf]  ;;  %v475_v26 = vld [vmem:[%s10470_s21 + $0x6d0] sm:$0xf] }
  0x93   : > { %472 = vst [vmem:[%s10466_s18 + $0x6c0] sm:$0xf] %v471_v24  ;;  %474 = vst [vmem:[%s10466_s18 + $0x6c8] sm:$0xf] %v473_v25  ;;  %v477_v27 = vld [vmem:[%s10470_s21 + $0x6d4] sm:$0xf] }
  0x94   : > { %476 = vst [vmem:[%s10466_s18 + $0x6d0] sm:$0xf] %v475_v26  ;;  %v479_v28 = vld [vmem:[%s10470_s21 + $0x6e0] sm:$0xf]  ;;  %v481_v29 = vld [vmem:[%s10470_s21 + $0x6e4] sm:$0xf] }
  0x95   : > { %478 = vst [vmem:[%s10466_s18 + $0x6d8] sm:$0xf] %v477_v27  ;;  %480 = vst [vmem:[%s10466_s18 + $0x6e0] sm:$0xf] %v479_v28  ;;  %v483_v30 = vld [vmem:[%s10470_s21 + $0x6f0] sm:$0xf] }
  0x96   : > { %482 = vst [vmem:[%s10466_s18 + $0x6e8] sm:$0xf] %v481_v29  ;;  %v485_v31 = vld [vmem:[%s10470_s21 + $0x6f4] sm:$0xf]  ;;  %v487_v32 = vld [vmem:[%s10470_s21 + $0x700] sm:$0xf] }
  0x97   : > { %484 = vst [vmem:[%s10466_s18 + $0x6f0] sm:$0xf] %v483_v30  ;;  %486 = vst [vmem:[%s10466_s18 + $0x6f8] sm:$0xf] %v485_v31  ;;  %v489_v33 = vld [vmem:[%s10470_s21 + $0x704] sm:$0xf] }
  0x98   : > { %488 = vst [vmem:[%s10466_s18 + $0x700] sm:$0xf] %v487_v32  ;;  %v491_v34 = vld [vmem:[%s10470_s21 + $0x710] sm:$0xf]  ;;  %v493_v35 = vld [vmem:[%s10470_s21 + $0x714] sm:$0xf] }
  0x99   : > { %490 = vst [vmem:[%s10466_s18 + $0x708] sm:$0xf] %v489_v33  ;;  %492 = vst [vmem:[%s10466_s18 + $0x710] sm:$0xf] %v491_v34  ;;  %v495_v36 = vld [vmem:[%s10470_s21 + $0x720] sm:$0xf] }
  0x9a   : > { %494 = vst [vmem:[%s10466_s18 + $0x718] sm:$0xf] %v493_v35  ;;  %v497_v37 = vld [vmem:[%s10470_s21 + $0x724] sm:$0xf]  ;;  %v499_v38 = vld [vmem:[%s10470_s21 + $0x730] sm:$0xf] }
  0x9b   : > { %496 = vst [vmem:[%s10466_s18 + $0x720] sm:$0xf] %v495_v36  ;;  %498 = vst [vmem:[%s10466_s18 + $0x728] sm:$0xf] %v497_v37  ;;  %v501_v39 = vld [vmem:[%s10470_s21 + $0x734] sm:$0xf] }
  0x9c   : > { %500 = vst [vmem:[%s10466_s18 + $0x730] sm:$0xf] %v499_v38  ;;  %v503_v40 = vld [vmem:[%s10470_s21 + $0x740] sm:$0xf]  ;;  %v505_v41 = vld [vmem:[%s10470_s21 + $0x744] sm:$0xf] }
  0x9d   : > { %502 = vst [vmem:[%s10466_s18 + $0x738] sm:$0xf] %v501_v39  ;;  %504 = vst [vmem:[%s10466_s18 + $0x740] sm:$0xf] %v503_v40  ;;  %v507_v42 = vld [vmem:[%s10470_s21 + $0x750] sm:$0xf] }
  0x9e   : > { %506 = vst [vmem:[%s10466_s18 + $0x748] sm:$0xf] %v505_v41  ;;  %v509_v43 = vld [vmem:[%s10470_s21 + $0x754] sm:$0xf]  ;;  %v511_v44 = vld [vmem:[%s10470_s21 + $0x760] sm:$0xf] }
  0x9f   : > { %508 = vst [vmem:[%s10466_s18 + $0x750] sm:$0xf] %v507_v42  ;;  %510 = vst [vmem:[%s10466_s18 + $0x758] sm:$0xf] %v509_v43  ;;  %v513_v45 = vld [vmem:[%s10470_s21 + $0x764] sm:$0xf] }
  0xa0   : > { %512 = vst [vmem:[%s10466_s18 + $0x760] sm:$0xf] %v511_v44  ;;  %v515_v46 = vld [vmem:[%s10470_s21 + $0x770] sm:$0xf]  ;;  %v517_v47 = vld [vmem:[%s10470_s21 + $0x774] sm:$0xf] }
  0xa1   : > { %514 = vst [vmem:[%s10466_s18 + $0x768] sm:$0xf] %v513_v45  ;;  %516 = vst [vmem:[%s10466_s18 + $0x770] sm:$0xf] %v515_v46  ;;  %v519_v48 = vld [vmem:[%s10470_s21 + $0x780] sm:$0xf] }
  0xa2   : > { %518 = vst [vmem:[%s10466_s18 + $0x778] sm:$0xf] %v517_v47  ;;  %v521_v49 = vld [vmem:[%s10470_s21 + $0x784] sm:$0xf]  ;;  %v523_v50 = vld [vmem:[%s10470_s21 + $0x790] sm:$0xf] }
  0xa3   : > { %520 = vst [vmem:[%s10466_s18 + $0x780] sm:$0xf] %v519_v48  ;;  %522 = vst [vmem:[%s10466_s18 + $0x788] sm:$0xf] %v521_v49  ;;  %v525_v51 = vld [vmem:[%s10470_s21 + $0x794] sm:$0xf] }
  0xa4   : > { %524 = vst [vmem:[%s10466_s18 + $0x790] sm:$0xf] %v523_v50  ;;  %v527_v52 = vld [vmem:[%s10470_s21 + $0x7a0] sm:$0xf]  ;;  %v529_v53 = vld [vmem:[%s10470_s21 + $0x7a4] sm:$0xf] }
  0xa5   : > { %526 = vst [vmem:[%s10466_s18 + $0x798] sm:$0xf] %v525_v51  ;;  %528 = vst [vmem:[%s10466_s18 + $0x7a0] sm:$0xf] %v527_v52  ;;  %v531_v54 = vld [vmem:[%s10470_s21 + $0x7b0] sm:$0xf] }
  0xa6   : > { %530 = vst [vmem:[%s10466_s18 + $0x7a8] sm:$0xf] %v529_v53  ;;  %v533_v55 = vld [vmem:[%s10470_s21 + $0x7b4] sm:$0xf]  ;;  %v535_v56 = vld [vmem:[%s10470_s21 + $0x7c0] sm:$0xf] }
  0xa7   : > { %532 = vst [vmem:[%s10466_s18 + $0x7b0] sm:$0xf] %v531_v54  ;;  %534 = vst [vmem:[%s10466_s18 + $0x7b8] sm:$0xf] %v533_v55  ;;  %v537_v57 = vld [vmem:[%s10470_s21 + $0x7c4] sm:$0xf] }
  0xa8   : > { %536 = vst [vmem:[%s10466_s18 + $0x7c0] sm:$0xf] %v535_v56  ;;  %v539_v58 = vld [vmem:[%s10470_s21 + $0x7d0] sm:$0xf]  ;;  %v541_v59 = vld [vmem:[%s10470_s21 + $0x7d4] sm:$0xf] }
  0xa9   : > { %538 = vst [vmem:[%s10466_s18 + $0x7c8] sm:$0xf] %v537_v57  ;;  %540 = vst [vmem:[%s10466_s18 + $0x7d0] sm:$0xf] %v539_v58  ;;  %v543_v60 = vld [vmem:[%s10470_s21 + $0x7e0] sm:$0xf] }
  0xaa   : > { %542 = vst [vmem:[%s10466_s18 + $0x7d8] sm:$0xf] %v541_v59  ;;  %v545_v61 = vld [vmem:[%s10470_s21 + $0x7e4] sm:$0xf]  ;;  %v547_v62 = vld [vmem:[%s10470_s21 + $0x7f0] sm:$0xf] }
  0xab   : > { %544 = vst [vmem:[%s10466_s18 + $0x7e0] sm:$0xf] %v543_v60  ;;  %546 = vst [vmem:[%s10466_s18 + $0x7e8] sm:$0xf] %v545_v61  ;;  %v549_v63 = vld [vmem:[%s10470_s21 + $0x7f4] sm:$0xf] }
  0xac   : > { %548 = vst [vmem:[%s10466_s18 + $0x7f0] sm:$0xf] %v547_v62  ;;  %v551_v0 = vld [vmem:[%s10470_s21 + $0x800] sm:$0xf]  ;;  %v553_v1 = vld [vmem:[%s10470_s21 + $0x804] sm:$0xf] }
  0xad   : > { %550 = vst [vmem:[%s10466_s18 + $0x7f8] sm:$0xf] %v549_v63  ;;  %552 = vst [vmem:[%s10466_s18 + $0x800] sm:$0xf] %v551_v0  ;;  %v555_v2 = vld [vmem:[%s10470_s21 + $0x810] sm:$0xf] }
  0xae   : > { %554 = vst [vmem:[%s10466_s18 + $0x808] sm:$0xf] %v553_v1  ;;  %v557_v3 = vld [vmem:[%s10470_s21 + $0x814] sm:$0xf]  ;;  %v559_v4 = vld [vmem:[%s10470_s21 + $0x820] sm:$0xf] }
  0xaf   : > { %556 = vst [vmem:[%s10466_s18 + $0x810] sm:$0xf] %v555_v2  ;;  %558 = vst [vmem:[%s10466_s18 + $0x818] sm:$0xf] %v557_v3  ;;  %v561_v5 = vld [vmem:[%s10470_s21 + $0x824] sm:$0xf] }
  0xb0   : > { %560 = vst [vmem:[%s10466_s18 + $0x820] sm:$0xf] %v559_v4  ;;  %v563_v6 = vld [vmem:[%s10470_s21 + $0x830] sm:$0xf]  ;;  %v565_v7 = vld [vmem:[%s10470_s21 + $0x834] sm:$0xf] }
  0xb1   : > { %562 = vst [vmem:[%s10466_s18 + $0x828] sm:$0xf] %v561_v5  ;;  %564 = vst [vmem:[%s10466_s18 + $0x830] sm:$0xf] %v563_v6  ;;  %v567_v8 = vld [vmem:[%s10470_s21 + $0x840] sm:$0xf] }
  0xb2   : > { %566 = vst [vmem:[%s10466_s18 + $0x838] sm:$0xf] %v565_v7  ;;  %v569_v9 = vld [vmem:[%s10470_s21 + $0x844] sm:$0xf]  ;;  %v571_v10 = vld [vmem:[%s10470_s21 + $0x850] sm:$0xf] }
  0xb3   : > { %568 = vst [vmem:[%s10466_s18 + $0x840] sm:$0xf] %v567_v8  ;;  %570 = vst [vmem:[%s10466_s18 + $0x848] sm:$0xf] %v569_v9  ;;  %v573_v11 = vld [vmem:[%s10470_s21 + $0x854] sm:$0xf] }
  0xb4   : > { %572 = vst [vmem:[%s10466_s18 + $0x850] sm:$0xf] %v571_v10  ;;  %v575_v12 = vld [vmem:[%s10470_s21 + $0x860] sm:$0xf]  ;;  %v577_v13 = vld [vmem:[%s10470_s21 + $0x864] sm:$0xf] }
  0xb5   : > { %574 = vst [vmem:[%s10466_s18 + $0x858] sm:$0xf] %v573_v11  ;;  %576 = vst [vmem:[%s10466_s18 + $0x860] sm:$0xf] %v575_v12  ;;  %v579_v14 = vld [vmem:[%s10470_s21 + $0x870] sm:$0xf] }
  0xb6   : > { %578 = vst [vmem:[%s10466_s18 + $0x868] sm:$0xf] %v577_v13  ;;  %v581_v15 = vld [vmem:[%s10470_s21 + $0x874] sm:$0xf]  ;;  %v583_v16 = vld [vmem:[%s10470_s21 + $0x880] sm:$0xf] }
  0xb7   : > { %580 = vst [vmem:[%s10466_s18 + $0x870] sm:$0xf] %v579_v14  ;;  %582 = vst [vmem:[%s10466_s18 + $0x878] sm:$0xf] %v581_v15  ;;  %v585_v17 = vld [vmem:[%s10470_s21 + $0x884] sm:$0xf] }
  0xb8   : > { %584 = vst [vmem:[%s10466_s18 + $0x880] sm:$0xf] %v583_v16  ;;  %v587_v18 = vld [vmem:[%s10470_s21 + $0x890] sm:$0xf]  ;;  %v589_v19 = vld [vmem:[%s10470_s21 + $0x894] sm:$0xf] }
  0xb9   : > { %586 = vst [vmem:[%s10466_s18 + $0x888] sm:$0xf] %v585_v17  ;;  %588 = vst [vmem:[%s10466_s18 + $0x890] sm:$0xf] %v587_v18  ;;  %v591_v20 = vld [vmem:[%s10470_s21 + $0x8a0] sm:$0xf] }
  0xba   : > { %590 = vst [vmem:[%s10466_s18 + $0x898] sm:$0xf] %v589_v19  ;;  %v593_v21 = vld [vmem:[%s10470_s21 + $0x8a4] sm:$0xf]  ;;  %v595_v22 = vld [vmem:[%s10470_s21 + $0x8b0] sm:$0xf] }
  0xbb   : > { %592 = vst [vmem:[%s10466_s18 + $0x8a0] sm:$0xf] %v591_v20  ;;  %594 = vst [vmem:[%s10466_s18 + $0x8a8] sm:$0xf] %v593_v21  ;;  %v597_v23 = vld [vmem:[%s10470_s21 + $0x8b4] sm:$0xf] }
  0xbc   : > { %596 = vst [vmem:[%s10466_s18 + $0x8b0] sm:$0xf] %v595_v22  ;;  %v599_v24 = vld [vmem:[%s10470_s21 + $0x8c0] sm:$0xf]  ;;  %v601_v25 = vld [vmem:[%s10470_s21 + $0x8c4] sm:$0xf] }
  0xbd   : > { %598 = vst [vmem:[%s10466_s18 + $0x8b8] sm:$0xf] %v597_v23  ;;  %600 = vst [vmem:[%s10466_s18 + $0x8c0] sm:$0xf] %v599_v24  ;;  %v603_v26 = vld [vmem:[%s10470_s21 + $0x8d0] sm:$0xf] }
  0xbe   : > { %602 = vst [vmem:[%s10466_s18 + $0x8c8] sm:$0xf] %v601_v25  ;;  %v605_v27 = vld [vmem:[%s10470_s21 + $0x8d4] sm:$0xf]  ;;  %v607_v28 = vld [vmem:[%s10470_s21 + $0x8e0] sm:$0xf] }
  0xbf   : > { %604 = vst [vmem:[%s10466_s18 + $0x8d0] sm:$0xf] %v603_v26  ;;  %606 = vst [vmem:[%s10466_s18 + $0x8d8] sm:$0xf] %v605_v27  ;;  %v609_v29 = vld [vmem:[%s10470_s21 + $0x8e4] sm:$0xf] }
  0xc0   : > { %608 = vst [vmem:[%s10466_s18 + $0x8e0] sm:$0xf] %v607_v28  ;;  %v611_v30 = vld [vmem:[%s10470_s21 + $0x8f0] sm:$0xf]  ;;  %v613_v31 = vld [vmem:[%s10470_s21 + $0x8f4] sm:$0xf] }
  0xc1   : > { %610 = vst [vmem:[%s10466_s18 + $0x8e8] sm:$0xf] %v609_v29  ;;  %612 = vst [vmem:[%s10466_s18 + $0x8f0] sm:$0xf] %v611_v30  ;;  %v615_v32 = vld [vmem:[%s10470_s21 + $0x900] sm:$0xf] }
  0xc2   : > { %614 = vst [vmem:[%s10466_s18 + $0x8f8] sm:$0xf] %v613_v31  ;;  %v617_v33 = vld [vmem:[%s10470_s21 + $0x904] sm:$0xf]  ;;  %v619_v34 = vld [vmem:[%s10470_s21 + $0x910] sm:$0xf] }
  0xc3   : > { %616 = vst [vmem:[%s10466_s18 + $0x900] sm:$0xf] %v615_v32  ;;  %618 = vst [vmem:[%s10466_s18 + $0x908] sm:$0xf] %v617_v33  ;;  %v621_v35 = vld [vmem:[%s10470_s21 + $0x914] sm:$0xf] }
  0xc4   : > { %620 = vst [vmem:[%s10466_s18 + $0x910] sm:$0xf] %v619_v34  ;;  %v623_v36 = vld [vmem:[%s10470_s21 + $0x920] sm:$0xf]  ;;  %v625_v37 = vld [vmem:[%s10470_s21 + $0x924] sm:$0xf] }
  0xc5   : > { %622 = vst [vmem:[%s10466_s18 + $0x918] sm:$0xf] %v621_v35  ;;  %624 = vst [vmem:[%s10466_s18 + $0x920] sm:$0xf] %v623_v36  ;;  %v627_v38 = vld [vmem:[%s10470_s21 + $0x930] sm:$0xf] }
  0xc6   : > { %626 = vst [vmem:[%s10466_s18 + $0x928] sm:$0xf] %v625_v37  ;;  %v629_v39 = vld [vmem:[%s10470_s21 + $0x934] sm:$0xf]  ;;  %v631_v40 = vld [vmem:[%s10470_s21 + $0x940] sm:$0xf] }
  0xc7   : > { %628 = vst [vmem:[%s10466_s18 + $0x930] sm:$0xf] %v627_v38  ;;  %630 = vst [vmem:[%s10466_s18 + $0x938] sm:$0xf] %v629_v39  ;;  %v633_v41 = vld [vmem:[%s10470_s21 + $0x944] sm:$0xf] }
  0xc8   : > { %632 = vst [vmem:[%s10466_s18 + $0x940] sm:$0xf] %v631_v40  ;;  %v635_v42 = vld [vmem:[%s10470_s21 + $0x950] sm:$0xf]  ;;  %v637_v43 = vld [vmem:[%s10470_s21 + $0x954] sm:$0xf] }
  0xc9   : > { %634 = vst [vmem:[%s10466_s18 + $0x948] sm:$0xf] %v633_v41  ;;  %636 = vst [vmem:[%s10466_s18 + $0x950] sm:$0xf] %v635_v42  ;;  %v639_v44 = vld [vmem:[%s10470_s21 + $0x960] sm:$0xf] }
  0xca   : > { %638 = vst [vmem:[%s10466_s18 + $0x958] sm:$0xf] %v637_v43  ;;  %v641_v45 = vld [vmem:[%s10470_s21 + $0x964] sm:$0xf]  ;;  %v643_v46 = vld [vmem:[%s10470_s21 + $0x970] sm:$0xf] }
  0xcb   : > { %640 = vst [vmem:[%s10466_s18 + $0x960] sm:$0xf] %v639_v44  ;;  %642 = vst [vmem:[%s10466_s18 + $0x968] sm:$0xf] %v641_v45  ;;  %v645_v47 = vld [vmem:[%s10470_s21 + $0x974] sm:$0xf] }
  0xcc   : > { %644 = vst [vmem:[%s10466_s18 + $0x970] sm:$0xf] %v643_v46  ;;  %v647_v48 = vld [vmem:[%s10470_s21 + $0x980] sm:$0xf]  ;;  %v649_v49 = vld [vmem:[%s10470_s21 + $0x984] sm:$0xf] }
  0xcd   : > { %646 = vst [vmem:[%s10466_s18 + $0x978] sm:$0xf] %v645_v47  ;;  %648 = vst [vmem:[%s10466_s18 + $0x980] sm:$0xf] %v647_v48  ;;  %v651_v50 = vld [vmem:[%s10470_s21 + $0x990] sm:$0xf] }
  0xce   : > { %650 = vst [vmem:[%s10466_s18 + $0x988] sm:$0xf] %v649_v49  ;;  %v653_v51 = vld [vmem:[%s10470_s21 + $0x994] sm:$0xf]  ;;  %v655_v52 = vld [vmem:[%s10470_s21 + $0x9a0] sm:$0xf] }
  0xcf   : > { %652 = vst [vmem:[%s10466_s18 + $0x990] sm:$0xf] %v651_v50  ;;  %654 = vst [vmem:[%s10466_s18 + $0x998] sm:$0xf] %v653_v51  ;;  %v657_v53 = vld [vmem:[%s10470_s21 + $0x9a4] sm:$0xf] }
  0xd0   : > { %656 = vst [vmem:[%s10466_s18 + $0x9a0] sm:$0xf] %v655_v52  ;;  %v659_v54 = vld [vmem:[%s10470_s21 + $0x9b0] sm:$0xf]  ;;  %v661_v55 = vld [vmem:[%s10470_s21 + $0x9b4] sm:$0xf] }
  0xd1   : > { %658 = vst [vmem:[%s10466_s18 + $0x9a8] sm:$0xf] %v657_v53  ;;  %660 = vst [vmem:[%s10466_s18 + $0x9b0] sm:$0xf] %v659_v54  ;;  %v663_v56 = vld [vmem:[%s10470_s21 + $0x9c0] sm:$0xf] }
  0xd2   : > { %662 = vst [vmem:[%s10466_s18 + $0x9b8] sm:$0xf] %v661_v55  ;;  %v665_v57 = vld [vmem:[%s10470_s21 + $0x9c4] sm:$0xf]  ;;  %v667_v58 = vld [vmem:[%s10470_s21 + $0x9d0] sm:$0xf] }
  0xd3   : > { %664 = vst [vmem:[%s10466_s18 + $0x9c0] sm:$0xf] %v663_v56  ;;  %666 = vst [vmem:[%s10466_s18 + $0x9c8] sm:$0xf] %v665_v57  ;;  %v669_v59 = vld [vmem:[%s10470_s21 + $0x9d4] sm:$0xf] }
  0xd4   : > { %668 = vst [vmem:[%s10466_s18 + $0x9d0] sm:$0xf] %v667_v58  ;;  %v671_v60 = vld [vmem:[%s10470_s21 + $0x9e0] sm:$0xf]  ;;  %v673_v61 = vld [vmem:[%s10470_s21 + $0x9e4] sm:$0xf] }
  0xd5   : > { %670 = vst [vmem:[%s10466_s18 + $0x9d8] sm:$0xf] %v669_v59  ;;  %672 = vst [vmem:[%s10466_s18 + $0x9e0] sm:$0xf] %v671_v60  ;;  %v675_v62 = vld [vmem:[%s10470_s21 + $0x9f0] sm:$0xf] }
  0xd6   : > { %674 = vst [vmem:[%s10466_s18 + $0x9e8] sm:$0xf] %v673_v61  ;;  %v677_v63 = vld [vmem:[%s10470_s21 + $0x9f4] sm:$0xf]  ;;  %v679_v0 = vld [vmem:[%s10470_s21 + $0xa00] sm:$0xf] }
  0xd7   : > { %676 = vst [vmem:[%s10466_s18 + $0x9f0] sm:$0xf] %v675_v62  ;;  %678 = vst [vmem:[%s10466_s18 + $0x9f8] sm:$0xf] %v677_v63  ;;  %v681_v1 = vld [vmem:[%s10470_s21 + $0xa04] sm:$0xf] }
  0xd8   : > { %680 = vst [vmem:[%s10466_s18 + $0xa00] sm:$0xf] %v679_v0  ;;  %v683_v2 = vld [vmem:[%s10470_s21 + $0xa10] sm:$0xf]  ;;  %v685_v3 = vld [vmem:[%s10470_s21 + $0xa14] sm:$0xf] }
  0xd9   : > { %682 = vst [vmem:[%s10466_s18 + $0xa08] sm:$0xf] %v681_v1  ;;  %684 = vst [vmem:[%s10466_s18 + $0xa10] sm:$0xf] %v683_v2  ;;  %v687_v4 = vld [vmem:[%s10470_s21 + $0xa20] sm:$0xf] }
  0xda   : > { %686 = vst [vmem:[%s10466_s18 + $0xa18] sm:$0xf] %v685_v3  ;;  %v689_v5 = vld [vmem:[%s10470_s21 + $0xa24] sm:$0xf]  ;;  %v691_v6 = vld [vmem:[%s10470_s21 + $0xa30] sm:$0xf] }
  0xdb   : > { %688 = vst [vmem:[%s10466_s18 + $0xa20] sm:$0xf] %v687_v4  ;;  %690 = vst [vmem:[%s10466_s18 + $0xa28] sm:$0xf] %v689_v5  ;;  %v693_v7 = vld [vmem:[%s10470_s21 + $0xa34] sm:$0xf] }
  0xdc   : > { %692 = vst [vmem:[%s10466_s18 + $0xa30] sm:$0xf] %v691_v6  ;;  %v695_v8 = vld [vmem:[%s10470_s21 + $0xa40] sm:$0xf]  ;;  %v697_v9 = vld [vmem:[%s10470_s21 + $0xa44] sm:$0xf] }
  0xdd   : > { %694 = vst [vmem:[%s10466_s18 + $0xa38] sm:$0xf] %v693_v7  ;;  %696 = vst [vmem:[%s10466_s18 + $0xa40] sm:$0xf] %v695_v8  ;;  %v699_v10 = vld [vmem:[%s10470_s21 + $0xa50] sm:$0xf] }
  0xde   : > { %698 = vst [vmem:[%s10466_s18 + $0xa48] sm:$0xf] %v697_v9  ;;  %v701_v11 = vld [vmem:[%s10470_s21 + $0xa54] sm:$0xf]  ;;  %v703_v12 = vld [vmem:[%s10470_s21 + $0xa60] sm:$0xf] }
  0xdf   : > { %700 = vst [vmem:[%s10466_s18 + $0xa50] sm:$0xf] %v699_v10  ;;  %702 = vst [vmem:[%s10466_s18 + $0xa58] sm:$0xf] %v701_v11  ;;  %v705_v13 = vld [vmem:[%s10470_s21 + $0xa64] sm:$0xf] }
  0xe0   : > { %704 = vst [vmem:[%s10466_s18 + $0xa60] sm:$0xf] %v703_v12  ;;  %v707_v14 = vld [vmem:[%s10470_s21 + $0xa70] sm:$0xf]  ;;  %v709_v15 = vld [vmem:[%s10470_s21 + $0xa74] sm:$0xf] }
  0xe1   : > { %706 = vst [vmem:[%s10466_s18 + $0xa68] sm:$0xf] %v705_v13  ;;  %708 = vst [vmem:[%s10466_s18 + $0xa70] sm:$0xf] %v707_v14  ;;  %v711_v16 = vld [vmem:[%s10470_s21 + $0xa80] sm:$0xf] }
  0xe2   : > { %710 = vst [vmem:[%s10466_s18 + $0xa78] sm:$0xf] %v709_v15  ;;  %v713_v17 = vld [vmem:[%s10470_s21 + $0xa84] sm:$0xf]  ;;  %v715_v18 = vld [vmem:[%s10470_s21 + $0xa90] sm:$0xf] }
  0xe3   : > { %712 = vst [vmem:[%s10466_s18 + $0xa80] sm:$0xf] %v711_v16  ;;  %714 = vst [vmem:[%s10466_s18 + $0xa88] sm:$0xf] %v713_v17  ;;  %v717_v19 = vld [vmem:[%s10470_s21 + $0xa94] sm:$0xf] }
  0xe4   : > { %716 = vst [vmem:[%s10466_s18 + $0xa90] sm:$0xf] %v715_v18  ;;  %v719_v20 = vld [vmem:[%s10470_s21 + $0xaa0] sm:$0xf]  ;;  %v721_v21 = vld [vmem:[%s10470_s21 + $0xaa4] sm:$0xf] }
  0xe5   : > { %718 = vst [vmem:[%s10466_s18 + $0xa98] sm:$0xf] %v717_v19  ;;  %720 = vst [vmem:[%s10466_s18 + $0xaa0] sm:$0xf] %v719_v20  ;;  %v723_v22 = vld [vmem:[%s10470_s21 + $0xab0] sm:$0xf] }
  0xe6   : > { %722 = vst [vmem:[%s10466_s18 + $0xaa8] sm:$0xf] %v721_v21  ;;  %v725_v23 = vld [vmem:[%s10470_s21 + $0xab4] sm:$0xf]  ;;  %v727_v24 = vld [vmem:[%s10470_s21 + $0xac0] sm:$0xf] }
  0xe7   : > { %724 = vst [vmem:[%s10466_s18 + $0xab0] sm:$0xf] %v723_v22  ;;  %726 = vst [vmem:[%s10466_s18 + $0xab8] sm:$0xf] %v725_v23  ;;  %v729_v25 = vld [vmem:[%s10470_s21 + $0xac4] sm:$0xf] }
  0xe8   : > { %728 = vst [vmem:[%s10466_s18 + $0xac0] sm:$0xf] %v727_v24  ;;  %v731_v26 = vld [vmem:[%s10470_s21 + $0xad0] sm:$0xf]  ;;  %v733_v27 = vld [vmem:[%s10470_s21 + $0xad4] sm:$0xf] }
  0xe9   : > { %730 = vst [vmem:[%s10466_s18 + $0xac8] sm:$0xf] %v729_v25  ;;  %732 = vst [vmem:[%s10466_s18 + $0xad0] sm:$0xf] %v731_v26  ;;  %v735_v28 = vld [vmem:[%s10470_s21 + $0xae0] sm:$0xf] }
  0xea   : > { %734 = vst [vmem:[%s10466_s18 + $0xad8] sm:$0xf] %v733_v27  ;;  %v737_v29 = vld [vmem:[%s10470_s21 + $0xae4] sm:$0xf]  ;;  %v739_v30 = vld [vmem:[%s10470_s21 + $0xaf0] sm:$0xf] }
  0xeb   : > { %736 = vst [vmem:[%s10466_s18 + $0xae0] sm:$0xf] %v735_v28  ;;  %738 = vst [vmem:[%s10466_s18 + $0xae8] sm:$0xf] %v737_v29  ;;  %v741_v31 = vld [vmem:[%s10470_s21 + $0xaf4] sm:$0xf] }
  0xec   : > { %740 = vst [vmem:[%s10466_s18 + $0xaf0] sm:$0xf] %v739_v30  ;;  %v743_v32 = vld [vmem:[%s10470_s21 + $0xb00] sm:$0xf]  ;;  %v745_v33 = vld [vmem:[%s10470_s21 + $0xb04] sm:$0xf] }
  0xed   : > { %742 = vst [vmem:[%s10466_s18 + $0xaf8] sm:$0xf] %v741_v31  ;;  %744 = vst [vmem:[%s10466_s18 + $0xb00] sm:$0xf] %v743_v32  ;;  %v747_v34 = vld [vmem:[%s10470_s21 + $0xb10] sm:$0xf] }
  0xee   : > { %746 = vst [vmem:[%s10466_s18 + $0xb08] sm:$0xf] %v745_v33  ;;  %v749_v35 = vld [vmem:[%s10470_s21 + $0xb14] sm:$0xf]  ;;  %v751_v36 = vld [vmem:[%s10470_s21 + $0xb20] sm:$0xf] }
  0xef   : > { %748 = vst [vmem:[%s10466_s18 + $0xb10] sm:$0xf] %v747_v34  ;;  %750 = vst [vmem:[%s10466_s18 + $0xb18] sm:$0xf] %v749_v35  ;;  %v753_v37 = vld [vmem:[%s10470_s21 + $0xb24] sm:$0xf] }
  0xf0   : > { %752 = vst [vmem:[%s10466_s18 + $0xb20] sm:$0xf] %v751_v36  ;;  %v755_v38 = vld [vmem:[%s10470_s21 + $0xb30] sm:$0xf]  ;;  %v757_v39 = vld [vmem:[%s10470_s21 + $0xb34] sm:$0xf] }
  0xf1   : > { %754 = vst [vmem:[%s10466_s18 + $0xb28] sm:$0xf] %v753_v37  ;;  %756 = vst [vmem:[%s10466_s18 + $0xb30] sm:$0xf] %v755_v38  ;;  %v759_v40 = vld [vmem:[%s10470_s21 + $0xb40] sm:$0xf] }
  0xf2   : > { %758 = vst [vmem:[%s10466_s18 + $0xb38] sm:$0xf] %v757_v39  ;;  %v761_v41 = vld [vmem:[%s10470_s21 + $0xb44] sm:$0xf]  ;;  %v763_v42 = vld [vmem:[%s10470_s21 + $0xb50] sm:$0xf] }
  0xf3   : > { %760 = vst [vmem:[%s10466_s18 + $0xb40] sm:$0xf] %v759_v40  ;;  %762 = vst [vmem:[%s10466_s18 + $0xb48] sm:$0xf] %v761_v41  ;;  %v765_v43 = vld [vmem:[%s10470_s21 + $0xb54] sm:$0xf] }
  0xf4   : > { %764 = vst [vmem:[%s10466_s18 + $0xb50] sm:$0xf] %v763_v42  ;;  %v767_v44 = vld [vmem:[%s10470_s21 + $0xb60] sm:$0xf]  ;;  %v769_v45 = vld [vmem:[%s10470_s21 + $0xb64] sm:$0xf] }
  0xf5   : > { %766 = vst [vmem:[%s10466_s18 + $0xb58] sm:$0xf] %v765_v43  ;;  %768 = vst [vmem:[%s10466_s18 + $0xb60] sm:$0xf] %v767_v44  ;;  %v771_v46 = vld [vmem:[%s10470_s21 + $0xb70] sm:$0xf] }
  0xf6   : > { %770 = vst [vmem:[%s10466_s18 + $0xb68] sm:$0xf] %v769_v45  ;;  %v773_v47 = vld [vmem:[%s10470_s21 + $0xb74] sm:$0xf]  ;;  %v775_v48 = vld [vmem:[%s10470_s21 + $0xb80] sm:$0xf] }
  0xf7   : > { %772 = vst [vmem:[%s10466_s18 + $0xb70] sm:$0xf] %v771_v46  ;;  %774 = vst [vmem:[%s10466_s18 + $0xb78] sm:$0xf] %v773_v47  ;;  %v777_v49 = vld [vmem:[%s10470_s21 + $0xb84] sm:$0xf] }
  0xf8   : > { %776 = vst [vmem:[%s10466_s18 + $0xb80] sm:$0xf] %v775_v48  ;;  %v779_v50 = vld [vmem:[%s10470_s21 + $0xb90] sm:$0xf]  ;;  %v781_v51 = vld [vmem:[%s10470_s21 + $0xb94] sm:$0xf] }
  0xf9   : > { %778 = vst [vmem:[%s10466_s18 + $0xb88] sm:$0xf] %v777_v49  ;;  %780 = vst [vmem:[%s10466_s18 + $0xb90] sm:$0xf] %v779_v50  ;;  %v783_v52 = vld [vmem:[%s10470_s21 + $0xba0] sm:$0xf] }
  0xfa   : > { %782 = vst [vmem:[%s10466_s18 + $0xb98] sm:$0xf] %v781_v51  ;;  %v785_v53 = vld [vmem:[%s10470_s21 + $0xba4] sm:$0xf]  ;;  %v787_v54 = vld [vmem:[%s10470_s21 + $0xbb0] sm:$0xf] }
  0xfb   : > { %784 = vst [vmem:[%s10466_s18 + $0xba0] sm:$0xf] %v783_v52  ;;  %786 = vst [vmem:[%s10466_s18 + $0xba8] sm:$0xf] %v785_v53  ;;  %v789_v55 = vld [vmem:[%s10470_s21 + $0xbb4] sm:$0xf] }
  0xfc   : > { %788 = vst [vmem:[%s10466_s18 + $0xbb0] sm:$0xf] %v787_v54  ;;  %v791_v56 = vld [vmem:[%s10470_s21 + $0xbc0] sm:$0xf]  ;;  %v793_v57 = vld [vmem:[%s10470_s21 + $0xbc4] sm:$0xf] }
  0xfd   : > { %790 = vst [vmem:[%s10466_s18 + $0xbb8] sm:$0xf] %v789_v55  ;;  %792 = vst [vmem:[%s10466_s18 + $0xbc0] sm:$0xf] %v791_v56  ;;  %v795_v58 = vld [vmem:[%s10470_s21 + $0xbd0] sm:$0xf] }
  0xfe   : > { %794 = vst [vmem:[%s10466_s18 + $0xbc8] sm:$0xf] %v793_v57  ;;  %v797_v59 = vld [vmem:[%s10470_s21 + $0xbd4] sm:$0xf]  ;;  %v799_v60 = vld [vmem:[%s10470_s21 + $0xbe0] sm:$0xf] }
  0xff   : > { %796 = vst [vmem:[%s10466_s18 + $0xbd0] sm:$0xf] %v795_v58  ;;  %798 = vst [vmem:[%s10466_s18 + $0xbd8] sm:$0xf] %v797_v59  ;;  %v801_v61 = vld [vmem:[%s10470_s21 + $0xbe4] sm:$0xf] }
 0x100   : > { %800 = vst [vmem:[%s10466_s18 + $0xbe0] sm:$0xf] %v799_v60  ;;  %v803_v62 = vld [vmem:[%s10470_s21 + $0xbf0] sm:$0xf]  ;;  %v805_v63 = vld [vmem:[%s10470_s21 + $0xbf4] sm:$0xf] }
 0x101   : > { %802 = vst [vmem:[%s10466_s18 + $0xbe8] sm:$0xf] %v801_v61  ;;  %804 = vst [vmem:[%s10466_s18 + $0xbf0] sm:$0xf] %v803_v62  ;;  %v807_v0 = vld [vmem:[%s10470_s21 + $0xc00] sm:$0xf] }
 0x102   : > { %806 = vst [vmem:[%s10466_s18 + $0xbf8] sm:$0xf] %v805_v63  ;;  %v809_v1 = vld [vmem:[%s10470_s21 + $0xc04] sm:$0xf]  ;;  %v811_v2 = vld [vmem:[%s10470_s21 + $0xc10] sm:$0xf] }
 0x103   : > { %808 = vst [vmem:[%s10466_s18 + $0xc00] sm:$0xf] %v807_v0  ;;  %810 = vst [vmem:[%s10466_s18 + $0xc08] sm:$0xf] %v809_v1  ;;  %v813_v3 = vld [vmem:[%s10470_s21 + $0xc14] sm:$0xf] }
 0x104   : > { %812 = vst [vmem:[%s10466_s18 + $0xc10] sm:$0xf] %v811_v2  ;;  %v815_v4 = vld [vmem:[%s10470_s21 + $0xc20] sm:$0xf]  ;;  %v817_v5 = vld [vmem:[%s10470_s21 + $0xc24] sm:$0xf] }
 0x105   : > { %814 = vst [vmem:[%s10466_s18 + $0xc18] sm:$0xf] %v813_v3  ;;  %816 = vst [vmem:[%s10466_s18 + $0xc20] sm:$0xf] %v815_v4  ;;  %v819_v6 = vld [vmem:[%s10470_s21 + $0xc30] sm:$0xf] }
 0x106   : > { %818 = vst [vmem:[%s10466_s18 + $0xc28] sm:$0xf] %v817_v5  ;;  %v821_v7 = vld [vmem:[%s10470_s21 + $0xc34] sm:$0xf]  ;;  %v823_v8 = vld [vmem:[%s10470_s21 + $0xc40] sm:$0xf] }
 0x107   : > { %820 = vst [vmem:[%s10466_s18 + $0xc30] sm:$0xf] %v819_v6  ;;  %822 = vst [vmem:[%s10466_s18 + $0xc38] sm:$0xf] %v821_v7  ;;  %v825_v9 = vld [vmem:[%s10470_s21 + $0xc44] sm:$0xf] }
 0x108   : > { %824 = vst [vmem:[%s10466_s18 + $0xc40] sm:$0xf] %v823_v8  ;;  %v827_v10 = vld [vmem:[%s10470_s21 + $0xc50] sm:$0xf]  ;;  %v829_v11 = vld [vmem:[%s10470_s21 + $0xc54] sm:$0xf] }
 0x109   : > { %826 = vst [vmem:[%s10466_s18 + $0xc48] sm:$0xf] %v825_v9  ;;  %828 = vst [vmem:[%s10466_s18 + $0xc50] sm:$0xf] %v827_v10  ;;  %v831_v12 = vld [vmem:[%s10470_s21 + $0xc60] sm:$0xf] }
 0x10a   : > { %830 = vst [vmem:[%s10466_s18 + $0xc58] sm:$0xf] %v829_v11  ;;  %v833_v13 = vld [vmem:[%s10470_s21 + $0xc64] sm:$0xf]  ;;  %v835_v14 = vld [vmem:[%s10470_s21 + $0xc70] sm:$0xf] }
 0x10b   : > { %832 = vst [vmem:[%s10466_s18 + $0xc60] sm:$0xf] %v831_v12  ;;  %834 = vst [vmem:[%s10466_s18 + $0xc68] sm:$0xf] %v833_v13  ;;  %v837_v15 = vld [vmem:[%s10470_s21 + $0xc74] sm:$0xf] }
 0x10c   : > { %836 = vst [vmem:[%s10466_s18 + $0xc70] sm:$0xf] %v835_v14  ;;  %v839_v16 = vld [vmem:[%s10470_s21 + $0xc80] sm:$0xf]  ;;  %v841_v17 = vld [vmem:[%s10470_s21 + $0xc84] sm:$0xf] }
 0x10d   : > { %838 = vst [vmem:[%s10466_s18 + $0xc78] sm:$0xf] %v837_v15  ;;  %840 = vst [vmem:[%s10466_s18 + $0xc80] sm:$0xf] %v839_v16  ;;  %v843_v18 = vld [vmem:[%s10470_s21 + $0xc90] sm:$0xf] }
 0x10e   : > { %842 = vst [vmem:[%s10466_s18 + $0xc88] sm:$0xf] %v841_v17  ;;  %v845_v19 = vld [vmem:[%s10470_s21 + $0xc94] sm:$0xf]  ;;  %v847_v20 = vld [vmem:[%s10470_s21 + $0xca0] sm:$0xf] }
 0x10f   : > { %844 = vst [vmem:[%s10466_s18 + $0xc90] sm:$0xf] %v843_v18  ;;  %846 = vst [vmem:[%s10466_s18 + $0xc98] sm:$0xf] %v845_v19  ;;  %v849_v21 = vld [vmem:[%s10470_s21 + $0xca4] sm:$0xf] }
 0x110   : > { %848 = vst [vmem:[%s10466_s18 + $0xca0] sm:$0xf] %v847_v20  ;;  %v851_v22 = vld [vmem:[%s10470_s21 + $0xcb0] sm:$0xf]  ;;  %v853_v23 = vld [vmem:[%s10470_s21 + $0xcb4] sm:$0xf] }
 0x111   : > { %850 = vst [vmem:[%s10466_s18 + $0xca8] sm:$0xf] %v849_v21  ;;  %852 = vst [vmem:[%s10466_s18 + $0xcb0] sm:$0xf] %v851_v22  ;;  %v855_v24 = vld [vmem:[%s10470_s21 + $0xcc0] sm:$0xf] }
 0x112   : > { %854 = vst [vmem:[%s10466_s18 + $0xcb8] sm:$0xf] %v853_v23  ;;  %v857_v25 = vld [vmem:[%s10470_s21 + $0xcc4] sm:$0xf]  ;;  %v859_v26 = vld [vmem:[%s10470_s21 + $0xcd0] sm:$0xf] }
 0x113   : > { %856 = vst [vmem:[%s10466_s18 + $0xcc0] sm:$0xf] %v855_v24  ;;  %858 = vst [vmem:[%s10466_s18 + $0xcc8] sm:$0xf] %v857_v25  ;;  %v861_v27 = vld [vmem:[%s10470_s21 + $0xcd4] sm:$0xf] }
 0x114   : > { %860 = vst [vmem:[%s10466_s18 + $0xcd0] sm:$0xf] %v859_v26  ;;  %v863_v28 = vld [vmem:[%s10470_s21 + $0xce0] sm:$0xf]  ;;  %v865_v29 = vld [vmem:[%s10470_s21 + $0xce4] sm:$0xf] }
 0x115   : > { %862 = vst [vmem:[%s10466_s18 + $0xcd8] sm:$0xf] %v861_v27  ;;  %864 = vst [vmem:[%s10466_s18 + $0xce0] sm:$0xf] %v863_v28  ;;  %v867_v30 = vld [vmem:[%s10470_s21 + $0xcf0] sm:$0xf] }
 0x116   : > { %866 = vst [vmem:[%s10466_s18 + $0xce8] sm:$0xf] %v865_v29  ;;  %v869_v31 = vld [vmem:[%s10470_s21 + $0xcf4] sm:$0xf]  ;;  %v871_v32 = vld [vmem:[%s10470_s21 + $0xd00] sm:$0xf] }
 0x117   : > { %868 = vst [vmem:[%s10466_s18 + $0xcf0] sm:$0xf] %v867_v30  ;;  %870 = vst [vmem:[%s10466_s18 + $0xcf8] sm:$0xf] %v869_v31  ;;  %v873_v33 = vld [vmem:[%s10470_s21 + $0xd04] sm:$0xf] }
 0x118   : > { %872 = vst [vmem:[%s10466_s18 + $0xd00] sm:$0xf] %v871_v32  ;;  %v875_v34 = vld [vmem:[%s10470_s21 + $0xd10] sm:$0xf]  ;;  %v877_v35 = vld [vmem:[%s10470_s21 + $0xd14] sm:$0xf] }
 0x119   : > { %874 = vst [vmem:[%s10466_s18 + $0xd08] sm:$0xf] %v873_v33  ;;  %876 = vst [vmem:[%s10466_s18 + $0xd10] sm:$0xf] %v875_v34  ;;  %v879_v36 = vld [vmem:[%s10470_s21 + $0xd20] sm:$0xf] }
 0x11a   : > { %878 = vst [vmem:[%s10466_s18 + $0xd18] sm:$0xf] %v877_v35  ;;  %v881_v37 = vld [vmem:[%s10470_s21 + $0xd24] sm:$0xf]  ;;  %v883_v38 = vld [vmem:[%s10470_s21 + $0xd30] sm:$0xf] }
 0x11b   : > { %880 = vst [vmem:[%s10466_s18 + $0xd20] sm:$0xf] %v879_v36  ;;  %882 = vst [vmem:[%s10466_s18 + $0xd28] sm:$0xf] %v881_v37  ;;  %v885_v39 = vld [vmem:[%s10470_s21 + $0xd34] sm:$0xf] }
 0x11c   : > { %884 = vst [vmem:[%s10466_s18 + $0xd30] sm:$0xf] %v883_v38  ;;  %v887_v40 = vld [vmem:[%s10470_s21 + $0xd40] sm:$0xf]  ;;  %v889_v41 = vld [vmem:[%s10470_s21 + $0xd44] sm:$0xf] }
 0x11d   : > { %886 = vst [vmem:[%s10466_s18 + $0xd38] sm:$0xf] %v885_v39  ;;  %888 = vst [vmem:[%s10466_s18 + $0xd40] sm:$0xf] %v887_v40  ;;  %v891_v42 = vld [vmem:[%s10470_s21 + $0xd50] sm:$0xf] }
 0x11e   : > { %890 = vst [vmem:[%s10466_s18 + $0xd48] sm:$0xf] %v889_v41  ;;  %v893_v43 = vld [vmem:[%s10470_s21 + $0xd54] sm:$0xf]  ;;  %v895_v44 = vld [vmem:[%s10470_s21 + $0xd60] sm:$0xf] }
 0x11f   : > { %892 = vst [vmem:[%s10466_s18 + $0xd50] sm:$0xf] %v891_v42  ;;  %894 = vst [vmem:[%s10466_s18 + $0xd58] sm:$0xf] %v893_v43  ;;  %v897_v45 = vld [vmem:[%s10470_s21 + $0xd64] sm:$0xf] }
 0x120   : > { %896 = vst [vmem:[%s10466_s18 + $0xd60] sm:$0xf] %v895_v44  ;;  %v899_v46 = vld [vmem:[%s10470_s21 + $0xd70] sm:$0xf]  ;;  %v901_v47 = vld [vmem:[%s10470_s21 + $0xd74] sm:$0xf] }
 0x121   : > { %898 = vst [vmem:[%s10466_s18 + $0xd68] sm:$0xf] %v897_v45  ;;  %900 = vst [vmem:[%s10466_s18 + $0xd70] sm:$0xf] %v899_v46  ;;  %v903_v48 = vld [vmem:[%s10470_s21 + $0xd80] sm:$0xf] }
 0x122   : > { %902 = vst [vmem:[%s10466_s18 + $0xd78] sm:$0xf] %v901_v47  ;;  %v905_v49 = vld [vmem:[%s10470_s21 + $0xd84] sm:$0xf]  ;;  %v907_v50 = vld [vmem:[%s10470_s21 + $0xd90] sm:$0xf] }
 0x123   : > { %904 = vst [vmem:[%s10466_s18 + $0xd80] sm:$0xf] %v903_v48  ;;  %906 = vst [vmem:[%s10466_s18 + $0xd88] sm:$0xf] %v905_v49  ;;  %v909_v51 = vld [vmem:[%s10470_s21 + $0xd94] sm:$0xf] }
 0x124   : > { %908 = vst [vmem:[%s10466_s18 + $0xd90] sm:$0xf] %v907_v50  ;;  %v911_v52 = vld [vmem:[%s10470_s21 + $0xda0] sm:$0xf]  ;;  %v913_v53 = vld [vmem:[%s10470_s21 + $0xda4] sm:$0xf] }
 0x125   : > { %910 = vst [vmem:[%s10466_s18 + $0xd98] sm:$0xf] %v909_v51  ;;  %912 = vst [vmem:[%s10466_s18 + $0xda0] sm:$0xf] %v911_v52  ;;  %v915_v54 = vld [vmem:[%s10470_s21 + $0xdb0] sm:$0xf] }
 0x126   : > { %914 = vst [vmem:[%s10466_s18 + $0xda8] sm:$0xf] %v913_v53  ;;  %v917_v55 = vld [vmem:[%s10470_s21 + $0xdb4] sm:$0xf]  ;;  %v919_v56 = vld [vmem:[%s10470_s21 + $0xdc0] sm:$0xf] }
 0x127   : > { %916 = vst [vmem:[%s10466_s18 + $0xdb0] sm:$0xf] %v915_v54  ;;  %918 = vst [vmem:[%s10466_s18 + $0xdb8] sm:$0xf] %v917_v55  ;;  %v921_v57 = vld [vmem:[%s10470_s21 + $0xdc4] sm:$0xf] }
 0x128   : > { %920 = vst [vmem:[%s10466_s18 + $0xdc0] sm:$0xf] %v919_v56  ;;  %v923_v58 = vld [vmem:[%s10470_s21 + $0xdd0] sm:$0xf]  ;;  %v925_v59 = vld [vmem:[%s10470_s21 + $0xdd4] sm:$0xf] }
 0x129   : > { %922 = vst [vmem:[%s10466_s18 + $0xdc8] sm:$0xf] %v921_v57  ;;  %924 = vst [vmem:[%s10466_s18 + $0xdd0] sm:$0xf] %v923_v58  ;;  %v927_v60 = vld [vmem:[%s10470_s21 + $0xde0] sm:$0xf] }
 0x12a   : > { %926 = vst [vmem:[%s10466_s18 + $0xdd8] sm:$0xf] %v925_v59  ;;  %v929_v61 = vld [vmem:[%s10470_s21 + $0xde4] sm:$0xf]  ;;  %v931_v62 = vld [vmem:[%s10470_s21 + $0xdf0] sm:$0xf] }
 0x12b   : > { %928 = vst [vmem:[%s10466_s18 + $0xde0] sm:$0xf] %v927_v60  ;;  %930 = vst [vmem:[%s10466_s18 + $0xde8] sm:$0xf] %v929_v61  ;;  %v933_v63 = vld [vmem:[%s10470_s21 + $0xdf4] sm:$0xf] }
 0x12c   : > { %932 = vst [vmem:[%s10466_s18 + $0xdf0] sm:$0xf] %v931_v62  ;;  %v935_v0 = vld [vmem:[%s10470_s21 + $0xe00] sm:$0xf]  ;;  %v937_v1 = vld [vmem:[%s10470_s21 + $0xe04] sm:$0xf] }
 0x12d   : > { %934 = vst [vmem:[%s10466_s18 + $0xdf8] sm:$0xf] %v933_v63  ;;  %936 = vst [vmem:[%s10466_s18 + $0xe00] sm:$0xf] %v935_v0  ;;  %v939_v2 = vld [vmem:[%s10470_s21 + $0xe10] sm:$0xf] }
 0x12e   : > { %938 = vst [vmem:[%s10466_s18 + $0xe08] sm:$0xf] %v937_v1  ;;  %v941_v3 = vld [vmem:[%s10470_s21 + $0xe14] sm:$0xf]  ;;  %v943_v4 = vld [vmem:[%s10470_s21 + $0xe20] sm:$0xf] }
 0x12f   : > { %940 = vst [vmem:[%s10466_s18 + $0xe10] sm:$0xf] %v939_v2  ;;  %942 = vst [vmem:[%s10466_s18 + $0xe18] sm:$0xf] %v941_v3  ;;  %v945_v5 = vld [vmem:[%s10470_s21 + $0xe24] sm:$0xf] }
 0x130   : > { %944 = vst [vmem:[%s10466_s18 + $0xe20] sm:$0xf] %v943_v4  ;;  %v947_v6 = vld [vmem:[%s10470_s21 + $0xe30] sm:$0xf]  ;;  %v949_v7 = vld [vmem:[%s10470_s21 + $0xe34] sm:$0xf] }
 0x131   : > { %946 = vst [vmem:[%s10466_s18 + $0xe28] sm:$0xf] %v945_v5  ;;  %948 = vst [vmem:[%s10466_s18 + $0xe30] sm:$0xf] %v947_v6  ;;  %v951_v8 = vld [vmem:[%s10470_s21 + $0xe40] sm:$0xf] }
 0x132   : > { %950 = vst [vmem:[%s10466_s18 + $0xe38] sm:$0xf] %v949_v7  ;;  %v953_v9 = vld [vmem:[%s10470_s21 + $0xe44] sm:$0xf]  ;;  %v955_v10 = vld [vmem:[%s10470_s21 + $0xe50] sm:$0xf] }
 0x133   : > { %952 = vst [vmem:[%s10466_s18 + $0xe40] sm:$0xf] %v951_v8  ;;  %954 = vst [vmem:[%s10466_s18 + $0xe48] sm:$0xf] %v953_v9  ;;  %v957_v11 = vld [vmem:[%s10470_s21 + $0xe54] sm:$0xf] }
 0x134   : > { %956 = vst [vmem:[%s10466_s18 + $0xe50] sm:$0xf] %v955_v10  ;;  %v959_v12 = vld [vmem:[%s10470_s21 + $0xe60] sm:$0xf]  ;;  %v961_v13 = vld [vmem:[%s10470_s21 + $0xe64] sm:$0xf] }
 0x135   : > { %958 = vst [vmem:[%s10466_s18 + $0xe58] sm:$0xf] %v957_v11  ;;  %960 = vst [vmem:[%s10466_s18 + $0xe60] sm:$0xf] %v959_v12  ;;  %v963_v14 = vld [vmem:[%s10470_s21 + $0xe70] sm:$0xf] }
 0x136   : > { %962 = vst [vmem:[%s10466_s18 + $0xe68] sm:$0xf] %v961_v13  ;;  %v965_v15 = vld [vmem:[%s10470_s21 + $0xe74] sm:$0xf]  ;;  %v967_v16 = vld [vmem:[%s10470_s21 + $0xe80] sm:$0xf] }
 0x137   : > { %964 = vst [vmem:[%s10466_s18 + $0xe70] sm:$0xf] %v963_v14  ;;  %966 = vst [vmem:[%s10466_s18 + $0xe78] sm:$0xf] %v965_v15  ;;  %v969_v17 = vld [vmem:[%s10470_s21 + $0xe84] sm:$0xf] }
 0x138   : > { %968 = vst [vmem:[%s10466_s18 + $0xe80] sm:$0xf] %v967_v16  ;;  %v971_v18 = vld [vmem:[%s10470_s21 + $0xe90] sm:$0xf]  ;;  %v973_v19 = vld [vmem:[%s10470_s21 + $0xe94] sm:$0xf] }
 0x139   : > { %970 = vst [vmem:[%s10466_s18 + $0xe88] sm:$0xf] %v969_v17  ;;  %972 = vst [vmem:[%s10466_s18 + $0xe90] sm:$0xf] %v971_v18  ;;  %v975_v20 = vld [vmem:[%s10470_s21 + $0xea0] sm:$0xf] }
 0x13a   : > { %974 = vst [vmem:[%s10466_s18 + $0xe98] sm:$0xf] %v973_v19  ;;  %v977_v21 = vld [vmem:[%s10470_s21 + $0xea4] sm:$0xf]  ;;  %v979_v22 = vld [vmem:[%s10470_s21 + $0xeb0] sm:$0xf] }
 0x13b   : > { %976 = vst [vmem:[%s10466_s18 + $0xea0] sm:$0xf] %v975_v20  ;;  %978 = vst [vmem:[%s10466_s18 + $0xea8] sm:$0xf] %v977_v21  ;;  %v981_v23 = vld [vmem:[%s10470_s21 + $0xeb4] sm:$0xf] }
 0x13c   : > { %980 = vst [vmem:[%s10466_s18 + $0xeb0] sm:$0xf] %v979_v22  ;;  %v983_v24 = vld [vmem:[%s10470_s21 + $0xec0] sm:$0xf]  ;;  %v985_v25 = vld [vmem:[%s10470_s21 + $0xec4] sm:$0xf] }
 0x13d   : > { %982 = vst [vmem:[%s10466_s18 + $0xeb8] sm:$0xf] %v981_v23  ;;  %984 = vst [vmem:[%s10466_s18 + $0xec0] sm:$0xf] %v983_v24  ;;  %v987_v26 = vld [vmem:[%s10470_s21 + $0xed0] sm:$0xf] }
 0x13e   : > { %986 = vst [vmem:[%s10466_s18 + $0xec8] sm:$0xf] %v985_v25  ;;  %v989_v27 = vld [vmem:[%s10470_s21 + $0xed4] sm:$0xf]  ;;  %v991_v28 = vld [vmem:[%s10470_s21 + $0xee0] sm:$0xf] }
 0x13f   : > { %988 = vst [vmem:[%s10466_s18 + $0xed0] sm:$0xf] %v987_v26  ;;  %990 = vst [vmem:[%s10466_s18 + $0xed8] sm:$0xf] %v989_v27  ;;  %v993_v29 = vld [vmem:[%s10470_s21 + $0xee4] sm:$0xf] }
 0x140   : > { %992 = vst [vmem:[%s10466_s18 + $0xee0] sm:$0xf] %v991_v28  ;;  %v995_v30 = vld [vmem:[%s10470_s21 + $0xef0] sm:$0xf]  ;;  %v997_v31 = vld [vmem:[%s10470_s21 + $0xef4] sm:$0xf] }
 0x141   : > { %994 = vst [vmem:[%s10466_s18 + $0xee8] sm:$0xf] %v993_v29  ;;  %996 = vst [vmem:[%s10466_s18 + $0xef0] sm:$0xf] %v995_v30  ;;  %v999_v32 = vld [vmem:[%s10470_s21 + $0xf00] sm:$0xf] }
 0x142   : > { %998 = vst [vmem:[%s10466_s18 + $0xef8] sm:$0xf] %v997_v31  ;;  %v1001_v33 = vld [vmem:[%s10470_s21 + $0xf04] sm:$0xf]  ;;  %v1003_v34 = vld [vmem:[%s10470_s21 + $0xf10] sm:$0xf] }
 0x143   : > { %1000 = vst [vmem:[%s10466_s18 + $0xf00] sm:$0xf] %v999_v32  ;;  %1002 = vst [vmem:[%s10466_s18 + $0xf08] sm:$0xf] %v1001_v33  ;;  %v1005_v35 = vld [vmem:[%s10470_s21 + $0xf14] sm:$0xf] }
 0x144   : > { %1004 = vst [vmem:[%s10466_s18 + $0xf10] sm:$0xf] %v1003_v34  ;;  %v1007_v36 = vld [vmem:[%s10470_s21 + $0xf20] sm:$0xf]  ;;  %v1009_v37 = vld [vmem:[%s10470_s21 + $0xf24] sm:$0xf] }
 0x145   : > { %1006 = vst [vmem:[%s10466_s18 + $0xf18] sm:$0xf] %v1005_v35  ;;  %1008 = vst [vmem:[%s10466_s18 + $0xf20] sm:$0xf] %v1007_v36  ;;  %v1011_v38 = vld [vmem:[%s10470_s21 + $0xf30] sm:$0xf] }
 0x146   : > { %1010 = vst [vmem:[%s10466_s18 + $0xf28] sm:$0xf] %v1009_v37  ;;  %v1013_v39 = vld [vmem:[%s10470_s21 + $0xf34] sm:$0xf]  ;;  %v1015_v40 = vld [vmem:[%s10470_s21 + $0xf40] sm:$0xf] }
 0x147   : > { %1012 = vst [vmem:[%s10466_s18 + $0xf30] sm:$0xf] %v1011_v38  ;;  %1014 = vst [vmem:[%s10466_s18 + $0xf38] sm:$0xf] %v1013_v39  ;;  %v1017_v41 = vld [vmem:[%s10470_s21 + $0xf44] sm:$0xf] }
 0x148   : > { %1016 = vst [vmem:[%s10466_s18 + $0xf40] sm:$0xf] %v1015_v40  ;;  %v1019_v42 = vld [vmem:[%s10470_s21 + $0xf50] sm:$0xf]  ;;  %v1021_v43 = vld [vmem:[%s10470_s21 + $0xf54] sm:$0xf] }
 0x149   : > { %1018 = vst [vmem:[%s10466_s18 + $0xf48] sm:$0xf] %v1017_v41  ;;  %1020 = vst [vmem:[%s10466_s18 + $0xf50] sm:$0xf] %v1019_v42  ;;  %v1023_v44 = vld [vmem:[%s10470_s21 + $0xf60] sm:$0xf] }
 0x14a   : > { %1022 = vst [vmem:[%s10466_s18 + $0xf58] sm:$0xf] %v1021_v43  ;;  %v1025_v45 = vld [vmem:[%s10470_s21 + $0xf64] sm:$0xf]  ;;  %v1027_v46 = vld [vmem:[%s10470_s21 + $0xf70] sm:$0xf] }
 0x14b   : > { %1024 = vst [vmem:[%s10466_s18 + $0xf60] sm:$0xf] %v1023_v44  ;;  %1026 = vst [vmem:[%s10466_s18 + $0xf68] sm:$0xf] %v1025_v45  ;;  %v1029_v47 = vld [vmem:[%s10470_s21 + $0xf74] sm:$0xf] }
 0x14c   : > { %1028 = vst [vmem:[%s10466_s18 + $0xf70] sm:$0xf] %v1027_v46  ;;  %v1031_v48 = vld [vmem:[%s10470_s21 + $0xf80] sm:$0xf]  ;;  %v1033_v49 = vld [vmem:[%s10470_s21 + $0xf84] sm:$0xf] }
 0x14d   : > { %1030 = vst [vmem:[%s10466_s18 + $0xf78] sm:$0xf] %v1029_v47  ;;  %1032 = vst [vmem:[%s10466_s18 + $0xf80] sm:$0xf] %v1031_v48  ;;  %v1035_v50 = vld [vmem:[%s10470_s21 + $0xf90] sm:$0xf] }
 0x14e   : > { %1034 = vst [vmem:[%s10466_s18 + $0xf88] sm:$0xf] %v1033_v49  ;;  %v1037_v51 = vld [vmem:[%s10470_s21 + $0xf94] sm:$0xf]  ;;  %v1039_v52 = vld [vmem:[%s10470_s21 + $0xfa0] sm:$0xf] }
 0x14f   : > { %1036 = vst [vmem:[%s10466_s18 + $0xf90] sm:$0xf] %v1035_v50  ;;  %1038 = vst [vmem:[%s10466_s18 + $0xf98] sm:$0xf] %v1037_v51  ;;  %v1041_v53 = vld [vmem:[%s10470_s21 + $0xfa4] sm:$0xf] }
 0x150   : > { %1040 = vst [vmem:[%s10466_s18 + $0xfa0] sm:$0xf] %v1039_v52  ;;  %v1043_v54 = vld [vmem:[%s10470_s21 + $0xfb0] sm:$0xf]  ;;  %v1045_v55 = vld [vmem:[%s10470_s21 + $0xfb4] sm:$0xf] }
 0x151   : > { %1042 = vst [vmem:[%s10466_s18 + $0xfa8] sm:$0xf] %v1041_v53  ;;  %1044 = vst [vmem:[%s10466_s18 + $0xfb0] sm:$0xf] %v1043_v54  ;;  %v1047_v56 = vld [vmem:[%s10470_s21 + $0xfc0] sm:$0xf] }
 0x152   : > { %1046 = vst [vmem:[%s10466_s18 + $0xfb8] sm:$0xf] %v1045_v55  ;;  %v1049_v57 = vld [vmem:[%s10470_s21 + $0xfc4] sm:$0xf]  ;;  %v1051_v58 = vld [vmem:[%s10470_s21 + $0xfd0] sm:$0xf] }
 0x153   : > { %1048 = vst [vmem:[%s10466_s18 + $0xfc0] sm:$0xf] %v1047_v56  ;;  %1050 = vst [vmem:[%s10466_s18 + $0xfc8] sm:$0xf] %v1049_v57  ;;  %v1053_v59 = vld [vmem:[%s10470_s21 + $0xfd4] sm:$0xf] }
 0x154   : > { %1052 = vst [vmem:[%s10466_s18 + $0xfd0] sm:$0xf] %v1051_v58  ;;  %v1055_v60 = vld [vmem:[%s10470_s21 + $0xfe0] sm:$0xf]  ;;  %v1057_v61 = vld [vmem:[%s10470_s21 + $0xfe4] sm:$0xf] }
 0x155   : > { %1054 = vst [vmem:[%s10466_s18 + $0xfd8] sm:$0xf] %v1053_v59  ;;  %1056 = vst [vmem:[%s10466_s18 + $0xfe0] sm:$0xf] %v1055_v60  ;;  %v1059_v62 = vld [vmem:[%s10470_s21 + $0xff0] sm:$0xf] }
 0x156   : > { %1058 = vst [vmem:[%s10466_s18 + $0xfe8] sm:$0xf] %v1057_v61  ;;  %v1061_v63 = vld [vmem:[%s10470_s21 + $0xff4] sm:$0xf]  ;;  %v1063_v0 = vld [vmem:[%s10470_s21 + $0x1000] sm:$0xf] }
 0x157   : > { %1060 = vst [vmem:[%s10466_s18 + $0xff0] sm:$0xf] %v1059_v62  ;;  %1062 = vst [vmem:[%s10466_s18 + $0xff8] sm:$0xf] %v1061_v63  ;;  %v1065_v1 = vld [vmem:[%s10470_s21 + $0x1004] sm:$0xf] }
 0x158   : > { %1064 = vst [vmem:[%s10466_s18 + $0x1000] sm:$0xf] %v1063_v0  ;;  %v1067_v2 = vld [vmem:[%s10470_s21 + $0x1010] sm:$0xf]  ;;  %v1069_v3 = vld [vmem:[%s10470_s21 + $0x1014] sm:$0xf] }
 0x159   : > { %1066 = vst [vmem:[%s10466_s18 + $0x1008] sm:$0xf] %v1065_v1  ;;  %1068 = vst [vmem:[%s10466_s18 + $0x1010] sm:$0xf] %v1067_v2  ;;  %v1071_v4 = vld [vmem:[%s10470_s21 + $0x1020] sm:$0xf] }
 0x15a   : > { %1070 = vst [vmem:[%s10466_s18 + $0x1018] sm:$0xf] %v1069_v3  ;;  %v1073_v5 = vld [vmem:[%s10470_s21 + $0x1024] sm:$0xf]  ;;  %v1075_v6 = vld [vmem:[%s10470_s21 + $0x1030] sm:$0xf] }
 0x15b   : > { %1072 = vst [vmem:[%s10466_s18 + $0x1020] sm:$0xf] %v1071_v4  ;;  %1074 = vst [vmem:[%s10466_s18 + $0x1028] sm:$0xf] %v1073_v5  ;;  %v1077_v7 = vld [vmem:[%s10470_s21 + $0x1034] sm:$0xf] }
 0x15c   : > { %1076 = vst [vmem:[%s10466_s18 + $0x1030] sm:$0xf] %v1075_v6  ;;  %v1079_v8 = vld [vmem:[%s10470_s21 + $0x1040] sm:$0xf]  ;;  %v1081_v9 = vld [vmem:[%s10470_s21 + $0x1044] sm:$0xf] }
 0x15d   : > { %1078 = vst [vmem:[%s10466_s18 + $0x1038] sm:$0xf] %v1077_v7  ;;  %1080 = vst [vmem:[%s10466_s18 + $0x1040] sm:$0xf] %v1079_v8  ;;  %v1083_v10 = vld [vmem:[%s10470_s21 + $0x1050] sm:$0xf] }
 0x15e   : > { %1082 = vst [vmem:[%s10466_s18 + $0x1048] sm:$0xf] %v1081_v9  ;;  %v1085_v11 = vld [vmem:[%s10470_s21 + $0x1054] sm:$0xf]  ;;  %v1087_v12 = vld [vmem:[%s10470_s21 + $0x1060] sm:$0xf] }
 0x15f   : > { %1084 = vst [vmem:[%s10466_s18 + $0x1050] sm:$0xf] %v1083_v10  ;;  %1086 = vst [vmem:[%s10466_s18 + $0x1058] sm:$0xf] %v1085_v11  ;;  %v1089_v13 = vld [vmem:[%s10470_s21 + $0x1064] sm:$0xf] }
 0x160   : > { %1088 = vst [vmem:[%s10466_s18 + $0x1060] sm:$0xf] %v1087_v12  ;;  %v1091_v14 = vld [vmem:[%s10470_s21 + $0x1070] sm:$0xf]  ;;  %v1093_v15 = vld [vmem:[%s10470_s21 + $0x1074] sm:$0xf] }
 0x161   : > { %1090 = vst [vmem:[%s10466_s18 + $0x1068] sm:$0xf] %v1089_v13  ;;  %1092 = vst [vmem:[%s10466_s18 + $0x1070] sm:$0xf] %v1091_v14  ;;  %v1095_v16 = vld [vmem:[%s10470_s21 + $0x1080] sm:$0xf] }
 0x162   : > { %1094 = vst [vmem:[%s10466_s18 + $0x1078] sm:$0xf] %v1093_v15  ;;  %v1097_v17 = vld [vmem:[%s10470_s21 + $0x1084] sm:$0xf]  ;;  %v1099_v18 = vld [vmem:[%s10470_s21 + $0x1090] sm:$0xf] }
 0x163   : > { %1096 = vst [vmem:[%s10466_s18 + $0x1080] sm:$0xf] %v1095_v16  ;;  %1098 = vst [vmem:[%s10466_s18 + $0x1088] sm:$0xf] %v1097_v17  ;;  %v1101_v19 = vld [vmem:[%s10470_s21 + $0x1094] sm:$0xf] }
 0x164   : > { %1100 = vst [vmem:[%s10466_s18 + $0x1090] sm:$0xf] %v1099_v18  ;;  %v1103_v20 = vld [vmem:[%s10470_s21 + $0x10a0] sm:$0xf]  ;;  %v1105_v21 = vld [vmem:[%s10470_s21 + $0x10a4] sm:$0xf] }
 0x165   : > { %1102 = vst [vmem:[%s10466_s18 + $0x1098] sm:$0xf] %v1101_v19  ;;  %1104 = vst [vmem:[%s10466_s18 + $0x10a0] sm:$0xf] %v1103_v20  ;;  %v1107_v22 = vld [vmem:[%s10470_s21 + $0x10b0] sm:$0xf] }
 0x166   : > { %1106 = vst [vmem:[%s10466_s18 + $0x10a8] sm:$0xf] %v1105_v21  ;;  %v1109_v23 = vld [vmem:[%s10470_s21 + $0x10b4] sm:$0xf]  ;;  %v1111_v24 = vld [vmem:[%s10470_s21 + $0x10c0] sm:$0xf] }
 0x167   : > { %1108 = vst [vmem:[%s10466_s18 + $0x10b0] sm:$0xf] %v1107_v22  ;;  %1110 = vst [vmem:[%s10466_s18 + $0x10b8] sm:$0xf] %v1109_v23  ;;  %v1113_v25 = vld [vmem:[%s10470_s21 + $0x10c4] sm:$0xf] }
 0x168   : > { %1112 = vst [vmem:[%s10466_s18 + $0x10c0] sm:$0xf] %v1111_v24  ;;  %v1115_v26 = vld [vmem:[%s10470_s21 + $0x10d0] sm:$0xf]  ;;  %v1117_v27 = vld [vmem:[%s10470_s21 + $0x10d4] sm:$0xf] }
 0x169   : > { %1114 = vst [vmem:[%s10466_s18 + $0x10c8] sm:$0xf] %v1113_v25  ;;  %1116 = vst [vmem:[%s10466_s18 + $0x10d0] sm:$0xf] %v1115_v26  ;;  %v1119_v28 = vld [vmem:[%s10470_s21 + $0x10e0] sm:$0xf] }
 0x16a   : > { %1118 = vst [vmem:[%s10466_s18 + $0x10d8] sm:$0xf] %v1117_v27  ;;  %v1121_v29 = vld [vmem:[%s10470_s21 + $0x10e4] sm:$0xf]  ;;  %v1123_v30 = vld [vmem:[%s10470_s21 + $0x10f0] sm:$0xf] }
 0x16b   : > { %1120 = vst [vmem:[%s10466_s18 + $0x10e0] sm:$0xf] %v1119_v28  ;;  %1122 = vst [vmem:[%s10466_s18 + $0x10e8] sm:$0xf] %v1121_v29  ;;  %v1125_v31 = vld [vmem:[%s10470_s21 + $0x10f4] sm:$0xf] }
 0x16c   : > { %1124 = vst [vmem:[%s10466_s18 + $0x10f0] sm:$0xf] %v1123_v30  ;;  %v1127_v32 = vld [vmem:[%s10470_s21 + $0x1100] sm:$0xf]  ;;  %v1129_v33 = vld [vmem:[%s10470_s21 + $0x1104] sm:$0xf] }
 0x16d   : > { %1126 = vst [vmem:[%s10466_s18 + $0x10f8] sm:$0xf] %v1125_v31  ;;  %1128 = vst [vmem:[%s10466_s18 + $0x1100] sm:$0xf] %v1127_v32  ;;  %v1131_v34 = vld [vmem:[%s10470_s21 + $0x1110] sm:$0xf] }
 0x16e   : > { %1130 = vst [vmem:[%s10466_s18 + $0x1108] sm:$0xf] %v1129_v33  ;;  %v1133_v35 = vld [vmem:[%s10470_s21 + $0x1114] sm:$0xf]  ;;  %v1135_v36 = vld [vmem:[%s10470_s21 + $0x1120] sm:$0xf] }
 0x16f   : > { %1132 = vst [vmem:[%s10466_s18 + $0x1110] sm:$0xf] %v1131_v34  ;;  %1134 = vst [vmem:[%s10466_s18 + $0x1118] sm:$0xf] %v1133_v35  ;;  %v1137_v37 = vld [vmem:[%s10470_s21 + $0x1124] sm:$0xf] }
 0x170   : > { %1136 = vst [vmem:[%s10466_s18 + $0x1120] sm:$0xf] %v1135_v36  ;;  %v1139_v38 = vld [vmem:[%s10470_s21 + $0x1130] sm:$0xf]  ;;  %v1141_v39 = vld [vmem:[%s10470_s21 + $0x1134] sm:$0xf] }
 0x171   : > { %1138 = vst [vmem:[%s10466_s18 + $0x1128] sm:$0xf] %v1137_v37  ;;  %1140 = vst [vmem:[%s10466_s18 + $0x1130] sm:$0xf] %v1139_v38  ;;  %v1143_v40 = vld [vmem:[%s10470_s21 + $0x1140] sm:$0xf] }
 0x172   : > { %1142 = vst [vmem:[%s10466_s18 + $0x1138] sm:$0xf] %v1141_v39  ;;  %v1145_v41 = vld [vmem:[%s10470_s21 + $0x1144] sm:$0xf]  ;;  %v1147_v42 = vld [vmem:[%s10470_s21 + $0x1150] sm:$0xf] }
 0x173   : > { %1144 = vst [vmem:[%s10466_s18 + $0x1140] sm:$0xf] %v1143_v40  ;;  %1146 = vst [vmem:[%s10466_s18 + $0x1148] sm:$0xf] %v1145_v41  ;;  %v1149_v43 = vld [vmem:[%s10470_s21 + $0x1154] sm:$0xf] }
 0x174   : > { %1148 = vst [vmem:[%s10466_s18 + $0x1150] sm:$0xf] %v1147_v42  ;;  %v1151_v44 = vld [vmem:[%s10470_s21 + $0x1160] sm:$0xf]  ;;  %v1153_v45 = vld [vmem:[%s10470_s21 + $0x1164] sm:$0xf] }
 0x175   : > { %1150 = vst [vmem:[%s10466_s18 + $0x1158] sm:$0xf] %v1149_v43  ;;  %1152 = vst [vmem:[%s10466_s18 + $0x1160] sm:$0xf] %v1151_v44  ;;  %v1155_v46 = vld [vmem:[%s10470_s21 + $0x1170] sm:$0xf] }
 0x176   : > { %1154 = vst [vmem:[%s10466_s18 + $0x1168] sm:$0xf] %v1153_v45  ;;  %v1157_v47 = vld [vmem:[%s10470_s21 + $0x1174] sm:$0xf]  ;;  %v1159_v48 = vld [vmem:[%s10470_s21 + $0x1180] sm:$0xf] }
 0x177   : > { %1156 = vst [vmem:[%s10466_s18 + $0x1170] sm:$0xf] %v1155_v46  ;;  %1158 = vst [vmem:[%s10466_s18 + $0x1178] sm:$0xf] %v1157_v47  ;;  %v1161_v49 = vld [vmem:[%s10470_s21 + $0x1184] sm:$0xf] }
 0x178   : > { %1160 = vst [vmem:[%s10466_s18 + $0x1180] sm:$0xf] %v1159_v48  ;;  %v1163_v50 = vld [vmem:[%s10470_s21 + $0x1190] sm:$0xf]  ;;  %v1165_v51 = vld [vmem:[%s10470_s21 + $0x1194] sm:$0xf] }
 0x179   : > { %1162 = vst [vmem:[%s10466_s18 + $0x1188] sm:$0xf] %v1161_v49  ;;  %1164 = vst [vmem:[%s10466_s18 + $0x1190] sm:$0xf] %v1163_v50  ;;  %v1167_v52 = vld [vmem:[%s10470_s21 + $0x11a0] sm:$0xf] }
 0x17a   : > { %1166 = vst [vmem:[%s10466_s18 + $0x1198] sm:$0xf] %v1165_v51  ;;  %v1169_v53 = vld [vmem:[%s10470_s21 + $0x11a4] sm:$0xf]  ;;  %v1171_v54 = vld [vmem:[%s10470_s21 + $0x11b0] sm:$0xf] }
 0x17b   : > { %1168 = vst [vmem:[%s10466_s18 + $0x11a0] sm:$0xf] %v1167_v52  ;;  %1170 = vst [vmem:[%s10466_s18 + $0x11a8] sm:$0xf] %v1169_v53  ;;  %v1173_v55 = vld [vmem:[%s10470_s21 + $0x11b4] sm:$0xf] }
 0x17c   : > { %1172 = vst [vmem:[%s10466_s18 + $0x11b0] sm:$0xf] %v1171_v54  ;;  %v1175_v56 = vld [vmem:[%s10470_s21 + $0x11c0] sm:$0xf]  ;;  %v1177_v57 = vld [vmem:[%s10470_s21 + $0x11c4] sm:$0xf] }
 0x17d   : > { %1174 = vst [vmem:[%s10466_s18 + $0x11b8] sm:$0xf] %v1173_v55  ;;  %1176 = vst [vmem:[%s10466_s18 + $0x11c0] sm:$0xf] %v1175_v56  ;;  %v1179_v58 = vld [vmem:[%s10470_s21 + $0x11d0] sm:$0xf] }
 0x17e   : > { %1178 = vst [vmem:[%s10466_s18 + $0x11c8] sm:$0xf] %v1177_v57  ;;  %v1181_v59 = vld [vmem:[%s10470_s21 + $0x11d4] sm:$0xf]  ;;  %v1183_v60 = vld [vmem:[%s10470_s21 + $0x11e0] sm:$0xf] }
 0x17f   : > { %1180 = vst [vmem:[%s10466_s18 + $0x11d0] sm:$0xf] %v1179_v58  ;;  %1182 = vst [vmem:[%s10466_s18 + $0x11d8] sm:$0xf] %v1181_v59  ;;  %v1185_v61 = vld [vmem:[%s10470_s21 + $0x11e4] sm:$0xf] }
 0x180   : > { %1184 = vst [vmem:[%s10466_s18 + $0x11e0] sm:$0xf] %v1183_v60  ;;  %v1187_v62 = vld [vmem:[%s10470_s21 + $0x11f0] sm:$0xf]  ;;  %v1189_v63 = vld [vmem:[%s10470_s21 + $0x11f4] sm:$0xf] }
 0x181   : > { %1186 = vst [vmem:[%s10466_s18 + $0x11e8] sm:$0xf] %v1185_v61  ;;  %1188 = vst [vmem:[%s10466_s18 + $0x11f0] sm:$0xf] %v1187_v62  ;;  %v1191_v0 = vld [vmem:[%s10470_s21 + $0x1200] sm:$0xf] }
 0x182   : > { %1190 = vst [vmem:[%s10466_s18 + $0x11f8] sm:$0xf] %v1189_v63  ;;  %v1193_v1 = vld [vmem:[%s10470_s21 + $0x1204] sm:$0xf]  ;;  %v1195_v2 = vld [vmem:[%s10470_s21 + $0x1210] sm:$0xf] }
 0x183   : > { %1192 = vst [vmem:[%s10466_s18 + $0x1200] sm:$0xf] %v1191_v0  ;;  %1194 = vst [vmem:[%s10466_s18 + $0x1208] sm:$0xf] %v1193_v1  ;;  %v1197_v3 = vld [vmem:[%s10470_s21 + $0x1214] sm:$0xf] }
 0x184   : > { %1196 = vst [vmem:[%s10466_s18 + $0x1210] sm:$0xf] %v1195_v2  ;;  %v1199_v4 = vld [vmem:[%s10470_s21 + $0x1220] sm:$0xf]  ;;  %v1201_v5 = vld [vmem:[%s10470_s21 + $0x1224] sm:$0xf] }
 0x185   : > { %1198 = vst [vmem:[%s10466_s18 + $0x1218] sm:$0xf] %v1197_v3  ;;  %1200 = vst [vmem:[%s10466_s18 + $0x1220] sm:$0xf] %v1199_v4  ;;  %v1203_v6 = vld [vmem:[%s10470_s21 + $0x1230] sm:$0xf] }
 0x186   : > { %1202 = vst [vmem:[%s10466_s18 + $0x1228] sm:$0xf] %v1201_v5  ;;  %v1205_v7 = vld [vmem:[%s10470_s21 + $0x1234] sm:$0xf]  ;;  %v1207_v8 = vld [vmem:[%s10470_s21 + $0x1240] sm:$0xf] }
 0x187   : > { %1204 = vst [vmem:[%s10466_s18 + $0x1230] sm:$0xf] %v1203_v6  ;;  %1206 = vst [vmem:[%s10466_s18 + $0x1238] sm:$0xf] %v1205_v7  ;;  %v1209_v9 = vld [vmem:[%s10470_s21 + $0x1244] sm:$0xf] }
 0x188   : > { %1208 = vst [vmem:[%s10466_s18 + $0x1240] sm:$0xf] %v1207_v8  ;;  %v1211_v10 = vld [vmem:[%s10470_s21 + $0x1250] sm:$0xf]  ;;  %v1213_v11 = vld [vmem:[%s10470_s21 + $0x1254] sm:$0xf] }
 0x189   : > { %1210 = vst [vmem:[%s10466_s18 + $0x1248] sm:$0xf] %v1209_v9  ;;  %1212 = vst [vmem:[%s10466_s18 + $0x1250] sm:$0xf] %v1211_v10  ;;  %v1215_v12 = vld [vmem:[%s10470_s21 + $0x1260] sm:$0xf] }
 0x18a   : > { %1214 = vst [vmem:[%s10466_s18 + $0x1258] sm:$0xf] %v1213_v11  ;;  %v1217_v13 = vld [vmem:[%s10470_s21 + $0x1264] sm:$0xf]  ;;  %v1219_v14 = vld [vmem:[%s10470_s21 + $0x1270] sm:$0xf] }
 0x18b   : > { %1216 = vst [vmem:[%s10466_s18 + $0x1260] sm:$0xf] %v1215_v12  ;;  %1218 = vst [vmem:[%s10466_s18 + $0x1268] sm:$0xf] %v1217_v13  ;;  %v1221_v15 = vld [vmem:[%s10470_s21 + $0x1274] sm:$0xf] }
 0x18c   : > { %1220 = vst [vmem:[%s10466_s18 + $0x1270] sm:$0xf] %v1219_v14  ;;  %v1223_v16 = vld [vmem:[%s10470_s21 + $0x1280] sm:$0xf]  ;;  %v1225_v17 = vld [vmem:[%s10470_s21 + $0x1284] sm:$0xf] }
 0x18d   : > { %1222 = vst [vmem:[%s10466_s18 + $0x1278] sm:$0xf] %v1221_v15  ;;  %1224 = vst [vmem:[%s10466_s18 + $0x1280] sm:$0xf] %v1223_v16  ;;  %v1227_v18 = vld [vmem:[%s10470_s21 + $0x1290] sm:$0xf] }
 0x18e   : > { %1226 = vst [vmem:[%s10466_s18 + $0x1288] sm:$0xf] %v1225_v17  ;;  %v1229_v19 = vld [vmem:[%s10470_s21 + $0x1294] sm:$0xf]  ;;  %v1231_v20 = vld [vmem:[%s10470_s21 + $0x12a0] sm:$0xf] }
 0x18f   : > { %1228 = vst [vmem:[%s10466_s18 + $0x1290] sm:$0xf] %v1227_v18  ;;  %1230 = vst [vmem:[%s10466_s18 + $0x1298] sm:$0xf] %v1229_v19  ;;  %v1233_v21 = vld [vmem:[%s10470_s21 + $0x12a4] sm:$0xf] }
 0x190   : > { %1232 = vst [vmem:[%s10466_s18 + $0x12a0] sm:$0xf] %v1231_v20  ;;  %v1235_v22 = vld [vmem:[%s10470_s21 + $0x12b0] sm:$0xf]  ;;  %v1237_v23 = vld [vmem:[%s10470_s21 + $0x12b4] sm:$0xf] }
 0x191   : > { %1234 = vst [vmem:[%s10466_s18 + $0x12a8] sm:$0xf] %v1233_v21  ;;  %1236 = vst [vmem:[%s10466_s18 + $0x12b0] sm:$0xf] %v1235_v22  ;;  %v1239_v24 = vld [vmem:[%s10470_s21 + $0x12c0] sm:$0xf] }
 0x192   : > { %1238 = vst [vmem:[%s10466_s18 + $0x12b8] sm:$0xf] %v1237_v23  ;;  %v1241_v25 = vld [vmem:[%s10470_s21 + $0x12c4] sm:$0xf]  ;;  %v1243_v26 = vld [vmem:[%s10470_s21 + $0x12d0] sm:$0xf] }
 0x193   : > { %1240 = vst [vmem:[%s10466_s18 + $0x12c0] sm:$0xf] %v1239_v24  ;;  %1242 = vst [vmem:[%s10466_s18 + $0x12c8] sm:$0xf] %v1241_v25  ;;  %v1245_v27 = vld [vmem:[%s10470_s21 + $0x12d4] sm:$0xf] }
 0x194   : > { %1244 = vst [vmem:[%s10466_s18 + $0x12d0] sm:$0xf] %v1243_v26  ;;  %v1247_v28 = vld [vmem:[%s10470_s21 + $0x12e0] sm:$0xf]  ;;  %v1249_v29 = vld [vmem:[%s10470_s21 + $0x12e4] sm:$0xf] }
 0x195   : > { %1246 = vst [vmem:[%s10466_s18 + $0x12d8] sm:$0xf] %v1245_v27  ;;  %1248 = vst [vmem:[%s10466_s18 + $0x12e0] sm:$0xf] %v1247_v28  ;;  %v1251_v30 = vld [vmem:[%s10470_s21 + $0x12f0] sm:$0xf] }
 0x196   : > { %1250 = vst [vmem:[%s10466_s18 + $0x12e8] sm:$0xf] %v1249_v29  ;;  %v1253_v31 = vld [vmem:[%s10470_s21 + $0x12f4] sm:$0xf]  ;;  %v1255_v32 = vld [vmem:[%s10470_s21 + $0x1300] sm:$0xf] }
 0x197   : > { %1252 = vst [vmem:[%s10466_s18 + $0x12f0] sm:$0xf] %v1251_v30  ;;  %1254 = vst [vmem:[%s10466_s18 + $0x12f8] sm:$0xf] %v1253_v31  ;;  %v1257_v33 = vld [vmem:[%s10470_s21 + $0x1304] sm:$0xf] }
 0x198   : > { %1256 = vst [vmem:[%s10466_s18 + $0x1300] sm:$0xf] %v1255_v32  ;;  %v1259_v34 = vld [vmem:[%s10470_s21 + $0x1310] sm:$0xf]  ;;  %v1261_v35 = vld [vmem:[%s10470_s21 + $0x1314] sm:$0xf] }
 0x199   : > { %1258 = vst [vmem:[%s10466_s18 + $0x1308] sm:$0xf] %v1257_v33  ;;  %1260 = vst [vmem:[%s10466_s18 + $0x1310] sm:$0xf] %v1259_v34  ;;  %v1263_v36 = vld [vmem:[%s10470_s21 + $0x1320] sm:$0xf] }
 0x19a   : > { %1262 = vst [vmem:[%s10466_s18 + $0x1318] sm:$0xf] %v1261_v35  ;;  %v1265_v37 = vld [vmem:[%s10470_s21 + $0x1324] sm:$0xf]  ;;  %v1267_v38 = vld [vmem:[%s10470_s21 + $0x1330] sm:$0xf] }
 0x19b   : > { %1264 = vst [vmem:[%s10466_s18 + $0x1320] sm:$0xf] %v1263_v36  ;;  %1266 = vst [vmem:[%s10466_s18 + $0x1328] sm:$0xf] %v1265_v37  ;;  %v1269_v39 = vld [vmem:[%s10470_s21 + $0x1334] sm:$0xf] }
 0x19c   : > { %1268 = vst [vmem:[%s10466_s18 + $0x1330] sm:$0xf] %v1267_v38  ;;  %v1271_v40 = vld [vmem:[%s10470_s21 + $0x1340] sm:$0xf]  ;;  %v1273_v41 = vld [vmem:[%s10470_s21 + $0x1344] sm:$0xf] }
 0x19d   : > { %1270 = vst [vmem:[%s10466_s18 + $0x1338] sm:$0xf] %v1269_v39  ;;  %1272 = vst [vmem:[%s10466_s18 + $0x1340] sm:$0xf] %v1271_v40  ;;  %v1275_v42 = vld [vmem:[%s10470_s21 + $0x1350] sm:$0xf] }
 0x19e   : > { %1274 = vst [vmem:[%s10466_s18 + $0x1348] sm:$0xf] %v1273_v41  ;;  %v1277_v43 = vld [vmem:[%s10470_s21 + $0x1354] sm:$0xf]  ;;  %v1279_v44 = vld [vmem:[%s10470_s21 + $0x1360] sm:$0xf] }
 0x19f   : > { %1276 = vst [vmem:[%s10466_s18 + $0x1350] sm:$0xf] %v1275_v42  ;;  %1278 = vst [vmem:[%s10466_s18 + $0x1358] sm:$0xf] %v1277_v43  ;;  %v1281_v45 = vld [vmem:[%s10470_s21 + $0x1364] sm:$0xf] }
 0x1a0   : > { %1280 = vst [vmem:[%s10466_s18 + $0x1360] sm:$0xf] %v1279_v44  ;;  %v1283_v46 = vld [vmem:[%s10470_s21 + $0x1370] sm:$0xf]  ;;  %v1285_v47 = vld [vmem:[%s10470_s21 + $0x1374] sm:$0xf] }
 0x1a1   : > { %1282 = vst [vmem:[%s10466_s18 + $0x1368] sm:$0xf] %v1281_v45  ;;  %1284 = vst [vmem:[%s10466_s18 + $0x1370] sm:$0xf] %v1283_v46  ;;  %v1287_v48 = vld [vmem:[%s10470_s21 + $0x1380] sm:$0xf] }
 0x1a2   : > { %1286 = vst [vmem:[%s10466_s18 + $0x1378] sm:$0xf] %v1285_v47  ;;  %v1289_v49 = vld [vmem:[%s10470_s21 + $0x1384] sm:$0xf]  ;;  %v1291_v50 = vld [vmem:[%s10470_s21 + $0x1390] sm:$0xf] }
 0x1a3   : > { %1288 = vst [vmem:[%s10466_s18 + $0x1380] sm:$0xf] %v1287_v48  ;;  %1290 = vst [vmem:[%s10466_s18 + $0x1388] sm:$0xf] %v1289_v49  ;;  %v1293_v51 = vld [vmem:[%s10470_s21 + $0x1394] sm:$0xf] }
 0x1a4   : > { %1292 = vst [vmem:[%s10466_s18 + $0x1390] sm:$0xf] %v1291_v50  ;;  %v1295_v52 = vld [vmem:[%s10470_s21 + $0x13a0] sm:$0xf]  ;;  %v1297_v53 = vld [vmem:[%s10470_s21 + $0x13a4] sm:$0xf] }
 0x1a5   : > { %1294 = vst [vmem:[%s10466_s18 + $0x1398] sm:$0xf] %v1293_v51  ;;  %1296 = vst [vmem:[%s10466_s18 + $0x13a0] sm:$0xf] %v1295_v52  ;;  %v1299_v54 = vld [vmem:[%s10470_s21 + $0x13b0] sm:$0xf] }
 0x1a6   : > { %1298 = vst [vmem:[%s10466_s18 + $0x13a8] sm:$0xf] %v1297_v53  ;;  %v1301_v55 = vld [vmem:[%s10470_s21 + $0x13b4] sm:$0xf]  ;;  %v1303_v56 = vld [vmem:[%s10470_s21 + $0x13c0] sm:$0xf] }
 0x1a7   : > { %1300 = vst [vmem:[%s10466_s18 + $0x13b0] sm:$0xf] %v1299_v54  ;;  %1302 = vst [vmem:[%s10466_s18 + $0x13b8] sm:$0xf] %v1301_v55  ;;  %v1305_v57 = vld [vmem:[%s10470_s21 + $0x13c4] sm:$0xf] }
 0x1a8   : > { %1304 = vst [vmem:[%s10466_s18 + $0x13c0] sm:$0xf] %v1303_v56  ;;  %v1307_v58 = vld [vmem:[%s10470_s21 + $0x13d0] sm:$0xf]  ;;  %v1309_v59 = vld [vmem:[%s10470_s21 + $0x13d4] sm:$0xf] }
 0x1a9   : > { %1306 = vst [vmem:[%s10466_s18 + $0x13c8] sm:$0xf] %v1305_v57  ;;  %1308 = vst [vmem:[%s10466_s18 + $0x13d0] sm:$0xf] %v1307_v58  ;;  %v1311_v60 = vld [vmem:[%s10470_s21 + $0x13e0] sm:$0xf] }
 0x1aa   : > { %1310 = vst [vmem:[%s10466_s18 + $0x13d8] sm:$0xf] %v1309_v59  ;;  %v1313_v61 = vld [vmem:[%s10470_s21 + $0x13e4] sm:$0xf]  ;;  %v1315_v62 = vld [vmem:[%s10470_s21 + $0x13f0] sm:$0xf] }
 0x1ab   : > { %1312 = vst [vmem:[%s10466_s18 + $0x13e0] sm:$0xf] %v1311_v60  ;;  %1314 = vst [vmem:[%s10466_s18 + $0x13e8] sm:$0xf] %v1313_v61  ;;  %v1317_v63 = vld [vmem:[%s10470_s21 + $0x13f4] sm:$0xf] }
 0x1ac   : > { %1316 = vst [vmem:[%s10466_s18 + $0x13f0] sm:$0xf] %v1315_v62  ;;  %v1319_v0 = vld [vmem:[%s10470_s21 + $0x1400] sm:$0xf]  ;;  %v1321_v1 = vld [vmem:[%s10470_s21 + $0x1404] sm:$0xf] }
 0x1ad   : > { %1318 = vst [vmem:[%s10466_s18 + $0x13f8] sm:$0xf] %v1317_v63  ;;  %1320 = vst [vmem:[%s10466_s18 + $0x1400] sm:$0xf] %v1319_v0  ;;  %v1323_v2 = vld [vmem:[%s10470_s21 + $0x1410] sm:$0xf] }
 0x1ae   : > { %1322 = vst [vmem:[%s10466_s18 + $0x1408] sm:$0xf] %v1321_v1  ;;  %v1325_v3 = vld [vmem:[%s10470_s21 + $0x1414] sm:$0xf]  ;;  %v1327_v4 = vld [vmem:[%s10470_s21 + $0x1420] sm:$0xf] }
 0x1af   : > { %1324 = vst [vmem:[%s10466_s18 + $0x1410] sm:$0xf] %v1323_v2  ;;  %1326 = vst [vmem:[%s10466_s18 + $0x1418] sm:$0xf] %v1325_v3  ;;  %v1329_v5 = vld [vmem:[%s10470_s21 + $0x1424] sm:$0xf] }
 0x1b0   : > { %1328 = vst [vmem:[%s10466_s18 + $0x1420] sm:$0xf] %v1327_v4  ;;  %v1331_v6 = vld [vmem:[%s10470_s21 + $0x1430] sm:$0xf]  ;;  %v1333_v7 = vld [vmem:[%s10470_s21 + $0x1434] sm:$0xf] }
 0x1b1   : > { %1330 = vst [vmem:[%s10466_s18 + $0x1428] sm:$0xf] %v1329_v5  ;;  %1332 = vst [vmem:[%s10466_s18 + $0x1430] sm:$0xf] %v1331_v6  ;;  %v1335_v8 = vld [vmem:[%s10470_s21 + $0x1440] sm:$0xf] }
 0x1b2   : > { %1334 = vst [vmem:[%s10466_s18 + $0x1438] sm:$0xf] %v1333_v7  ;;  %v1337_v9 = vld [vmem:[%s10470_s21 + $0x1444] sm:$0xf]  ;;  %v1339_v10 = vld [vmem:[%s10470_s21 + $0x1450] sm:$0xf] }
 0x1b3   : > { %1336 = vst [vmem:[%s10466_s18 + $0x1440] sm:$0xf] %v1335_v8  ;;  %1338 = vst [vmem:[%s10466_s18 + $0x1448] sm:$0xf] %v1337_v9  ;;  %v1341_v11 = vld [vmem:[%s10470_s21 + $0x1454] sm:$0xf] }
 0x1b4   : > { %1340 = vst [vmem:[%s10466_s18 + $0x1450] sm:$0xf] %v1339_v10  ;;  %v1343_v12 = vld [vmem:[%s10470_s21 + $0x1460] sm:$0xf]  ;;  %v1345_v13 = vld [vmem:[%s10470_s21 + $0x1464] sm:$0xf] }
 0x1b5   : > { %1342 = vst [vmem:[%s10466_s18 + $0x1458] sm:$0xf] %v1341_v11  ;;  %1344 = vst [vmem:[%s10466_s18 + $0x1460] sm:$0xf] %v1343_v12  ;;  %v1347_v14 = vld [vmem:[%s10470_s21 + $0x1470] sm:$0xf] }
 0x1b6   : > { %1346 = vst [vmem:[%s10466_s18 + $0x1468] sm:$0xf] %v1345_v13  ;;  %v1349_v15 = vld [vmem:[%s10470_s21 + $0x1474] sm:$0xf]  ;;  %v1351_v16 = vld [vmem:[%s10470_s21 + $0x1480] sm:$0xf] }
 0x1b7   : > { %1348 = vst [vmem:[%s10466_s18 + $0x1470] sm:$0xf] %v1347_v14  ;;  %1350 = vst [vmem:[%s10466_s18 + $0x1478] sm:$0xf] %v1349_v15  ;;  %v1353_v17 = vld [vmem:[%s10470_s21 + $0x1484] sm:$0xf] }
 0x1b8   : > { %1352 = vst [vmem:[%s10466_s18 + $0x1480] sm:$0xf] %v1351_v16  ;;  %v1355_v18 = vld [vmem:[%s10470_s21 + $0x1490] sm:$0xf]  ;;  %v1357_v19 = vld [vmem:[%s10470_s21 + $0x1494] sm:$0xf] }
 0x1b9   : > { %1354 = vst [vmem:[%s10466_s18 + $0x1488] sm:$0xf] %v1353_v17  ;;  %1356 = vst [vmem:[%s10466_s18 + $0x1490] sm:$0xf] %v1355_v18  ;;  %v1359_v20 = vld [vmem:[%s10470_s21 + $0x14a0] sm:$0xf] }
 0x1ba   : > { %1358 = vst [vmem:[%s10466_s18 + $0x1498] sm:$0xf] %v1357_v19  ;;  %v1361_v21 = vld [vmem:[%s10470_s21 + $0x14a4] sm:$0xf]  ;;  %v1363_v22 = vld [vmem:[%s10470_s21 + $0x14b0] sm:$0xf] }
 0x1bb   : > { %1360 = vst [vmem:[%s10466_s18 + $0x14a0] sm:$0xf] %v1359_v20  ;;  %1362 = vst [vmem:[%s10466_s18 + $0x14a8] sm:$0xf] %v1361_v21  ;;  %v1365_v23 = vld [vmem:[%s10470_s21 + $0x14b4] sm:$0xf] }
 0x1bc   : > { %1364 = vst [vmem:[%s10466_s18 + $0x14b0] sm:$0xf] %v1363_v22  ;;  %v1367_v24 = vld [vmem:[%s10470_s21 + $0x14c0] sm:$0xf]  ;;  %v1369_v25 = vld [vmem:[%s10470_s21 + $0x14c4] sm:$0xf] }
 0x1bd   : > { %1366 = vst [vmem:[%s10466_s18 + $0x14b8] sm:$0xf] %v1365_v23  ;;  %1368 = vst [vmem:[%s10466_s18 + $0x14c0] sm:$0xf] %v1367_v24  ;;  %v1371_v26 = vld [vmem:[%s10470_s21 + $0x14d0] sm:$0xf] }
 0x1be   : > { %1370 = vst [vmem:[%s10466_s18 + $0x14c8] sm:$0xf] %v1369_v25  ;;  %v1373_v27 = vld [vmem:[%s10470_s21 + $0x14d4] sm:$0xf]  ;;  %v1375_v28 = vld [vmem:[%s10470_s21 + $0x14e0] sm:$0xf] }
 0x1bf   : > { %1372 = vst [vmem:[%s10466_s18 + $0x14d0] sm:$0xf] %v1371_v26  ;;  %1374 = vst [vmem:[%s10466_s18 + $0x14d8] sm:$0xf] %v1373_v27  ;;  %v1377_v29 = vld [vmem:[%s10470_s21 + $0x14e4] sm:$0xf] }
 0x1c0   : > { %1376 = vst [vmem:[%s10466_s18 + $0x14e0] sm:$0xf] %v1375_v28  ;;  %v1379_v30 = vld [vmem:[%s10470_s21 + $0x14f0] sm:$0xf]  ;;  %v1381_v31 = vld [vmem:[%s10470_s21 + $0x14f4] sm:$0xf] }
 0x1c1   : > { %1378 = vst [vmem:[%s10466_s18 + $0x14e8] sm:$0xf] %v1377_v29  ;;  %1380 = vst [vmem:[%s10466_s18 + $0x14f0] sm:$0xf] %v1379_v30  ;;  %v1383_v32 = vld [vmem:[%s10470_s21 + $0x1500] sm:$0xf] }
 0x1c2   : > { %1382 = vst [vmem:[%s10466_s18 + $0x14f8] sm:$0xf] %v1381_v31  ;;  %v1385_v33 = vld [vmem:[%s10470_s21 + $0x1504] sm:$0xf]  ;;  %v1387_v34 = vld [vmem:[%s10470_s21 + $0x1510] sm:$0xf] }
 0x1c3   : > { %1384 = vst [vmem:[%s10466_s18 + $0x1500] sm:$0xf] %v1383_v32  ;;  %1386 = vst [vmem:[%s10466_s18 + $0x1508] sm:$0xf] %v1385_v33  ;;  %v1389_v35 = vld [vmem:[%s10470_s21 + $0x1514] sm:$0xf] }
 0x1c4   : > { %1388 = vst [vmem:[%s10466_s18 + $0x1510] sm:$0xf] %v1387_v34  ;;  %v1391_v36 = vld [vmem:[%s10470_s21 + $0x1520] sm:$0xf]  ;;  %v1393_v37 = vld [vmem:[%s10470_s21 + $0x1524] sm:$0xf] }
 0x1c5   : > { %1390 = vst [vmem:[%s10466_s18 + $0x1518] sm:$0xf] %v1389_v35  ;;  %1392 = vst [vmem:[%s10466_s18 + $0x1520] sm:$0xf] %v1391_v36  ;;  %v1395_v38 = vld [vmem:[%s10470_s21 + $0x1530] sm:$0xf] }
 0x1c6   : > { %1394 = vst [vmem:[%s10466_s18 + $0x1528] sm:$0xf] %v1393_v37  ;;  %v1397_v39 = vld [vmem:[%s10470_s21 + $0x1534] sm:$0xf]  ;;  %v1399_v40 = vld [vmem:[%s10470_s21 + $0x1540] sm:$0xf] }
 0x1c7   : > { %1396 = vst [vmem:[%s10466_s18 + $0x1530] sm:$0xf] %v1395_v38  ;;  %1398 = vst [vmem:[%s10466_s18 + $0x1538] sm:$0xf] %v1397_v39  ;;  %v1401_v41 = vld [vmem:[%s10470_s21 + $0x1544] sm:$0xf] }
 0x1c8   : > { %1400 = vst [vmem:[%s10466_s18 + $0x1540] sm:$0xf] %v1399_v40  ;;  %v1403_v42 = vld [vmem:[%s10470_s21 + $0x1550] sm:$0xf]  ;;  %v1405_v43 = vld [vmem:[%s10470_s21 + $0x1554] sm:$0xf] }
 0x1c9   : > { %1402 = vst [vmem:[%s10466_s18 + $0x1548] sm:$0xf] %v1401_v41  ;;  %1404 = vst [vmem:[%s10466_s18 + $0x1550] sm:$0xf] %v1403_v42  ;;  %v1407_v44 = vld [vmem:[%s10470_s21 + $0x1560] sm:$0xf] }
 0x1ca   : > { %1406 = vst [vmem:[%s10466_s18 + $0x1558] sm:$0xf] %v1405_v43  ;;  %v1409_v45 = vld [vmem:[%s10470_s21 + $0x1564] sm:$0xf]  ;;  %v1411_v46 = vld [vmem:[%s10470_s21 + $0x1570] sm:$0xf] }
 0x1cb   : > { %1408 = vst [vmem:[%s10466_s18 + $0x1560] sm:$0xf] %v1407_v44  ;;  %1410 = vst [vmem:[%s10466_s18 + $0x1568] sm:$0xf] %v1409_v45  ;;  %v1413_v47 = vld [vmem:[%s10470_s21 + $0x1574] sm:$0xf] }
 0x1cc   : > { %1412 = vst [vmem:[%s10466_s18 + $0x1570] sm:$0xf] %v1411_v46  ;;  %v1415_v48 = vld [vmem:[%s10470_s21 + $0x1580] sm:$0xf]  ;;  %v1417_v49 = vld [vmem:[%s10470_s21 + $0x1584] sm:$0xf] }
 0x1cd   : > { %1414 = vst [vmem:[%s10466_s18 + $0x1578] sm:$0xf] %v1413_v47  ;;  %1416 = vst [vmem:[%s10466_s18 + $0x1580] sm:$0xf] %v1415_v48  ;;  %v1419_v50 = vld [vmem:[%s10470_s21 + $0x1590] sm:$0xf] }
 0x1ce   : > { %1418 = vst [vmem:[%s10466_s18 + $0x1588] sm:$0xf] %v1417_v49  ;;  %v1421_v51 = vld [vmem:[%s10470_s21 + $0x1594] sm:$0xf]  ;;  %v1423_v52 = vld [vmem:[%s10470_s21 + $0x15a0] sm:$0xf] }
 0x1cf   : > { %1420 = vst [vmem:[%s10466_s18 + $0x1590] sm:$0xf] %v1419_v50  ;;  %1422 = vst [vmem:[%s10466_s18 + $0x1598] sm:$0xf] %v1421_v51  ;;  %v1425_v53 = vld [vmem:[%s10470_s21 + $0x15a4] sm:$0xf] }
 0x1d0   : > { %1424 = vst [vmem:[%s10466_s18 + $0x15a0] sm:$0xf] %v1423_v52  ;;  %v1427_v54 = vld [vmem:[%s10470_s21 + $0x15b0] sm:$0xf]  ;;  %v1429_v55 = vld [vmem:[%s10470_s21 + $0x15b4] sm:$0xf] }
 0x1d1   : > { %1426 = vst [vmem:[%s10466_s18 + $0x15a8] sm:$0xf] %v1425_v53  ;;  %1428 = vst [vmem:[%s10466_s18 + $0x15b0] sm:$0xf] %v1427_v54  ;;  %v1431_v56 = vld [vmem:[%s10470_s21 + $0x15c0] sm:$0xf] }
 0x1d2   : > { %1430 = vst [vmem:[%s10466_s18 + $0x15b8] sm:$0xf] %v1429_v55  ;;  %v1433_v57 = vld [vmem:[%s10470_s21 + $0x15c4] sm:$0xf]  ;;  %v1435_v58 = vld [vmem:[%s10470_s21 + $0x15d0] sm:$0xf] }
 0x1d3   : > { %1432 = vst [vmem:[%s10466_s18 + $0x15c0] sm:$0xf] %v1431_v56  ;;  %1434 = vst [vmem:[%s10466_s18 + $0x15c8] sm:$0xf] %v1433_v57  ;;  %v1437_v59 = vld [vmem:[%s10470_s21 + $0x15d4] sm:$0xf] }
 0x1d4   : > { %1436 = vst [vmem:[%s10466_s18 + $0x15d0] sm:$0xf] %v1435_v58  ;;  %v1439_v60 = vld [vmem:[%s10470_s21 + $0x15e0] sm:$0xf]  ;;  %v1441_v61 = vld [vmem:[%s10470_s21 + $0x15e4] sm:$0xf] }
 0x1d5   : > { %1438 = vst [vmem:[%s10466_s18 + $0x15d8] sm:$0xf] %v1437_v59  ;;  %1440 = vst [vmem:[%s10466_s18 + $0x15e0] sm:$0xf] %v1439_v60  ;;  %v1443_v62 = vld [vmem:[%s10470_s21 + $0x15f0] sm:$0xf] }
 0x1d6   : > { %1442 = vst [vmem:[%s10466_s18 + $0x15e8] sm:$0xf] %v1441_v61  ;;  %v1445_v63 = vld [vmem:[%s10470_s21 + $0x15f4] sm:$0xf]  ;;  %v1447_v0 = vld [vmem:[%s10470_s21 + $0x1600] sm:$0xf] }
 0x1d7   : > { %1444 = vst [vmem:[%s10466_s18 + $0x15f0] sm:$0xf] %v1443_v62  ;;  %1446 = vst [vmem:[%s10466_s18 + $0x15f8] sm:$0xf] %v1445_v63  ;;  %v1449_v1 = vld [vmem:[%s10470_s21 + $0x1604] sm:$0xf] }
 0x1d8   : > { %1448 = vst [vmem:[%s10466_s18 + $0x1600] sm:$0xf] %v1447_v0  ;;  %v1451_v2 = vld [vmem:[%s10470_s21 + $0x1610] sm:$0xf]  ;;  %v1453_v3 = vld [vmem:[%s10470_s21 + $0x1614] sm:$0xf] }
 0x1d9   : > { %1450 = vst [vmem:[%s10466_s18 + $0x1608] sm:$0xf] %v1449_v1  ;;  %1452 = vst [vmem:[%s10466_s18 + $0x1610] sm:$0xf] %v1451_v2  ;;  %v1455_v4 = vld [vmem:[%s10470_s21 + $0x1620] sm:$0xf] }
 0x1da   : > { %1454 = vst [vmem:[%s10466_s18 + $0x1618] sm:$0xf] %v1453_v3  ;;  %v1457_v5 = vld [vmem:[%s10470_s21 + $0x1624] sm:$0xf]  ;;  %v1459_v6 = vld [vmem:[%s10470_s21 + $0x1630] sm:$0xf] }
 0x1db   : > { %1456 = vst [vmem:[%s10466_s18 + $0x1620] sm:$0xf] %v1455_v4  ;;  %1458 = vst [vmem:[%s10466_s18 + $0x1628] sm:$0xf] %v1457_v5  ;;  %v1461_v7 = vld [vmem:[%s10470_s21 + $0x1634] sm:$0xf] }
 0x1dc   : > { %1460 = vst [vmem:[%s10466_s18 + $0x1630] sm:$0xf] %v1459_v6  ;;  %v1463_v8 = vld [vmem:[%s10470_s21 + $0x1640] sm:$0xf]  ;;  %v1465_v9 = vld [vmem:[%s10470_s21 + $0x1644] sm:$0xf] }
 0x1dd   : > { %1462 = vst [vmem:[%s10466_s18 + $0x1638] sm:$0xf] %v1461_v7  ;;  %1464 = vst [vmem:[%s10466_s18 + $0x1640] sm:$0xf] %v1463_v8  ;;  %v1467_v10 = vld [vmem:[%s10470_s21 + $0x1650] sm:$0xf] }
 0x1de   : > { %1466 = vst [vmem:[%s10466_s18 + $0x1648] sm:$0xf] %v1465_v9  ;;  %v1469_v11 = vld [vmem:[%s10470_s21 + $0x1654] sm:$0xf]  ;;  %v1471_v12 = vld [vmem:[%s10470_s21 + $0x1660] sm:$0xf] }
 0x1df   : > { %1468 = vst [vmem:[%s10466_s18 + $0x1650] sm:$0xf] %v1467_v10  ;;  %1470 = vst [vmem:[%s10466_s18 + $0x1658] sm:$0xf] %v1469_v11  ;;  %v1473_v13 = vld [vmem:[%s10470_s21 + $0x1664] sm:$0xf] }
 0x1e0   : > { %1472 = vst [vmem:[%s10466_s18 + $0x1660] sm:$0xf] %v1471_v12  ;;  %v1475_v14 = vld [vmem:[%s10470_s21 + $0x1670] sm:$0xf]  ;;  %v1477_v15 = vld [vmem:[%s10470_s21 + $0x1674] sm:$0xf] }
 0x1e1   : > { %1474 = vst [vmem:[%s10466_s18 + $0x1668] sm:$0xf] %v1473_v13  ;;  %1476 = vst [vmem:[%s10466_s18 + $0x1670] sm:$0xf] %v1475_v14  ;;  %v1479_v16 = vld [vmem:[%s10470_s21 + $0x1680] sm:$0xf] }
 0x1e2   : > { %1478 = vst [vmem:[%s10466_s18 + $0x1678] sm:$0xf] %v1477_v15  ;;  %v1481_v17 = vld [vmem:[%s10470_s21 + $0x1684] sm:$0xf]  ;;  %v1483_v18 = vld [vmem:[%s10470_s21 + $0x1690] sm:$0xf] }
 0x1e3   : > { %1480 = vst [vmem:[%s10466_s18 + $0x1680] sm:$0xf] %v1479_v16  ;;  %1482 = vst [vmem:[%s10466_s18 + $0x1688] sm:$0xf] %v1481_v17  ;;  %v1485_v19 = vld [vmem:[%s10470_s21 + $0x1694] sm:$0xf] }
 0x1e4   : > { %1484 = vst [vmem:[%s10466_s18 + $0x1690] sm:$0xf] %v1483_v18  ;;  %v1487_v20 = vld [vmem:[%s10470_s21 + $0x16a0] sm:$0xf]  ;;  %v1489_v21 = vld [vmem:[%s10470_s21 + $0x16a4] sm:$0xf] }
 0x1e5   : > { %1486 = vst [vmem:[%s10466_s18 + $0x1698] sm:$0xf] %v1485_v19  ;;  %1488 = vst [vmem:[%s10466_s18 + $0x16a0] sm:$0xf] %v1487_v20  ;;  %v1491_v22 = vld [vmem:[%s10470_s21 + $0x16b0] sm:$0xf] }
 0x1e6   : > { %1490 = vst [vmem:[%s10466_s18 + $0x16a8] sm:$0xf] %v1489_v21  ;;  %v1493_v23 = vld [vmem:[%s10470_s21 + $0x16b4] sm:$0xf]  ;;  %v1495_v24 = vld [vmem:[%s10470_s21 + $0x16c0] sm:$0xf] }
 0x1e7   : > { %1492 = vst [vmem:[%s10466_s18 + $0x16b0] sm:$0xf] %v1491_v22  ;;  %1494 = vst [vmem:[%s10466_s18 + $0x16b8] sm:$0xf] %v1493_v23  ;;  %v1497_v25 = vld [vmem:[%s10470_s21 + $0x16c4] sm:$0xf] }
 0x1e8   : > { %1496 = vst [vmem:[%s10466_s18 + $0x16c0] sm:$0xf] %v1495_v24  ;;  %v1499_v26 = vld [vmem:[%s10470_s21 + $0x16d0] sm:$0xf]  ;;  %v1501_v27 = vld [vmem:[%s10470_s21 + $0x16d4] sm:$0xf] }
 0x1e9   : > { %1498 = vst [vmem:[%s10466_s18 + $0x16c8] sm:$0xf] %v1497_v25  ;;  %1500 = vst [vmem:[%s10466_s18 + $0x16d0] sm:$0xf] %v1499_v26  ;;  %v1503_v28 = vld [vmem:[%s10470_s21 + $0x16e0] sm:$0xf] }
 0x1ea   : > { %1502 = vst [vmem:[%s10466_s18 + $0x16d8] sm:$0xf] %v1501_v27  ;;  %v1505_v29 = vld [vmem:[%s10470_s21 + $0x16e4] sm:$0xf]  ;;  %v1507_v30 = vld [vmem:[%s10470_s21 + $0x16f0] sm:$0xf] }
 0x1eb   : > { %1504 = vst [vmem:[%s10466_s18 + $0x16e0] sm:$0xf] %v1503_v28  ;;  %1506 = vst [vmem:[%s10466_s18 + $0x16e8] sm:$0xf] %v1505_v29  ;;  %v1509_v31 = vld [vmem:[%s10470_s21 + $0x16f4] sm:$0xf] }
 0x1ec   : > { %1508 = vst [vmem:[%s10466_s18 + $0x16f0] sm:$0xf] %v1507_v30  ;;  %v1511_v32 = vld [vmem:[%s10470_s21 + $0x1700] sm:$0xf]  ;;  %v1513_v33 = vld [vmem:[%s10470_s21 + $0x1704] sm:$0xf] }
 0x1ed   : > { %1510 = vst [vmem:[%s10466_s18 + $0x16f8] sm:$0xf] %v1509_v31  ;;  %1512 = vst [vmem:[%s10466_s18 + $0x1700] sm:$0xf] %v1511_v32  ;;  %v1515_v34 = vld [vmem:[%s10470_s21 + $0x1710] sm:$0xf] }
 0x1ee   : > { %1514 = vst [vmem:[%s10466_s18 + $0x1708] sm:$0xf] %v1513_v33  ;;  %v1517_v35 = vld [vmem:[%s10470_s21 + $0x1714] sm:$0xf]  ;;  %v1519_v36 = vld [vmem:[%s10470_s21 + $0x1720] sm:$0xf] }
 0x1ef   : > { %1516 = vst [vmem:[%s10466_s18 + $0x1710] sm:$0xf] %v1515_v34  ;;  %1518 = vst [vmem:[%s10466_s18 + $0x1718] sm:$0xf] %v1517_v35  ;;  %v1521_v37 = vld [vmem:[%s10470_s21 + $0x1724] sm:$0xf] }
 0x1f0   : > { %1520 = vst [vmem:[%s10466_s18 + $0x1720] sm:$0xf] %v1519_v36  ;;  %v1523_v38 = vld [vmem:[%s10470_s21 + $0x1730] sm:$0xf]  ;;  %v1525_v39 = vld [vmem:[%s10470_s21 + $0x1734] sm:$0xf] }
 0x1f1   : > { %1522 = vst [vmem:[%s10466_s18 + $0x1728] sm:$0xf] %v1521_v37  ;;  %1524 = vst [vmem:[%s10466_s18 + $0x1730] sm:$0xf] %v1523_v38  ;;  %v1527_v40 = vld [vmem:[%s10470_s21 + $0x1740] sm:$0xf] }
 0x1f2   : > { %1526 = vst [vmem:[%s10466_s18 + $0x1738] sm:$0xf] %v1525_v39  ;;  %v1529_v41 = vld [vmem:[%s10470_s21 + $0x1744] sm:$0xf]  ;;  %v1531_v42 = vld [vmem:[%s10470_s21 + $0x1750] sm:$0xf] }
 0x1f3   : > { %1528 = vst [vmem:[%s10466_s18 + $0x1740] sm:$0xf] %v1527_v40  ;;  %1530 = vst [vmem:[%s10466_s18 + $0x1748] sm:$0xf] %v1529_v41  ;;  %v1533_v43 = vld [vmem:[%s10470_s21 + $0x1754] sm:$0xf] }
 0x1f4   : > { %1532 = vst [vmem:[%s10466_s18 + $0x1750] sm:$0xf] %v1531_v42  ;;  %v1535_v44 = vld [vmem:[%s10470_s21 + $0x1760] sm:$0xf]  ;;  %v1537_v45 = vld [vmem:[%s10470_s21 + $0x1764] sm:$0xf] }
 0x1f5   : > { %1534 = vst [vmem:[%s10466_s18 + $0x1758] sm:$0xf] %v1533_v43  ;;  %1536 = vst [vmem:[%s10466_s18 + $0x1760] sm:$0xf] %v1535_v44  ;;  %v1539_v46 = vld [vmem:[%s10470_s21 + $0x1770] sm:$0xf] }
 0x1f6   : > { %1538 = vst [vmem:[%s10466_s18 + $0x1768] sm:$0xf] %v1537_v45  ;;  %v1541_v47 = vld [vmem:[%s10470_s21 + $0x1774] sm:$0xf]  ;;  %v1543_v48 = vld [vmem:[%s10470_s21 + $0x1780] sm:$0xf] }
 0x1f7   : > { %1540 = vst [vmem:[%s10466_s18 + $0x1770] sm:$0xf] %v1539_v46  ;;  %1542 = vst [vmem:[%s10466_s18 + $0x1778] sm:$0xf] %v1541_v47  ;;  %v1545_v49 = vld [vmem:[%s10470_s21 + $0x1784] sm:$0xf] }
 0x1f8   : > { %1544 = vst [vmem:[%s10466_s18 + $0x1780] sm:$0xf] %v1543_v48  ;;  %v1547_v50 = vld [vmem:[%s10470_s21 + $0x1790] sm:$0xf]  ;;  %v1549_v51 = vld [vmem:[%s10470_s21 + $0x1794] sm:$0xf] }
 0x1f9   : > { %1546 = vst [vmem:[%s10466_s18 + $0x1788] sm:$0xf] %v1545_v49  ;;  %1548 = vst [vmem:[%s10466_s18 + $0x1790] sm:$0xf] %v1547_v50  ;;  %v1551_v52 = vld [vmem:[%s10470_s21 + $0x17a0] sm:$0xf] }
 0x1fa   : > { %1550 = vst [vmem:[%s10466_s18 + $0x1798] sm:$0xf] %v1549_v51  ;;  %v1553_v53 = vld [vmem:[%s10470_s21 + $0x17a4] sm:$0xf]  ;;  %v1555_v54 = vld [vmem:[%s10470_s21 + $0x17b0] sm:$0xf] }
 0x1fb   : > { %1552 = vst [vmem:[%s10466_s18 + $0x17a0] sm:$0xf] %v1551_v52  ;;  %1554 = vst [vmem:[%s10466_s18 + $0x17a8] sm:$0xf] %v1553_v53  ;;  %v1557_v55 = vld [vmem:[%s10470_s21 + $0x17b4] sm:$0xf] }
 0x1fc   : > { %1556 = vst [vmem:[%s10466_s18 + $0x17b0] sm:$0xf] %v1555_v54  ;;  %v1559_v56 = vld [vmem:[%s10470_s21 + $0x17c0] sm:$0xf]  ;;  %v1561_v57 = vld [vmem:[%s10470_s21 + $0x17c4] sm:$0xf] }
 0x1fd   : > { %1558 = vst [vmem:[%s10466_s18 + $0x17b8] sm:$0xf] %v1557_v55  ;;  %1560 = vst [vmem:[%s10466_s18 + $0x17c0] sm:$0xf] %v1559_v56  ;;  %v1563_v58 = vld [vmem:[%s10470_s21 + $0x17d0] sm:$0xf] }
 0x1fe   : > { %1562 = vst [vmem:[%s10466_s18 + $0x17c8] sm:$0xf] %v1561_v57  ;;  %v1565_v59 = vld [vmem:[%s10470_s21 + $0x17d4] sm:$0xf]  ;;  %v1567_v60 = vld [vmem:[%s10470_s21 + $0x17e0] sm:$0xf] }
 0x1ff   : > { %1564 = vst [vmem:[%s10466_s18 + $0x17d0] sm:$0xf] %v1563_v58  ;;  %1566 = vst [vmem:[%s10466_s18 + $0x17d8] sm:$0xf] %v1565_v59  ;;  %v1569_v61 = vld [vmem:[%s10470_s21 + $0x17e4] sm:$0xf] }
 0x200   : > { %1568 = vst [vmem:[%s10466_s18 + $0x17e0] sm:$0xf] %v1567_v60  ;;  %v1571_v62 = vld [vmem:[%s10470_s21 + $0x17f0] sm:$0xf]  ;;  %v1573_v63 = vld [vmem:[%s10470_s21 + $0x17f4] sm:$0xf] }
 0x201   : > { %1570 = vst [vmem:[%s10466_s18 + $0x17e8] sm:$0xf] %v1569_v61  ;;  %1572 = vst [vmem:[%s10466_s18 + $0x17f0] sm:$0xf] %v1571_v62  ;;  %p1576_p0 = scmp.ge.s32.totalorder %s1575_s24, 2  ;;  %s35_s23 = sadd.s32 1, %s10478_s23  }
 0x202   : > { %1574 = vst [vmem:[%s10466_s18 + $0x17f8] sm:$0xf] %v1573_v63  ;;  %p32_p1 = scmp.ge.s32.totalorder %s35_s23, 2  }
 0x203   : > { %s12869_s24 = smov (%p1576_p0, %s1575_s24), 0 }
 0x204   : > { %s10008_s25 = sshll.u32 %s12869_s24, 3  ;;  %s10009_s26 = sshll.u32 %s12869_s24, 2 }
 0x205   : > { %s1580_s21 = scalar_lea.vmem %s12855_s3, %s10008_s25   ;;  %s1581_s18 = scalar_lea.vmem [#allocation2], %s10009_s26  }
 0x206   : > { %s12859_s22 = smov %s12869_s24  ;;  %34 = sbr.rel (!%p32_p1) target bundleno = 2 (0x2), region = 127 }
 0x20d   :  { %6287 = vsyncadd [#allocation4], 98304  ;;  %v10330_v0 = vld [vmem:[%s12852_s0 + $0x40] sm:$0xff]   ;;  %v10480_v2 = vmov 0   ;;  %v10332_v3 = vld [vmem:[%s12852_s0 + $0x48] sm:$0xff]   ;;  %s10484_s9 = smov 32  }
 0x20e   :  { %v10331_v1 = vld [vmem:[%s12852_s0] sm:$0xff]   ;;  %10328 = vset.pattern.permute.xlu0 %v10480_v2  ;;  %10329 = vset.pattern.permute.xlu1 %v10480_v2  ;;  %v10333_v4 = vld [vmem:[%s12852_s0 + $0x8] sm:$0xff]   ;;  %v10334_v5 = vld [vmem:[%s12852_s0 + $0x50] sm:$0xff]   ;;  %vm7069_vm5 = vcmask 523264   ;;  %vm7058_vm6 = vcmask 785408  }
 0x20f   :  { %10084 = vmatprep.subr.bf16.mxu0 %v10330_v0  ;;  %v10335_v6 = vld [vmem:[%s12852_s0 + $0x10] sm:$0xff]   ;;  %v10336_v7 = vld [vmem:[%s12852_s0 + $0x58] sm:$0xff]   ;;  %v10338_v9 = vld [vmem:[%s12852_s0 + $0x60] sm:$0xff]  }
 0x210   :  { %10085 = vmatpush3.bf16.msra.mxu0 %v10331_v1  ;;  %v10337_v8 = vld [vmem:[%s12852_s0 + $0x18] sm:$0xff]   ;;  %v10339_v10 = vld [vmem:[%s12852_s0 + $0x20] sm:$0xff]   ;;  %v10340_v11 = vld [vmem:[%s12852_s0 + $0x68] sm:$0xff]  }
 0x211   :  { %10086 = vmatprep.subr.bf16.mxu0 %v10332_v3  ;;  %v10348_v12 = vld [vmem:[%s12853_s1 + $0x4] ss:$20 sps:$4 sm:$0xff]   ;;  %v10341_v13 = vld [vmem:[%s12852_s0 + $0x28] sm:$0xff]   ;;  %v10342_v14 = vld [vmem:[%s12852_s0 + $0x70] sm:$0xff]  }
 0x212   :  { %6816 = vmatprep.mubr.bf16.mxu0 %v10348_v12  ;;  %v10343_v15 = vld [vmem:[%s12852_s0 + $0x30] sm:$0xff]   ;;  %v10344_v16 = vld [vmem:[%s12852_s0 + $0x78] sm:$0xff]   ;;  %v10349_v18 = vld [vmem:[%s12852_s0 + $0xc0] sm:$0xff]  }
 0x213   :  { %v10345_v17 = vld [vmem:[%s12852_s0 + $0x38] sm:$0xff]   ;;  %v10346_v19 = vld [vmem:[%s12853_s1] ss:$20 sps:$4 sm:$0xff]   ;;  %v10351_v22 = vld [vmem:[%s12852_s0 + $0xc8] sm:$0xff]  }
 0x214   :  { %10087 = vmatpush3.bf16.msra.mxu0 %v10333_v4  ;;  %v10350_v20 = vld [vmem:[%s12852_s0 + $0x80] sm:$0xff]   ;;  %v10352_v23 = vld [vmem:[%s12852_s0 + $0x88] sm:$0xff]   ;;  %v10356_v24 = vld [vmem:[%s12852_s0 + $0xd0] sm:$0xff]  }
 0x215   :  { %10088 = vmatprep.subr.bf16.mxu0 %v10334_v5  ;;  %v10353_v21 = vld [vmem:[%s12853_s1 + $0x2c] ss:$20 sps:$4 sm:$0xff]   ;;  %v10355_v25 = vld [vmem:[%s12853_s1 + $0x28] ss:$20 sps:$4 sm:$0xff]   ;;  %v10357_v26 = vld [vmem:[%s12852_s0 + $0x90] sm:$0xff]  }
 0x216   :  { %v10360_v27 = vld [vmem:[%s12853_s1 + $0x54] ss:$20 sps:$4 sm:$0xff]   ;;  %v10358_v28 = vld [vmem:[%s12852_s0 + $0xd8] sm:$0xff]   ;;  %v10363_v30 = vld [vmem:[%s12852_s0 + $0xe0] sm:$0xff]  }
 0x217   :  { %v10359_v29 = vld [vmem:[%s12852_s0 + $0x98] sm:$0xff]   ;;  %v10362_v31 = vld [vmem:[%s12853_s1 + $0x50] ss:$20 sps:$4 sm:$0xff]   ;;  %v10365_v34 = vld [vmem:[%s12852_s0 + $0xe8] sm:$0xff]  }
 0x218   :  { %10089 = vmatpush3.bf16.msra.mxu0 %v10335_v6  ;;  %v10364_v32 = vld [vmem:[%s12852_s0 + $0xa0] sm:$0xff]   ;;  %v10367_v33 = vld [vmem:[%s12853_s1 + $0x7c] ss:$20 sps:$4 sm:$0xff]   ;;  %v10366_v35 = vld [vmem:[%s12852_s0 + $0xa8] sm:$0xff]  }
 0x219   :  { %10090 = vmatprep.subr.bf16.mxu0 %v10336_v7  ;;  %v10370_v36 = vld [vmem:[%s12852_s0 + $0xf0] sm:$0xff]   ;;  %v10369_v37 = vld [vmem:[%s12853_s1 + $0x78] ss:$20 sps:$4 sm:$0xff]   ;;  %v6392_v38 = vld [vmem:[%s12854_s2] sm:$0xff] }
 0x21a   :  { %v6394_v39 = vld [vmem:[%s12854_s2 + $0x10] sm:$0xff]  ;;  %v10376_v41 = vld [vmem:[%s12853_s1 + $0xc] ss:$20 sps:$4 sm:$0xff]   ;;  %6402 = vperm.xlu0 %10328, %v6392_v38   ;;  %v10372_v42 = vld [vmem:[%s12852_s0 + $0xf8] sm:$0xff]  }
 0x21b   :  { %v10371_v40 = vld [vmem:[%s12852_s0 + $0xb0] sm:$0xff]   ;;  %6412 = vperm.xlu1 %10329, %v6394_v39   ;;  %v6393_v43 = vld [vmem:[%s12854_s2 + $0x8] sm:$0xff]  ;;  %v6395_v44 = vld [vmem:[%s12854_s2 + $0x18] sm:$0xff] }
 0x21c   :  { %10091 = vmatpush3.bf16.msra.mxu0 %v10337_v8  ;;  %v10373_v45 = vld [vmem:[%s12852_s0 + $0xb8] sm:$0xff]   ;;  %v10377_v46 = vld [vmem:[%s12852_s0 + $0x100] sm:$0xff]   ;;  %v6397_v49 = vld [vmem:[%s12854_s2 + $0x28] sm:$0xff] }
 0x21d   :  { %10092 = vmatprep.subr.bf16.mxu0 %v10338_v9  ;;  %v6396_v47 = vld [vmem:[%s12854_s2 + $0x20] sm:$0xff]  ;;  %v10374_v48 = vld [vmem:[%s12853_s1 + $0x8] ss:$20 sps:$4 sm:$0xff]   ;;  %v6398_v52 = vld [vmem:[%s12854_s2 + $0x30] sm:$0xff] }
 0x21e   :  { %6407 = vperm.xlu0 %10328, %v6393_v43   ;;  %v10379_v50 = vld [vmem:[%s12853_s1 + $0x34] ss:$20 sps:$4 sm:$0xff]   ;;  %v6399_v53 = vld [vmem:[%s12854_s2 + $0x38] sm:$0xff]  ;;  %v10381_v55 = vld [vmem:[%s12853_s1 + $0x30] ss:$20 sps:$4 sm:$0xff]  }
 0x21f   :  { %6417 = vperm.xlu1 %10329, %v6395_v44   ;;  %v10378_v51 = vld [vmem:[%s12852_s0 + $0x108] sm:$0xff]   ;;  %v10382_v54 = vld [vmem:[%s12852_s0 + $0x110] sm:$0xff]   ;;  %v10383_v57 = vld [vmem:[%s12852_s0 + $0x118] sm:$0xff]  }
 0x220   :  { %10093 = vmatpush3.bf16.msra.mxu0 %v10339_v10  ;;  %v10384_v56 = vld [vmem:[%s12853_s1 + $0x5c] ss:$20 sps:$4 sm:$0xff]   ;;  %v10387_v58 = vld [vmem:[%s12852_s0 + $0x120] sm:$0xff]   ;;  %v10386_v59 = vld [vmem:[%s12853_s1 + $0x58] ss:$20 sps:$4 sm:$0xff]  }
 0x221   :  { %10094 = vmatprep.subr.bf16.mxu0 %v10340_v11  ;;  %v10389_v60 = vld [vmem:[%s12853_s1 + $0x84] ss:$20 sps:$4 sm:$0xff]   ;;  %v10388_v61 = vld [vmem:[%s12852_s0 + $0x128] sm:$0xff]   ;;  %v10392_v62 = vld [vmem:[%s12852_s0 + $0x130] sm:$0xff]  }
 0x222   :  { %6422 = vperm.xlu0 %10328, %v6396_v47   ;;  %v10391_v63 = vld [vmem:[%s12853_s1 + $0x80] ss:$20 sps:$4 sm:$0xff]   ;;  %v10394_v0 = vld [vmem:[%s12853_s1 + $0x10] ss:$20 sps:$4 sm:$0xff]   ;;  %v10393_v1 = vld [vmem:[%s12852_s0 + $0x138] sm:$0xff]   ;;  %s10482_s0 = smov 64  }
 0x223   :  { %6427 = vperm.xlu1 %10329, %v6397_v49   ;;  %v10395_v2 = vld [vmem:[%s12853_s1 + $0x38] ss:$20 sps:$4 sm:$0xff]   ;;  %v10396_v3 = vld [vmem:[%s12853_s1 + $0x60] ss:$20 sps:$4 sm:$0xff]   ;;  %v10397_v4 = vld [vmem:[%s12853_s1 + $0x88] ss:$20 sps:$4 sm:$0xff]  }
 0x224   :  { %10095 = vmatpush3.bf16.msra.mxu0 %v10341_v13  ;;  %s10483_s1 = smov 96  }
 0x225   :  { %10096 = vmatprep.subr.bf16.mxu0 %v10342_v14 }
 0x226   :  { %6432 = vperm.xlu0 %10328, %v6398_v52  }
 0x227   :  { %6437 = vperm.xlu1 %10329, %v6399_v53  }
 0x228   :  { %10097 = vmatpush3.bf16.msra.mxu0 %v10343_v15 }
 0x229   :  { %10098 = vmatprep.subr.bf16.mxu0 %v10344_v16 }
 0x22c   :  { %10099 = vmatpush3.bf16.msra.mxu0 %v10345_v17 }
 0x22d   :  { %10124 = vmatprep.subr.bf16.mxu0 %v10349_v18 }
 0x22f   :  { %6817 = vmatmul.mubr.bf16.vlgmr.msra.gmra.mrb[0].mxu0 %v10346_v19 }
 0x230   :  { %10125 = vmatpush3.bf16.msra.mxu0 %v10350_v20  ;;  %6824 = vmatprep.mubr.bf16.mxu0 %v10353_v21 }
 0x231   :  { %10126 = vmatprep.subr.bf16.mxu0 %v10351_v22 }
 0x234   :  { %10127 = vmatpush3.bf16.msra.mxu0 %v10352_v23 }
 0x235   :  { %10128 = vmatprep.subr.bf16.mxu0 %v10356_v24 }
 0x237   :  { %6825 = vmatmul.mubr.bf16.gmra.mrb[4].mxu0 %v10355_v25 }
 0x238   :  { %10129 = vmatpush3.bf16.msra.mxu0 %v10357_v26  ;;  %6832 = vmatprep.mubr.bf16.mxu0 %v10360_v27 }
 0x239   :  { %10130 = vmatprep.subr.bf16.mxu0 %v10358_v28 }
 0x23c   :  { %10131 = vmatpush3.bf16.msra.mxu0 %v10359_v29 }
 0x23d   :  { %10132 = vmatprep.subr.bf16.mxu0 %v10363_v30 }
 0x23f   :  { %6833 = vmatmul.mubr.bf16.gmra.mrb[8].mxu0 %v10362_v31 }
 0x240   :  { %10133 = vmatpush3.bf16.msra.mxu0 %v10364_v32  ;;  %6840 = vmatprep.mubr.bf16.mxu0 %v10367_v33 }
 0x241   :  { %10134 = vmatprep.subr.bf16.mxu0 %v10365_v34 }
 0x244   :  { %10135 = vmatpush3.bf16.msra.mxu0 %v10366_v35 }
 0x245   :  { %10136 = vmatprep.subr.bf16.mxu0 %v10370_v36 }
 0x247   :  { %6841 = vmatmul.mubr.bf16.gmra.mrb[12].mxu0 %v10369_v37 }
 0x248   :  { %10137 = vmatpush3.bf16.msra.mxu0 %v10371_v40  ;;  %6881 = vmatprep.mubr.bf16.mxu0 %v10376_v41 }
 0x249   :  { %10138 = vmatprep.subr.bf16.mxu0 %v10372_v42 }
 0x24c   :  { %10139 = vmatpush3.bf16.msra.mxu0 %v10373_v45 }
 0x24d   :  { %10176 = vmatprep.subr.bf16.mxu0 %v10377_v46 }
 0x24f   :  { %6882 = vmatmul.mubr.bf16.vlgmr.msra.gmra.mrb[16].mxu0 %v10374_v48 }
 0x250   :  { %10177 = vmatpush3.bf16.msra.mxu0 %v10377_v46  ;;  %6889 = vmatprep.mubr.bf16.mxu0 %v10379_v50 }
 0x251   :  { %10178 = vmatprep.subr.bf16.mxu0 %v10378_v51 }
 0x254   :  { %10179 = vmatpush3.bf16.msra.mxu0 %v10378_v51 }
 0x255   :  { %10180 = vmatprep.subr.bf16.mxu0 %v10382_v54 }
 0x257   :  { %6890 = vmatmul.mubr.bf16.gmra.mrb[20].mxu0 %v10381_v55 }
 0x258   :  { %10181 = vmatpush3.bf16.msra.mxu0 %v10382_v54  ;;  %6897 = vmatprep.mubr.bf16.mxu0 %v10384_v56 }
 0x259   :  { %10182 = vmatprep.subr.bf16.mxu0 %v10383_v57 }
 0x25c   :  { %10183 = vmatpush3.bf16.msra.mxu0 %v10383_v57 }
 0x25d   :  { %10184 = vmatprep.subr.bf16.mxu0 %v10387_v58 }
 0x25f   :  { %6898 = vmatmul.mubr.bf16.gmra.mrb[24].mxu0 %v10386_v59 }
 0x260   :  { %10185 = vmatpush3.bf16.msra.mxu0 %v10387_v58  ;;  %6905 = vmatprep.mubr.bf16.mxu0 %v10389_v60 }
 0x261   :  { %10186 = vmatprep.subr.bf16.mxu0 %v10388_v61 }
 0x264   :  { %10187 = vmatpush3.bf16.msra.mxu0 %v10388_v61 }
 0x265   :  { %10188 = vmatprep.subr.bf16.mxu0 %v10392_v62 }
 0x267   :  { %6906 = vmatmul.mubr.bf16.gmra.mrb[28].mxu0 %v10391_v63 }
 0x268   :  { %10189 = vmatpush3.bf16.msra.mxu0 %v10392_v62  ;;  %10192 = vmatprep.mubr.bf16.mxu0 %v10394_v0 }
 0x269   :  { %10190 = vmatprep.subr.bf16.mxu0 %v10393_v1 }
 0x26c   :  { %10191 = vmatpush3.bf16.msra.mxu0 %v10393_v1 }
 0x26f   :  { %10193 = vmatmul.mubr.bf16.vlgmr.msra.gmra.mrb[32].mxu0 %v10395_v2 }
 0x270   :  { %10196 = vmatprep.mubr.bf16.mxu0 %v10396_v3 }
 0x277   :  { %10197 = vmatmul.mubr.bf16.gmra.mrb[36].mxu0 %v10397_v4 }
 0x299   :  { %v6403_v27 = vpop.permute.xlu0 %6402 }
 0x29a   :  { %v6413_v36 = vpop.permute.xlu1 %6412 }
 0x29d   :  { %v6408_v31 = vpop.permute.xlu0 %6407 }
 0x29e   :  { %v6418_v43 = vpop.permute.xlu1 %6417 }
 0x2a1   :  { %v6423_v53 = vpop.permute.xlu0 %6422 }
 0x2a2   :  { %v6428_v55 = vpop.permute.xlu1 %6427 }
 0x2a5   :  { %v6433_v1 = vpop.permute.xlu0 %6432 }
 0x2a6   :  { %v6438_v3 = vpop.permute.xlu1 %6437 }
 0x302   :  { %v10100_v5 = vpop.f32.mrb[0].mxu0 }
 0x303   :  { %v10101_v6 = vpop.f32.mrb[1].mxu0 }
 0x304   :  { %v10102_v7 = vadd.f32 %v10101_v6, %v10100_v5  ;;  %v10103_v8 = vpop.f32.mrb[2].mxu0 }
 0x305   :  { %v10104_v9 = vpop.f32.mrb[3].mxu0 }
 0x306   :  { %v10105_v10 = vadd.f32 %v10104_v9, %v10103_v8  ;;  %v6819_v33 = vadd.f32 %v10102_v7, %v6403_v27 }
 0x308   :  { %v6822_v38 = vadd.f32 %v10105_v10, %v6408_v31 }
 0x30a   :  { %v10106_v11 = vpop.f32.mrb[4].mxu0 }
 0x30b   :  { %v10107_v12 = vpop.f32.mrb[5].mxu0 }
 0x30c   :  { %v10108_v13 = vadd.f32 %v10107_v12, %v10106_v11  ;;  %v10109_v14 = vpop.f32.mrb[6].mxu0 }
 0x30d   :  { %v10110_v15 = vpop.f32.mrb[7].mxu0 }
 0x30e   :  { %v10111_v16 = vadd.f32 %v10110_v15, %v10109_v14  ;;  %v6827_v45 = vadd.f32 %v10108_v13, %v6413_v36 }
 0x310   :  { %v6830_v49 = vadd.f32 %v10111_v16, %v6418_v43  ;;  %v10481_v43 = vmov 1966171168  }
 0x312   :  { %v10112_v17 = vpop.f32.mrb[8].mxu0 }
 0x313   :  { %v10113_v18 = vpop.f32.mrb[9].mxu0 }
 0x314   :  { %v10114_v19 = vadd.f32 %v10113_v18, %v10112_v17  ;;  %v10115_v20 = vpop.f32.mrb[10].mxu0 }
 0x315   :  { %v10116_v21 = vpop.f32.mrb[11].mxu0 }
 0x316   :  { %v10117_v22 = vadd.f32 %v10116_v21, %v10115_v20  ;;  %v6835_v57 = vadd.f32 %v10114_v19, %v6423_v53 }
 0x318   :  { %v6838_v61 = vadd.f32 %v10117_v22, %v6428_v55 }
 0x31a   :  { %v10118_v23 = vpop.f32.mrb[12].mxu0 }
 0x31b   :  { %v10119_v24 = vpop.f32.mrb[13].mxu0 }
 0x31c   :  { %v10120_v25 = vadd.f32 %v10119_v24, %v10118_v23  ;;  %v10121_v26 = vpop.f32.mrb[14].mxu0 }
 0x31d   :  { %v10122_v28 = vpop.f32.mrb[15].mxu0 }
 0x31e   :  { %v10123_v29 = vadd.f32 %v10122_v28, %v10121_v26  ;;  %v6843_v5 = vadd.f32 %v10120_v25, %v6433_v1 }
 0x320   :  { %v6846_v9 = vadd.f32 %v10123_v29, %v6438_v3 }
 0x322   :  { %v10140_v30 = vpop.f32.mrb[16].mxu0 }
 0x323   :  { %v10141_v32 = vpop.f32.mrb[17].mxu0 }
 0x324   :  { %v10142_v34 = vadd.f32 %v10141_v32, %v10140_v30  ;;  %v10143_v35 = vpop.f32.mrb[18].mxu0 }
 0x325   :  { %v10144_v37 = vpop.f32.mrb[19].mxu0 }
 0x326   :  { %v10145_v39 = vadd.f32 %v10144_v37, %v10143_v35  ;;  %v6884_v40 = vadd.f32 %v10142_v34, %v6819_v33 }
 0x328   :  { %v6887_v41 = vadd.f32 %v10145_v39, %v6822_v38 }
 0x32a   :  { %v10146_v42 = vpop.f32.mrb[20].mxu0 }
 0x32b   :  { %v10147_v44 = vpop.f32.mrb[21].mxu0 }
 0x32c   :  { %v10148_v46 = vadd.f32 %v10147_v44, %v10146_v42  ;;  %v10149_v47 = vpop.f32.mrb[22].mxu0  ;;  %v7027_v42 = vlaneseq  ;;  %v7034_v44 = vunpack.c.l.s4 %v10481_v43 }
 0x32d   :  { %v10150_v48 = vpop.f32.mrb[23].mxu0 }
 0x32e   :  { %v10151_v50 = vadd.f32 %v10150_v48, %v10149_v47  ;;  %v6892_v51 = vadd.f32 %v10148_v46, %v6827_v45  ;;  %v7035_v48 = vunpack.c.0.s8 %v7034_v44  ;;  %vm12298_vm0 = vcmp.lt.s32.totalorder %v7027_v42, 96 }
 0x32f   :  { %vm7061_vm1 = vcmp.ge.s32.totalorder %v7027_v42, 96  ;;  %vm7062_vm2 = vcmp.lt.s32.totalorder %v7027_v42, 192  ;;  %vm7072_vm3 = vcmp.ge.s32.totalorder %v7027_v42, 64  ;;  %vm7073_vm4 = vcmp.lt.s32.totalorder %v7027_v42, 160 }
 0x330   :  { %v6895_v52 = vadd.f32 %v10151_v50, %v6830_v49  ;;  %v12292_v49 = vshrl.u32 %v7027_v42, 7  ;;  %vm12539_vm7 = vmand %vm7061_vm1, %vm7062_vm2  ;;  %vm7080_vm9 = vcmp.ge.s32.totalorder %v7027_v42, 32  ;;  %vm7081_vm10 = vcmp.lt.s32.totalorder %v7027_v42, 128 }
 0x331   :  { %vm12543_vm8 = vmand %vm7072_vm3, %vm7073_vm4 }
 0x332   :  { %v10152_v54 = vpop.f32.mrb[24].mxu0  ;;  %v12295_v55 = vsub.s32 %v7035_v48, %v12292_v49  ;;  %vm12555_vm11 = vmand %vm7080_vm9, %vm7081_vm10 }
 0x333   :  { %v10153_v56 = vpop.f32.mrb[25].mxu0 }
 0x334   :  { %v10154_v58 = vadd.f32 %v10153_v56, %v10152_v54  ;;  %v10155_v59 = vpop.f32.mrb[26].mxu0 }
 0x335   :  { %v10156_v60 = vpop.f32.mrb[27].mxu0 }
 0x336   :  { %v10157_v62 = vadd.f32 %v10156_v60, %v10155_v59  ;;  %v6900_v63 = vadd.f32 %v10154_v58, %v6835_v57 }
 0x338   :  { %v6903_v0 = vadd.f32 %v10157_v62, %v6838_v61 }
 0x33a   :  { %v10158_v2 = vpop.f32.mrb[28].mxu0 }
 0x33b   :  { %v10159_v4 = vpop.f32.mrb[29].mxu0 }
 0x33c   :  { %v10160_v6 = vadd.f32 %v10159_v4, %v10158_v2  ;;  %v10161_v7 = vpop.f32.mrb[30].mxu0 }
 0x33d   :  { %v10162_v8 = vpop.f32.mrb[31].mxu0 }
 0x33e   :  { %v10163_v10 = vadd.f32 %v10162_v8, %v10161_v7  ;;  %v6908_v11 = vadd.f32 %v10160_v6, %v6843_v5 }
 0x340   :  { %v6911_v12 = vadd.f32 %v10163_v10, %v6846_v9 }
 0x342   :  { %v10194_v13 = vpop.f32.mrb[32].mxu0 }
 0x343   :  { %v6957_v14 = vadd.f32 %v10194_v13, %v6892_v51  ;;  %v6948_v15 = vpop.f32.mrb[33].mxu0 }
 0x344   :  { %v6949_v16 = vadd.f32 %v6948_v15, %v6884_v40  ;;  %v10195_v17 = vpop.f32.mrb[34].mxu0 }
 0x345   :  { %v10072_v18 = vmul.f32 -1.442695, %v6957_v14  ;;  %v6960_v19 = vadd.f32 %v10195_v17, %v6895_v52  ;;  %v6951_v20 = vpop.f32.mrb[35].mxu0 }
 0x346   :  { %v10070_v21 = vmul.f32 -1.442695, %v6949_v16  ;;  %v6952_v22 = vadd.f32 %v6951_v20, %v6887_v41 }
 0x347   :  { %10398 = vpow2.f32 %v10072_v18  ;;  %v10073_v23 = vmul.f32 -1.442695, %v6960_v19 }
 0x348   :  { %10400 = vpow2.f32 %v10070_v21  ;;  %v10071_v24 = vmul.f32 -1.442695, %v6952_v22 }
 0x349   :  { %10402 = vpow2.f32 %v10073_v23 }
 0x34a   :  { %10404 = vpow2.f32 %v10071_v24  ;;  %v10198_v25 = vpop.f32.mrb[36].mxu0 }
 0x34b   :  { %v6973_v26 = vadd.f32 %v10198_v25, %v6908_v11  ;;  %v6964_v27 = vpop.f32.mrb[37].mxu0 }
 0x34c   :  { %v6965_v28 = vadd.f32 %v6964_v27, %v6900_v63  ;;  %v10199_v29 = vpop.f32.mrb[38].mxu0 }
 0x34d   :  { %v10076_v30 = vmul.f32 -1.442695, %v6973_v26  ;;  %v6976_v31 = vadd.f32 %v10199_v29, %v6911_v12  ;;  %v6967_v32 = vpop.f32.mrb[39].mxu0 }
 0x34e   :  { %v10074_v33 = vmul.f32 -1.442695, %v6965_v28  ;;  %v6968_v34 = vadd.f32 %v6967_v32, %v6903_v0 }
 0x34f   :  { %10406 = vpow2.f32 %v10076_v30  ;;  %v10077_v35 = vmul.f32 -1.442695, %v6976_v31 }
 0x350   :  { %10408 = vpow2.f32 %v10074_v33  ;;  %v10075_v36 = vmul.f32 -1.442695, %v6968_v34 }
 0x351   :  { %v10399_v37 = vpop.eup %10398  ;;  %10410 = vpow2.f32 %v10077_v35 }
 0x352   :  { %v10401_v38 = vpop.eup %10400  ;;  %v7005_v39 = vadd.f32 1.0, %v10399_v37  ;;  %10412 = vpow2.f32 %v10075_v36 }
 0x353   :  { %v10403_v40 = vpop.eup %10402  ;;  %v7003_v41 = vadd.f32 1.0, %v10401_v38 }
 0x354   :  { %v10405_v45 = vpop.eup %10404  ;;  %10414 = vrcp.f32 %v7005_v39  ;;  %v7006_v46 = vadd.f32 1.0, %v10403_v40 }
 0x355   :  { %10416 = vrcp.f32 %v7003_v41  ;;  %v7004_v47 = vadd.f32 1.0, %v10405_v45 }
 0x356   :  { %10418 = vrcp.f32 %v7006_v46 }
 0x357   :  { %10420 = vrcp.f32 %v7004_v47 }
 0x359   :  { %v10407_v50 = vpop.eup %10406 }
 0x35a   :  { %v10409_v51 = vpop.eup %10408  ;;  %v7009_v52 = vadd.f32 1.0, %v10407_v50 }
 0x35b   :  { %v10411_v53 = vpop.eup %10410  ;;  %v7007_v54 = vadd.f32 1.0, %v10409_v51 }
 0x35c   :  { %v10413_v56 = vpop.eup %10412  ;;  %10422 = vrcp.f32 %v7009_v52  ;;  %v7010_v57 = vadd.f32 1.0, %v10411_v53 }
 0x35d   :  { %10424 = vrcp.f32 %v7007_v54  ;;  %v7008_v59 = vadd.f32 1.0, %v10413_v56 }
 0x35e   :  { %v10415_v60 = vpop.eup %10414  ;;  %10426 = vrcp.f32 %v7010_v57 }
 0x35f   :  { %v10417_v61 = vpop.eup %10416  ;;  %10428 = vrcp.f32 %v7008_v59  ;;  %v7220_v62 = vrot.slane %v10415_v60, %v12295_v55  ;;  %v7254_v63 = vcombine.high %v10415_v60, %v10415_v60  ;;  %7212 = vst.msk [vmem:[#allocation3 + $0xc] sm:$0x1] %vm12298_vm0, %v10415_v60 }
 0x360   :  { %v10419_v0 = vpop.eup %10418  ;;  %v7039_v1 = vrot.slane %v10417_v61, %v12295_v55  ;;  %v7084_v2 = vcombine.high %v10417_v61, %v10417_v61  ;;  %7031 = vst.msk [vmem:[#allocation3] sm:$0x1] %vm12298_vm0, %v10417_v61 }
 0x361   :  { %v10421_v3 = vpop.eup %10420  ;;  %v7228_v4 = vrot.slane %v7220_v62, %v12295_v55  ;;  %v7221_v5 = vcombine.high %v7220_v62, %v7220_v62  ;;  %v7261_v6 = vrot.slane %v7254_v63, %v12295_v55  ;;  %7297 = vst.msk [vmem:[#allocation3 + $0x12] sm:$0x1] %vm12298_vm0, %v10419_v0  ;;  %v7305_v14 = vrot.slane %v10419_v0, %v12295_v55 }
 0x362   :  { %v7047_v7 = vrot.slane %v7039_v1, %v12295_v55  ;;  %7127 = vst.msk [vmem:[#allocation3 + $0x6] sm:$0x1] %vm12298_vm0, %v10421_v3  ;;  %v7040_v10 = vcombine.high %v7039_v1, %v7039_v1  ;;  %v12317_v11 = vrot.slane %v7084_v2, %v12295_v55  ;;  %v7339_v21 = vcombine.high %v10419_v0, %v10419_v0 }
 0x363   :  { %v7242_v8 = vcombine.high %v7228_v4, %v7228_v4  ;;  %v7235_v9 = vrot.slane %v7221_v5, %v12295_v55  ;;  %v7268_v12 = vrot.slane %v7261_v6, %v12295_v55  ;;  %v7271_v18 = vcombine.high %v7261_v6, %v7261_v6 }
 0x364   :  { %v7065_v16 = vcombine.high %v7047_v7, %v7047_v7  ;;  %v7054_v17 = vrot.slane %v7040_v10, %v12295_v55  ;;  %v12332_v19 = vrot.slane %v12317_v11, %v12295_v55  ;;  %v7169_v22 = vcombine.high %v10421_v3, %v10421_v3 }
 0x365   :  { %7243 = vrot.lane.b32.xlu1 %v7242_v8, %s10482_s0  ;;  %7236 = vrot.lane.b32.xlu0 %v7235_v9, %s10483_s1  ;;  %7270 = vst.msk [vmem:[#allocation3 + $0xf] sm:$0x1] %vm12298_vm0, %v7268_v12  ;;  %v12348_v24 = vrot.slane %v7339_v21, %v12295_v55  ;;  %v12356_v26 = vrot.slane %v7271_v18, %v12295_v55 }
 0x366   :  { %v12322_v13 = vpop.eup %10422  ;;  %7100 = vst.msk [vmem:[#allocation3 + $0x3] sm:$0x1] %vm12298_vm0, %v12332_v19  ;;  %v12351_v25 = vrot.slane %v7169_v22, %v12295_v55  ;;  %v7249_v27 = vcombine.high %v7235_v9, %v7235_v9  ;;  %v7306_v28 = vcombine.high %v7305_v14, %v7305_v14  ;;  %v7313_v32 = vrot.slane %v7305_v14, %v12295_v55 }
 0x367   :  { %v12327_v15 = vpop.eup %10424  ;;  %7552 = vst.msk [vmem:[#allocation3 + $0x24] sm:$0x1] %vm12298_vm0, %v12322_v13  ;;  %v7594_v29 = vcombine.high %v12322_v13, %v12322_v13  ;;  %v12362_v30 = vrot.slane %v12348_v24, %v12295_v55  ;;  %v7285_v36 = vcombine.high %v7268_v12, %v7268_v12  ;;  %v7135_v37 = vrot.slane %v10421_v3, %v12295_v55 }
 0x368   :  { %v10427_v20 = vpop.eup %10426  ;;  %7382 = vst.msk [vmem:[#allocation3 + $0x18] sm:$0x1] %vm12298_vm0, %v12327_v15  ;;  %v12366_v31 = vrot.slane %v12351_v25, %v12295_v55  ;;  %v7424_v34 = vcombine.high %v12327_v15, %v12327_v15  ;;  %v7320_v35 = vrot.slane %v7306_v28, %v12295_v55  ;;  %v7327_v39 = vcombine.high %v7313_v32, %v7313_v32 }
 0x369   :  { %v10429_v23 = vpop.eup %10428  ;;  %7066 = vrot.lane.b32.xlu1 %v7065_v16, %s10482_s0  ;;  %7055 = vrot.lane.b32.xlu0 %v7054_v17, %s10483_s1  ;;  %7637 = vst.msk [vmem:[#allocation3 + $0x2a] sm:$0x1] %vm12298_vm0, %v10427_v20  ;;  %v12373_v33 = vrot.slane %v7594_v29, %v12295_v55  ;;  %7355 = vst.msk [vmem:[#allocation3 + $0x15] sm:$0x1] %vm12298_vm0, %v12362_v30  ;;  %v7076_v40 = vcombine.high %v7054_v17, %v7054_v17 }
 0x36a   :  { %7467 = vst.msk [vmem:[#allocation3 + $0x1e] sm:$0x1] %vm12298_vm0, %v10429_v23  ;;  %7185 = vst.msk [vmem:[#allocation3 + $0x9] sm:$0x1] %vm12298_vm0, %v12366_v31  ;;  %v7101_v41 = vcombine.high %v12317_v11, %v12317_v11  ;;  %v7431_v43 = vrot.slane %v7424_v34, %v12295_v55  ;;  %v7645_v44 = vrot.slane %v10427_v20, %v12295_v55 }
 0x36b   :  { %v12387_v38 = vrot.slane %v12373_v33, %v12295_v55  ;;  %v7143_v45 = vrot.slane %v7135_v37, %v12295_v55  ;;  %v7475_v46 = vrot.slane %v10429_v23, %v12295_v55  ;;  %v7679_v47 = vcombine.high %v10427_v20, %v10427_v20 }
 0x36c   :  { %v7509_v48 = vcombine.high %v10429_v23, %v10429_v23  ;;  %v7441_v50 = vcombine.high %v7431_v43, %v7431_v43  ;;  %v7646_v51 = vcombine.high %v7645_v44, %v7645_v44  ;;  %v12401_v52 = vrot.slane %v7431_v43, %v12295_v55 }
 0x36d   :  { %7279 = vrot.lane.b32.xlu1 %v12356_v26, %s10483_s1  ;;  %7250 = vrot.lane.b32.xlu0 %v7249_v27, %s10484_s9  ;;  %7610 = vst.msk [vmem:[#allocation3 + $0x27] sm:$0x1] %vm12298_vm0, %v12387_v38  ;;  %v12404_v53 = vrot.slane %v7645_v44, %v12295_v55  ;;  %v7136_v54 = vcombine.high %v7135_v37, %v7135_v37 }
 0x36e   :  { %v7476_v56 = vcombine.high %v7475_v46, %v7475_v46  ;;  %v7686_v57 = vrot.slane %v7679_v47, %v12295_v55  ;;  %v7108_v59 = vrot.slane %v7101_v41, %v12295_v55  ;;  %v7115_v60 = vcombine.high %v12332_v19, %v12332_v19  ;;  %7440 = vst.msk [vmem:[#allocation3 + $0x1b] sm:$0x1] %vm12298_vm0, %v12401_v52 }
 0x36f   :  { %v12413_v61 = vrot.slane %v7441_v50, %v12295_v55  ;;  %v12416_v62 = vrot.slane %v7646_v51, %v12295_v55  ;;  %v12425_v1 = vrot.slane %v7475_v46, %v12295_v55  ;;  %v7516_v3 = vrot.slane %v7509_v48, %v12295_v55 }
 0x370   :  { %v12422_v63 = vrot.slane %v7476_v56, %v12295_v55  ;;  %v7696_v0 = vcombine.high %v7686_v57, %v7686_v57  ;;  %v12428_v2 = vrot.slane %v7686_v57, %v12295_v55  ;;  %v7157_v7 = vcombine.high %v7143_v45, %v7143_v45 }
 0x371   :  { %7321 = vrot.lane.b32.xlu1 %v7320_v35, %s10483_s1  ;;  %7286 = vrot.lane.b32.xlu0 %v7285_v36, %s10482_s0  ;;  %v7526_v5 = vcombine.high %v7516_v3, %v7516_v3  ;;  %v12440_v6 = vrot.slane %v7516_v3, %v12295_v55  ;;  %v7150_v8 = vrot.slane %v7136_v54, %v12295_v55 }
 0x372   :  { %v12434_v4 = vrot.slane %v7696_v0, %v12295_v55  ;;  %7695 = vst.msk [vmem:[#allocation3 + $0x2d] sm:$0x1] %vm12298_vm0, %v12428_v2  ;;  %v7356_v9 = vcombine.high %v12348_v24, %v12348_v24  ;;  %v7292_v11 = vcombine.high %v12356_v26, %v12356_v26  ;;  %v7122_v14 = vcombine.high %v7108_v59, %v7108_v59 }
 0x373   :  { %v12446_v10 = vrot.slane %v7526_v5, %v12295_v55  ;;  %7525 = vst.msk [vmem:[#allocation3 + $0x21] sm:$0x1] %vm12298_vm0, %v12440_v6  ;;  %v7370_v16 = vcombine.high %v12362_v30, %v12362_v30  ;;  %v7186_v58 = vcombine.high %v12351_v25, %v12351_v25  ;;  %v7334_v18 = vcombine.high %v7320_v35, %v7320_v35 }
 0x374   :  { %v7363_v12 = vrot.slane %v7356_v9, %v12295_v55  ;;  %v7164_v20 = vcombine.high %v7150_v8, %v7150_v8  ;;  %v7560_v21 = vrot.slane %v12322_v13, %v12295_v55  ;;  %v7200_v23 = vcombine.high %v12366_v31, %v12366_v31 }
 0x375   :  { %7328 = vrot.lane.b32.xlu1 %v7327_v39, %s10482_s0  ;;  %7077 = vrot.lane.b32.xlu0 %v7076_v40, %s10484_s9  ;;  %v7193_v17 = vrot.slane %v7186_v58, %v12295_v55  ;;  %v7611_v25 = vcombine.high %v12373_v33, %v12373_v33  ;;  %v7390_v28 = vrot.slane %v12327_v15, %v12295_v55 }
 0x376   :  { %v7377_v19 = vcombine.high %v7363_v12, %v7363_v12  ;;  %v7561_v24 = vcombine.high %v7560_v21, %v7560_v21  ;;  %v7568_v27 = vrot.slane %v7560_v21, %v12295_v55  ;;  %v7625_v30 = vcombine.high %v12387_v38, %v12387_v38 }
 0x377   :  { %v7207_v22 = vcombine.high %v7193_v17, %v7193_v17  ;;  %v7618_v13 = vrot.slane %v7611_v25, %v12295_v55  ;;  %v7391_v31 = vcombine.high %v7390_v28, %v7390_v28  ;;  %v7398_v34 = vrot.slane %v7390_v28, %v12295_v55 }
 0x378   :  { %v7575_v26 = vrot.slane %v7561_v24, %v12295_v55  ;;  %v7582_v29 = vcombine.high %v7568_v27, %v7568_v27  ;;  %v7455_v35 = vcombine.high %v12401_v52, %v12401_v52  ;;  %v7497_v37 = vcombine.high %v12425_v1, %v12425_v1 }
 0x379   :  { %7109 = vrot.lane.b32.xlu1 %v7108_v59, %s10483_s1  ;;  %7116 = vrot.lane.b32.xlu0 %v7115_v60, %s10482_s0  ;;  %v7405_v32 = vrot.slane %v7391_v31, %v12295_v55  ;;  %v7412_v15 = vcombine.high %v7398_v34, %v7398_v34  ;;  %v7667_v55 = vcombine.high %v12404_v53, %v12404_v53 }
 0x37a   :  { %v7589_v33 = vcombine.high %v7575_v26, %v7575_v26  ;;  %v7710_v38 = vcombine.high %v12428_v2, %v12428_v2  ;;  %v7632_v39 = vcombine.high %v7618_v13, %v7618_v13  ;;  %v7462_v40 = vcombine.high %v12413_v61, %v12413_v61 }
 0x37b   :  { %v7419_v36 = vcombine.high %v7405_v32, %v7405_v32  ;;  %v7540_v41 = vcombine.high %v12440_v6, %v12440_v6  ;;  %v7547_v43 = vcombine.high %v12446_v10, %v12446_v10  ;;  %v7504_v44 = vcombine.high %v12422_v63, %v12422_v63 }
 0x37c   :  { %v7717_v45 = vcombine.high %v12434_v4, %v12434_v4  ;;  %v7674_v46 = vcombine.high %v12416_v62, %v12416_v62 }
 0x37d   :  { %7158 = vrot.lane.b32.xlu1 %v7157_v7, %s10482_s0  ;;  %7151 = vrot.lane.b32.xlu0 %v7150_v8, %s10483_s1 }
 0x381   :  { %7293 = vrot.lane.b32.xlu1 %v7292_v11, %s10484_s9  ;;  %7364 = vrot.lane.b32.xlu0 %v7363_v12, %s10483_s1 }
 0x385   :  { %7123 = vrot.lane.b32.xlu1 %v7122_v14, %s10484_s9  ;;  %7371 = vrot.lane.b32.xlu0 %v7370_v16, %s10482_s0 }
 0x389   :  { %7194 = vrot.lane.b32.xlu1 %v7193_v17, %s10483_s1  ;;  %7335 = vrot.lane.b32.xlu0 %v7334_v18, %s10484_s9 }
 0x38d   :  { %7378 = vrot.lane.b32.xlu1 %v7377_v19, %s10484_s9  ;;  %7165 = vrot.lane.b32.xlu0 %v7164_v20, %s10484_s9 }
 0x391   :  { %7208 = vrot.lane.b32.xlu1 %v7207_v22, %s10484_s9  ;;  %7201 = vrot.lane.b32.xlu0 %v7200_v23, %s10482_s0 }
 0x395   :  { %7576 = vrot.lane.b32.xlu1 %v7575_v26, %s10483_s1  ;;  %7619 = vrot.lane.b32.xlu0 %v7618_v13, %s10483_s1 }
 0x399   :  { %7583 = vrot.lane.b32.xlu1 %v7582_v29, %s10482_s0  ;;  %7626 = vrot.lane.b32.xlu0 %v7625_v30, %s10482_s0 }
 0x39d   :  { %7406 = vrot.lane.b32.xlu1 %v7405_v32, %s10483_s1  ;;  %7590 = vrot.lane.b32.xlu0 %v7589_v33, %s10484_s9 }
 0x3a1   :  { %7413 = vrot.lane.b32.xlu1 %v7412_v15, %s10482_s0  ;;  %7449 = vrot.lane.b32.xlu0 %v12413_v61, %s10483_s1 }
 0x3a5   :  { %7661 = vrot.lane.b32.xlu1 %v12416_v62, %s10483_s1  ;;  %7456 = vrot.lane.b32.xlu0 %v7455_v35, %s10482_s0 }
 0x3a9   :  { %7668 = vrot.lane.b32.xlu1 %v7667_v55, %s10482_s0  ;;  %7420 = vrot.lane.b32.xlu0 %v7419_v36, %s10484_s9 }
 0x3ad   :  { %7491 = vrot.lane.b32.xlu1 %v12422_v63, %s10483_s1  ;;  %7704 = vrot.lane.b32.xlu0 %v12434_v4, %s10483_s1 }
 0x3b1   :  { %7498 = vrot.lane.b32.xlu1 %v7497_v37, %s10482_s0  ;;  %7711 = vrot.lane.b32.xlu0 %v7710_v38, %s10482_s0 }
 0x3b5   :  { %7633 = vrot.lane.b32.xlu1 %v7632_v39, %s10484_s9  ;;  %7534 = vrot.lane.b32.xlu0 %v12446_v10, %s10483_s1 }
 0x3b9   :  { %7463 = vrot.lane.b32.xlu1 %v7462_v40, %s10484_s9  ;;  %7541 = vrot.lane.b32.xlu0 %v7540_v41, %s10482_s0 }
 0x3bd   :  { %7548 = vrot.lane.b32.xlu1 %v7547_v43, %s10484_s9  ;;  %7505 = vrot.lane.b32.xlu0 %v7504_v44, %s10484_s9 }
 0x3c1   :  { %7718 = vrot.lane.b32.xlu1 %v7717_v45, %s10484_s9  ;;  %7675 = vrot.lane.b32.xlu0 %v7674_v46, %s10484_s9 }
 0x3d7   :  { %v7244_v47 = vpop.permute.xlu1 %7243  ;;  %v7237_v48 = vpop.permute.xlu0 %7236 }
 0x3d8   :  { %v7245_v50 = vrot.slane %v7244_v47, 7  ;;  %v7238_v52 = vrot.slane %v7237_v48, 7 }
 0x3da   :  { %v7246_v54 = vsel %vm7069_vm5, %v7245_v50, %v7244_v47  ;;  %v7239_v56 = vsel %vm7058_vm6, %v7238_v52, %v7237_v48 }
 0x3db   :  { %7241 = vst.msk [vmem:[#allocation3 + $0xc] sm:$0x3] %vm12539_vm7, %v7239_v56  ;;  %v7067_v57 = vpop.permute.xlu1 %7066  ;;  %v7056_v59 = vpop.permute.xlu0 %7055 }
 0x3dc   :  { %v7068_v60 = vrot.slane %v7067_v57, 7  ;;  %v7057_v61 = vrot.slane %v7056_v59, 7  ;;  %7248 = vst.msk [vmem:[#allocation3 + $0xd] sm:$0x3] %vm12543_vm8, %v7246_v54 }
 0x3de   :  { %v7070_v63 = vsel %vm7069_vm5, %v7068_v60, %v7067_v57  ;;  %v7059_v0 = vsel %vm7058_vm6, %v7057_v61, %v7056_v59 }
 0x3df   :  { %7064 = vst.msk [vmem:[#allocation3] sm:$0x3] %vm12539_vm7, %v7059_v0  ;;  %v7280_v42 = vpop.permute.xlu1 %7279  ;;  %v7251_v1 = vpop.permute.xlu0 %7250 }
 0x3e0   :  { %v7281_v2 = vrot.slane %v7280_v42, 7  ;;  %7253 = vst.msk [vmem:[#allocation3 + $0xe] sm:$0x1] %vm12555_vm11, %v7251_v1 }
 0x3e1   :  { %7075 = vst.msk [vmem:[#allocation3 + $0x1] sm:$0x3] %vm12543_vm8, %v7070_v63 }
 0x3e2   :  { %v7282_v3 = vsel %vm7058_vm6, %v7281_v2, %v7280_v42 }
 0x3e3   :  { %7284 = vst.msk [vmem:[#allocation3 + $0xf] sm:$0x3] %vm12539_vm7, %v7282_v3  ;;  %v7322_v4 = vpop.permute.xlu1 %7321  ;;  %v7287_v5 = vpop.permute.xlu0 %7286 }
 0x3e4   :  { %v7323_v6 = vrot.slane %v7322_v4, 7  ;;  %v7288_v7 = vrot.slane %v7287_v5, 7 }
 0x3e6   :  { %v7324_v8 = vsel %vm7058_vm6, %v7323_v6, %v7322_v4  ;;  %v7289_v9 = vsel %vm7069_vm5, %v7288_v7, %v7287_v5 }
 0x3e7   :  { %7326 = vst.msk [vmem:[#allocation3 + $0x12] sm:$0x3] %vm12539_vm7, %v7324_v8  ;;  %v7329_v10 = vpop.permute.xlu1 %7328  ;;  %v7078_v11 = vpop.permute.xlu0 %7077 }
 0x3e8   :  { %7291 = vst.msk [vmem:[#allocation3 + $0x10] sm:$0x3] %vm12543_vm8, %v7289_v9  ;;  %v7330_v12 = vrot.slane %v7329_v10, 7 }
 0x3e9   :  { %7083 = vst.msk [vmem:[#allocation3 + $0x2] sm:$0x1] %vm12555_vm11, %v7078_v11 }
 0x3ea   :  { %v7331_v14 = vsel %vm7069_vm5, %v7330_v12, %v7329_v10 }
 0x3eb   :  { %7333 = vst.msk [vmem:[#allocation3 + $0x13] sm:$0x3] %vm12543_vm8, %v7331_v14  ;;  %v7110_v16 = vpop.permute.xlu1 %7109  ;;  %v7117_v58 = vpop.permute.xlu0 %7116 }
 0x3ec   :  { %v7111_v17 = vrot.slane %v7110_v16, 7  ;;  %v7118_v18 = vrot.slane %v7117_v58, 7 }
 0x3ee   :  { %v7112_v19 = vsel %vm7058_vm6, %v7111_v17, %v7110_v16  ;;  %v7119_v20 = vsel %vm7069_vm5, %v7118_v18, %v7117_v58 }
 0x3ef   :  { %7114 = vst.msk [vmem:[#allocation3 + $0x3] sm:$0x3] %vm12539_vm7, %v7112_v19  ;;  %v7159_v21 = vpop.permute.xlu1 %7158  ;;  %v7152_v22 = vpop.permute.xlu0 %7151 }
 0x3f0   :  { %7121 = vst.msk [vmem:[#allocation3 + $0x4] sm:$0x3] %vm12543_vm8, %v7119_v20  ;;  %v7160_v23 = vrot.slane %v7159_v21, 7  ;;  %v7153_v24 = vrot.slane %v7152_v22, 7 }
 0x3f2   :  { %v7161_v25 = vsel %vm7069_vm5, %v7160_v23, %v7159_v21  ;;  %v7154_v26 = vsel %vm7058_vm6, %v7153_v24, %v7152_v22 }
 0x3f3   :  { %7156 = vst.msk [vmem:[#allocation3 + $0x6] sm:$0x3] %vm12539_vm7, %v7154_v26  ;;  %v7294_v13 = vpop.permute.xlu1 %7293  ;;  %v7365_v27 = vpop.permute.xlu0 %7364 }
 0x3f4   :  { %7163 = vst.msk [vmem:[#allocation3 + $0x7] sm:$0x3] %vm12543_vm8, %v7161_v25  ;;  %v7366_v28 = vrot.slane %v7365_v27, 7 }
 0x3f5   :  { %7296 = vst.msk [vmem:[#allocation3 + $0x11] sm:$0x1] %vm12555_vm11, %v7294_v13 }
 0x3f6   :  { %v7367_v29 = vsel %vm7058_vm6, %v7366_v28, %v7365_v27 }
 0x3f7   :  { %7369 = vst.msk [vmem:[#allocation3 + $0x15] sm:$0x3] %vm12539_vm7, %v7367_v29  ;;  %v7124_v30 = vpop.permute.xlu1 %7123  ;;  %v7372_v31 = vpop.permute.xlu0 %7371 }
 0x3f8   :  { %7126 = vst.msk [vmem:[#allocation3 + $0x5] sm:$0x1] %vm12555_vm11, %v7124_v30  ;;  %v7373_v32 = vrot.slane %v7372_v31, 7 }
 0x3fa   :  { %v7374_v33 = vsel %vm7069_vm5, %v7373_v32, %v7372_v31 }
 0x3fb   :  { %7376 = vst.msk [vmem:[#allocation3 + $0x16] sm:$0x3] %vm12543_vm8, %v7374_v33  ;;  %v7195_v34 = vpop.permute.xlu1 %7194  ;;  %v7336_v15 = vpop.permute.xlu0 %7335 }
 0x3fc   :  { %v7196_v35 = vrot.slane %v7195_v34, 7  ;;  %7338 = vst.msk [vmem:[#allocation3 + $0x14] sm:$0x1] %vm12555_vm11, %v7336_v15 }
 0x3fe   :  { %v7197_v55 = vsel %vm7058_vm6, %v7196_v35, %v7195_v34 }
 0x3ff   :  { %7199 = vst.msk [vmem:[#allocation3 + $0x9] sm:$0x3] %vm12539_vm7, %v7197_v55  ;;  %v7379_v36 = vpop.permute.xlu1 %7378  ;;  %v7166_v37 = vpop.permute.xlu0 %7165 }
 0x400   :  { %7381 = vst.msk [vmem:[#allocation3 + $0x17] sm:$0x1] %vm12555_vm11, %v7379_v36  ;;  %7168 = vst.msk [vmem:[#allocation3 + $0x8] sm:$0x1] %vm12555_vm11, %v7166_v37 }
 0x403   :  { %v7209_v38 = vpop.permute.xlu1 %7208  ;;  %v7202_v39 = vpop.permute.xlu0 %7201 }
 0x404   :  { %v7203_v40 = vrot.slane %v7202_v39, 7 }
 0x406   :  { %v7204_v41 = vsel %vm7069_vm5, %v7203_v40, %v7202_v39 }
 0x407   :  { %7206 = vst.msk [vmem:[#allocation3 + $0xa] sm:$0x3] %vm12543_vm8, %v7204_v41  ;;  %v7577_v43 = vpop.permute.xlu1 %7576  ;;  %v7620_v44 = vpop.permute.xlu0 %7619 }
 0x408   :  { %7211 = vst.msk [vmem:[#allocation3 + $0xb] sm:$0x1] %vm12555_vm11, %v7209_v38  ;;  %v7578_v45 = vrot.slane %v7577_v43, 7  ;;  %v7621_v46 = vrot.slane %v7620_v44, 7 }
 0x40a   :  { %v7579_v47 = vsel %vm7058_vm6, %v7578_v45, %v7577_v43  ;;  %v7622_v48 = vsel %vm7058_vm6, %v7621_v46, %v7620_v44 }
 0x40b   :  { %7581 = vst.msk [vmem:[#allocation3 + $0x24] sm:$0x3] %vm12539_vm7, %v7579_v47  ;;  %7624 = vst.msk [vmem:[#allocation3 + $0x27] sm:$0x3] %vm12539_vm7, %v7622_v48  ;;  %v7584_v50 = vpop.permute.xlu1 %7583  ;;  %v7627_v52 = vpop.permute.xlu0 %7626 }
 0x40c   :  { %v7585_v54 = vrot.slane %v7584_v50, 7  ;;  %v7628_v56 = vrot.slane %v7627_v52, 7 }
 0x40e   :  { %v7586_v57 = vsel %vm7069_vm5, %v7585_v54, %v7584_v50  ;;  %v7629_v59 = vsel %vm7069_vm5, %v7628_v56, %v7627_v52 }
 0x40f   :  { %7588 = vst.msk [vmem:[#allocation3 + $0x25] sm:$0x3] %vm12543_vm8, %v7586_v57  ;;  %7631 = vst.msk [vmem:[#allocation3 + $0x28] sm:$0x3] %vm12543_vm8, %v7629_v59  ;;  %v7407_v60 = vpop.permute.xlu1 %7406  ;;  %v7591_v61 = vpop.permute.xlu0 %7590 }
 0x410   :  { %v7408_v63 = vrot.slane %v7407_v60, 7  ;;  %7593 = vst.msk [vmem:[#allocation3 + $0x26] sm:$0x1] %vm12555_vm11, %v7591_v61 }
 0x412   :  { %v7409_v0 = vsel %vm7058_vm6, %v7408_v63, %v7407_v60 }
 0x413   :  { %7411 = vst.msk [vmem:[#allocation3 + $0x18] sm:$0x3] %vm12539_vm7, %v7409_v0  ;;  %v7414_v42 = vpop.permute.xlu1 %7413  ;;  %v7450_v1 = vpop.permute.xlu0 %7449 }
 0x414   :  { %v7415_v2 = vrot.slane %v7414_v42, 7  ;;  %v7451_v3 = vrot.slane %v7450_v1, 7 }
 0x416   :  { %v7416_v4 = vsel %vm7069_vm5, %v7415_v2, %v7414_v42  ;;  %v7452_v5 = vsel %vm7058_vm6, %v7451_v3, %v7450_v1 }
 0x417   :  { %7418 = vst.msk [vmem:[#allocation3 + $0x19] sm:$0x3] %vm12543_vm8, %v7416_v4  ;;  %v7662_v6 = vpop.permute.xlu1 %7661  ;;  %v7457_v7 = vpop.permute.xlu0 %7456 }
 0x418   :  { %7454 = vst.msk [vmem:[#allocation3 + $0x1b] sm:$0x3] %vm12539_vm7, %v7452_v5  ;;  %v7663_v8 = vrot.slane %v7662_v6, 7  ;;  %v7458_v9 = vrot.slane %v7457_v7, 7 }
 0x41a   :  { %v7664_v10 = vsel %vm7058_vm6, %v7663_v8, %v7662_v6  ;;  %v7459_v11 = vsel %vm7069_vm5, %v7458_v9, %v7457_v7 }
 0x41b   :  { %7666 = vst.msk [vmem:[#allocation3 + $0x2a] sm:$0x3] %vm12539_vm7, %v7664_v10  ;;  %v7669_v12 = vpop.permute.xlu1 %7668  ;;  %v7421_v14 = vpop.permute.xlu0 %7420 }
 0x41c   :  { %7461 = vst.msk [vmem:[#allocation3 + $0x1c] sm:$0x3] %vm12543_vm8, %v7459_v11  ;;  %v7670_v16 = vrot.slane %v7669_v12, 7 }
 0x41d   :  { %7423 = vst.msk [vmem:[#allocation3 + $0x1a] sm:$0x1] %vm12555_vm11, %v7421_v14 }
 0x41e   :  { %v7671_v58 = vsel %vm7069_vm5, %v7670_v16, %v7669_v12 }
 0x41f   :  { %7673 = vst.msk [vmem:[#allocation3 + $0x2b] sm:$0x3] %vm12543_vm8, %v7671_v58  ;;  %v7492_v17 = vpop.permute.xlu1 %7491  ;;  %v7705_v18 = vpop.permute.xlu0 %7704 }
 0x420   :  { %v7493_v19 = vrot.slane %v7492_v17, 7  ;;  %v7706_v20 = vrot.slane %v7705_v18, 7 }
 0x422   :  { %v7494_v21 = vsel %vm7058_vm6, %v7493_v19, %v7492_v17  ;;  %v7707_v22 = vsel %vm7058_vm6, %v7706_v20, %v7705_v18 }
 0x423   :  { %7496 = vst.msk [vmem:[#allocation3 + $0x1e] sm:$0x3] %vm12539_vm7, %v7494_v21  ;;  %7709 = vst.msk [vmem:[#allocation3 + $0x2d] sm:$0x3] %vm12539_vm7, %v7707_v22  ;;  %v7499_v23 = vpop.permute.xlu1 %7498  ;;  %v7712_v24 = vpop.permute.xlu0 %7711 }
 0x424   :  { %v7500_v25 = vrot.slane %v7499_v23, 7  ;;  %v7713_v26 = vrot.slane %v7712_v24, 7 }
 0x426   :  { %v7501_v13 = vsel %vm7069_vm5, %v7500_v25, %v7499_v23  ;;  %v7714_v27 = vsel %vm7069_vm5, %v7713_v26, %v7712_v24 }
 0x427   :  { %7503 = vst.msk [vmem:[#allocation3 + $0x1f] sm:$0x3] %vm12543_vm8, %v7501_v13  ;;  %7716 = vst.msk [vmem:[#allocation3 + $0x2e] sm:$0x3] %vm12543_vm8, %v7714_v27  ;;  %v7634_v28 = vpop.permute.xlu1 %7633  ;;  %v7535_v29 = vpop.permute.xlu0 %7534 }
 0x428   :  { %7636 = vst.msk [vmem:[#allocation3 + $0x29] sm:$0x1] %vm12555_vm11, %v7634_v28  ;;  %v7536_v30 = vrot.slane %v7535_v29, 7 }
 0x42a   :  { %v7537_v31 = vsel %vm7058_vm6, %v7536_v30, %v7535_v29 }
 0x42b   :  { %7539 = vst.msk [vmem:[#allocation3 + $0x21] sm:$0x3] %vm12539_vm7, %v7537_v31  ;;  %v7464_v32 = vpop.permute.xlu1 %7463  ;;  %v7542_v33 = vpop.permute.xlu0 %7541 }
 0x42c   :  { %7466 = vst.msk [vmem:[#allocation3 + $0x1d] sm:$0x1] %vm12555_vm11, %v7464_v32  ;;  %v7543_v34 = vrot.slane %v7542_v33, 7 }
 0x42e   :  { %v7544_v15 = vsel %vm7069_vm5, %v7543_v34, %v7542_v33 }
 0x42f   :  { %7546 = vst.msk [vmem:[#allocation3 + $0x22] sm:$0x3] %vm12543_vm8, %v7544_v15  ;;  %v7549_v35 = vpop.permute.xlu1 %7548  ;;  %v7506_v55 = vpop.permute.xlu0 %7505 }
 0x430   :  { %7551 = vst.msk [vmem:[#allocation3 + $0x23] sm:$0x1] %vm12555_vm11, %v7549_v35  ;;  %7508 = vst.msk [vmem:[#allocation3 + $0x20] sm:$0x1] %vm12555_vm11, %v7506_v55 }
 0x433   :  { %v7719_v51 = vpop.permute.xlu1 %7718  ;;  %v7676_v36 = vpop.permute.xlu0 %7675 }
 0x434   :  { %7721 = vst.msk [vmem:[#allocation3 + $0x2f] sm:$0x1] %vm12555_vm11, %v7719_v51  ;;  %7678 = vst.msk [vmem:[#allocation3 + $0x2c] sm:$0x1] %vm12555_vm11, %v7676_v36 }
 0x435   :  { %10462 = dma.done.wait [#allocation4], 98304 }
 0x436   :  { %10463 = vsyncadd [#allocation4], 4294868992  ;;  %v8027_v53 = vld [vmem:[#allocation2 + $0x8] sm:$0xff]  ;;  %v8026_v38 = vld [vmem:[#allocation2] sm:$0xff]  ;;  %v12682_v0 = vsub.s32 1, %v12292_v49  ;;  %v12685_v2 = vsub.s32 7, %v12292_v49 }
 0x437   :  { %v8379_v37 = vld [vmem:[#allocation2 + $0xb08] sm:$0xff]  ;;  %8794 = vmatprep.subr.bf16.mxu0 %v8027_v53  ;;  %v8378_v39 = vld [vmem:[#allocation2 + $0xb00] sm:$0xff]  ;;  %v8029_v40 = vld [vmem:[#allocation2 + $0x18] sm:$0xff]  ;;  %vm9891_vm15 = vcmask 236544  }
 0x438   :  { %9245 = vmatprep.subr.bf16.mxu1 %v8379_v37  ;;  %v8381_v41 = vld [vmem:[#allocation2 + $0xb18] sm:$0xff]  ;;  %8795 = vmatpush1.bf16.msra.mxu0 %v8026_v38  ;;  %v8028_v43 = vld [vmem:[#allocation2 + $0x10] sm:$0xff]  ;;  %v8031_v45 = vld [vmem:[#allocation2 + $0x28] sm:$0xff] }
 0x439   :  { %9246 = vmatpush1.bf16.msra.mxu1 %v8378_v39  ;;  %8796 = vmatprep.subr.bf16.mxu0 %v8029_v40  ;;  %v8380_v44 = vld [vmem:[#allocation2 + $0xb10] sm:$0xff]  ;;  %v8383_v46 = vld [vmem:[#allocation2 + $0xb28] sm:$0xff]  ;;  %v8030_v62 = vld [vmem:[#allocation2 + $0x20] sm:$0xff]  ;;  %v12696_v39 = vsub.s32 0, %v12292_v49  ;;  %v12699_v40 = vsub.s32 6, %v12292_v49 }
 0x43a   :  { %9247 = vmatprep.subr.bf16.mxu1 %v8381_v41  ;;  %v8382_v47 = vld [vmem:[#allocation2 + $0xb20] sm:$0xff]  ;;  %v8033_v48 = vld [vmem:[#allocation2 + $0x38] sm:$0xff]  ;;  %v8032_v52 = vld [vmem:[#allocation2 + $0x30] sm:$0xff] }
 0x43b   :  { %v8385_v50 = vld [vmem:[#allocation2 + $0xb38] sm:$0xff]  ;;  %v8384_v54 = vld [vmem:[#allocation2 + $0xb30] sm:$0xff]  ;;  %v8035_v56 = vld [vmem:[#allocation2 + $0x48] sm:$0xff] }
 0x43c   :  { %8797 = vmatpush1.bf16.msra.mxu0 %v8028_v43  ;;  %v8387_v57 = vld [vmem:[#allocation2 + $0xb48] sm:$0xff]  ;;  %v8034_v59 = vld [vmem:[#allocation2 + $0x40] sm:$0xff]  ;;  %v8037_v61 = vld [vmem:[#allocation2 + $0x58] sm:$0xff] }
 0x43d   :  { %9248 = vmatpush1.bf16.msra.mxu1 %v8380_v44  ;;  %8798 = vmatprep.subr.bf16.mxu0 %v8031_v45  ;;  %v8386_v60 = vld [vmem:[#allocation2 + $0xb40] sm:$0xff]  ;;  %v8389_v63 = vld [vmem:[#allocation2 + $0xb58] sm:$0xff]  ;;  %v8036_v42 = vld [vmem:[#allocation2 + $0x50] sm:$0xff] }
 0x43e   :  { %9249 = vmatprep.subr.bf16.mxu1 %v8383_v46  ;;  %v8388_v1 = vld [vmem:[#allocation2 + $0xb50] sm:$0xff]  ;;  %v8039_v3 = vld [vmem:[#allocation2 + $0x68] sm:$0xff]  ;;  %v12687_v5 = vld [vmem:[#allocation3] sm:$0xff]  ;;  %v12702_v46 = vsub.s32 3, %v12292_v49 }
 0x43f   :  { %v8391_v4 = vld [vmem:[#allocation2 + $0xb68] sm:$0xff]  ;;  %v7745_v6 = vrot.slane %v12687_v5, %v12682_v0  ;;  %v12691_v7 = vld [vmem:[#allocation3 + $0x10] sm:$0xff]  ;;  %v8038_v8 = vld [vmem:[#allocation2 + $0x60] sm:$0xff] }
 0x440   :  { %8799 = vmatpush1.bf16.msra.mxu0 %v8030_v62  ;;  %v8390_v9 = vld [vmem:[#allocation2 + $0xb60] sm:$0xff]  ;;  %v7833_v10 = vrot.slane %v12691_v7, %v12685_v2  ;;  %v8041_v11 = vld [vmem:[#allocation2 + $0x78] sm:$0xff]  ;;  %v8040_v58 = vld [vmem:[#allocation2 + $0x70] sm:$0xff]  ;;  %v7741_v62 = vrot.slane %v12687_v5, %v12696_v39 }
 0x441   :  { %9250 = vmatpush1.bf16.msra.mxu1 %v8382_v47  ;;  %8800 = vmatprep.subr.bf16.mxu0 %v8033_v48  ;;  %v8393_v12 = vld [vmem:[#allocation2 + $0xb78] sm:$0xff]  ;;  %v7979_v14 = vpack.c.bf16 %v7745_v6, %v7745_v6  ;;  %v8392_v17 = vld [vmem:[#allocation2 + $0xb70] sm:$0xff]  ;;  %v8043_v18 = vld [vmem:[#allocation2 + $0x88] sm:$0xff]  ;;  %v7829_v47 = vrot.slane %v12691_v7, %v12699_v40 }
 0x442   :  { %9251 = vmatprep.subr.bf16.mxu1 %v8385_v50  ;;  %v8001_v16 = vpack.c.bf16 %v7833_v10, %v7833_v10  ;;  %v8395_v19 = vld [vmem:[#allocation2 + $0xb88] sm:$0xff]  ;;  %v8042_v20 = vld [vmem:[#allocation2 + $0x80] sm:$0xff]  ;;  %v8045_v22 = vld [vmem:[#allocation2 + $0x98] sm:$0xff] }
 0x443   :  { %8826 = vmatprep.mubr.bf16.mxu0 %v7979_v14  ;;  %v8394_v21 = vld [vmem:[#allocation2 + $0xb80] sm:$0xff]  ;;  %v8397_v23 = vld [vmem:[#allocation2 + $0xb98] sm:$0xff]  ;;  %v8044_v24 = vld [vmem:[#allocation2 + $0x90] sm:$0xff] }
 0x444   :  { %8801 = vmatpush1.bf16.msra.mxu0 %v8032_v52  ;;  %9277 = vmatprep.mubr.bf16.mxu1 %v8001_v16  ;;  %v8396_v25 = vld [vmem:[#allocation2 + $0xb90] sm:$0xff]  ;;  %v8047_v26 = vld [vmem:[#allocation2 + $0xa8] sm:$0xff]  ;;  %v8046_v27 = vld [vmem:[#allocation2 + $0xa0] sm:$0xff] }
 0x445   :  { %9252 = vmatpush1.bf16.msra.mxu1 %v8384_v54  ;;  %8802 = vmatprep.subr.bf16.mxu0 %v8035_v56  ;;  %v8399_v13 = vld [vmem:[#allocation2 + $0xba8] sm:$0xff]  ;;  %v8398_v28 = vld [vmem:[#allocation2 + $0xba0] sm:$0xff]  ;;  %v8049_v29 = vld [vmem:[#allocation2 + $0xb8] sm:$0xff] }
 0x446   :  { %9253 = vmatprep.subr.bf16.mxu1 %v8387_v57  ;;  %v8401_v30 = vld [vmem:[#allocation2 + $0xbb8] sm:$0xff]  ;;  %v8048_v31 = vld [vmem:[#allocation2 + $0xb0] sm:$0xff]  ;;  %v8051_v33 = vld [vmem:[#allocation2 + $0xc8] sm:$0xff]  ;;  %v7753_v57 = vrot.slane %v12687_v5, %v12702_v46 }
 0x447   :  { %v8400_v32 = vld [vmem:[#allocation2 + $0xbb0] sm:$0xff]  ;;  %v8403_v34 = vld [vmem:[#allocation2 + $0xbc8] sm:$0xff]  ;;  %v8050_v15 = vld [vmem:[#allocation2 + $0xc0] sm:$0xff] }
 0x448   :  { %8803 = vmatpush1.bf16.msra.mxu0 %v8034_v59  ;;  %v8402_v35 = vld [vmem:[#allocation2 + $0xbc0] sm:$0xff]  ;;  %v8053_v55 = vld [vmem:[#allocation2 + $0xd8] sm:$0xff]  ;;  %v8052_v36 = vld [vmem:[#allocation2 + $0xd0] sm:$0xff] }
 0x449   :  { %9254 = vmatpush1.bf16.msra.mxu1 %v8386_v60  ;;  %8804 = vmatprep.subr.bf16.mxu0 %v8037_v61  ;;  %v8405_v51 = vld [vmem:[#allocation2 + $0xbd8] sm:$0xff]  ;;  %v8404_v53 = vld [vmem:[#allocation2 + $0xbd0] sm:$0xff]  ;;  %v8055_v37 = vld [vmem:[#allocation2 + $0xe8] sm:$0xff]  ;;  %v7978_v60 = vpack.c.bf16 %v7741_v62, %v7741_v62  ;;  %v8000_v61 = vpack.c.bf16 %v7829_v47, %v7829_v47 }
 0x44a   :  { %9255 = vmatprep.subr.bf16.mxu1 %v8389_v63  ;;  %v8407_v38 = vld [vmem:[#allocation2 + $0xbe8] sm:$0xff]  ;;  %v8054_v41 = vld [vmem:[#allocation2 + $0xe0] sm:$0xff]  ;;  %v8057_v44 = vld [vmem:[#allocation2 + $0xf8] sm:$0xff] }
 0x44b   :  { %v8406_v43 = vld [vmem:[#allocation2 + $0xbe0] sm:$0xff]  ;;  %v8409_v45 = vld [vmem:[#allocation2 + $0xbf8] sm:$0xff]  ;;  %v8056_v50 = vld [vmem:[#allocation2 + $0xf0] sm:$0xff] }
 0x44c   :  { %8805 = vmatpush1.bf16.msra.mxu0 %v8036_v42  ;;  %v12708_v48 = vld [vmem:[#allocation3 + $0x18] sm:$0xff]  ;;  %v8408_v52 = vld [vmem:[#allocation2 + $0xbf0] sm:$0xff]  ;;  %v8059_v54 = vld [vmem:[#allocation2 + $0x108] sm:$0xff] }
 0x44d   :  { %9256 = vmatpush1.bf16.msra.mxu1 %v8388_v1  ;;  %8806 = vmatprep.subr.bf16.mxu0 %v8039_v3  ;;  %v8411_v56 = vld [vmem:[#allocation2 + $0xc08] sm:$0xff]  ;;  %v7841_v59 = vrot.slane %v12708_v48, %v12682_v0  ;;  %v8058_v63 = vld [vmem:[#allocation2 + $0x100] sm:$0xff]  ;;  %v8061_v1 = vld [vmem:[#allocation2 + $0x118] sm:$0xff] }
 0x44e   :  { %9257 = vmatprep.subr.bf16.mxu1 %v8391_v4  ;;  %v8410_v42 = vld [vmem:[#allocation2 + $0xc00] sm:$0xff]  ;;  %v8413_v3 = vld [vmem:[#allocation2 + $0xc18] sm:$0xff]  ;;  %v7981_v4 = vpack.c.bf16 %v7753_v57, %v7753_v57  ;;  %v8060_v7 = vld [vmem:[#allocation2 + $0x110] sm:$0xff] }
 0x44f   :  { %v8003_v6 = vpack.c.bf16 %v7841_v59, %v7841_v59  ;;  %v8415_v10 = vld [vmem:[#allocation2 + $0xc28] sm:$0xff]  ;;  %v8065_v14 = vld [vmem:[#allocation2 + $0x138] sm:$0xff]  ;;  %v8080_v62 = vld [vmem:[#allocation2 + $0x1b0] sm:$0xff] }
 0x450   :  { %8807 = vmatpush1.bf16.msra.mxu0 %v8038_v8  ;;  %v8412_v8 = vld [vmem:[#allocation2 + $0xc10] sm:$0xff]  ;;  %v8417_v16 = vld [vmem:[#allocation2 + $0xc38] sm:$0xff] }
 0x451   :  { %9258 = vmatpush1.bf16.msra.mxu1 %v8390_v9  ;;  %8808 = vmatprep.subr.bf16.mxu0 %v8041_v11  ;;  %v8063_v9 = vld [vmem:[#allocation2 + $0x128] sm:$0xff]  ;;  %v8062_v11 = vld [vmem:[#allocation2 + $0x120] sm:$0xff]  ;;  %v8432_v47 = vld [vmem:[#allocation2 + $0xcb0] sm:$0xff] }
 0x452   :  { %9259 = vmatprep.subr.bf16.mxu1 %v8393_v12  ;;  %v8414_v12 = vld [vmem:[#allocation2 + $0xc20] sm:$0xff]  ;;  %v8085_v57 = vld [vmem:[#allocation2 + $0x1d8] sm:$0xff] }
 0x453   :  { %v8437_v59 = vld [vmem:[#allocation2 + $0xcd8] sm:$0xff] }
 0x454   :  { %8809 = vmatpush1.bf16.msra.mxu0 %v8040_v58  ;;  %v8064_v58 = vld [vmem:[#allocation2 + $0x130] sm:$0xff] }
 0x455   :  { %9260 = vmatpush1.bf16.msra.mxu1 %v8392_v17  ;;  %8810 = vmatprep.subr.bf16.mxu0 %v8043_v18  ;;  %v8416_v17 = vld [vmem:[#allocation2 + $0xc30] sm:$0xff]  ;;  %v8067_v18 = vld [vmem:[#allocation2 + $0x148] sm:$0xff] }
 0x456   :  { %9261 = vmatprep.subr.bf16.mxu1 %v8395_v19  ;;  %v8419_v19 = vld [vmem:[#allocation2 + $0xc48] sm:$0xff] }
 0x458   :  { %8811 = vmatpush1.bf16.msra.mxu0 %v8042_v20  ;;  %v8066_v20 = vld [vmem:[#allocation2 + $0x140] sm:$0xff] }
 0x459   :  { %9262 = vmatpush1.bf16.msra.mxu1 %v8394_v21  ;;  %8812 = vmatprep.subr.bf16.mxu0 %v8045_v22  ;;  %v8418_v21 = vld [vmem:[#allocation2 + $0xc40] sm:$0xff]  ;;  %v8069_v22 = vld [vmem:[#allocation2 + $0x158] sm:$0xff] }
 0x45a   :  { %9263 = vmatprep.subr.bf16.mxu1 %v8397_v23  ;;  %v8421_v23 = vld [vmem:[#allocation2 + $0xc58] sm:$0xff] }
 0x45c   :  { %8813 = vmatpush1.bf16.msra.mxu0 %v8044_v24  ;;  %v8068_v24 = vld [vmem:[#allocation2 + $0x150] sm:$0xff] }
 0x45d   :  { %9264 = vmatpush1.bf16.msra.mxu1 %v8396_v25  ;;  %8814 = vmatprep.subr.bf16.mxu0 %v8047_v26  ;;  %v8420_v25 = vld [vmem:[#allocation2 + $0xc50] sm:$0xff]  ;;  %v8071_v26 = vld [vmem:[#allocation2 + $0x168] sm:$0xff] }
 0x45e   :  { %9265 = vmatprep.subr.bf16.mxu1 %v8399_v13  ;;  %v8423_v13 = vld [vmem:[#allocation2 + $0xc68] sm:$0xff] }
 0x460   :  { %8815 = vmatpush1.bf16.msra.mxu0 %v8046_v27  ;;  %v8070_v27 = vld [vmem:[#allocation2 + $0x160] sm:$0xff] }
 0x461   :  { %9266 = vmatpush1.bf16.msra.mxu1 %v8398_v28  ;;  %8816 = vmatprep.subr.bf16.mxu0 %v8049_v29  ;;  %v8422_v28 = vld [vmem:[#allocation2 + $0xc60] sm:$0xff]  ;;  %v8073_v29 = vld [vmem:[#allocation2 + $0x178] sm:$0xff] }
 0x462   :  { %9267 = vmatprep.subr.bf16.mxu1 %v8401_v30  ;;  %v8425_v30 = vld [vmem:[#allocation2 + $0xc78] sm:$0xff] }
 0x464   :  { %8817 = vmatpush1.bf16.msra.mxu0 %v8048_v31  ;;  %v8072_v31 = vld [vmem:[#allocation2 + $0x170] sm:$0xff] }
 0x465   :  { %9268 = vmatpush1.bf16.msra.mxu1 %v8400_v32  ;;  %8818 = vmatprep.subr.bf16.mxu0 %v8051_v33  ;;  %v8424_v32 = vld [vmem:[#allocation2 + $0xc70] sm:$0xff]  ;;  %v8075_v33 = vld [vmem:[#allocation2 + $0x188] sm:$0xff] }
 0x466   :  { %9269 = vmatprep.subr.bf16.mxu1 %v8403_v34  ;;  %v8427_v34 = vld [vmem:[#allocation2 + $0xc88] sm:$0xff] }
 0x468   :  { %8819 = vmatpush1.bf16.msra.mxu0 %v8050_v15  ;;  %v8074_v15 = vld [vmem:[#allocation2 + $0x180] sm:$0xff] }
 0x469   :  { %9270 = vmatpush1.bf16.msra.mxu1 %v8402_v35  ;;  %8820 = vmatprep.subr.bf16.mxu0 %v8053_v55  ;;  %v8426_v35 = vld [vmem:[#allocation2 + $0xc80] sm:$0xff]  ;;  %v8077_v55 = vld [vmem:[#allocation2 + $0x198] sm:$0xff] }
 0x46a   :  { %9271 = vmatprep.subr.bf16.mxu1 %v8405_v51  ;;  %v8429_v51 = vld [vmem:[#allocation2 + $0xc98] sm:$0xff] }
 0x46c   :  { %8821 = vmatpush1.bf16.msra.mxu0 %v8052_v36  ;;  %v8076_v36 = vld [vmem:[#allocation2 + $0x190] sm:$0xff] }
 0x46d   :  { %9272 = vmatpush1.bf16.msra.mxu1 %v8404_v53  ;;  %8822 = vmatprep.subr.bf16.mxu0 %v8055_v37  ;;  %v8428_v53 = vld [vmem:[#allocation2 + $0xc90] sm:$0xff]  ;;  %v8079_v37 = vld [vmem:[#allocation2 + $0x1a8] sm:$0xff] }
 0x46e   :  { %9273 = vmatprep.subr.bf16.mxu1 %v8407_v38  ;;  %v8431_v38 = vld [vmem:[#allocation2 + $0xca8] sm:$0xff] }
 0x470   :  { %8823 = vmatpush1.bf16.msra.mxu0 %v8054_v41  ;;  %v8078_v41 = vld [vmem:[#allocation2 + $0x1a0] sm:$0xff] }
 0x471   :  { %9274 = vmatpush1.bf16.msra.mxu1 %v8406_v43  ;;  %8824 = vmatprep.subr.bf16.mxu0 %v8057_v44  ;;  %v8430_v43 = vld [vmem:[#allocation2 + $0xca0] sm:$0xff]  ;;  %v8081_v44 = vld [vmem:[#allocation2 + $0x1b8] sm:$0xff] }
 0x472   :  { %9275 = vmatprep.subr.bf16.mxu1 %v8409_v45  ;;  %v8433_v45 = vld [vmem:[#allocation2 + $0xcb8] sm:$0xff] }
 0x474   :  { %8825 = vmatpush1.bf16.msra.mxu0 %v8056_v50  ;;  %v8083_v50 = vld [vmem:[#allocation2 + $0x1c8] sm:$0xff] }
 0x475   :  { %9276 = vmatpush1.bf16.msra.mxu1 %v8408_v52  ;;  %8835 = vmatprep.subr.bf16.mxu0 %v8059_v54  ;;  %v8435_v52 = vld [vmem:[#allocation2 + $0xcc8] sm:$0xff]  ;;  %v8082_v54 = vld [vmem:[#allocation2 + $0x1c0] sm:$0xff] }
 0x476   :  { %9286 = vmatprep.subr.bf16.mxu1 %v8411_v56  ;;  %v8434_v56 = vld [vmem:[#allocation2 + $0xcc0] sm:$0xff] }
 0x477   :  { %8827 = vmatmul.mubr.bf16.vlgmr.msra.gmra.mrb[40].mxu0 %v7978_v60  ;;  %v8084_v60 = vld [vmem:[#allocation2 + $0x1d0] sm:$0xff] }
 0x478   :  { %9278 = vmatmul.mubr.bf16.vlgmr.msra.gmra.mrb[0].mxu1 %v8000_v61  ;;  %8836 = vmatpush1.bf16.msra.mxu0 %v8058_v63  ;;  %v8436_v61 = vld [vmem:[#allocation2 + $0xcd0] sm:$0xff]  ;;  %v8087_v63 = vld [vmem:[#allocation2 + $0x1e8] sm:$0xff] }
 0x479   :  { %9287 = vmatpush1.bf16.msra.mxu1 %v8410_v42  ;;  %8837 = vmatprep.subr.bf16.mxu0 %v8061_v1  ;;  %v8439_v42 = vld [vmem:[#allocation2 + $0xce8] sm:$0xff]  ;;  %v12715_v1 = vsub.s32 2, %v12292_v49 }
 0x47a   :  { %9288 = vmatprep.subr.bf16.mxu1 %v8413_v3  ;;  %8867 = vmatprep.mubr.bf16.mxu0 %v7981_v4  ;;  %v8086_v3 = vld [vmem:[#allocation2 + $0x1e0] sm:$0xff] }
 0x47b   :  { %9318 = vmatprep.mubr.bf16.mxu1 %v8003_v6  ;;  %v8438_v4 = vld [vmem:[#allocation2 + $0xce0] sm:$0xff]  ;;  %v8089_v6 = vld [vmem:[#allocation2 + $0x1f8] sm:$0xff] }
 0x47c   :  { %8838 = vmatpush1.bf16.msra.mxu0 %v8060_v7  ;;  %v8441_v7 = vld [vmem:[#allocation2 + $0xcf8] sm:$0xff] }
 0x47d   :  { %9289 = vmatpush1.bf16.msra.mxu1 %v8412_v8  ;;  %8839 = vmatprep.subr.bf16.mxu0 %v8063_v9  ;;  %v12718_v8 = vsub.s32 5, %v12292_v49  ;;  %v7749_v9 = vrot.slane %v12687_v5, %v12715_v1 }
 0x47e   :  { %9290 = vmatprep.subr.bf16.mxu1 %v8415_v10  ;;  %v7837_v10 = vrot.slane %v12708_v48, %v12696_v39 }
 0x480   :  { %8840 = vmatpush1.bf16.msra.mxu0 %v8062_v11  ;;  %v8088_v11 = vld [vmem:[#allocation2 + $0x1f0] sm:$0xff] }
 0x481   :  { %9291 = vmatpush1.bf16.msra.mxu1 %v8414_v12  ;;  %8841 = vmatprep.subr.bf16.mxu0 %v8065_v14  ;;  %v8440_v12 = vld [vmem:[#allocation2 + $0xcf0] sm:$0xff]  ;;  %v8091_v14 = vld [vmem:[#allocation2 + $0x208] sm:$0xff] }
 0x482   :  { %9292 = vmatprep.subr.bf16.mxu1 %v8417_v16  ;;  %v8443_v16 = vld [vmem:[#allocation2 + $0xd08] sm:$0xff] }
 0x484   :  { %8842 = vmatpush1.bf16.msra.mxu0 %v8064_v58  ;;  %v7761_v58 = vrot.slane %v12687_v5, %v12718_v8 }
 0x485   :  { %9293 = vmatpush1.bf16.msra.mxu1 %v8416_v17  ;;  %8843 = vmatprep.subr.bf16.mxu0 %v8067_v18  ;;  %v7849_v17 = vrot.slane %v12708_v48, %v12702_v46  ;;  %v7980_v18 = vpack.c.bf16 %v7749_v9, %v7749_v9  ;;  %v8113_v9 = vld [vmem:[#allocation2 + $0x2b8] sm:$0xff] }
 0x486   :  { %9294 = vmatprep.subr.bf16.mxu1 %v8419_v19  ;;  %v8002_v19 = vpack.c.bf16 %v7837_v10, %v7837_v10  ;;  %v8465_v10 = vld [vmem:[#allocation2 + $0xdb8] sm:$0xff] }
 0x488   :  { %8844 = vmatpush1.bf16.msra.mxu0 %v8066_v20  ;;  %v8090_v20 = vld [vmem:[#allocation2 + $0x200] sm:$0xff] }
 0x489   :  { %9295 = vmatpush1.bf16.msra.mxu1 %v8418_v21  ;;  %8845 = vmatprep.subr.bf16.mxu0 %v8069_v22  ;;  %v8442_v21 = vld [vmem:[#allocation2 + $0xd00] sm:$0xff]  ;;  %v8093_v22 = vld [vmem:[#allocation2 + $0x218] sm:$0xff] }
 0x48a   :  { %9296 = vmatprep.subr.bf16.mxu1 %v8421_v23  ;;  %v8445_v23 = vld [vmem:[#allocation2 + $0xd18] sm:$0xff] }
 0x48c   :  { %8846 = vmatpush1.bf16.msra.mxu0 %v8068_v24  ;;  %v7983_v24 = vpack.c.bf16 %v7761_v58, %v7761_v58  ;;  %v8114_v58 = vld [vmem:[#allocation2 + $0x2c0] sm:$0xff] }
 0x48d   :  { %9297 = vmatpush1.bf16.msra.mxu1 %v8420_v25  ;;  %8847 = vmatprep.subr.bf16.mxu0 %v8071_v26  ;;  %v8005_v25 = vpack.c.bf16 %v7849_v17, %v7849_v17  ;;  %v8092_v26 = vld [vmem:[#allocation2 + $0x210] sm:$0xff]  ;;  %v8466_v17 = vld [vmem:[#allocation2 + $0xdc0] sm:$0xff] }
 0x48e   :  { %9298 = vmatprep.subr.bf16.mxu1 %v8423_v13  ;;  %v8444_v13 = vld [vmem:[#allocation2 + $0xd10] sm:$0xff] }
 0x490   :  { %8848 = vmatpush1.bf16.msra.mxu0 %v8070_v27  ;;  %v8095_v27 = vld [vmem:[#allocation2 + $0x228] sm:$0xff] }
 0x491   :  { %9299 = vmatpush1.bf16.msra.mxu1 %v8422_v28  ;;  %8849 = vmatprep.subr.bf16.mxu0 %v8073_v29  ;;  %v8447_v28 = vld [vmem:[#allocation2 + $0xd28] sm:$0xff]  ;;  %v8094_v29 = vld [vmem:[#allocation2 + $0x220] sm:$0xff] }
 0x492   :  { %9300 = vmatprep.subr.bf16.mxu1 %v8425_v30  ;;  %v8446_v30 = vld [vmem:[#allocation2 + $0xd20] sm:$0xff] }
 0x494   :  { %8850 = vmatpush1.bf16.msra.mxu0 %v8072_v31  ;;  %v8097_v31 = vld [vmem:[#allocation2 + $0x238] sm:$0xff] }
 0x495   :  { %9301 = vmatpush1.bf16.msra.mxu1 %v8424_v32  ;;  %8851 = vmatprep.subr.bf16.mxu0 %v8075_v33  ;;  %v8449_v32 = vld [vmem:[#allocation2 + $0xd38] sm:$0xff]  ;;  %v8096_v33 = vld [vmem:[#allocation2 + $0x230] sm:$0xff] }
 0x496   :  { %9302 = vmatprep.subr.bf16.mxu1 %v8427_v34  ;;  %v8448_v34 = vld [vmem:[#allocation2 + $0xd30] sm:$0xff] }
 0x498   :  { %8852 = vmatpush1.bf16.msra.mxu0 %v8074_v15  ;;  %v8099_v15 = vld [vmem:[#allocation2 + $0x248] sm:$0xff] }
 0x499   :  { %9303 = vmatpush1.bf16.msra.mxu1 %v8426_v35  ;;  %8853 = vmatprep.subr.bf16.mxu0 %v8077_v55  ;;  %v8451_v35 = vld [vmem:[#allocation2 + $0xd48] sm:$0xff]  ;;  %v8098_v55 = vld [vmem:[#allocation2 + $0x240] sm:$0xff] }
 0x49a   :  { %9304 = vmatprep.subr.bf16.mxu1 %v8429_v51  ;;  %v8450_v51 = vld [vmem:[#allocation2 + $0xd40] sm:$0xff] }
 0x49c   :  { %8854 = vmatpush1.bf16.msra.mxu0 %v8076_v36  ;;  %v8101_v36 = vld [vmem:[#allocation2 + $0x258] sm:$0xff] }
 0x49d   :  { %9305 = vmatpush1.bf16.msra.mxu1 %v8428_v53  ;;  %8855 = vmatprep.subr.bf16.mxu0 %v8079_v37  ;;  %v8453_v53 = vld [vmem:[#allocation2 + $0xd58] sm:$0xff]  ;;  %v8100_v37 = vld [vmem:[#allocation2 + $0x250] sm:$0xff] }
 0x49e   :  { %9306 = vmatprep.subr.bf16.mxu1 %v8431_v38  ;;  %v8452_v38 = vld [vmem:[#allocation2 + $0xd50] sm:$0xff] }
 0x4a0   :  { %8856 = vmatpush1.bf16.msra.mxu0 %v8078_v41  ;;  %v8103_v41 = vld [vmem:[#allocation2 + $0x268] sm:$0xff] }
 0x4a1   :  { %9307 = vmatpush1.bf16.msra.mxu1 %v8430_v43  ;;  %8857 = vmatprep.subr.bf16.mxu0 %v8081_v44  ;;  %v8455_v43 = vld [vmem:[#allocation2 + $0xd68] sm:$0xff]  ;;  %v8102_v44 = vld [vmem:[#allocation2 + $0x260] sm:$0xff] }
 0x4a2   :  { %9308 = vmatprep.subr.bf16.mxu1 %v8433_v45  ;;  %v8454_v45 = vld [vmem:[#allocation2 + $0xd60] sm:$0xff] }
 0x4a4   :  { %8858 = vmatpush1.bf16.msra.mxu0 %v8080_v62  ;;  %v8105_v62 = vld [vmem:[#allocation2 + $0x278] sm:$0xff] }
 0x4a5   :  { %9309 = vmatpush1.bf16.msra.mxu1 %v8432_v47  ;;  %8859 = vmatprep.subr.bf16.mxu0 %v8083_v50  ;;  %v8457_v47 = vld [vmem:[#allocation2 + $0xd78] sm:$0xff]  ;;  %v8104_v50 = vld [vmem:[#allocation2 + $0x270] sm:$0xff] }
 0x4a6   :  { %9310 = vmatprep.subr.bf16.mxu1 %v8435_v52  ;;  %v8456_v52 = vld [vmem:[#allocation2 + $0xd70] sm:$0xff] }
 0x4a8   :  { %8860 = vmatpush1.bf16.msra.mxu0 %v8082_v54  ;;  %v8107_v54 = vld [vmem:[#allocation2 + $0x288] sm:$0xff] }
 0x4a9   :  { %9311 = vmatpush1.bf16.msra.mxu1 %v8434_v56  ;;  %8861 = vmatprep.subr.bf16.mxu0 %v8085_v57  ;;  %v8459_v56 = vld [vmem:[#allocation2 + $0xd88] sm:$0xff]  ;;  %v8106_v57 = vld [vmem:[#allocation2 + $0x280] sm:$0xff] }
 0x4aa   :  { %9312 = vmatprep.subr.bf16.mxu1 %v8437_v59  ;;  %v8458_v59 = vld [vmem:[#allocation2 + $0xd80] sm:$0xff] }
 0x4ac   :  { %8862 = vmatpush1.bf16.msra.mxu0 %v8084_v60  ;;  %v8109_v60 = vld [vmem:[#allocation2 + $0x298] sm:$0xff] }
 0x4ad   :  { %9313 = vmatpush1.bf16.msra.mxu1 %v8436_v61  ;;  %8863 = vmatprep.subr.bf16.mxu0 %v8087_v63  ;;  %v8461_v61 = vld [vmem:[#allocation2 + $0xd98] sm:$0xff]  ;;  %v8108_v63 = vld [vmem:[#allocation2 + $0x290] sm:$0xff] }
 0x4ae   :  { %9314 = vmatprep.subr.bf16.mxu1 %v8439_v42  ;;  %v8460_v42 = vld [vmem:[#allocation2 + $0xd90] sm:$0xff] }
 0x4b0   :  { %8864 = vmatpush1.bf16.msra.mxu0 %v8086_v3  ;;  %v8111_v3 = vld [vmem:[#allocation2 + $0x2a8] sm:$0xff] }
 0x4b1   :  { %9315 = vmatpush1.bf16.msra.mxu1 %v8438_v4  ;;  %8865 = vmatprep.subr.bf16.mxu0 %v8089_v6  ;;  %v8463_v4 = vld [vmem:[#allocation2 + $0xda8] sm:$0xff]  ;;  %v8110_v6 = vld [vmem:[#allocation2 + $0x2a0] sm:$0xff] }
 0x4b2   :  { %9316 = vmatprep.subr.bf16.mxu1 %v8441_v7  ;;  %v8462_v7 = vld [vmem:[#allocation2 + $0xda0] sm:$0xff] }
 0x4b4   :  { %8866 = vmatpush1.bf16.msra.mxu0 %v8088_v11  ;;  %v8112_v11 = vld [vmem:[#allocation2 + $0x2b0] sm:$0xff] }
 0x4b5   :  { %9317 = vmatpush1.bf16.msra.mxu1 %v8440_v12  ;;  %8876 = vmatprep.subr.bf16.mxu0 %v8091_v14  ;;  %v8464_v12 = vld [vmem:[#allocation2 + $0xdb0] sm:$0xff]  ;;  %v8115_v14 = vld [vmem:[#allocation2 + $0x2c8] sm:$0xff] }
 0x4b6   :  { %9327 = vmatprep.subr.bf16.mxu1 %v8443_v16  ;;  %v8467_v16 = vld [vmem:[#allocation2 + $0xdc8] sm:$0xff] }
 0x4b7   :  { %8868 = vmatmul.mubr.bf16.vlgmr.msra.gmra.mrb[40].mxu0 %v7980_v18  ;;  %v8117_v18 = vld [vmem:[#allocation2 + $0x2d8] sm:$0xff] }
 0x4b8   :  { %9319 = vmatmul.mubr.bf16.vlgmr.msra.gmra.mrb[0].mxu1 %v8002_v19  ;;  %8877 = vmatpush1.bf16.msra.mxu0 %v8090_v20  ;;  %v8469_v19 = vld [vmem:[#allocation2 + $0xdd8] sm:$0xff]  ;;  %v8116_v20 = vld [vmem:[#allocation2 + $0x2d0] sm:$0xff] }
 0x4b9   :  { %9328 = vmatpush1.bf16.msra.mxu1 %v8442_v21  ;;  %8878 = vmatprep.subr.bf16.mxu0 %v8093_v22  ;;  %v8468_v21 = vld [vmem:[#allocation2 + $0xdd0] sm:$0xff]  ;;  %v8119_v22 = vld [vmem:[#allocation2 + $0x2e8] sm:$0xff] }
 0x4ba   :  { %9329 = vmatprep.subr.bf16.mxu1 %v8445_v23  ;;  %8908 = vmatprep.mubr.bf16.mxu0 %v7983_v24  ;;  %v8471_v23 = vld [vmem:[#allocation2 + $0xde8] sm:$0xff]  ;;  %v12729_v24 = vsub.s32 4, %v12292_v49 }
 0x4bb   :  { %9359 = vmatprep.mubr.bf16.mxu1 %v8005_v25  ;;  %v8118_v25 = vld [vmem:[#allocation2 + $0x2e0] sm:$0xff] }
 0x4bc   :  { %8879 = vmatpush1.bf16.msra.mxu0 %v8092_v26  ;;  %v8470_v26 = vld [vmem:[#allocation2 + $0xde0] sm:$0xff] }
 0x4bd   :  { %9330 = vmatpush1.bf16.msra.mxu1 %v8444_v13  ;;  %8880 = vmatprep.subr.bf16.mxu0 %v8095_v27  ;;  %v8121_v13 = vld [vmem:[#allocation2 + $0x2f8] sm:$0xff] }
 0x4be   :  { %9331 = vmatprep.subr.bf16.mxu1 %v8447_v28  ;;  %v8473_v27 = vld [vmem:[#allocation2 + $0xdf8] sm:$0xff]  ;;  %v7757_v28 = vrot.slane %v12687_v5, %v12729_v24 }
 0x4c0   :  { %8881 = vmatpush1.bf16.msra.mxu0 %v8094_v29  ;;  %v7845_v29 = vrot.slane %v12708_v48, %v12715_v1 }
 0x4c1   :  { %9332 = vmatpush1.bf16.msra.mxu1 %v8446_v30  ;;  %8882 = vmatprep.subr.bf16.mxu0 %v8097_v31  ;;  %v8120_v30 = vld [vmem:[#allocation2 + $0x2f0] sm:$0xff] }
 0x4c2   :  { %9333 = vmatprep.subr.bf16.mxu1 %v8449_v32  ;;  %v8472_v31 = vld [vmem:[#allocation2 + $0xdf0] sm:$0xff]  ;;  %v8123_v32 = vld [vmem:[#allocation2 + $0x308] sm:$0xff] }
 0x4c4   :  { %8883 = vmatpush1.bf16.msra.mxu0 %v8096_v33  ;;  %v8475_v33 = vld [vmem:[#allocation2 + $0xe08] sm:$0xff] }
 0x4c5   :  { %9334 = vmatpush1.bf16.msra.mxu1 %v8448_v34  ;;  %8884 = vmatprep.subr.bf16.mxu0 %v8099_v15  ;;  %v7769_v34 = vrot.slane %v12687_v5, %v12685_v2  ;;  %v7857_v15 = vrot.slane %v12708_v48, %v12718_v8 }
 0x4c6   :  { %9335 = vmatprep.subr.bf16.mxu1 %v8451_v35  ;;  %v7982_v35 = vpack.c.bf16 %v7757_v28, %v7757_v28  ;;  %v8494_v28 = vld [vmem:[#allocation2 + $0xea0] sm:$0xff] }
 0x4c8   :  { %8885 = vmatpush1.bf16.msra.mxu0 %v8098_v55  ;;  %v8004_v55 = vpack.c.bf16 %v7845_v29, %v7845_v29  ;;  %v8145_v29 = vld [vmem:[#allocation2 + $0x3b8] sm:$0xff] }
 0x4c9   :  { %9336 = vmatpush1.bf16.msra.mxu1 %v8450_v51  ;;  %8886 = vmatprep.subr.bf16.mxu0 %v8101_v36  ;;  %v8122_v51 = vld [vmem:[#allocation2 + $0x300] sm:$0xff] }
 0x4ca   :  { %9337 = vmatprep.subr.bf16.mxu1 %v8453_v53  ;;  %v8474_v36 = vld [vmem:[#allocation2 + $0xe00] sm:$0xff]  ;;  %v8125_v53 = vld [vmem:[#allocation2 + $0x318] sm:$0xff] }
 0x4cc   :  { %8887 = vmatpush1.bf16.msra.mxu0 %v8100_v37  ;;  %v8477_v37 = vld [vmem:[#allocation2 + $0xe18] sm:$0xff] }
 0x4cd   :  { %9338 = vmatpush1.bf16.msra.mxu1 %v8452_v38  ;;  %8888 = vmatprep.subr.bf16.mxu0 %v8103_v41  ;;  %v7985_v38 = vpack.c.bf16 %v7769_v34, %v7769_v34  ;;  %v8007_v41 = vpack.c.bf16 %v7857_v15, %v7857_v15  ;;  %v8499_v34 = vld [vmem:[#allocation2 + $0xec8] sm:$0xff]  ;;  %v8146_v15 = vld [vmem:[#allocation2 + $0x3c0] sm:$0xff] }
 0x4ce   :  { %9339 = vmatprep.subr.bf16.mxu1 %v8455_v43  ;;  %v8124_v43 = vld [vmem:[#allocation2 + $0x310] sm:$0xff] }
 0x4d0   :  { %8889 = vmatpush1.bf16.msra.mxu0 %v8102_v44  ;;  %v8476_v44 = vld [vmem:[#allocation2 + $0xe10] sm:$0xff] }
 0x4d1   :  { %9340 = vmatpush1.bf16.msra.mxu1 %v8454_v45  ;;  %8890 = vmatprep.subr.bf16.mxu0 %v8105_v62  ;;  %v8127_v45 = vld [vmem:[#allocation2 + $0x328] sm:$0xff] }
 0x4d2   :  { %9341 = vmatprep.subr.bf16.mxu1 %v8457_v47  ;;  %v8479_v62 = vld [vmem:[#allocation2 + $0xe28] sm:$0xff]  ;;  %v8126_v47 = vld [vmem:[#allocation2 + $0x320] sm:$0xff] }
 0x4d4   :  { %8891 = vmatpush1.bf16.msra.mxu0 %v8104_v50  ;;  %v8478_v50 = vld [vmem:[#allocation2 + $0xe20] sm:$0xff] }
 0x4d5   :  { %9342 = vmatpush1.bf16.msra.mxu1 %v8456_v52  ;;  %8892 = vmatprep.subr.bf16.mxu0 %v8107_v54  ;;  %v8129_v52 = vld [vmem:[#allocation2 + $0x338] sm:$0xff] }
 0x4d6   :  { %9343 = vmatprep.subr.bf16.mxu1 %v8459_v56  ;;  %v8481_v54 = vld [vmem:[#allocation2 + $0xe38] sm:$0xff]  ;;  %v8128_v56 = vld [vmem:[#allocation2 + $0x330] sm:$0xff] }
 0x4d8   :  { %8893 = vmatpush1.bf16.msra.mxu0 %v8106_v57  ;;  %v8480_v57 = vld [vmem:[#allocation2 + $0xe30] sm:$0xff] }
 0x4d9   :  { %9344 = vmatpush1.bf16.msra.mxu1 %v8458_v59  ;;  %8894 = vmatprep.subr.bf16.mxu0 %v8109_v60  ;;  %v8131_v59 = vld [vmem:[#allocation2 + $0x348] sm:$0xff] }
 0x4da   :  { %9345 = vmatprep.subr.bf16.mxu1 %v8461_v61  ;;  %v8483_v60 = vld [vmem:[#allocation2 + $0xe48] sm:$0xff]  ;;  %v8130_v61 = vld [vmem:[#allocation2 + $0x340] sm:$0xff] }
 0x4dc   :  { %8895 = vmatpush1.bf16.msra.mxu0 %v8108_v63  ;;  %v8482_v63 = vld [vmem:[#allocation2 + $0xe40] sm:$0xff] }
 0x4dd   :  { %9346 = vmatpush1.bf16.msra.mxu1 %v8460_v42  ;;  %8896 = vmatprep.subr.bf16.mxu0 %v8111_v3  ;;  %v8133_v42 = vld [vmem:[#allocation2 + $0x358] sm:$0xff] }
 0x4de   :  { %9347 = vmatprep.subr.bf16.mxu1 %v8463_v4  ;;  %v8485_v3 = vld [vmem:[#allocation2 + $0xe58] sm:$0xff]  ;;  %v8132_v4 = vld [vmem:[#allocation2 + $0x350] sm:$0xff] }
 0x4e0   :  { %8897 = vmatpush1.bf16.msra.mxu0 %v8110_v6  ;;  %v8484_v6 = vld [vmem:[#allocation2 + $0xe50] sm:$0xff] }
 0x4e1   :  { %9348 = vmatpush1.bf16.msra.mxu1 %v8462_v7  ;;  %8898 = vmatprep.subr.bf16.mxu0 %v8113_v9  ;;  %v8135_v7 = vld [vmem:[#allocation2 + $0x368] sm:$0xff] }
 0x4e2   :  { %9349 = vmatprep.subr.bf16.mxu1 %v8465_v10  ;;  %v8487_v9 = vld [vmem:[#allocation2 + $0xe68] sm:$0xff]  ;;  %v8134_v10 = vld [vmem:[#allocation2 + $0x360] sm:$0xff] }
 0x4e4   :  { %8899 = vmatpush1.bf16.msra.mxu0 %v8112_v11  ;;  %v8486_v11 = vld [vmem:[#allocation2 + $0xe60] sm:$0xff] }
 0x4e5   :  { %9350 = vmatpush1.bf16.msra.mxu1 %v8464_v12  ;;  %8900 = vmatprep.subr.bf16.mxu0 %v8115_v14  ;;  %v8137_v12 = vld [vmem:[#allocation2 + $0x378] sm:$0xff] }
 0x4e6   :  { %9351 = vmatprep.subr.bf16.mxu1 %v8467_v16  ;;  %v8489_v14 = vld [vmem:[#allocation2 + $0xe78] sm:$0xff]  ;;  %v8136_v16 = vld [vmem:[#allocation2 + $0x370] sm:$0xff] }
 0x4e8   :  { %8901 = vmatpush1.bf16.msra.mxu0 %v8114_v58  ;;  %v8488_v58 = vld [vmem:[#allocation2 + $0xe70] sm:$0xff] }
 0x4e9   :  { %9352 = vmatpush1.bf16.msra.mxu1 %v8466_v17  ;;  %8902 = vmatprep.subr.bf16.mxu0 %v8117_v18  ;;  %v8139_v17 = vld [vmem:[#allocation2 + $0x388] sm:$0xff] }
 0x4ea   :  { %9353 = vmatprep.subr.bf16.mxu1 %v8469_v19  ;;  %v8491_v18 = vld [vmem:[#allocation2 + $0xe88] sm:$0xff]  ;;  %v8138_v19 = vld [vmem:[#allocation2 + $0x380] sm:$0xff] }
 0x4ec   :  { %8903 = vmatpush1.bf16.msra.mxu0 %v8116_v20  ;;  %v8490_v20 = vld [vmem:[#allocation2 + $0xe80] sm:$0xff] }
 0x4ed   :  { %9354 = vmatpush1.bf16.msra.mxu1 %v8468_v21  ;;  %8904 = vmatprep.subr.bf16.mxu0 %v8119_v22  ;;  %v8141_v21 = vld [vmem:[#allocation2 + $0x398] sm:$0xff] }
 0x4ee   :  { %9355 = vmatprep.subr.bf16.mxu1 %v8471_v23  ;;  %v8493_v22 = vld [vmem:[#allocation2 + $0xe98] sm:$0xff]  ;;  %v8140_v23 = vld [vmem:[#allocation2 + $0x390] sm:$0xff] }
 0x4f0   :  { %8905 = vmatpush1.bf16.msra.mxu0 %v8118_v25  ;;  %v8492_v25 = vld [vmem:[#allocation2 + $0xe90] sm:$0xff] }
 0x4f1   :  { %9356 = vmatpush1.bf16.msra.mxu1 %v8470_v26  ;;  %8906 = vmatprep.subr.bf16.mxu0 %v8121_v13  ;;  %v8143_v26 = vld [vmem:[#allocation2 + $0x3a8] sm:$0xff] }
 0x4f2   :  { %9357 = vmatprep.subr.bf16.mxu1 %v8473_v27  ;;  %v8495_v13 = vld [vmem:[#allocation2 + $0xea8] sm:$0xff]  ;;  %v8142_v27 = vld [vmem:[#allocation2 + $0x3a0] sm:$0xff] }
 0x4f4   :  { %8907 = vmatpush1.bf16.msra.mxu0 %v8120_v30  ;;  %v8497_v30 = vld [vmem:[#allocation2 + $0xeb8] sm:$0xff] }
 0x4f5   :  { %9358 = vmatpush1.bf16.msra.mxu1 %v8472_v31  ;;  %8917 = vmatprep.subr.bf16.mxu0 %v8123_v32  ;;  %v8144_v31 = vld [vmem:[#allocation2 + $0x3b0] sm:$0xff] }
 0x4f6   :  { %9368 = vmatprep.subr.bf16.mxu1 %v8475_v33  ;;  %v8496_v32 = vld [vmem:[#allocation2 + $0xeb0] sm:$0xff]  ;;  %v8147_v33 = vld [vmem:[#allocation2 + $0x3c8] sm:$0xff] }
 0x4f7   :  { %8909 = vmatmul.mubr.bf16.vlgmr.msra.gmra.mrb[40].mxu0 %v7982_v35  ;;  %v8498_v35 = vld [vmem:[#allocation2 + $0xec0] sm:$0xff] }
 0x4f8   :  { %9360 = vmatmul.mubr.bf16.vlgmr.msra.gmra.mrb[0].mxu1 %v8004_v55  ;;  %8918 = vmatpush1.bf16.msra.mxu0 %v8122_v51  ;;  %v8149_v55 = vld [vmem:[#allocation2 + $0x3d8] sm:$0xff] }
 0x4f9   :  { %9369 = vmatpush1.bf16.msra.mxu1 %v8474_v36  ;;  %8919 = vmatprep.subr.bf16.mxu0 %v8125_v53  ;;  %v8501_v51 = vld [vmem:[#allocation2 + $0xed8] sm:$0xff]  ;;  %v8148_v36 = vld [vmem:[#allocation2 + $0x3d0] sm:$0xff] }
 0x4fa   :  { %9370 = vmatprep.subr.bf16.mxu1 %v8477_v37  ;;  %8949 = vmatprep.mubr.bf16.mxu0 %v7985_v38  ;;  %v8500_v53 = vld [vmem:[#allocation2 + $0xed0] sm:$0xff]  ;;  %v8151_v37 = vld [vmem:[#allocation2 + $0x3e8] sm:$0xff] }
 0x4fb   :  { %9400 = vmatprep.mubr.bf16.mxu1 %v8007_v41  ;;  %v8503_v38 = vld [vmem:[#allocation2 + $0xee8] sm:$0xff]  ;;  %v8150_v41 = vld [vmem:[#allocation2 + $0x3e0] sm:$0xff] }
 0x4fc   :  { %8920 = vmatpush1.bf16.msra.mxu0 %v8124_v43  ;;  %v8502_v43 = vld [vmem:[#allocation2 + $0xee0] sm:$0xff] }
 0x4fd   :  { %9371 = vmatpush1.bf16.msra.mxu1 %v8476_v44  ;;  %8921 = vmatprep.subr.bf16.mxu0 %v8127_v45  ;;  %v8153_v44 = vld [vmem:[#allocation2 + $0x3f8] sm:$0xff] }
 0x4fe   :  { %9372 = vmatprep.subr.bf16.mxu1 %v8479_v62  ;;  %v8505_v45 = vld [vmem:[#allocation2 + $0xef8] sm:$0xff]  ;;  %v7765_v62 = vrot.slane %v12687_v5, %v12699_v40 }
 0x500   :  { %8922 = vmatpush1.bf16.msra.mxu0 %v8126_v47  ;;  %v7853_v47 = vrot.slane %v12708_v48, %v12729_v24  ;;  %v7984_v5 = vpack.c.bf16 %v7765_v62, %v7765_v62  ;;  %v8177_v62 = vld [vmem:[#allocation2 + $0x4b8] sm:$0xff] }
 0x501   :  { %9373 = vmatpush1.bf16.msra.mxu1 %v8478_v50  ;;  %8923 = vmatprep.subr.bf16.mxu0 %v8129_v52  ;;  %v12743_v50 = vld [vmem:[#allocation3 + $0x8] sm:$0xff]  ;;  %v8152_v52 = vld [vmem:[#allocation2 + $0x3f0] sm:$0xff] }
 0x502   :  { %9374 = vmatprep.subr.bf16.mxu1 %v8481_v54  ;;  %v8504_v54 = vld [vmem:[#allocation2 + $0xef0] sm:$0xff] }
 0x504   :  { %8924 = vmatpush1.bf16.msra.mxu0 %v8128_v56  ;;  %v8155_v56 = vld [vmem:[#allocation2 + $0x408] sm:$0xff] }
 0x505   :  { %9375 = vmatpush1.bf16.msra.mxu1 %v8480_v57  ;;  %8925 = vmatprep.subr.bf16.mxu0 %v8131_v59  ;;  %v8507_v57 = vld [vmem:[#allocation2 + $0xf08] sm:$0xff]  ;;  %v7777_v59 = vrot.slane %v12743_v50, %v12682_v0 }
 0x506   :  { %9376 = vmatprep.subr.bf16.mxu1 %v8483_v60  ;;  %v7865_v60 = vrot.slane %v12708_v48, %v12685_v2  ;;  %v8508_v48 = vld [vmem:[#allocation2 + $0xf10] sm:$0xff] }
 0x508   :  { %8926 = vmatpush1.bf16.msra.mxu0 %v8130_v61  ;;  %v8006_v61 = vpack.c.bf16 %v7853_v47, %v7853_v47  ;;  %v8529_v47 = vld [vmem:[#allocation2 + $0xfb8] sm:$0xff] }
 0x509   :  { %9377 = vmatpush1.bf16.msra.mxu1 %v8482_v63  ;;  %8927 = vmatprep.subr.bf16.mxu0 %v8133_v42  ;;  %v8154_v63 = vld [vmem:[#allocation2 + $0x400] sm:$0xff] }
 0x50a   :  { %9378 = vmatprep.subr.bf16.mxu1 %v8485_v3  ;;  %v8506_v42 = vld [vmem:[#allocation2 + $0xf00] sm:$0xff]  ;;  %v8157_v3 = vld [vmem:[#allocation2 + $0x418] sm:$0xff] }
 0x50c   :  { %8928 = vmatpush1.bf16.msra.mxu0 %v8132_v4  ;;  %v8509_v4 = vld [vmem:[#allocation2 + $0xf18] sm:$0xff] }
 0x50d   :  { %9379 = vmatpush1.bf16.msra.mxu1 %v8484_v6  ;;  %8929 = vmatprep.subr.bf16.mxu0 %v8135_v7  ;;  %v7987_v6 = vpack.c.bf16 %v7777_v59, %v7777_v59  ;;  %v8009_v7 = vpack.c.bf16 %v7865_v60, %v7865_v60  ;;  %v8178_v59 = vld [vmem:[#allocation2 + $0x4c0] sm:$0xff] }
 0x50e   :  { %9380 = vmatprep.subr.bf16.mxu1 %v8487_v9  ;;  %v8156_v9 = vld [vmem:[#allocation2 + $0x410] sm:$0xff]  ;;  %v8530_v60 = vld [vmem:[#allocation2 + $0xfc0] sm:$0xff] }
 0x510   :  { %8930 = vmatpush1.bf16.msra.mxu0 %v8134_v10  ;;  %v8159_v10 = vld [vmem:[#allocation2 + $0x428] sm:$0xff] }
 0x511   :  { %9381 = vmatpush1.bf16.msra.mxu1 %v8486_v11  ;;  %8931 = vmatprep.subr.bf16.mxu0 %v8137_v12  ;;  %v8511_v11 = vld [vmem:[#allocation2 + $0xf28] sm:$0xff]  ;;  %v8158_v12 = vld [vmem:[#allocation2 + $0x420] sm:$0xff] }
 0x512   :  { %9382 = vmatprep.subr.bf16.mxu1 %v8489_v14  ;;  %v8510_v14 = vld [vmem:[#allocation2 + $0xf20] sm:$0xff] }
 0x514   :  { %8932 = vmatpush1.bf16.msra.mxu0 %v8136_v16  ;;  %v8161_v16 = vld [vmem:[#allocation2 + $0x438] sm:$0xff] }
 0x515   :  { %9383 = vmatpush1.bf16.msra.mxu1 %v8488_v58  ;;  %8933 = vmatprep.subr.bf16.mxu0 %v8139_v17  ;;  %v8513_v58 = vld [vmem:[#allocation2 + $0xf38] sm:$0xff]  ;;  %v8160_v17 = vld [vmem:[#allocation2 + $0x430] sm:$0xff] }
 0x516   :  { %9384 = vmatprep.subr.bf16.mxu1 %v8491_v18  ;;  %v8512_v18 = vld [vmem:[#allocation2 + $0xf30] sm:$0xff] }
 0x518   :  { %8934 = vmatpush1.bf16.msra.mxu0 %v8138_v19  ;;  %v8163_v19 = vld [vmem:[#allocation2 + $0x448] sm:$0xff] }
 0x519   :  { %9385 = vmatpush1.bf16.msra.mxu1 %v8490_v20  ;;  %8935 = vmatprep.subr.bf16.mxu0 %v8141_v21  ;;  %v8515_v20 = vld [vmem:[#allocation2 + $0xf48] sm:$0xff]  ;;  %v8162_v21 = vld [vmem:[#allocation2 + $0x440] sm:$0xff] }
 0x51a   :  { %9386 = vmatprep.subr.bf16.mxu1 %v8493_v22  ;;  %v8514_v22 = vld [vmem:[#allocation2 + $0xf40] sm:$0xff] }
 0x51c   :  { %8936 = vmatpush1.bf16.msra.mxu0 %v8140_v23  ;;  %v8165_v23 = vld [vmem:[#allocation2 + $0x458] sm:$0xff] }
 0x51d   :  { %9387 = vmatpush1.bf16.msra.mxu1 %v8492_v25  ;;  %8937 = vmatprep.subr.bf16.mxu0 %v8143_v26  ;;  %v8517_v25 = vld [vmem:[#allocation2 + $0xf58] sm:$0xff]  ;;  %v8164_v26 = vld [vmem:[#allocation2 + $0x450] sm:$0xff] }
 0x51e   :  { %9388 = vmatprep.subr.bf16.mxu1 %v8495_v13  ;;  %v8516_v13 = vld [vmem:[#allocation2 + $0xf50] sm:$0xff] }
 0x520   :  { %8938 = vmatpush1.bf16.msra.mxu0 %v8142_v27  ;;  %v8167_v27 = vld [vmem:[#allocation2 + $0x468] sm:$0xff] }
 0x521   :  { %9389 = vmatpush1.bf16.msra.mxu1 %v8494_v28  ;;  %8939 = vmatprep.subr.bf16.mxu0 %v8145_v29  ;;  %v8519_v28 = vld [vmem:[#allocation2 + $0xf68] sm:$0xff]  ;;  %v8166_v29 = vld [vmem:[#allocation2 + $0x460] sm:$0xff] }
 0x522   :  { %9390 = vmatprep.subr.bf16.mxu1 %v8497_v30  ;;  %v8518_v30 = vld [vmem:[#allocation2 + $0xf60] sm:$0xff] }
 0x524   :  { %8940 = vmatpush1.bf16.msra.mxu0 %v8144_v31  ;;  %v8169_v31 = vld [vmem:[#allocation2 + $0x478] sm:$0xff] }
 0x525   :  { %9391 = vmatpush1.bf16.msra.mxu1 %v8496_v32  ;;  %8941 = vmatprep.subr.bf16.mxu0 %v8147_v33  ;;  %v8521_v32 = vld [vmem:[#allocation2 + $0xf78] sm:$0xff]  ;;  %v8168_v33 = vld [vmem:[#allocation2 + $0x470] sm:$0xff] }
 0x526   :  { %9392 = vmatprep.subr.bf16.mxu1 %v8499_v34  ;;  %v8520_v34 = vld [vmem:[#allocation2 + $0xf70] sm:$0xff] }
 0x528   :  { %8942 = vmatpush1.bf16.msra.mxu0 %v8146_v15  ;;  %v8171_v15 = vld [vmem:[#allocation2 + $0x488] sm:$0xff] }
 0x529   :  { %9393 = vmatpush1.bf16.msra.mxu1 %v8498_v35  ;;  %8943 = vmatprep.subr.bf16.mxu0 %v8149_v55  ;;  %v8523_v35 = vld [vmem:[#allocation2 + $0xf88] sm:$0xff]  ;;  %v8170_v55 = vld [vmem:[#allocation2 + $0x480] sm:$0xff] }
 0x52a   :  { %9394 = vmatprep.subr.bf16.mxu1 %v8501_v51  ;;  %v8522_v51 = vld [vmem:[#allocation2 + $0xf80] sm:$0xff] }
 0x52c   :  { %8944 = vmatpush1.bf16.msra.mxu0 %v8148_v36  ;;  %v8173_v36 = vld [vmem:[#allocation2 + $0x498] sm:$0xff] }
 0x52d   :  { %9395 = vmatpush1.bf16.msra.mxu1 %v8500_v53  ;;  %8945 = vmatprep.subr.bf16.mxu0 %v8151_v37  ;;  %v8525_v53 = vld [vmem:[#allocation2 + $0xf98] sm:$0xff]  ;;  %v8172_v37 = vld [vmem:[#allocation2 + $0x490] sm:$0xff] }
 0x52e   :  { %9396 = vmatprep.subr.bf16.mxu1 %v8503_v38  ;;  %v8524_v38 = vld [vmem:[#allocation2 + $0xf90] sm:$0xff] }
 0x530   :  { %8946 = vmatpush1.bf16.msra.mxu0 %v8150_v41  ;;  %v8175_v41 = vld [vmem:[#allocation2 + $0x4a8] sm:$0xff] }
 0x531   :  { %9397 = vmatpush1.bf16.msra.mxu1 %v8502_v43  ;;  %8947 = vmatprep.subr.bf16.mxu0 %v8153_v44  ;;  %v8527_v43 = vld [vmem:[#allocation2 + $0xfa8] sm:$0xff]  ;;  %v8174_v44 = vld [vmem:[#allocation2 + $0x4a0] sm:$0xff] }
 0x532   :  { %9398 = vmatprep.subr.bf16.mxu1 %v8505_v45  ;;  %v8526_v45 = vld [vmem:[#allocation2 + $0xfa0] sm:$0xff] }
 0x534   :  { %8948 = vmatpush1.bf16.msra.mxu0 %v8152_v52  ;;  %v8176_v52 = vld [vmem:[#allocation2 + $0x4b0] sm:$0xff] }
 0x535   :  { %9399 = vmatpush1.bf16.msra.mxu1 %v8504_v54  ;;  %8958 = vmatprep.subr.bf16.mxu0 %v8155_v56  ;;  %v8528_v54 = vld [vmem:[#allocation2 + $0xfb0] sm:$0xff]  ;;  %v8179_v56 = vld [vmem:[#allocation2 + $0x4c8] sm:$0xff] }
 0x536   :  { %9409 = vmatprep.subr.bf16.mxu1 %v8507_v57  ;;  %v8531_v57 = vld [vmem:[#allocation2 + $0xfc8] sm:$0xff] }
 0x537   :  { %8950 = vmatmul.mubr.bf16.vlgmr.msra.gmra.mrb[40].mxu0 %v7984_v5  ;;  %v8181_v5 = vld [vmem:[#allocation2 + $0x4d8] sm:$0xff] }
 0x538   :  { %9401 = vmatmul.mubr.bf16.vlgmr.msra.gmra.mrb[0].mxu1 %v8006_v61  ;;  %8959 = vmatpush1.bf16.msra.mxu0 %v8154_v63  ;;  %v8533_v61 = vld [vmem:[#allocation2 + $0xfd8] sm:$0xff]  ;;  %v8180_v63 = vld [vmem:[#allocation2 + $0x4d0] sm:$0xff] }
 0x539   :  { %9410 = vmatpush1.bf16.msra.mxu1 %v8506_v42  ;;  %8960 = vmatprep.subr.bf16.mxu0 %v8157_v3  ;;  %v8532_v42 = vld [vmem:[#allocation2 + $0xfd0] sm:$0xff]  ;;  %v8183_v3 = vld [vmem:[#allocation2 + $0x4e8] sm:$0xff] }
 0x53a   :  { %9411 = vmatprep.subr.bf16.mxu1 %v8509_v4  ;;  %8990 = vmatprep.mubr.bf16.mxu0 %v7987_v6  ;;  %v8535_v4 = vld [vmem:[#allocation2 + $0xfe8] sm:$0xff]  ;;  %v8182_v6 = vld [vmem:[#allocation2 + $0x4e0] sm:$0xff] }
 0x53b   :  { %9441 = vmatprep.mubr.bf16.mxu1 %v8009_v7  ;;  %v8534_v7 = vld [vmem:[#allocation2 + $0xfe0] sm:$0xff] }
 0x53c   :  { %8961 = vmatpush1.bf16.msra.mxu0 %v8156_v9  ;;  %v8185_v9 = vld [vmem:[#allocation2 + $0x4f8] sm:$0xff] }
 0x53d   :  { %9412 = vmatpush1.bf16.msra.mxu1 %v8508_v48  ;;  %8962 = vmatprep.subr.bf16.mxu0 %v8159_v10  ;;  %v8537_v48 = vld [vmem:[#allocation2 + $0xff8] sm:$0xff]  ;;  %v7773_v10 = vrot.slane %v12743_v50, %v12696_v39 }
 0x53e   :  { %9413 = vmatprep.subr.bf16.mxu1 %v8511_v11  ;;  %v10442_v11 = vld [vmem:[#allocation3 + $0x18] sm:$0xff] }
 0x540   :  { %8963 = vmatpush1.bf16.msra.mxu0 %v8158_v12  ;;  %v7861_v12 = vrot.slane %v10442_v11, %v12699_v40  ;;  %v8558_v11 = vld [vmem:[#allocation2 + $0x10a0] sm:$0xff] }
 0x541   :  { %9414 = vmatpush1.bf16.msra.mxu1 %v8510_v14  ;;  %8964 = vmatprep.subr.bf16.mxu0 %v8161_v16  ;;  %v12752_v14 = vld [vmem:[#allocation3 + $0x20] sm:$0xff]  ;;  %v8184_v16 = vld [vmem:[#allocation2 + $0x4f0] sm:$0xff] }
 0x542   :  { %9415 = vmatprep.subr.bf16.mxu1 %v8513_v58  ;;  %v8536_v58 = vld [vmem:[#allocation2 + $0xff0] sm:$0xff] }
 0x544   :  { %8965 = vmatpush1.bf16.msra.mxu0 %v8160_v17  ;;  %v8187_v17 = vld [vmem:[#allocation2 + $0x508] sm:$0xff] }
 0x545   :  { %9416 = vmatpush1.bf16.msra.mxu1 %v8512_v18  ;;  %8966 = vmatprep.subr.bf16.mxu0 %v8163_v19  ;;  %v8539_v18 = vld [vmem:[#allocation2 + $0x1008] sm:$0xff]  ;;  %v7785_v19 = vrot.slane %v12743_v50, %v12702_v46 }
 0x546   :  { %9417 = vmatprep.subr.bf16.mxu1 %v8515_v20  ;;  %v7873_v20 = vrot.slane %v12752_v14, %v12682_v0 }
 0x548   :  { %8967 = vmatpush1.bf16.msra.mxu0 %v8162_v21  ;;  %v7986_v21 = vpack.c.bf16 %v7773_v10, %v7773_v10  ;;  %v8206_v10 = vld [vmem:[#allocation2 + $0x5a0] sm:$0xff] }
 0x549   :  { %9418 = vmatpush1.bf16.msra.mxu1 %v8514_v22  ;;  %8968 = vmatprep.subr.bf16.mxu0 %v8165_v23  ;;  %v8008_v22 = vpack.c.bf16 %v7861_v12, %v7861_v12  ;;  %v8186_v23 = vld [vmem:[#allocation2 + $0x500] sm:$0xff]  ;;  %v8209_v12 = vld [vmem:[#allocation2 + $0x5b8] sm:$0xff] }
 0x54a   :  { %9419 = vmatprep.subr.bf16.mxu1 %v8517_v25  ;;  %v8538_v25 = vld [vmem:[#allocation2 + $0x1000] sm:$0xff] }
 0x54c   :  { %8969 = vmatpush1.bf16.msra.mxu0 %v8164_v26  ;;  %v8189_v26 = vld [vmem:[#allocation2 + $0x518] sm:$0xff] }
 0x54d   :  { %9420 = vmatpush1.bf16.msra.mxu1 %v8516_v13  ;;  %8970 = vmatprep.subr.bf16.mxu0 %v8167_v27  ;;  %v8541_v13 = vld [vmem:[#allocation2 + $0x1018] sm:$0xff]  ;;  %v7989_v27 = vpack.c.bf16 %v7785_v19, %v7785_v19  ;;  %v8563_v19 = vld [vmem:[#allocation2 + $0x10c8] sm:$0xff] }
 0x54e   :  { %9421 = vmatprep.subr.bf16.mxu1 %v8519_v28  ;;  %v8011_v28 = vpack.c.bf16 %v7873_v20, %v7873_v20  ;;  %v8210_v20 = vld [vmem:[#allocation2 + $0x5c0] sm:$0xff] }
 0x550   :  { %8971 = vmatpush1.bf16.msra.mxu0 %v8166_v29  ;;  %v8188_v29 = vld [vmem:[#allocation2 + $0x510] sm:$0xff] }
 0x551   :  { %9422 = vmatpush1.bf16.msra.mxu1 %v8518_v30  ;;  %8972 = vmatprep.subr.bf16.mxu0 %v8169_v31  ;;  %v8540_v30 = vld [vmem:[#allocation2 + $0x1010] sm:$0xff]  ;;  %v8191_v31 = vld [vmem:[#allocation2 + $0x528] sm:$0xff] }
 0x552   :  { %9423 = vmatprep.subr.bf16.mxu1 %v8521_v32  ;;  %v8543_v32 = vld [vmem:[#allocation2 + $0x1028] sm:$0xff] }
 0x554   :  { %8973 = vmatpush1.bf16.msra.mxu0 %v8168_v33  ;;  %v8190_v33 = vld [vmem:[#allocation2 + $0x520] sm:$0xff] }
 0x555   :  { %9424 = vmatpush1.bf16.msra.mxu1 %v8520_v34  ;;  %8974 = vmatprep.subr.bf16.mxu0 %v8171_v15  ;;  %v8542_v34 = vld [vmem:[#allocation2 + $0x1020] sm:$0xff]  ;;  %v8193_v15 = vld [vmem:[#allocation2 + $0x538] sm:$0xff] }
 0x556   :  { %9425 = vmatprep.subr.bf16.mxu1 %v8523_v35  ;;  %v8545_v35 = vld [vmem:[#allocation2 + $0x1038] sm:$0xff] }
 0x558   :  { %8975 = vmatpush1.bf16.msra.mxu0 %v8170_v55  ;;  %v8192_v55 = vld [vmem:[#allocation2 + $0x530] sm:$0xff] }
 0x559   :  { %9426 = vmatpush1.bf16.msra.mxu1 %v8522_v51  ;;  %8976 = vmatprep.subr.bf16.mxu0 %v8173_v36  ;;  %v8544_v51 = vld [vmem:[#allocation2 + $0x1030] sm:$0xff]  ;;  %v8195_v36 = vld [vmem:[#allocation2 + $0x548] sm:$0xff] }
 0x55a   :  { %9427 = vmatprep.subr.bf16.mxu1 %v8525_v53  ;;  %v8547_v53 = vld [vmem:[#allocation2 + $0x1048] sm:$0xff] }
 0x55c   :  { %8977 = vmatpush1.bf16.msra.mxu0 %v8172_v37  ;;  %v8194_v37 = vld [vmem:[#allocation2 + $0x540] sm:$0xff] }
 0x55d   :  { %9428 = vmatpush1.bf16.msra.mxu1 %v8524_v38  ;;  %8978 = vmatprep.subr.bf16.mxu0 %v8175_v41  ;;  %v8546_v38 = vld [vmem:[#allocation2 + $0x1040] sm:$0xff]  ;;  %v8197_v41 = vld [vmem:[#allocation2 + $0x558] sm:$0xff] }
 0x55e   :  { %9429 = vmatprep.subr.bf16.mxu1 %v8527_v43  ;;  %v8549_v43 = vld [vmem:[#allocation2 + $0x1058] sm:$0xff] }
 0x560   :  { %8979 = vmatpush1.bf16.msra.mxu0 %v8174_v44  ;;  %v8196_v44 = vld [vmem:[#allocation2 + $0x550] sm:$0xff] }
 0x561   :  { %9430 = vmatpush1.bf16.msra.mxu1 %v8526_v45  ;;  %8980 = vmatprep.subr.bf16.mxu0 %v8177_v62  ;;  %v8548_v45 = vld [vmem:[#allocation2 + $0x1050] sm:$0xff]  ;;  %v8199_v62 = vld [vmem:[#allocation2 + $0x568] sm:$0xff] }
 0x562   :  { %9431 = vmatprep.subr.bf16.mxu1 %v8529_v47  ;;  %v8551_v47 = vld [vmem:[#allocation2 + $0x1068] sm:$0xff] }
 0x564   :  { %8981 = vmatpush1.bf16.msra.mxu0 %v8176_v52  ;;  %v8198_v52 = vld [vmem:[#allocation2 + $0x560] sm:$0xff] }
 0x565   :  { %9432 = vmatpush1.bf16.msra.mxu1 %v8528_v54  ;;  %8982 = vmatprep.subr.bf16.mxu0 %v8179_v56  ;;  %v8550_v54 = vld [vmem:[#allocation2 + $0x1060] sm:$0xff]  ;;  %v8201_v56 = vld [vmem:[#allocation2 + $0x578] sm:$0xff] }
 0x566   :  { %9433 = vmatprep.subr.bf16.mxu1 %v8531_v57  ;;  %v8553_v57 = vld [vmem:[#allocation2 + $0x1078] sm:$0xff] }
 0x568   :  { %8983 = vmatpush1.bf16.msra.mxu0 %v8178_v59  ;;  %v8200_v59 = vld [vmem:[#allocation2 + $0x570] sm:$0xff] }
 0x569   :  { %9434 = vmatpush1.bf16.msra.mxu1 %v8530_v60  ;;  %8984 = vmatprep.subr.bf16.mxu0 %v8181_v5  ;;  %v8552_v60 = vld [vmem:[#allocation2 + $0x1070] sm:$0xff]  ;;  %v8203_v5 = vld [vmem:[#allocation2 + $0x588] sm:$0xff] }
 0x56a   :  { %9435 = vmatprep.subr.bf16.mxu1 %v8533_v61  ;;  %v8555_v61 = vld [vmem:[#allocation2 + $0x1088] sm:$0xff] }
 0x56c   :  { %8985 = vmatpush1.bf16.msra.mxu0 %v8180_v63  ;;  %v8202_v63 = vld [vmem:[#allocation2 + $0x580] sm:$0xff] }
 0x56d   :  { %9436 = vmatpush1.bf16.msra.mxu1 %v8532_v42  ;;  %8986 = vmatprep.subr.bf16.mxu0 %v8183_v3  ;;  %v8554_v42 = vld [vmem:[#allocation2 + $0x1080] sm:$0xff]  ;;  %v8205_v3 = vld [vmem:[#allocation2 + $0x598] sm:$0xff] }
 0x56e   :  { %9437 = vmatprep.subr.bf16.mxu1 %v8535_v4  ;;  %v8557_v4 = vld [vmem:[#allocation2 + $0x1098] sm:$0xff] }
 0x570   :  { %8987 = vmatpush1.bf16.msra.mxu0 %v8182_v6  ;;  %v8204_v6 = vld [vmem:[#allocation2 + $0x590] sm:$0xff] }
 0x571   :  { %9438 = vmatpush1.bf16.msra.mxu1 %v8534_v7  ;;  %8988 = vmatprep.subr.bf16.mxu0 %v8185_v9  ;;  %v8556_v7 = vld [vmem:[#allocation2 + $0x1090] sm:$0xff]  ;;  %v8207_v9 = vld [vmem:[#allocation2 + $0x5a8] sm:$0xff] }
 0x572   :  { %9439 = vmatprep.subr.bf16.mxu1 %v8537_v48  ;;  %v8559_v48 = vld [vmem:[#allocation2 + $0x10a8] sm:$0xff] }
 0x574   :  { %8989 = vmatpush1.bf16.msra.mxu0 %v8184_v16  ;;  %v8561_v16 = vld [vmem:[#allocation2 + $0x10b8] sm:$0xff] }
 0x575   :  { %9440 = vmatpush1.bf16.msra.mxu1 %v8536_v58  ;;  %8999 = vmatprep.subr.bf16.mxu0 %v8187_v17  ;;  %v8208_v58 = vld [vmem:[#allocation2 + $0x5b0] sm:$0xff] }
 0x576   :  { %9450 = vmatprep.subr.bf16.mxu1 %v8539_v18  ;;  %v8560_v17 = vld [vmem:[#allocation2 + $0x10b0] sm:$0xff]  ;;  %v8211_v18 = vld [vmem:[#allocation2 + $0x5c8] sm:$0xff] }
 0x577   :  { %8991 = vmatmul.mubr.bf16.vlgmr.msra.gmra.mrb[40].mxu0 %v7986_v21  ;;  %v8562_v21 = vld [vmem:[#allocation2 + $0x10c0] sm:$0xff] }
 0x578   :  { %9442 = vmatmul.mubr.bf16.vlgmr.msra.gmra.mrb[0].mxu1 %v8008_v22  ;;  %9000 = vmatpush1.bf16.msra.mxu0 %v8186_v23  ;;  %v8213_v22 = vld [vmem:[#allocation2 + $0x5d8] sm:$0xff] }
 0x579   :  { %9451 = vmatpush1.bf16.msra.mxu1 %v8538_v25  ;;  %9001 = vmatprep.subr.bf16.mxu0 %v8189_v26  ;;  %v8565_v23 = vld [vmem:[#allocation2 + $0x10d8] sm:$0xff]  ;;  %v8212_v25 = vld [vmem:[#allocation2 + $0x5d0] sm:$0xff] }
 0x57a   :  { %9452 = vmatprep.subr.bf16.mxu1 %v8541_v13  ;;  %9031 = vmatprep.mubr.bf16.mxu0 %v7989_v27  ;;  %v8564_v26 = vld [vmem:[#allocation2 + $0x10d0] sm:$0xff]  ;;  %v8215_v13 = vld [vmem:[#allocation2 + $0x5e8] sm:$0xff] }
 0x57b   :  { %9482 = vmatprep.mubr.bf16.mxu1 %v8011_v28  ;;  %v8567_v27 = vld [vmem:[#allocation2 + $0x10e8] sm:$0xff]  ;;  %v8214_v28 = vld [vmem:[#allocation2 + $0x5e0] sm:$0xff] }
 0x57c   :  { %9002 = vmatpush1.bf16.msra.mxu0 %v8188_v29  ;;  %v8566_v29 = vld [vmem:[#allocation2 + $0x10e0] sm:$0xff] }
 0x57d   :  { %9453 = vmatpush1.bf16.msra.mxu1 %v8540_v30  ;;  %9003 = vmatprep.subr.bf16.mxu0 %v8191_v31  ;;  %v8217_v30 = vld [vmem:[#allocation2 + $0x5f8] sm:$0xff] }
 0x57e   :  { %9454 = vmatprep.subr.bf16.mxu1 %v8543_v32  ;;  %v8569_v31 = vld [vmem:[#allocation2 + $0x10f8] sm:$0xff]  ;;  %v7781_v32 = vrot.slane %v12743_v50, %v12715_v1 }
 0x580   :  { %9004 = vmatpush1.bf16.msra.mxu0 %v8190_v33  ;;  %v7869_v33 = vrot.slane %v12752_v14, %v12696_v39 }
 0x581   :  { %9455 = vmatpush1.bf16.msra.mxu1 %v8542_v34  ;;  %9005 = vmatprep.subr.bf16.mxu0 %v8193_v15  ;;  %v8216_v34 = vld [vmem:[#allocation2 + $0x5f0] sm:$0xff] }
 0x582   :  { %9456 = vmatprep.subr.bf16.mxu1 %v8545_v35  ;;  %v8568_v15 = vld [vmem:[#allocation2 + $0x10f0] sm:$0xff]  ;;  %v8219_v35 = vld [vmem:[#allocation2 + $0x608] sm:$0xff] }
 0x584   :  { %9006 = vmatpush1.bf16.msra.mxu0 %v8192_v55  ;;  %v8571_v55 = vld [vmem:[#allocation2 + $0x1108] sm:$0xff] }
 0x585   :  { %9457 = vmatpush1.bf16.msra.mxu1 %v8544_v51  ;;  %9007 = vmatprep.subr.bf16.mxu0 %v8195_v36  ;;  %v7793_v51 = vrot.slane %v12743_v50, %v12718_v8  ;;  %v7881_v36 = vrot.slane %v12752_v14, %v12702_v46 }
 0x586   :  { %9458 = vmatprep.subr.bf16.mxu1 %v8547_v53  ;;  %v7988_v53 = vpack.c.bf16 %v7781_v32, %v7781_v32  ;;  %v8590_v32 = vld [vmem:[#allocation2 + $0x11a0] sm:$0xff] }
 0x588   :  { %9008 = vmatpush1.bf16.msra.mxu0 %v8194_v37  ;;  %v8010_v37 = vpack.c.bf16 %v7869_v33, %v7869_v33  ;;  %v8241_v33 = vld [vmem:[#allocation2 + $0x6b8] sm:$0xff] }
 0x589   :  { %9459 = vmatpush1.bf16.msra.mxu1 %v8546_v38  ;;  %9009 = vmatprep.subr.bf16.mxu0 %v8197_v41  ;;  %v8218_v38 = vld [vmem:[#allocation2 + $0x600] sm:$0xff] }
 0x58a   :  { %9460 = vmatprep.subr.bf16.mxu1 %v8549_v43  ;;  %v8570_v41 = vld [vmem:[#allocation2 + $0x1100] sm:$0xff]  ;;  %v8221_v43 = vld [vmem:[#allocation2 + $0x618] sm:$0xff] }
 0x58c   :  { %9010 = vmatpush1.bf16.msra.mxu0 %v8196_v44  ;;  %v8573_v44 = vld [vmem:[#allocation2 + $0x1118] sm:$0xff] }
 0x58d   :  { %9461 = vmatpush1.bf16.msra.mxu1 %v8548_v45  ;;  %9011 = vmatprep.subr.bf16.mxu0 %v8199_v62  ;;  %v7991_v45 = vpack.c.bf16 %v7793_v51, %v7793_v51  ;;  %v8013_v62 = vpack.c.bf16 %v7881_v36, %v7881_v36  ;;  %v8595_v51 = vld [vmem:[#allocation2 + $0x11c8] sm:$0xff]  ;;  %v8242_v36 = vld [vmem:[#allocation2 + $0x6c0] sm:$0xff] }
 0x58e   :  { %9462 = vmatprep.subr.bf16.mxu1 %v8551_v47  ;;  %v8220_v47 = vld [vmem:[#allocation2 + $0x610] sm:$0xff] }
 0x590   :  { %9012 = vmatpush1.bf16.msra.mxu0 %v8198_v52  ;;  %v8572_v52 = vld [vmem:[#allocation2 + $0x1110] sm:$0xff] }
 0x591   :  { %9463 = vmatpush1.bf16.msra.mxu1 %v8550_v54  ;;  %9013 = vmatprep.subr.bf16.mxu0 %v8201_v56  ;;  %v8223_v54 = vld [vmem:[#allocation2 + $0x628] sm:$0xff] }
 0x592   :  { %9464 = vmatprep.subr.bf16.mxu1 %v8553_v57  ;;  %v8575_v56 = vld [vmem:[#allocation2 + $0x1128] sm:$0xff]  ;;  %v8222_v57 = vld [vmem:[#allocation2 + $0x620] sm:$0xff] }
 0x594   :  { %9014 = vmatpush1.bf16.msra.mxu0 %v8200_v59  ;;  %v8574_v59 = vld [vmem:[#allocation2 + $0x1120] sm:$0xff] }
 0x595   :  { %9465 = vmatpush1.bf16.msra.mxu1 %v8552_v60  ;;  %9015 = vmatprep.subr.bf16.mxu0 %v8203_v5  ;;  %v8225_v60 = vld [vmem:[#allocation2 + $0x638] sm:$0xff] }
 0x596   :  { %9466 = vmatprep.subr.bf16.mxu1 %v8555_v61  ;;  %v8577_v5 = vld [vmem:[#allocation2 + $0x1138] sm:$0xff]  ;;  %v8224_v61 = vld [vmem:[#allocation2 + $0x630] sm:$0xff] }
 0x598   :  { %9016 = vmatpush1.bf16.msra.mxu0 %v8202_v63  ;;  %v8576_v63 = vld [vmem:[#allocation2 + $0x1130] sm:$0xff] }
 0x599   :  { %9467 = vmatpush1.bf16.msra.mxu1 %v8554_v42  ;;  %9017 = vmatprep.subr.bf16.mxu0 %v8205_v3  ;;  %v8227_v42 = vld [vmem:[#allocation2 + $0x648] sm:$0xff] }
 0x59a   :  { %9468 = vmatprep.subr.bf16.mxu1 %v8557_v4  ;;  %v8579_v3 = vld [vmem:[#allocation2 + $0x1148] sm:$0xff]  ;;  %v8226_v4 = vld [vmem:[#allocation2 + $0x640] sm:$0xff] }
 0x59c   :  { %9018 = vmatpush1.bf16.msra.mxu0 %v8204_v6  ;;  %v8578_v6 = vld [vmem:[#allocation2 + $0x1140] sm:$0xff] }
 0x59d   :  { %9469 = vmatpush1.bf16.msra.mxu1 %v8556_v7  ;;  %9019 = vmatprep.subr.bf16.mxu0 %v8207_v9  ;;  %v8229_v7 = vld [vmem:[#allocation2 + $0x658] sm:$0xff] }
 0x59e   :  { %9470 = vmatprep.subr.bf16.mxu1 %v8559_v48  ;;  %v8581_v9 = vld [vmem:[#allocation2 + $0x1158] sm:$0xff]  ;;  %v8228_v48 = vld [vmem:[#allocation2 + $0x650] sm:$0xff] }
 0x5a0   :  { %9020 = vmatpush1.bf16.msra.mxu0 %v8206_v10  ;;  %v8580_v10 = vld [vmem:[#allocation2 + $0x1150] sm:$0xff] }
 0x5a1   :  { %9471 = vmatpush1.bf16.msra.mxu1 %v8558_v11  ;;  %9021 = vmatprep.subr.bf16.mxu0 %v8209_v12  ;;  %v8231_v11 = vld [vmem:[#allocation2 + $0x668] sm:$0xff] }
 0x5a2   :  { %9472 = vmatprep.subr.bf16.mxu1 %v8561_v16  ;;  %v8583_v12 = vld [vmem:[#allocation2 + $0x1168] sm:$0xff]  ;;  %v8230_v16 = vld [vmem:[#allocation2 + $0x660] sm:$0xff] }
 0x5a4   :  { %9022 = vmatpush1.bf16.msra.mxu0 %v8208_v58  ;;  %v8582_v58 = vld [vmem:[#allocation2 + $0x1160] sm:$0xff] }
 0x5a5   :  { %9473 = vmatpush1.bf16.msra.mxu1 %v8560_v17  ;;  %9023 = vmatprep.subr.bf16.mxu0 %v8211_v18  ;;  %v8233_v17 = vld [vmem:[#allocation2 + $0x678] sm:$0xff] }
 0x5a6   :  { %9474 = vmatprep.subr.bf16.mxu1 %v8563_v19  ;;  %v8585_v18 = vld [vmem:[#allocation2 + $0x1178] sm:$0xff]  ;;  %v8232_v19 = vld [vmem:[#allocation2 + $0x670] sm:$0xff] }
 0x5a8   :  { %9024 = vmatpush1.bf16.msra.mxu0 %v8210_v20  ;;  %v8584_v20 = vld [vmem:[#allocation2 + $0x1170] sm:$0xff] }
 0x5a9   :  { %9475 = vmatpush1.bf16.msra.mxu1 %v8562_v21  ;;  %9025 = vmatprep.subr.bf16.mxu0 %v8213_v22  ;;  %v8235_v21 = vld [vmem:[#allocation2 + $0x688] sm:$0xff] }
 0x5aa   :  { %9476 = vmatprep.subr.bf16.mxu1 %v8565_v23  ;;  %v8587_v22 = vld [vmem:[#allocation2 + $0x1188] sm:$0xff]  ;;  %v8234_v23 = vld [vmem:[#allocation2 + $0x680] sm:$0xff] }
 0x5ac   :  { %9026 = vmatpush1.bf16.msra.mxu0 %v8212_v25  ;;  %v8586_v25 = vld [vmem:[#allocation2 + $0x1180] sm:$0xff] }
 0x5ad   :  { %9477 = vmatpush1.bf16.msra.mxu1 %v8564_v26  ;;  %9027 = vmatprep.subr.bf16.mxu0 %v8215_v13  ;;  %v8237_v26 = vld [vmem:[#allocation2 + $0x698] sm:$0xff] }
 0x5ae   :  { %9478 = vmatprep.subr.bf16.mxu1 %v8567_v27  ;;  %v8589_v13 = vld [vmem:[#allocation2 + $0x1198] sm:$0xff]  ;;  %v8236_v27 = vld [vmem:[#allocation2 + $0x690] sm:$0xff] }
 0x5b0   :  { %9028 = vmatpush1.bf16.msra.mxu0 %v8214_v28  ;;  %v8588_v28 = vld [vmem:[#allocation2 + $0x1190] sm:$0xff] }
 0x5b1   :  { %9479 = vmatpush1.bf16.msra.mxu1 %v8566_v29  ;;  %9029 = vmatprep.subr.bf16.mxu0 %v8217_v30  ;;  %v8239_v29 = vld [vmem:[#allocation2 + $0x6a8] sm:$0xff] }
 0x5b2   :  { %9480 = vmatprep.subr.bf16.mxu1 %v8569_v31  ;;  %v8591_v30 = vld [vmem:[#allocation2 + $0x11a8] sm:$0xff]  ;;  %v8238_v31 = vld [vmem:[#allocation2 + $0x6a0] sm:$0xff] }
 0x5b4   :  { %9030 = vmatpush1.bf16.msra.mxu0 %v8216_v34  ;;  %v8593_v34 = vld [vmem:[#allocation2 + $0x11b8] sm:$0xff] }
 0x5b5   :  { %9481 = vmatpush1.bf16.msra.mxu1 %v8568_v15  ;;  %9040 = vmatprep.subr.bf16.mxu0 %v8219_v35  ;;  %v8240_v15 = vld [vmem:[#allocation2 + $0x6b0] sm:$0xff] }
 0x5b6   :  { %9491 = vmatprep.subr.bf16.mxu1 %v8571_v55  ;;  %v8592_v35 = vld [vmem:[#allocation2 + $0x11b0] sm:$0xff]  ;;  %v8243_v55 = vld [vmem:[#allocation2 + $0x6c8] sm:$0xff] }
 0x5b7   :  { %9032 = vmatmul.mubr.bf16.vlgmr.msra.gmra.mrb[40].mxu0 %v7988_v53  ;;  %v8594_v53 = vld [vmem:[#allocation2 + $0x11c0] sm:$0xff] }
 0x5b8   :  { %9483 = vmatmul.mubr.bf16.vlgmr.msra.gmra.mrb[0].mxu1 %v8010_v37  ;;  %9041 = vmatpush1.bf16.msra.mxu0 %v8218_v38  ;;  %v8245_v37 = vld [vmem:[#allocation2 + $0x6d8] sm:$0xff] }
 0x5b9   :  { %9492 = vmatpush1.bf16.msra.mxu1 %v8570_v41  ;;  %9042 = vmatprep.subr.bf16.mxu0 %v8221_v43  ;;  %v8597_v38 = vld [vmem:[#allocation2 + $0x11d8] sm:$0xff]  ;;  %v8244_v41 = vld [vmem:[#allocation2 + $0x6d0] sm:$0xff] }
 0x5ba   :  { %9493 = vmatprep.subr.bf16.mxu1 %v8573_v44  ;;  %9072 = vmatprep.mubr.bf16.mxu0 %v7991_v45  ;;  %v8596_v43 = vld [vmem:[#allocation2 + $0x11d0] sm:$0xff]  ;;  %v8247_v44 = vld [vmem:[#allocation2 + $0x6e8] sm:$0xff] }
 0x5bb   :  { %9523 = vmatprep.mubr.bf16.mxu1 %v8013_v62  ;;  %v8599_v45 = vld [vmem:[#allocation2 + $0x11e8] sm:$0xff]  ;;  %v8246_v62 = vld [vmem:[#allocation2 + $0x6e0] sm:$0xff] }
 0x5bc   :  { %9043 = vmatpush1.bf16.msra.mxu0 %v8220_v47  ;;  %v8598_v47 = vld [vmem:[#allocation2 + $0x11e0] sm:$0xff] }
 0x5bd   :  { %9494 = vmatpush1.bf16.msra.mxu1 %v8572_v52  ;;  %9044 = vmatprep.subr.bf16.mxu0 %v8223_v54  ;;  %v8249_v52 = vld [vmem:[#allocation2 + $0x6f8] sm:$0xff] }
 0x5be   :  { %9495 = vmatprep.subr.bf16.mxu1 %v8575_v56  ;;  %v8601_v54 = vld [vmem:[#allocation2 + $0x11f8] sm:$0xff]  ;;  %v7789_v56 = vrot.slane %v12743_v50, %v12729_v24 }
 0x5c0   :  { %9045 = vmatpush1.bf16.msra.mxu0 %v8222_v57  ;;  %v7877_v57 = vrot.slane %v12752_v14, %v12715_v1 }
 0x5c1   :  { %9496 = vmatpush1.bf16.msra.mxu1 %v8574_v59  ;;  %9046 = vmatprep.subr.bf16.mxu0 %v8225_v60  ;;  %v8248_v59 = vld [vmem:[#allocation2 + $0x6f0] sm:$0xff] }
 0x5c2   :  { %9497 = vmatprep.subr.bf16.mxu1 %v8577_v5  ;;  %v8600_v60 = vld [vmem:[#allocation2 + $0x11f0] sm:$0xff]  ;;  %v8251_v5 = vld [vmem:[#allocation2 + $0x708] sm:$0xff] }
 0x5c4   :  { %9047 = vmatpush1.bf16.msra.mxu0 %v8224_v61  ;;  %v8603_v61 = vld [vmem:[#allocation2 + $0x1208] sm:$0xff] }
 0x5c5   :  { %9498 = vmatpush1.bf16.msra.mxu1 %v8576_v63  ;;  %9048 = vmatprep.subr.bf16.mxu0 %v8227_v42  ;;  %v7801_v63 = vrot.slane %v12743_v50, %v12685_v2  ;;  %v7889_v42 = vrot.slane %v12752_v14, %v12718_v8  ;;  %v8252_v50 = vld [vmem:[#allocation2 + $0x710] sm:$0xff] }
 0x5c6   :  { %9499 = vmatprep.subr.bf16.mxu1 %v8579_v3  ;;  %v7990_v3 = vpack.c.bf16 %v7789_v56, %v7789_v56  ;;  %v8273_v56 = vld [vmem:[#allocation2 + $0x7b8] sm:$0xff] }
 0x5c8   :  { %9049 = vmatpush1.bf16.msra.mxu0 %v8226_v4  ;;  %v8012_v4 = vpack.c.bf16 %v7877_v57, %v7877_v57  ;;  %v8625_v57 = vld [vmem:[#allocation2 + $0x12b8] sm:$0xff] }
 0x5c9   :  { %9500 = vmatpush1.bf16.msra.mxu1 %v8578_v6  ;;  %9050 = vmatprep.subr.bf16.mxu0 %v8229_v7  ;;  %v8250_v6 = vld [vmem:[#allocation2 + $0x700] sm:$0xff] }
 0x5ca   :  { %9501 = vmatprep.subr.bf16.mxu1 %v8581_v9  ;;  %v8602_v7 = vld [vmem:[#allocation2 + $0x1200] sm:$0xff]  ;;  %v8253_v9 = vld [vmem:[#allocation2 + $0x718] sm:$0xff] }
 0x5cc   :  { %9051 = vmatpush1.bf16.msra.mxu0 %v8228_v48  ;;  %v8605_v48 = vld [vmem:[#allocation2 + $0x1218] sm:$0xff] }
 0x5cd   :  { %9502 = vmatpush1.bf16.msra.mxu1 %v8580_v10  ;;  %9052 = vmatprep.subr.bf16.mxu0 %v8231_v11  ;;  %v7993_v10 = vpack.c.bf16 %v7801_v63, %v7801_v63  ;;  %v8015_v11 = vpack.c.bf16 %v7889_v42, %v7889_v42  ;;  %v8274_v63 = vld [vmem:[#allocation2 + $0x7c0] sm:$0xff] }
 0x5ce   :  { %9503 = vmatprep.subr.bf16.mxu1 %v8583_v12  ;;  %v8604_v12 = vld [vmem:[#allocation2 + $0x1210] sm:$0xff]  ;;  %v8626_v42 = vld [vmem:[#allocation2 + $0x12c0] sm:$0xff] }
 0x5d0   :  { %9053 = vmatpush1.bf16.msra.mxu0 %v8230_v16  ;;  %v8255_v16 = vld [vmem:[#allocation2 + $0x728] sm:$0xff] }
 0x5d1   :  { %9504 = vmatpush1.bf16.msra.mxu1 %v8582_v58  ;;  %9054 = vmatprep.subr.bf16.mxu0 %v8233_v17  ;;  %v8607_v58 = vld [vmem:[#allocation2 + $0x1228] sm:$0xff]  ;;  %v8254_v17 = vld [vmem:[#allocation2 + $0x720] sm:$0xff] }
 0x5d2   :  { %9505 = vmatprep.subr.bf16.mxu1 %v8585_v18  ;;  %v8606_v18 = vld [vmem:[#allocation2 + $0x1220] sm:$0xff] }
 0x5d4   :  { %9055 = vmatpush1.bf16.msra.mxu0 %v8232_v19  ;;  %v8257_v19 = vld [vmem:[#allocation2 + $0x738] sm:$0xff] }
 0x5d5   :  { %9506 = vmatpush1.bf16.msra.mxu1 %v8584_v20  ;;  %9056 = vmatprep.subr.bf16.mxu0 %v8235_v21  ;;  %v8609_v20 = vld [vmem:[#allocation2 + $0x1238] sm:$0xff]  ;;  %v8256_v21 = vld [vmem:[#allocation2 + $0x730] sm:$0xff] }
 0x5d6   :  { %9507 = vmatprep.subr.bf16.mxu1 %v8587_v22  ;;  %v8608_v22 = vld [vmem:[#allocation2 + $0x1230] sm:$0xff] }
 0x5d8   :  { %9057 = vmatpush1.bf16.msra.mxu0 %v8234_v23  ;;  %v8259_v23 = vld [vmem:[#allocation2 + $0x748] sm:$0xff] }
 0x5d9   :  { %9508 = vmatpush1.bf16.msra.mxu1 %v8586_v25  ;;  %9058 = vmatprep.subr.bf16.mxu0 %v8237_v26  ;;  %v8611_v25 = vld [vmem:[#allocation2 + $0x1248] sm:$0xff]  ;;  %v8258_v26 = vld [vmem:[#allocation2 + $0x740] sm:$0xff] }
 0x5da   :  { %9509 = vmatprep.subr.bf16.mxu1 %v8589_v13  ;;  %v8610_v13 = vld [vmem:[#allocation2 + $0x1240] sm:$0xff] }
 0x5dc   :  { %9059 = vmatpush1.bf16.msra.mxu0 %v8236_v27  ;;  %v8261_v27 = vld [vmem:[#allocation2 + $0x758] sm:$0xff] }
 0x5dd   :  { %9510 = vmatpush1.bf16.msra.mxu1 %v8588_v28  ;;  %9060 = vmatprep.subr.bf16.mxu0 %v8239_v29  ;;  %v8613_v28 = vld [vmem:[#allocation2 + $0x1258] sm:$0xff]  ;;  %v8260_v29 = vld [vmem:[#allocation2 + $0x750] sm:$0xff] }
 0x5de   :  { %9511 = vmatprep.subr.bf16.mxu1 %v8591_v30  ;;  %v8612_v30 = vld [vmem:[#allocation2 + $0x1250] sm:$0xff] }
 0x5e0   :  { %9061 = vmatpush1.bf16.msra.mxu0 %v8238_v31  ;;  %v8263_v31 = vld [vmem:[#allocation2 + $0x768] sm:$0xff] }
 0x5e1   :  { %9512 = vmatpush1.bf16.msra.mxu1 %v8590_v32  ;;  %9062 = vmatprep.subr.bf16.mxu0 %v8241_v33  ;;  %v8615_v32 = vld [vmem:[#allocation2 + $0x1268] sm:$0xff]  ;;  %v8262_v33 = vld [vmem:[#allocation2 + $0x760] sm:$0xff] }
 0x5e2   :  { %9513 = vmatprep.subr.bf16.mxu1 %v8593_v34  ;;  %v8614_v34 = vld [vmem:[#allocation2 + $0x1260] sm:$0xff] }
 0x5e4   :  { %9063 = vmatpush1.bf16.msra.mxu0 %v8240_v15  ;;  %v8265_v15 = vld [vmem:[#allocation2 + $0x778] sm:$0xff] }
 0x5e5   :  { %9514 = vmatpush1.bf16.msra.mxu1 %v8592_v35  ;;  %9064 = vmatprep.subr.bf16.mxu0 %v8243_v55  ;;  %v8617_v35 = vld [vmem:[#allocation2 + $0x1278] sm:$0xff]  ;;  %v8264_v55 = vld [vmem:[#allocation2 + $0x770] sm:$0xff] }
 0x5e6   :  { %9515 = vmatprep.subr.bf16.mxu1 %v8595_v51  ;;  %v8616_v51 = vld [vmem:[#allocation2 + $0x1270] sm:$0xff] }
 0x5e8   :  { %9065 = vmatpush1.bf16.msra.mxu0 %v8242_v36  ;;  %v8267_v36 = vld [vmem:[#allocation2 + $0x788] sm:$0xff] }
 0x5e9   :  { %9516 = vmatpush1.bf16.msra.mxu1 %v8594_v53  ;;  %9066 = vmatprep.subr.bf16.mxu0 %v8245_v37  ;;  %v8619_v53 = vld [vmem:[#allocation2 + $0x1288] sm:$0xff]  ;;  %v8266_v37 = vld [vmem:[#allocation2 + $0x780] sm:$0xff] }
 0x5ea   :  { %9517 = vmatprep.subr.bf16.mxu1 %v8597_v38  ;;  %v8618_v38 = vld [vmem:[#allocation2 + $0x1280] sm:$0xff] }
 0x5ec   :  { %9067 = vmatpush1.bf16.msra.mxu0 %v8244_v41  ;;  %v8269_v41 = vld [vmem:[#allocation2 + $0x798] sm:$0xff] }
 0x5ed   :  { %9518 = vmatpush1.bf16.msra.mxu1 %v8596_v43  ;;  %9068 = vmatprep.subr.bf16.mxu0 %v8247_v44  ;;  %v8621_v43 = vld [vmem:[#allocation2 + $0x1298] sm:$0xff]  ;;  %v8268_v44 = vld [vmem:[#allocation2 + $0x790] sm:$0xff] }
 0x5ee   :  { %9519 = vmatprep.subr.bf16.mxu1 %v8599_v45  ;;  %v8620_v45 = vld [vmem:[#allocation2 + $0x1290] sm:$0xff] }
 0x5f0   :  { %9069 = vmatpush1.bf16.msra.mxu0 %v8246_v62  ;;  %v8271_v62 = vld [vmem:[#allocation2 + $0x7a8] sm:$0xff] }
 0x5f1   :  { %9520 = vmatpush1.bf16.msra.mxu1 %v8598_v47  ;;  %9070 = vmatprep.subr.bf16.mxu0 %v8249_v52  ;;  %v8623_v47 = vld [vmem:[#allocation2 + $0x12a8] sm:$0xff]  ;;  %v8270_v52 = vld [vmem:[#allocation2 + $0x7a0] sm:$0xff] }
 0x5f2   :  { %9521 = vmatprep.subr.bf16.mxu1 %v8601_v54  ;;  %v8622_v54 = vld [vmem:[#allocation2 + $0x12a0] sm:$0xff] }
 0x5f4   :  { %9071 = vmatpush1.bf16.msra.mxu0 %v8248_v59  ;;  %v8272_v59 = vld [vmem:[#allocation2 + $0x7b0] sm:$0xff] }
 0x5f5   :  { %9522 = vmatpush1.bf16.msra.mxu1 %v8600_v60  ;;  %9081 = vmatprep.subr.bf16.mxu0 %v8251_v5  ;;  %v8624_v60 = vld [vmem:[#allocation2 + $0x12b0] sm:$0xff]  ;;  %v8275_v5 = vld [vmem:[#allocation2 + $0x7c8] sm:$0xff] }
 0x5f6   :  { %9532 = vmatprep.subr.bf16.mxu1 %v8603_v61  ;;  %v8627_v61 = vld [vmem:[#allocation2 + $0x12c8] sm:$0xff] }
 0x5f7   :  { %9073 = vmatmul.mubr.bf16.vlgmr.msra.gmra.mrb[40].mxu0 %v7990_v3  ;;  %v8277_v3 = vld [vmem:[#allocation2 + $0x7d8] sm:$0xff] }
 0x5f8   :  { %9524 = vmatmul.mubr.bf16.vlgmr.msra.gmra.mrb[0].mxu1 %v8012_v4  ;;  %9082 = vmatpush1.bf16.msra.mxu0 %v8250_v6  ;;  %v8629_v4 = vld [vmem:[#allocation2 + $0x12d8] sm:$0xff]  ;;  %v8276_v6 = vld [vmem:[#allocation2 + $0x7d0] sm:$0xff] }
 0x5f9   :  { %9533 = vmatpush1.bf16.msra.mxu1 %v8602_v7  ;;  %9083 = vmatprep.subr.bf16.mxu0 %v8253_v9  ;;  %v8628_v7 = vld [vmem:[#allocation2 + $0x12d0] sm:$0xff]  ;;  %v8279_v9 = vld [vmem:[#allocation2 + $0x7e8] sm:$0xff] }
 0x5fa   :  { %9534 = vmatprep.subr.bf16.mxu1 %v8605_v48  ;;  %9113 = vmatprep.mubr.bf16.mxu0 %v7993_v10  ;;  %v8631_v48 = vld [vmem:[#allocation2 + $0x12e8] sm:$0xff]  ;;  %v8278_v10 = vld [vmem:[#allocation2 + $0x7e0] sm:$0xff] }
 0x5fb   :  { %9564 = vmatprep.mubr.bf16.mxu1 %v8015_v11  ;;  %v8630_v11 = vld [vmem:[#allocation2 + $0x12e0] sm:$0xff] }
 0x5fc   :  { %9084 = vmatpush1.bf16.msra.mxu0 %v8252_v50  ;;  %v8281_v50 = vld [vmem:[#allocation2 + $0x7f8] sm:$0xff] }
 0x5fd   :  { %9535 = vmatpush1.bf16.msra.mxu1 %v8604_v12  ;;  %9085 = vmatprep.subr.bf16.mxu0 %v8255_v16  ;;  %v8633_v12 = vld [vmem:[#allocation2 + $0x12f8] sm:$0xff]  ;;  %v10443_v16 = vld [vmem:[#allocation3 + $0x8] sm:$0xff] }
 0x5fe   :  { %9536 = vmatprep.subr.bf16.mxu1 %v8607_v58  ;;  %v7797_v58 = vrot.slane %v10443_v16, %v12699_v40  ;;  %v8654_v16 = vld [vmem:[#allocation2 + $0x13a0] sm:$0xff] }
 0x600   :  { %9086 = vmatpush1.bf16.msra.mxu0 %v8254_v17  ;;  %v7885_v17 = vrot.slane %v12752_v14, %v12729_v24 }
 0x601   :  { %9537 = vmatpush1.bf16.msra.mxu1 %v8606_v18  ;;  %9087 = vmatprep.subr.bf16.mxu0 %v8257_v19  ;;  %v8280_v18 = vld [vmem:[#allocation2 + $0x7f0] sm:$0xff] }
 0x602   :  { %9538 = vmatprep.subr.bf16.mxu1 %v8609_v20  ;;  %v8632_v19 = vld [vmem:[#allocation2 + $0x12f0] sm:$0xff]  ;;  %v8283_v20 = vld [vmem:[#allocation2 + $0x808] sm:$0xff] }
 0x604   :  { %9088 = vmatpush1.bf16.msra.mxu0 %v8256_v21  ;;  %v8635_v21 = vld [vmem:[#allocation2 + $0x1308] sm:$0xff] }
 0x605   :  { %9539 = vmatpush1.bf16.msra.mxu1 %v8608_v22  ;;  %9089 = vmatprep.subr.bf16.mxu0 %v8259_v23  ;;  %v12777_v22 = vld [vmem:[#allocation3 + $0x10] sm:$0xff] }
 0x606   :  { %9540 = vmatprep.subr.bf16.mxu1 %v8611_v25  ;;  %v7809_v23 = vrot.slane %v12777_v22, %v12682_v0  ;;  %v7897_v25 = vrot.slane %v12752_v14, %v12685_v2  ;;  %v8636_v14 = vld [vmem:[#allocation2 + $0x1310] sm:$0xff] }
 0x608   :  { %9090 = vmatpush1.bf16.msra.mxu0 %v8258_v26  ;;  %v7992_v26 = vpack.c.bf16 %v7797_v58, %v7797_v58  ;;  %v8305_v58 = vld [vmem:[#allocation2 + $0x8b8] sm:$0xff] }
 0x609   :  { %9541 = vmatpush1.bf16.msra.mxu1 %v8610_v13  ;;  %9091 = vmatprep.subr.bf16.mxu0 %v8261_v27  ;;  %v8014_v13 = vpack.c.bf16 %v7885_v17, %v7885_v17  ;;  %v8282_v27 = vld [vmem:[#allocation2 + $0x800] sm:$0xff]  ;;  %v8657_v17 = vld [vmem:[#allocation2 + $0x13b8] sm:$0xff] }
 0x60a   :  { %9542 = vmatprep.subr.bf16.mxu1 %v8613_v28  ;;  %v8634_v28 = vld [vmem:[#allocation2 + $0x1300] sm:$0xff] }
 0x60c   :  { %9092 = vmatpush1.bf16.msra.mxu0 %v8260_v29  ;;  %v8285_v29 = vld [vmem:[#allocation2 + $0x818] sm:$0xff] }
 0x60d   :  { %9543 = vmatpush1.bf16.msra.mxu1 %v8612_v30  ;;  %9093 = vmatprep.subr.bf16.mxu0 %v8263_v31  ;;  %v8637_v30 = vld [vmem:[#allocation2 + $0x1318] sm:$0xff]  ;;  %v7995_v31 = vpack.c.bf16 %v7809_v23, %v7809_v23  ;;  %v8306_v23 = vld [vmem:[#allocation2 + $0x8c0] sm:$0xff] }
 0x60e   :  { %9544 = vmatprep.subr.bf16.mxu1 %v8615_v32  ;;  %v8017_v32 = vpack.c.bf16 %v7897_v25, %v7897_v25  ;;  %v8658_v25 = vld [vmem:[#allocation2 + $0x13c0] sm:$0xff] }
 0x610   :  { %9094 = vmatpush1.bf16.msra.mxu0 %v8262_v33  ;;  %v8284_v33 = vld [vmem:[#allocation2 + $0x810] sm:$0xff] }
 0x611   :  { %9545 = vmatpush1.bf16.msra.mxu1 %v8614_v34  ;;  %9095 = vmatprep.subr.bf16.mxu0 %v8265_v15  ;;  %v8287_v34 = vld [vmem:[#allocation2 + $0x828] sm:$0xff] }
 0x612   :  { %9546 = vmatprep.subr.bf16.mxu1 %v8617_v35  ;;  %v8639_v15 = vld [vmem:[#allocation2 + $0x1328] sm:$0xff]  ;;  %v8286_v35 = vld [vmem:[#allocation2 + $0x820] sm:$0xff] }
 0x614   :  { %9096 = vmatpush1.bf16.msra.mxu0 %v8264_v55  ;;  %v8638_v55 = vld [vmem:[#allocation2 + $0x1320] sm:$0xff] }
 0x615   :  { %9547 = vmatpush1.bf16.msra.mxu1 %v8616_v51  ;;  %9097 = vmatprep.subr.bf16.mxu0 %v8267_v36  ;;  %v8289_v51 = vld [vmem:[#allocation2 + $0x838] sm:$0xff] }
 0x616   :  { %9548 = vmatprep.subr.bf16.mxu1 %v8619_v53  ;;  %v8641_v36 = vld [vmem:[#allocation2 + $0x1338] sm:$0xff]  ;;  %v8288_v53 = vld [vmem:[#allocation2 + $0x830] sm:$0xff] }
 0x618   :  { %9098 = vmatpush1.bf16.msra.mxu0 %v8266_v37  ;;  %v8640_v37 = vld [vmem:[#allocation2 + $0x1330] sm:$0xff] }
 0x619   :  { %9549 = vmatpush1.bf16.msra.mxu1 %v8618_v38  ;;  %9099 = vmatprep.subr.bf16.mxu0 %v8269_v41  ;;  %v8291_v38 = vld [vmem:[#allocation2 + $0x848] sm:$0xff] }
 0x61a   :  { %9550 = vmatprep.subr.bf16.mxu1 %v8621_v43  ;;  %v8643_v41 = vld [vmem:[#allocation2 + $0x1348] sm:$0xff]  ;;  %v8290_v43 = vld [vmem:[#allocation2 + $0x840] sm:$0xff] }
 0x61c   :  { %9100 = vmatpush1.bf16.msra.mxu0 %v8268_v44  ;;  %v8642_v44 = vld [vmem:[#allocation2 + $0x1340] sm:$0xff] }
 0x61d   :  { %9551 = vmatpush1.bf16.msra.mxu1 %v8620_v45  ;;  %9101 = vmatprep.subr.bf16.mxu0 %v8271_v62  ;;  %v8293_v45 = vld [vmem:[#allocation2 + $0x858] sm:$0xff] }
 0x61e   :  { %9552 = vmatprep.subr.bf16.mxu1 %v8623_v47  ;;  %v8645_v62 = vld [vmem:[#allocation2 + $0x1358] sm:$0xff]  ;;  %v8292_v47 = vld [vmem:[#allocation2 + $0x850] sm:$0xff] }
 0x620   :  { %9102 = vmatpush1.bf16.msra.mxu0 %v8270_v52  ;;  %v8644_v52 = vld [vmem:[#allocation2 + $0x1350] sm:$0xff] }
 0x621   :  { %9553 = vmatpush1.bf16.msra.mxu1 %v8622_v54  ;;  %9103 = vmatprep.subr.bf16.mxu0 %v8273_v56  ;;  %v8295_v54 = vld [vmem:[#allocation2 + $0x868] sm:$0xff] }
 0x622   :  { %9554 = vmatprep.subr.bf16.mxu1 %v8625_v57  ;;  %v8647_v56 = vld [vmem:[#allocation2 + $0x1368] sm:$0xff]  ;;  %v8294_v57 = vld [vmem:[#allocation2 + $0x860] sm:$0xff] }
 0x624   :  { %9104 = vmatpush1.bf16.msra.mxu0 %v8272_v59  ;;  %v8646_v59 = vld [vmem:[#allocation2 + $0x1360] sm:$0xff] }
 0x625   :  { %9555 = vmatpush1.bf16.msra.mxu1 %v8624_v60  ;;  %9105 = vmatprep.subr.bf16.mxu0 %v8275_v5  ;;  %v8297_v60 = vld [vmem:[#allocation2 + $0x878] sm:$0xff] }
 0x626   :  { %9556 = vmatprep.subr.bf16.mxu1 %v8627_v61  ;;  %v8649_v5 = vld [vmem:[#allocation2 + $0x1378] sm:$0xff]  ;;  %v8296_v61 = vld [vmem:[#allocation2 + $0x870] sm:$0xff] }
 0x628   :  { %9106 = vmatpush1.bf16.msra.mxu0 %v8274_v63  ;;  %v8648_v63 = vld [vmem:[#allocation2 + $0x1370] sm:$0xff] }
 0x629   :  { %9557 = vmatpush1.bf16.msra.mxu1 %v8626_v42  ;;  %9107 = vmatprep.subr.bf16.mxu0 %v8277_v3  ;;  %v8299_v42 = vld [vmem:[#allocation2 + $0x888] sm:$0xff] }
 0x62a   :  { %9558 = vmatprep.subr.bf16.mxu1 %v8629_v4  ;;  %v8651_v3 = vld [vmem:[#allocation2 + $0x1388] sm:$0xff]  ;;  %v8298_v4 = vld [vmem:[#allocation2 + $0x880] sm:$0xff] }
 0x62c   :  { %9108 = vmatpush1.bf16.msra.mxu0 %v8276_v6  ;;  %v8650_v6 = vld [vmem:[#allocation2 + $0x1380] sm:$0xff] }
 0x62d   :  { %9559 = vmatpush1.bf16.msra.mxu1 %v8628_v7  ;;  %9109 = vmatprep.subr.bf16.mxu0 %v8279_v9  ;;  %v8301_v7 = vld [vmem:[#allocation2 + $0x898] sm:$0xff] }
 0x62e   :  { %9560 = vmatprep.subr.bf16.mxu1 %v8631_v48  ;;  %v8653_v9 = vld [vmem:[#allocation2 + $0x1398] sm:$0xff]  ;;  %v8300_v48 = vld [vmem:[#allocation2 + $0x890] sm:$0xff] }
 0x630   :  { %9110 = vmatpush1.bf16.msra.mxu0 %v8278_v10  ;;  %v8652_v10 = vld [vmem:[#allocation2 + $0x1390] sm:$0xff] }
 0x631   :  { %9561 = vmatpush1.bf16.msra.mxu1 %v8630_v11  ;;  %9111 = vmatprep.subr.bf16.mxu0 %v8281_v50  ;;  %v8303_v11 = vld [vmem:[#allocation2 + $0x8a8] sm:$0xff] }
 0x632   :  { %9562 = vmatprep.subr.bf16.mxu1 %v8633_v12  ;;  %v8655_v50 = vld [vmem:[#allocation2 + $0x13a8] sm:$0xff]  ;;  %v8302_v12 = vld [vmem:[#allocation2 + $0x8a0] sm:$0xff] }
 0x634   :  { %9112 = vmatpush1.bf16.msra.mxu0 %v8280_v18  ;;  %v8304_v18 = vld [vmem:[#allocation2 + $0x8b0] sm:$0xff] }
 0x635   :  { %9563 = vmatpush1.bf16.msra.mxu1 %v8632_v19  ;;  %9122 = vmatprep.subr.bf16.mxu0 %v8283_v20  ;;  %v8656_v19 = vld [vmem:[#allocation2 + $0x13b0] sm:$0xff]  ;;  %v8307_v20 = vld [vmem:[#allocation2 + $0x8c8] sm:$0xff] }
 0x636   :  { %9573 = vmatprep.subr.bf16.mxu1 %v8635_v21  ;;  %v8659_v21 = vld [vmem:[#allocation2 + $0x13c8] sm:$0xff] }
 0x637   :  { %9114 = vmatmul.mubr.bf16.vlgmr.msra.gmra.mrb[40].mxu0 %v7992_v26  ;;  %v8309_v26 = vld [vmem:[#allocation2 + $0x8d8] sm:$0xff] }
 0x638   :  { %9565 = vmatmul.mubr.bf16.vlgmr.msra.gmra.mrb[0].mxu1 %v8014_v13  ;;  %9123 = vmatpush1.bf16.msra.mxu0 %v8282_v27  ;;  %v8661_v13 = vld [vmem:[#allocation2 + $0x13d8] sm:$0xff]  ;;  %v8308_v27 = vld [vmem:[#allocation2 + $0x8d0] sm:$0xff] }
 0x639   :  { %9574 = vmatpush1.bf16.msra.mxu1 %v8634_v28  ;;  %9124 = vmatprep.subr.bf16.mxu0 %v8285_v29  ;;  %v8660_v28 = vld [vmem:[#allocation2 + $0x13d0] sm:$0xff]  ;;  %v8311_v29 = vld [vmem:[#allocation2 + $0x8e8] sm:$0xff] }
 0x63a   :  { %9575 = vmatprep.subr.bf16.mxu1 %v8637_v30  ;;  %9154 = vmatprep.mubr.bf16.mxu0 %v7995_v31  ;;  %v8663_v30 = vld [vmem:[#allocation2 + $0x13e8] sm:$0xff]  ;;  %v8310_v31 = vld [vmem:[#allocation2 + $0x8e0] sm:$0xff] }
 0x63b   :  { %9605 = vmatprep.mubr.bf16.mxu1 %v8017_v32  ;;  %v8662_v32 = vld [vmem:[#allocation2 + $0x13e0] sm:$0xff] }
 0x63c   :  { %9125 = vmatpush1.bf16.msra.mxu0 %v8284_v33  ;;  %v8313_v33 = vld [vmem:[#allocation2 + $0x8f8] sm:$0xff] }
 0x63d   :  { %9576 = vmatpush1.bf16.msra.mxu1 %v8636_v14  ;;  %9126 = vmatprep.subr.bf16.mxu0 %v8287_v34  ;;  %v8665_v14 = vld [vmem:[#allocation2 + $0x13f8] sm:$0xff]  ;;  %v7805_v34 = vrot.slane %v12777_v22, %v12696_v39 }
 0x63e   :  { %9577 = vmatprep.subr.bf16.mxu1 %v8639_v15  ;;  %v10445_v15 = vld [vmem:[#allocation3 + $0x20] sm:$0xff] }
 0x640   :  { %9127 = vmatpush1.bf16.msra.mxu0 %v8286_v35  ;;  %v7893_v35 = vrot.slane %v10445_v15, %v12699_v40  ;;  %v8337_v15 = vld [vmem:[#allocation2 + $0x9b8] sm:$0xff] }
 0x641   :  { %9578 = vmatpush1.bf16.msra.mxu1 %v8638_v55  ;;  %9128 = vmatprep.subr.bf16.mxu0 %v8289_v51  ;;  %v12786_v55 = vld [vmem:[#allocation3 + $0x28] sm:$0xff]  ;;  %v8312_v51 = vld [vmem:[#allocation2 + $0x8f0] sm:$0xff] }
 0x642   :  { %9579 = vmatprep.subr.bf16.mxu1 %v8641_v36  ;;  %v8664_v36 = vld [vmem:[#allocation2 + $0x13f0] sm:$0xff] }
 0x644   :  { %9129 = vmatpush1.bf16.msra.mxu0 %v8288_v53  ;;  %v8315_v53 = vld [vmem:[#allocation2 + $0x908] sm:$0xff] }
 0x645   :  { %9580 = vmatpush1.bf16.msra.mxu1 %v8640_v37  ;;  %9130 = vmatprep.subr.bf16.mxu0 %v8291_v38  ;;  %v8667_v37 = vld [vmem:[#allocation2 + $0x1408] sm:$0xff]  ;;  %v7817_v38 = vrot.slane %v12777_v22, %v12702_v46 }
 0x646   :  { %9581 = vmatprep.subr.bf16.mxu1 %v8643_v41  ;;  %v7905_v41 = vrot.slane %v12786_v55, %v12682_v0  ;;  %v8668_v0 = vld [vmem:[#allocation2 + $0x1410] sm:$0xff] }
 0x648   :  { %9131 = vmatpush1.bf16.msra.mxu0 %v8290_v43  ;;  %v7994_v43 = vpack.c.bf16 %v7805_v34, %v7805_v34  ;;  %v8686_v34 = vld [vmem:[#allocation2 + $0x14a0] sm:$0xff] }
 0x649   :  { %9582 = vmatpush1.bf16.msra.mxu1 %v8642_v44  ;;  %9132 = vmatprep.subr.bf16.mxu0 %v8293_v45  ;;  %v8016_v44 = vpack.c.bf16 %v7893_v35, %v7893_v35  ;;  %v8314_v45 = vld [vmem:[#allocation2 + $0x900] sm:$0xff]  ;;  %v8689_v35 = vld [vmem:[#allocation2 + $0x14b8] sm:$0xff] }
 0x64a   :  { %9583 = vmatprep.subr.bf16.mxu1 %v8645_v62  ;;  %v8666_v62 = vld [vmem:[#allocation2 + $0x1400] sm:$0xff] }
 0x64c   :  { %9133 = vmatpush1.bf16.msra.mxu0 %v8292_v47  ;;  %v8317_v47 = vld [vmem:[#allocation2 + $0x918] sm:$0xff] }
 0x64d   :  { %9584 = vmatpush1.bf16.msra.mxu1 %v8644_v52  ;;  %9134 = vmatprep.subr.bf16.mxu0 %v8295_v54  ;;  %v8669_v52 = vld [vmem:[#allocation2 + $0x1418] sm:$0xff]  ;;  %v7997_v54 = vpack.c.bf16 %v7817_v38, %v7817_v38  ;;  %v8338_v38 = vld [vmem:[#allocation2 + $0x9c0] sm:$0xff] }
 0x64e   :  { %9585 = vmatprep.subr.bf16.mxu1 %v8647_v56  ;;  %v8019_v56 = vpack.c.bf16 %v7905_v41, %v7905_v41  ;;  %v8690_v41 = vld [vmem:[#allocation2 + $0x14c0] sm:$0xff] }
 0x650   :  { %9135 = vmatpush1.bf16.msra.mxu0 %v8294_v57  ;;  %v8316_v57 = vld [vmem:[#allocation2 + $0x910] sm:$0xff] }
 0x651   :  { %9586 = vmatpush1.bf16.msra.mxu1 %v8646_v59  ;;  %9136 = vmatprep.subr.bf16.mxu0 %v8297_v60  ;;  %v8319_v59 = vld [vmem:[#allocation2 + $0x928] sm:$0xff] }
 0x652   :  { %9587 = vmatprep.subr.bf16.mxu1 %v8649_v5  ;;  %v8671_v60 = vld [vmem:[#allocation2 + $0x1428] sm:$0xff]  ;;  %v8318_v5 = vld [vmem:[#allocation2 + $0x920] sm:$0xff] }
 0x654   :  { %9137 = vmatpush1.bf16.msra.mxu0 %v8296_v61  ;;  %v8670_v61 = vld [vmem:[#allocation2 + $0x1420] sm:$0xff] }
 0x655   :  { %9588 = vmatpush1.bf16.msra.mxu1 %v8648_v63  ;;  %9138 = vmatprep.subr.bf16.mxu0 %v8299_v42  ;;  %v8321_v63 = vld [vmem:[#allocation2 + $0x938] sm:$0xff] }
 0x656   :  { %9589 = vmatprep.subr.bf16.mxu1 %v8651_v3  ;;  %v8673_v42 = vld [vmem:[#allocation2 + $0x1438] sm:$0xff]  ;;  %v8320_v3 = vld [vmem:[#allocation2 + $0x930] sm:$0xff] }
 0x658   :  { %9139 = vmatpush1.bf16.msra.mxu0 %v8298_v4  ;;  %v8672_v4 = vld [vmem:[#allocation2 + $0x1430] sm:$0xff] }
 0x659   :  { %9590 = vmatpush1.bf16.msra.mxu1 %v8650_v6  ;;  %9140 = vmatprep.subr.bf16.mxu0 %v8301_v7  ;;  %v8323_v6 = vld [vmem:[#allocation2 + $0x948] sm:$0xff] }
 0x65a   :  { %9591 = vmatprep.subr.bf16.mxu1 %v8653_v9  ;;  %v8675_v7 = vld [vmem:[#allocation2 + $0x1448] sm:$0xff]  ;;  %v8322_v9 = vld [vmem:[#allocation2 + $0x940] sm:$0xff] }
 0x65c   :  { %9141 = vmatpush1.bf16.msra.mxu0 %v8300_v48  ;;  %v8674_v48 = vld [vmem:[#allocation2 + $0x1440] sm:$0xff] }
 0x65d   :  { %9592 = vmatpush1.bf16.msra.mxu1 %v8652_v10  ;;  %9142 = vmatprep.subr.bf16.mxu0 %v8303_v11  ;;  %v8325_v10 = vld [vmem:[#allocation2 + $0x958] sm:$0xff] }
 0x65e   :  { %9593 = vmatprep.subr.bf16.mxu1 %v8655_v50  ;;  %v8677_v11 = vld [vmem:[#allocation2 + $0x1458] sm:$0xff]  ;;  %v8324_v50 = vld [vmem:[#allocation2 + $0x950] sm:$0xff] }
 0x660   :  { %9143 = vmatpush1.bf16.msra.mxu0 %v8302_v12  ;;  %v8676_v12 = vld [vmem:[#allocation2 + $0x1450] sm:$0xff] }
 0x661   :  { %9594 = vmatpush1.bf16.msra.mxu1 %v8654_v16  ;;  %9144 = vmatprep.subr.bf16.mxu0 %v8305_v58  ;;  %v8327_v16 = vld [vmem:[#allocation2 + $0x968] sm:$0xff] }
 0x662   :  { %9595 = vmatprep.subr.bf16.mxu1 %v8657_v17  ;;  %v8679_v58 = vld [vmem:[#allocation2 + $0x1468] sm:$0xff]  ;;  %v8326_v17 = vld [vmem:[#allocation2 + $0x960] sm:$0xff] }
 0x664   :  { %9145 = vmatpush1.bf16.msra.mxu0 %v8304_v18  ;;  %v8678_v18 = vld [vmem:[#allocation2 + $0x1460] sm:$0xff] }
 0x665   :  { %9596 = vmatpush1.bf16.msra.mxu1 %v8656_v19  ;;  %9146 = vmatprep.subr.bf16.mxu0 %v8307_v20  ;;  %v8329_v19 = vld [vmem:[#allocation2 + $0x978] sm:$0xff] }
 0x666   :  { %9597 = vmatprep.subr.bf16.mxu1 %v8659_v21  ;;  %v8681_v20 = vld [vmem:[#allocation2 + $0x1478] sm:$0xff]  ;;  %v8328_v21 = vld [vmem:[#allocation2 + $0x970] sm:$0xff] }
 0x668   :  { %9147 = vmatpush1.bf16.msra.mxu0 %v8306_v23  ;;  %v8680_v23 = vld [vmem:[#allocation2 + $0x1470] sm:$0xff] }
 0x669   :  { %9598 = vmatpush1.bf16.msra.mxu1 %v8658_v25  ;;  %9148 = vmatprep.subr.bf16.mxu0 %v8309_v26  ;;  %v8331_v25 = vld [vmem:[#allocation2 + $0x988] sm:$0xff] }
 0x66a   :  { %9599 = vmatprep.subr.bf16.mxu1 %v8661_v13  ;;  %v8683_v26 = vld [vmem:[#allocation2 + $0x1488] sm:$0xff]  ;;  %v8330_v13 = vld [vmem:[#allocation2 + $0x980] sm:$0xff] }
 0x66c   :  { %9149 = vmatpush1.bf16.msra.mxu0 %v8308_v27  ;;  %v8682_v27 = vld [vmem:[#allocation2 + $0x1480] sm:$0xff] }
 0x66d   :  { %9600 = vmatpush1.bf16.msra.mxu1 %v8660_v28  ;;  %9150 = vmatprep.subr.bf16.mxu0 %v8311_v29  ;;  %v8333_v28 = vld [vmem:[#allocation2 + $0x998] sm:$0xff] }
 0x66e   :  { %9601 = vmatprep.subr.bf16.mxu1 %v8663_v30  ;;  %v8685_v29 = vld [vmem:[#allocation2 + $0x1498] sm:$0xff]  ;;  %v8332_v30 = vld [vmem:[#allocation2 + $0x990] sm:$0xff] }
 0x670   :  { %9151 = vmatpush1.bf16.msra.mxu0 %v8310_v31  ;;  %v8684_v31 = vld [vmem:[#allocation2 + $0x1490] sm:$0xff] }
 0x671   :  { %9602 = vmatpush1.bf16.msra.mxu1 %v8662_v32  ;;  %9152 = vmatprep.subr.bf16.mxu0 %v8313_v33  ;;  %v8335_v32 = vld [vmem:[#allocation2 + $0x9a8] sm:$0xff] }
 0x672   :  { %9603 = vmatprep.subr.bf16.mxu1 %v8665_v14  ;;  %v8687_v33 = vld [vmem:[#allocation2 + $0x14a8] sm:$0xff]  ;;  %v8334_v14 = vld [vmem:[#allocation2 + $0x9a0] sm:$0xff] }
 0x674   :  { %9153 = vmatpush1.bf16.msra.mxu0 %v8312_v51  ;;  %v8336_v51 = vld [vmem:[#allocation2 + $0x9b0] sm:$0xff] }
 0x675   :  { %9604 = vmatpush1.bf16.msra.mxu1 %v8664_v36  ;;  %9163 = vmatprep.subr.bf16.mxu0 %v8315_v53  ;;  %v8688_v36 = vld [vmem:[#allocation2 + $0x14b0] sm:$0xff]  ;;  %v8339_v53 = vld [vmem:[#allocation2 + $0x9c8] sm:$0xff] }
 0x676   :  { %9614 = vmatprep.subr.bf16.mxu1 %v8667_v37  ;;  %v8691_v37 = vld [vmem:[#allocation2 + $0x14c8] sm:$0xff] }
 0x677   :  { %9155 = vmatmul.mubr.bf16.vlgmr.msra.gmra.mrb[40].mxu0 %v7994_v43  ;;  %v8341_v43 = vld [vmem:[#allocation2 + $0x9d8] sm:$0xff] }
 0x678   :  { %9606 = vmatmul.mubr.bf16.vlgmr.msra.gmra.mrb[0].mxu1 %v8016_v44  ;;  %9164 = vmatpush1.bf16.msra.mxu0 %v8314_v45  ;;  %v8693_v44 = vld [vmem:[#allocation2 + $0x14d8] sm:$0xff]  ;;  %v8340_v45 = vld [vmem:[#allocation2 + $0x9d0] sm:$0xff] }
 0x679   :  { %9615 = vmatpush1.bf16.msra.mxu1 %v8666_v62  ;;  %9165 = vmatprep.subr.bf16.mxu0 %v8317_v47  ;;  %v8692_v62 = vld [vmem:[#allocation2 + $0x14d0] sm:$0xff]  ;;  %v8343_v47 = vld [vmem:[#allocation2 + $0x9e8] sm:$0xff] }
 0x67a   :  { %9616 = vmatprep.subr.bf16.mxu1 %v8669_v52  ;;  %9195 = vmatprep.mubr.bf16.mxu0 %v7997_v54  ;;  %v8695_v52 = vld [vmem:[#allocation2 + $0x14e8] sm:$0xff]  ;;  %v8342_v54 = vld [vmem:[#allocation2 + $0x9e0] sm:$0xff] }
 0x67b   :  { %9646 = vmatprep.mubr.bf16.mxu1 %v8019_v56  ;;  %v8694_v56 = vld [vmem:[#allocation2 + $0x14e0] sm:$0xff] }
 0x67c   :  { %9166 = vmatpush1.bf16.msra.mxu0 %v8316_v57  ;;  %v8345_v57 = vld [vmem:[#allocation2 + $0x9f8] sm:$0xff] }
 0x67d   :  { %9617 = vmatpush1.bf16.msra.mxu1 %v8668_v0  ;;  %9167 = vmatprep.subr.bf16.mxu0 %v8319_v59  ;;  %v8697_v0 = vld [vmem:[#allocation2 + $0x14f8] sm:$0xff]  ;;  %v7813_v59 = vrot.slane %v12777_v22, %v12715_v1 }
 0x67e   :  { %9618 = vmatprep.subr.bf16.mxu1 %v8671_v60  ;;  %v7901_v60 = vrot.slane %v12786_v55, %v12696_v39 }
 0x680   :  { %9168 = vmatpush1.bf16.msra.mxu0 %v8318_v5  ;;  %v8344_v5 = vld [vmem:[#allocation2 + $0x9f0] sm:$0xff] }
 0x681   :  { %9619 = vmatpush1.bf16.msra.mxu1 %v8670_v61  ;;  %9169 = vmatprep.subr.bf16.mxu0 %v8321_v63  ;;  %v8696_v61 = vld [vmem:[#allocation2 + $0x14f0] sm:$0xff]  ;;  %v8347_v63 = vld [vmem:[#allocation2 + $0xa08] sm:$0xff] }
 0x682   :  { %9620 = vmatprep.subr.bf16.mxu1 %v8673_v42  ;;  %v8699_v42 = vld [vmem:[#allocation2 + $0x1508] sm:$0xff] }
 0x684   :  { %9170 = vmatpush1.bf16.msra.mxu0 %v8320_v3  ;;  %v7825_v3 = vrot.slane %v12777_v22, %v12718_v8 }
 0x685   :  { %9621 = vmatpush1.bf16.msra.mxu1 %v8672_v4  ;;  %9171 = vmatprep.subr.bf16.mxu0 %v8323_v6  ;;  %v7913_v4 = vrot.slane %v12786_v55, %v12702_v46  ;;  %v7996_v6 = vpack.c.bf16 %v7813_v59, %v7813_v59  ;;  %v8700_v46 = vld [vmem:[#allocation2 + $0x1510] sm:$0xff]  ;;  %v8721_v59 = vld [vmem:[#allocation2 + $0x15b8] sm:$0xff] }
 0x686   :  { %9622 = vmatprep.subr.bf16.mxu1 %v8675_v7  ;;  %v8018_v7 = vpack.c.bf16 %v7901_v60, %v7901_v60  ;;  %v8368_v60 = vld [vmem:[#allocation2 + $0xab0] sm:$0xff] }
 0x688   :  { %9172 = vmatpush1.bf16.msra.mxu0 %v8322_v9  ;;  %v8346_v9 = vld [vmem:[#allocation2 + $0xa00] sm:$0xff] }
 0x689   :  { %9623 = vmatpush1.bf16.msra.mxu1 %v8674_v48  ;;  %9173 = vmatprep.subr.bf16.mxu0 %v8325_v10  ;;  %v8698_v48 = vld [vmem:[#allocation2 + $0x1500] sm:$0xff]  ;;  %v8349_v10 = vld [vmem:[#allocation2 + $0xa18] sm:$0xff] }
 0x68a   :  { %9624 = vmatprep.subr.bf16.mxu1 %v8677_v11  ;;  %v8701_v11 = vld [vmem:[#allocation2 + $0x1518] sm:$0xff] }
 0x68c   :  { %9174 = vmatpush1.bf16.msra.mxu0 %v8324_v50  ;;  %v7999_v50 = vpack.c.bf16 %v7825_v3, %v7825_v3  ;;  %v8722_v3 = vld [vmem:[#allocation2 + $0x15c0] sm:$0xff] }
 0x68d   :  { %9625 = vmatpush1.bf16.msra.mxu1 %v8676_v12  ;;  %9175 = vmatprep.subr.bf16.mxu0 %v8327_v16  ;;  %v8021_v12 = vpack.c.bf16 %v7913_v4, %v7913_v4  ;;  %v8348_v16 = vld [vmem:[#allocation2 + $0xa10] sm:$0xff]  ;;  %v8373_v4 = vld [vmem:[#allocation2 + $0xad8] sm:$0xff] }
 0x68e   :  { %9626 = vmatprep.subr.bf16.mxu1 %v8679_v58  ;;  %v8351_v58 = vld [vmem:[#allocation2 + $0xa28] sm:$0xff] }
 0x690   :  { %9176 = vmatpush1.bf16.msra.mxu0 %v8326_v17  ;;  %v8703_v17 = vld [vmem:[#allocation2 + $0x1528] sm:$0xff] }
 0x691   :  { %9627 = vmatpush1.bf16.msra.mxu1 %v8678_v18  ;;  %9177 = vmatprep.subr.bf16.mxu0 %v8329_v19  ;;  %v8350_v18 = vld [vmem:[#allocation2 + $0xa20] sm:$0xff] }
 0x692   :  { %9628 = vmatprep.subr.bf16.mxu1 %v8681_v20  ;;  %v8702_v19 = vld [vmem:[#allocation2 + $0x1520] sm:$0xff]  ;;  %v8353_v20 = vld [vmem:[#allocation2 + $0xa38] sm:$0xff] }
 0x694   :  { %9178 = vmatpush1.bf16.msra.mxu0 %v8328_v21  ;;  %v8705_v21 = vld [vmem:[#allocation2 + $0x1538] sm:$0xff] }
 0x695   :  { %9629 = vmatpush1.bf16.msra.mxu1 %v8680_v23  ;;  %9179 = vmatprep.subr.bf16.mxu0 %v8331_v25  ;;  %v8352_v23 = vld [vmem:[#allocation2 + $0xa30] sm:$0xff] }
 0x696   :  { %9630 = vmatprep.subr.bf16.mxu1 %v8683_v26  ;;  %v8704_v25 = vld [vmem:[#allocation2 + $0x1530] sm:$0xff]  ;;  %v8355_v26 = vld [vmem:[#allocation2 + $0xa48] sm:$0xff] }
 0x698   :  { %9180 = vmatpush1.bf16.msra.mxu0 %v8330_v13  ;;  %v8707_v13 = vld [vmem:[#allocation2 + $0x1548] sm:$0xff] }
 0x699   :  { %9631 = vmatpush1.bf16.msra.mxu1 %v8682_v27  ;;  %9181 = vmatprep.subr.bf16.mxu0 %v8333_v28  ;;  %v8354_v27 = vld [vmem:[#allocation2 + $0xa40] sm:$0xff] }
 0x69a   :  { %9632 = vmatprep.subr.bf16.mxu1 %v8685_v29  ;;  %v8706_v28 = vld [vmem:[#allocation2 + $0x1540] sm:$0xff]  ;;  %v8357_v29 = vld [vmem:[#allocation2 + $0xa58] sm:$0xff] }
 0x69c   :  { %9182 = vmatpush1.bf16.msra.mxu0 %v8332_v30  ;;  %v8709_v30 = vld [vmem:[#allocation2 + $0x1558] sm:$0xff] }
 0x69d   :  { %9633 = vmatpush1.bf16.msra.mxu1 %v8684_v31  ;;  %9183 = vmatprep.subr.bf16.mxu0 %v8335_v32  ;;  %v8356_v31 = vld [vmem:[#allocation2 + $0xa50] sm:$0xff] }
 0x69e   :  { %9634 = vmatprep.subr.bf16.mxu1 %v8687_v33  ;;  %v8708_v32 = vld [vmem:[#allocation2 + $0x1550] sm:$0xff]  ;;  %v8359_v33 = vld [vmem:[#allocation2 + $0xa68] sm:$0xff] }
 0x6a0   :  { %9184 = vmatpush1.bf16.msra.mxu0 %v8334_v14  ;;  %v8711_v14 = vld [vmem:[#allocation2 + $0x1568] sm:$0xff] }
 0x6a1   :  { %9635 = vmatpush1.bf16.msra.mxu1 %v8686_v34  ;;  %9185 = vmatprep.subr.bf16.mxu0 %v8337_v15  ;;  %v8358_v34 = vld [vmem:[#allocation2 + $0xa60] sm:$0xff] }
 0x6a2   :  { %9636 = vmatprep.subr.bf16.mxu1 %v8689_v35  ;;  %v8710_v15 = vld [vmem:[#allocation2 + $0x1560] sm:$0xff]  ;;  %v8361_v35 = vld [vmem:[#allocation2 + $0xa78] sm:$0xff] }
 0x6a4   :  { %9186 = vmatpush1.bf16.msra.mxu0 %v8336_v51  ;;  %v8713_v51 = vld [vmem:[#allocation2 + $0x1578] sm:$0xff] }
 0x6a5   :  { %9637 = vmatpush1.bf16.msra.mxu1 %v8688_v36  ;;  %9187 = vmatprep.subr.bf16.mxu0 %v8339_v53  ;;  %v8360_v36 = vld [vmem:[#allocation2 + $0xa70] sm:$0xff] }
 0x6a6   :  { %9638 = vmatprep.subr.bf16.mxu1 %v8691_v37  ;;  %v8712_v53 = vld [vmem:[#allocation2 + $0x1570] sm:$0xff]  ;;  %v8363_v37 = vld [vmem:[#allocation2 + $0xa88] sm:$0xff] }
 0x6a8   :  { %9188 = vmatpush1.bf16.msra.mxu0 %v8338_v38  ;;  %v8715_v38 = vld [vmem:[#allocation2 + $0x1588] sm:$0xff] }
 0x6a9   :  { %9639 = vmatpush1.bf16.msra.mxu1 %v8690_v41  ;;  %9189 = vmatprep.subr.bf16.mxu0 %v8341_v43  ;;  %v8362_v41 = vld [vmem:[#allocation2 + $0xa80] sm:$0xff] }
 0x6aa   :  { %9640 = vmatprep.subr.bf16.mxu1 %v8693_v44  ;;  %v8714_v43 = vld [vmem:[#allocation2 + $0x1580] sm:$0xff]  ;;  %v8365_v44 = vld [vmem:[#allocation2 + $0xa98] sm:$0xff] }
 0x6ac   :  { %9190 = vmatpush1.bf16.msra.mxu0 %v8340_v45  ;;  %v8717_v45 = vld [vmem:[#allocation2 + $0x1598] sm:$0xff] }
 0x6ad   :  { %9641 = vmatpush1.bf16.msra.mxu1 %v8692_v62  ;;  %9191 = vmatprep.subr.bf16.mxu0 %v8343_v47  ;;  %v8364_v62 = vld [vmem:[#allocation2 + $0xa90] sm:$0xff] }
 0x6ae   :  { %9642 = vmatprep.subr.bf16.mxu1 %v8695_v52  ;;  %v8716_v47 = vld [vmem:[#allocation2 + $0x1590] sm:$0xff]  ;;  %v8367_v52 = vld [vmem:[#allocation2 + $0xaa8] sm:$0xff] }
 0x6b0   :  { %9192 = vmatpush1.bf16.msra.mxu0 %v8342_v54  ;;  %v8719_v54 = vld [vmem:[#allocation2 + $0x15a8] sm:$0xff] }
 0x6b1   :  { %9643 = vmatpush1.bf16.msra.mxu1 %v8694_v56  ;;  %9193 = vmatprep.subr.bf16.mxu0 %v8345_v57  ;;  %v8366_v56 = vld [vmem:[#allocation2 + $0xaa0] sm:$0xff] }
 0x6b2   :  { %9644 = vmatprep.subr.bf16.mxu1 %v8697_v0  ;;  %v8718_v57 = vld [vmem:[#allocation2 + $0x15a0] sm:$0xff]  ;;  %v8369_v0 = vld [vmem:[#allocation2 + $0xab8] sm:$0xff] }
 0x6b4   :  { %9194 = vmatpush1.bf16.msra.mxu0 %v8344_v5  ;;  %v8720_v5 = vld [vmem:[#allocation2 + $0x15b0] sm:$0xff] }
 0x6b5   :  { %9645 = vmatpush1.bf16.msra.mxu1 %v8696_v61  ;;  %9204 = vmatprep.subr.bf16.mxu0 %v8347_v63  ;;  %v8371_v61 = vld [vmem:[#allocation2 + $0xac8] sm:$0xff] }
 0x6b6   :  { %9655 = vmatprep.subr.bf16.mxu1 %v8699_v42  ;;  %v8723_v63 = vld [vmem:[#allocation2 + $0x15c8] sm:$0xff]  ;;  %v8370_v42 = vld [vmem:[#allocation2 + $0xac0] sm:$0xff] }
 0x6b7   :  { %9196 = vmatmul.mubr.bf16.vlgmr.msra.gmra.mrb[40].mxu0 %v7996_v6  ;;  %v8725_v6 = vld [vmem:[#allocation2 + $0x15d8] sm:$0xff] }
 0x6b8   :  { %9647 = vmatmul.mubr.bf16.vlgmr.msra.gmra.mrb[0].mxu1 %v8018_v7  ;;  %9205 = vmatpush1.bf16.msra.mxu0 %v8346_v9  ;;  %v8372_v7 = vld [vmem:[#allocation2 + $0xad0] sm:$0xff] }
 0x6b9   :  { %9656 = vmatpush1.bf16.msra.mxu1 %v8698_v48  ;;  %9206 = vmatprep.subr.bf16.mxu0 %v8349_v10  ;;  %v8724_v9 = vld [vmem:[#allocation2 + $0x15d0] sm:$0xff]  ;;  %v8375_v48 = vld [vmem:[#allocation2 + $0xae8] sm:$0xff] }
 0x6ba   :  { %9657 = vmatprep.subr.bf16.mxu1 %v8701_v11  ;;  %9236 = vmatprep.mubr.bf16.mxu0 %v7999_v50  ;;  %v8727_v10 = vld [vmem:[#allocation2 + $0x15e8] sm:$0xff]  ;;  %v8374_v11 = vld [vmem:[#allocation2 + $0xae0] sm:$0xff] }
 0x6bb   :  { %9687 = vmatprep.mubr.bf16.mxu1 %v8021_v12  ;;  %v8726_v50 = vld [vmem:[#allocation2 + $0x15e0] sm:$0xff]  ;;  %v8377_v12 = vld [vmem:[#allocation2 + $0xaf8] sm:$0xff] }
 0x6bc   :  { %9207 = vmatpush1.bf16.msra.mxu0 %v8348_v16  ;;  %v8729_v16 = vld [vmem:[#allocation2 + $0x15f8] sm:$0xff] }
 0x6bd   :  { %9658 = vmatpush1.bf16.msra.mxu1 %v8700_v46  ;;  %9208 = vmatprep.subr.bf16.mxu0 %v8351_v58  ;;  %v7821_v46 = vrot.slane %v12777_v22, %v12729_v24  ;;  %v7909_v58 = vrot.slane %v12786_v55, %v12715_v1  ;;  %v8730_v22 = vld [vmem:[#allocation2 + $0x1600] sm:$0xff]  ;;  %v8732_v1 = vld [vmem:[#allocation2 + $0x1610] sm:$0xff] }
 0x6be   :  { %9659 = vmatprep.subr.bf16.mxu1 %v8703_v17  ;;  %v7921_v17 = vrot.slane %v12786_v55, %v12718_v8  ;;  %v8735_v8 = vld [vmem:[#allocation2 + $0x1628] sm:$0xff] }
 0x6c0   :  { %9209 = vmatpush1.bf16.msra.mxu0 %v8350_v18  ;;  %v8376_v18 = vld [vmem:[#allocation2 + $0xaf0] sm:$0xff] }
 0x6c1   :  { %9660 = vmatpush1.bf16.msra.mxu1 %v8702_v19  ;;  %9210 = vmatprep.subr.bf16.mxu0 %v8353_v20  ;;  %v8728_v19 = vld [vmem:[#allocation2 + $0x15f0] sm:$0xff]  ;;  %v8731_v20 = vld [vmem:[#allocation2 + $0x1608] sm:$0xff] }
 0x6c2   :  { %9661 = vmatprep.subr.bf16.mxu1 %v8705_v21  ;;  %v7998_v21 = vpack.c.bf16 %v7821_v46, %v7821_v46  ;;  %v8779_v46 = vld [vmem:[#allocation2 + $0x1788] sm:$0xff] }
 0x6c4   :  { %9211 = vmatpush1.bf16.msra.mxu0 %v8352_v23  ;;  %v8020_v23 = vpack.c.bf16 %v7909_v58, %v7909_v58  ;;  %v8778_v58 = vld [vmem:[#allocation2 + $0x1780] sm:$0xff] }
 0x6c5   :  { %9662 = vmatpush1.bf16.msra.mxu1 %v8704_v25  ;;  %9212 = vmatprep.subr.bf16.mxu0 %v8355_v26  ;;  %v8023_v25 = vpack.c.bf16 %v7921_v17, %v7921_v17  ;;  %v8733_v26 = vld [vmem:[#allocation2 + $0x1618] sm:$0xff] }
 0x6c6   :  { %9663 = vmatprep.subr.bf16.mxu1 %v8707_v13  ;;  %v8734_v13 = vld [vmem:[#allocation2 + $0x1620] sm:$0xff]  ;;  %v8781_v17 = vld [vmem:[#allocation2 + $0x1798] sm:$0xff] }
 0x6c8   :  { %9213 = vmatpush1.bf16.msra.mxu0 %v8354_v27  ;;  %v8737_v27 = vld [vmem:[#allocation2 + $0x1638] sm:$0xff] }
 0x6c9   :  { %9664 = vmatpush1.bf16.msra.mxu1 %v8706_v28  ;;  %9214 = vmatprep.subr.bf16.mxu0 %v8357_v29  ;;  %v8736_v28 = vld [vmem:[#allocation2 + $0x1630] sm:$0xff]  ;;  %v8739_v29 = vld [vmem:[#allocation2 + $0x1648] sm:$0xff] }
 0x6ca   :  { %9665 = vmatprep.subr.bf16.mxu1 %v8709_v30  ;;  %v8738_v30 = vld [vmem:[#allocation2 + $0x1640] sm:$0xff] }
 0x6cc   :  { %9215 = vmatpush1.bf16.msra.mxu0 %v8356_v31  ;;  %v8741_v31 = vld [vmem:[#allocation2 + $0x1658] sm:$0xff] }
 0x6cd   :  { %9666 = vmatpush1.bf16.msra.mxu1 %v8708_v32  ;;  %9216 = vmatprep.subr.bf16.mxu0 %v8359_v33  ;;  %v8740_v32 = vld [vmem:[#allocation2 + $0x1650] sm:$0xff]  ;;  %v8743_v33 = vld [vmem:[#allocation2 + $0x1668] sm:$0xff] }
 0x6ce   :  { %9667 = vmatprep.subr.bf16.mxu1 %v8711_v14  ;;  %v8742_v14 = vld [vmem:[#allocation2 + $0x1660] sm:$0xff] }
 0x6d0   :  { %9217 = vmatpush1.bf16.msra.mxu0 %v8358_v34  ;;  %v8745_v34 = vld [vmem:[#allocation2 + $0x1678] sm:$0xff] }
 0x6d1   :  { %9668 = vmatpush1.bf16.msra.mxu1 %v8710_v15  ;;  %9218 = vmatprep.subr.bf16.mxu0 %v8361_v35  ;;  %v8744_v15 = vld [vmem:[#allocation2 + $0x1670] sm:$0xff]  ;;  %v8747_v35 = vld [vmem:[#allocation2 + $0x1688] sm:$0xff] }
 0x6d2   :  { %9669 = vmatprep.subr.bf16.mxu1 %v8713_v51  ;;  %v8746_v51 = vld [vmem:[#allocation2 + $0x1680] sm:$0xff] }
 0x6d4   :  { %9219 = vmatpush1.bf16.msra.mxu0 %v8360_v36  ;;  %v8749_v36 = vld [vmem:[#allocation2 + $0x1698] sm:$0xff] }
 0x6d5   :  { %9670 = vmatpush1.bf16.msra.mxu1 %v8712_v53  ;;  %9220 = vmatprep.subr.bf16.mxu0 %v8363_v37  ;;  %v8748_v53 = vld [vmem:[#allocation2 + $0x1690] sm:$0xff]  ;;  %v8751_v37 = vld [vmem:[#allocation2 + $0x16a8] sm:$0xff] }
 0x6d6   :  { %9671 = vmatprep.subr.bf16.mxu1 %v8715_v38  ;;  %v8750_v38 = vld [vmem:[#allocation2 + $0x16a0] sm:$0xff] }
 0x6d8   :  { %9221 = vmatpush1.bf16.msra.mxu0 %v8362_v41  ;;  %v8753_v41 = vld [vmem:[#allocation2 + $0x16b8] sm:$0xff] }
 0x6d9   :  { %9672 = vmatpush1.bf16.msra.mxu1 %v8714_v43  ;;  %9222 = vmatprep.subr.bf16.mxu0 %v8365_v44  ;;  %v8752_v43 = vld [vmem:[#allocation2 + $0x16b0] sm:$0xff]  ;;  %v8755_v44 = vld [vmem:[#allocation2 + $0x16c8] sm:$0xff] }
 0x6da   :  { %9673 = vmatprep.subr.bf16.mxu1 %v8717_v45  ;;  %v8754_v45 = vld [vmem:[#allocation2 + $0x16c0] sm:$0xff] }
 0x6dc   :  { %9223 = vmatpush1.bf16.msra.mxu0 %v8364_v62  ;;  %v8757_v62 = vld [vmem:[#allocation2 + $0x16d8] sm:$0xff] }
 0x6dd   :  { %9674 = vmatpush1.bf16.msra.mxu1 %v8716_v47  ;;  %9224 = vmatprep.subr.bf16.mxu0 %v8367_v52  ;;  %v8756_v47 = vld [vmem:[#allocation2 + $0x16d0] sm:$0xff]  ;;  %v8759_v52 = vld [vmem:[#allocation2 + $0x16e8] sm:$0xff] }
 0x6de   :  { %9675 = vmatprep.subr.bf16.mxu1 %v8719_v54  ;;  %v8758_v54 = vld [vmem:[#allocation2 + $0x16e0] sm:$0xff] }
 0x6e0   :  { %9225 = vmatpush1.bf16.msra.mxu0 %v8366_v56  ;;  %v8761_v56 = vld [vmem:[#allocation2 + $0x16f8] sm:$0xff] }
 0x6e1   :  { %9676 = vmatpush1.bf16.msra.mxu1 %v8718_v57  ;;  %9226 = vmatprep.subr.bf16.mxu0 %v8369_v0  ;;  %v7917_v57 = vrot.slane %v12786_v55, %v12729_v24  ;;  %v7929_v0 = vrot.slane %v12786_v55, %v12685_v2  ;;  %v8766_v24 = vld [vmem:[#allocation2 + $0x1720] sm:$0xff]  ;;  %v8768_v2 = vld [vmem:[#allocation2 + $0x1730] sm:$0xff] }
 0x6e2   :  { %9677 = vmatprep.subr.bf16.mxu1 %v8721_v59  ;;  %v8760_v59 = vld [vmem:[#allocation2 + $0x16f0] sm:$0xff] }
 0x6e4   :  { %9227 = vmatpush1.bf16.msra.mxu0 %v8368_v60  ;;  %v8763_v60 = vld [vmem:[#allocation2 + $0x1708] sm:$0xff] }
 0x6e5   :  { %9678 = vmatpush1.bf16.msra.mxu1 %v8720_v5  ;;  %9228 = vmatprep.subr.bf16.mxu0 %v8371_v61  ;;  %v8022_v5 = vpack.c.bf16 %v7917_v57, %v7917_v57  ;;  %v8025_v61 = vpack.c.bf16 %v7929_v0, %v7929_v0 }
 0x6e6   :  { %9679 = vmatprep.subr.bf16.mxu1 %v8723_v63  ;;  %v8762_v63 = vld [vmem:[#allocation2 + $0x1700] sm:$0xff] }
 0x6e8   :  { %9229 = vmatpush1.bf16.msra.mxu0 %v8370_v42  ;;  %v8765_v42 = vld [vmem:[#allocation2 + $0x1718] sm:$0xff] }
 0x6e9   :  { %9680 = vmatpush1.bf16.msra.mxu1 %v8722_v3  ;;  %9230 = vmatprep.subr.bf16.mxu0 %v8373_v4  ;;  %v8764_v3 = vld [vmem:[#allocation2 + $0x1710] sm:$0xff]  ;;  %v8767_v4 = vld [vmem:[#allocation2 + $0x1728] sm:$0xff] }
 0x6ea   :  { %9681 = vmatprep.subr.bf16.mxu1 %v8725_v6  ;;  %v8769_v6 = vld [vmem:[#allocation2 + $0x1738] sm:$0xff] }
 0x6ec   :  { %9231 = vmatpush1.bf16.msra.mxu0 %v8372_v7  ;;  %v8771_v7 = vld [vmem:[#allocation2 + $0x1748] sm:$0xff] }
 0x6ed   :  { %9682 = vmatpush1.bf16.msra.mxu1 %v8724_v9  ;;  %9232 = vmatprep.subr.bf16.mxu0 %v8375_v48  ;;  %v8770_v9 = vld [vmem:[#allocation2 + $0x1740] sm:$0xff]  ;;  %v8773_v48 = vld [vmem:[#allocation2 + $0x1758] sm:$0xff] }
 0x6ee   :  { %9683 = vmatprep.subr.bf16.mxu1 %v8727_v10  ;;  %v8772_v10 = vld [vmem:[#allocation2 + $0x1750] sm:$0xff] }
 0x6f0   :  { %9233 = vmatpush1.bf16.msra.mxu0 %v8374_v11  ;;  %v8775_v11 = vld [vmem:[#allocation2 + $0x1768] sm:$0xff] }
 0x6f1   :  { %9684 = vmatpush1.bf16.msra.mxu1 %v8726_v50  ;;  %9234 = vmatprep.subr.bf16.mxu0 %v8377_v12  ;;  %v8774_v50 = vld [vmem:[#allocation2 + $0x1760] sm:$0xff]  ;;  %v8777_v12 = vld [vmem:[#allocation2 + $0x1778] sm:$0xff] }
 0x6f2   :  { %9685 = vmatprep.subr.bf16.mxu1 %v8729_v16  ;;  %v8776_v16 = vld [vmem:[#allocation2 + $0x1770] sm:$0xff] }
 0x6f4   :  { %9235 = vmatpush1.bf16.msra.mxu0 %v8376_v18  ;;  %v8780_v18 = vld [vmem:[#allocation2 + $0x1790] sm:$0xff] }
 0x6f5   :  { %9686 = vmatpush1.bf16.msra.mxu1 %v8728_v19  ;;  %v8783_v19 = vld [vmem:[#allocation2 + $0x17a8] sm:$0xff] }
 0x6f6   :  { %9696 = vmatprep.subr.bf16.mxu1 %v8731_v20  ;;  %v8782_v20 = vld [vmem:[#allocation2 + $0x17a0] sm:$0xff] }
 0x6f7   :  { %9237 = vmatmul.mubr.bf16.vlgmr.msra.gmra.mrb[40].mxu0 %v7998_v21  ;;  %v8785_v21 = vld [vmem:[#allocation2 + $0x17b8] sm:$0xff] }
 0x6f8   :  { %9688 = vmatmul.mubr.bf16.vlgmr.msra.gmra.mrb[0].mxu1 %v8020_v23  ;;  %v8784_v23 = vld [vmem:[#allocation2 + $0x17b0] sm:$0xff] }
 0x6f9   :  { %9697 = vmatpush1.bf16.msra.mxu1 %v8730_v22  ;;  %9728 = vmatprep.mubr.bf16.mxu1 %v8023_v25  ;;  %v8787_v25 = vld [vmem:[#allocation2 + $0x17c8] sm:$0xff]  ;;  %v8786_v22 = vld [vmem:[#allocation2 + $0x17c0] sm:$0xff] }
 0x6fa   :  { %9698 = vmatprep.subr.bf16.mxu1 %v8733_v26  ;;  %v8789_v26 = vld [vmem:[#allocation2 + $0x17d8] sm:$0xff] }
 0x6fd   :  { %9699 = vmatpush1.bf16.msra.mxu1 %v8732_v1  ;;  %v8788_v1 = vld [vmem:[#allocation2 + $0x17d0] sm:$0xff] }
 0x6fe   :  { %9700 = vmatprep.subr.bf16.mxu1 %v8735_v8  ;;  %v8791_v8 = vld [vmem:[#allocation2 + $0x17e8] sm:$0xff] }
 0x701   :  { %9701 = vmatpush1.bf16.msra.mxu1 %v8734_v13  ;;  %v8790_v13 = vld [vmem:[#allocation2 + $0x17e0] sm:$0xff] }
 0x702   :  { %9702 = vmatprep.subr.bf16.mxu1 %v8737_v27  ;;  %v8793_v27 = vld [vmem:[#allocation2 + $0x17f8] sm:$0xff] }
 0x705   :  { %9703 = vmatpush1.bf16.msra.mxu1 %v8736_v28  ;;  %v7925_v28 = vrot.slane %v12786_v55, %v12699_v40 }
 0x706   :  { %9704 = vmatprep.subr.bf16.mxu1 %v8739_v29  ;;  %v8792_v29 = vld [vmem:[#allocation2 + $0x17f0] sm:$0xff] }
 0x709   :  { %9705 = vmatpush1.bf16.msra.mxu1 %v8738_v30  ;;  %v8024_v30 = vpack.c.bf16 %v7925_v28, %v7925_v28 }
 0x70a   :  { %9706 = vmatprep.subr.bf16.mxu1 %v8741_v31 }
 0x70d   :  { %9707 = vmatpush1.bf16.msra.mxu1 %v8740_v32 }
 0x70e   :  { %9708 = vmatprep.subr.bf16.mxu1 %v8743_v33 }
 0x711   :  { %9709 = vmatpush1.bf16.msra.mxu1 %v8742_v14 }
 0x712   :  { %9710 = vmatprep.subr.bf16.mxu1 %v8745_v34 }
 0x715   :  { %9711 = vmatpush1.bf16.msra.mxu1 %v8744_v15  ;;  %v10078_v15 = vld [vmem:[%s12856_s4] ss:$0 sm:$0xff] }
 0x716   :  { %9712 = vmatprep.subr.bf16.mxu1 %v8747_v35 }
 0x719   :  { %9713 = vmatpush1.bf16.msra.mxu1 %v8746_v51 }
 0x71a   :  { %9714 = vmatprep.subr.bf16.mxu1 %v8749_v36  ;;  %v10079_v36 = vmul.f32 -1.442695, %v10078_v15 }
 0x71c   :  { %10430 = vpow2.f32 %v10079_v36 }
 0x71d   :  { %9715 = vmatpush1.bf16.msra.mxu1 %v8748_v53 }
 0x71e   :  { %9716 = vmatprep.subr.bf16.mxu1 %v8751_v37 }
 0x721   :  { %9717 = vmatpush1.bf16.msra.mxu1 %v8750_v38 }
 0x722   :  { %9718 = vmatprep.subr.bf16.mxu1 %v8753_v41 }
 0x725   :  { %9719 = vmatpush1.bf16.msra.mxu1 %v8752_v43 }
 0x726   :  { %9720 = vmatprep.subr.bf16.mxu1 %v8755_v44  ;;  %v10431_v38 = vpop.eup %10430  ;;  %v9788_v44 = vadd.s32 16, %v12292_v49 }
 0x727   :  { %v9847_v41 = vadd.f32 1.0, %v10431_v38 }
 0x728   :  { %vm9796_vm12 = vcmp.eq.s32.totalorder %v9788_v44, 18 }
 0x729   :  { %9721 = vmatpush1.bf16.msra.mxu1 %v8754_v45  ;;  %10432 = vrcp.f32 %v9847_v41  ;;  %v9787_v45 = vadd.s32 8, %v12292_v49 }
 0x72a   :  { %9722 = vmatprep.subr.bf16.mxu1 %v8757_v62 }
 0x72b   :  { %vm9804_vm13 = vcmp.eq.s32.totalorder %v9787_v45, 14  ;;  %vm9824_vm14 = vcmp.eq.s32.totalorder %v9787_v45, 10 }
 0x72d   :  { %9723 = vmatpush1.bf16.msra.mxu1 %v8756_v47 }
 0x72e   :  { %9724 = vmatprep.subr.bf16.mxu1 %v8759_v52 }
 0x731   :  { %9725 = vmatpush1.bf16.msra.mxu1 %v8758_v54 }
 0x732   :  { %9726 = vmatprep.subr.bf16.mxu1 %v8761_v56 }
 0x733   :  { %v10433_v43 = vpop.eup %10432 }
 0x735   :  { %9727 = vmatpush1.bf16.msra.mxu1 %v8760_v59 }
 0x736   :  { %9737 = vmatprep.subr.bf16.mxu1 %v8763_v60 }
 0x738   :  { %9729 = vmatmul.mubr.bf16.vlgmr.msra.gmra.mrb[0].mxu1 %v8022_v5 }
 0x739   :  { %9738 = vmatpush1.bf16.msra.mxu1 %v8762_v63  ;;  %9769 = vmatprep.mubr.bf16.mxu1 %v8025_v61 }
 0x73a   :  { %9739 = vmatprep.subr.bf16.mxu1 %v8765_v42 }
 0x73d   :  { %9740 = vmatpush1.bf16.msra.mxu1 %v8764_v3 }
 0x73e   :  { %9741 = vmatprep.subr.bf16.mxu1 %v8767_v4 }
 0x741   :  { %9742 = vmatpush1.bf16.msra.mxu1 %v8766_v24 }
 0x742   :  { %9743 = vmatprep.subr.bf16.mxu1 %v8769_v6 }
 0x745   :  { %9744 = vmatpush1.bf16.msra.mxu1 %v8768_v2 }
 0x746   :  { %9745 = vmatprep.subr.bf16.mxu1 %v8771_v7 }
 0x749   :  { %9746 = vmatpush1.bf16.msra.mxu1 %v8770_v9 }
 0x74a   :  { %9747 = vmatprep.subr.bf16.mxu1 %v8773_v48 }
 0x74d   :  { %9748 = vmatpush1.bf16.msra.mxu1 %v8772_v10 }
 0x74e   :  { %9749 = vmatprep.subr.bf16.mxu1 %v8775_v11 }
 0x751   :  { %9750 = vmatpush1.bf16.msra.mxu1 %v8774_v50 }
 0x752   :  { %9751 = vmatprep.subr.bf16.mxu1 %v8777_v12 }
 0x755   :  { %9752 = vmatpush1.bf16.msra.mxu1 %v8776_v16 }
 0x756   :  { %9753 = vmatprep.subr.bf16.mxu1 %v8779_v46 }
 0x759   :  { %9754 = vmatpush1.bf16.msra.mxu1 %v8778_v58 }
 0x75a   :  { %9755 = vmatprep.subr.bf16.mxu1 %v8781_v17 }
 0x75d   :  { %9756 = vmatpush1.bf16.msra.mxu1 %v8780_v18 }
 0x75e   :  { %9757 = vmatprep.subr.bf16.mxu1 %v8783_v19 }
 0x761   :  { %9758 = vmatpush1.bf16.msra.mxu1 %v8782_v20 }
 0x762   :  { %9759 = vmatprep.subr.bf16.mxu1 %v8785_v21 }
 0x765   :  { %9760 = vmatpush1.bf16.msra.mxu1 %v8784_v23 }
 0x766   :  { %9761 = vmatprep.subr.bf16.mxu1 %v8787_v25 }
 0x769   :  { %9762 = vmatpush1.bf16.msra.mxu1 %v8786_v22 }
 0x76a   :  { %9763 = vmatprep.subr.bf16.mxu1 %v8789_v26 }
 0x76d   :  { %9764 = vmatpush1.bf16.msra.mxu1 %v8788_v1 }
 0x76e   :  { %9765 = vmatprep.subr.bf16.mxu1 %v8791_v8 }
 0x771   :  { %9766 = vmatpush1.bf16.msra.mxu1 %v8790_v13 }
 0x772   :  { %9767 = vmatprep.subr.bf16.mxu1 %v8793_v27 }
 0x775   :  { %9768 = vmatpush1.bf16.msra.mxu1 %v8792_v29 }
 0x778   :  { %9770 = vmatmul.mubr.bf16.vlgmr.msra.gmra.mrb[0].mxu1 %v8024_v30 }
 0x7ca   :  { %v9238_v31 = vpop.f32.mrb[40].mxu0 }
 0x7cb   :  { %v9240_v32 = vpop.f32.mrb[41].mxu0 }
 0x7cc   :  { %v9242_v33 = vpop.f32.mrb[42].mxu0 }
 0x7cd   :  { %v9243_v14 = vpop.f32.mrb[43].mxu0 }
 0x84b   :  { %v9771_v34 = vpop.f32.mrb[0].mxu1 }
 0x84c   :  { %v10200_v35 = vadd.f32 %v9771_v34, %v9238_v31  ;;  %v9773_v51 = vpop.f32.mrb[1].mxu1 }
 0x84d   :  { %v10201_v53 = vadd.f32 %v9773_v51, %v9240_v32  ;;  %v9775_v40 = vpop.f32.mrb[2].mxu1 }
 0x84e   :  { %v9776_v55 = vpop.f32.mrb[3].mxu1  ;;  %v9793_v37 = vrot.slane %v10200_v35, %v12696_v39 }
 0x84f   :  { %v9822_v56 = vrot.slane %v10201_v53, %v12696_v39 }
 0x850   :  { %9808 = vrot.lane.b32.xlu0 %v9793_v37, %s10482_s0  ;;  %v9798_v62 = vadd.f32 %v10078_v15, %v9793_v37 }
 0x852   :  { %v9801_v52 = vsel %vm9796_vm12, %v9798_v62, %v10078_v15 }
 0x853   :  { %v10081_v0 = vmul.f32 -1.442695, %v9801_v52 }
 0x855   :  { %10434 = vpow2.f32 %v10081_v0 }
 0x85f   :  { %v10435_v61 = vpop.eup %10434 }
 0x860   :  { %v9849_v49 = vadd.f32 1.0, %v10435_v61 }
 0x86e   :  { %9859 = vxpose.xlu0.b32.start [1/4] (short) (narrow) %v10433_v43, 64 }
 0x8c2   :  { %v9809_v47 = vpop.permute.xlu0 %9808 }
 0x8c3   :  { %v9812_v54 = vadd.f32 %v10078_v15, %v9809_v47 }
 0x8c5   :  { %v9816_v57 = vsel %vm9804_vm13, %v9812_v54, %v10078_v15 }
 0x8c6   :  { %v9828_v59 = vadd.f32 %v9822_v56, %v9816_v57 }
 0x8c8   :  { %v9832_v60 = vsel %vm9824_vm14, %v9828_v59, %v9816_v57 }
 0x8c9   :  { %v10080_v5 = vmul.f32 -1.442695, %v9832_v60 }
 0x8cb   :  { %10436 = vpow2.f32 %v10080_v5 }
 0x8d5   :  { %v10437_v63 = vpop.eup %10436 }
 0x8d6   :  { %v9848_v42 = vadd.f32 1.0, %v10437_v63 }
 0x8d8   :  { %10438 = vrcp.f32 %v9848_v42 }
 0x8d9   :  { %10440 = vrcp.f32 %v9849_v49 }
 0x8e2   :  { %v10439_v3 = vpop.eup %10438 }
 0x8e3   :  { %9860 = vxpose.xlu0.b32.cont [2/4] (short) (narrow) %v10439_v3, 64  ;;  %v10441_v4 = vpop.eup %10440 }
 0x8e7   :  { %9861 = vxpose.xlu0.b32.cont [3/4] (short) (narrow) %v10441_v4, 64 }
 0x8eb   :  { %9862 = vxpose.xlu0.b32.end [4/4] (short) (narrow) %v10433_v43, 64 }
 0x95f   :  { %v9875_v39 = vpop.trf.xlu0 }
 0x960   :  { %9892 = vst.msk [vmem:[%s12857_s5] sm:$0xff] %vm9891_vm15, %v9875_v39 }
 0x963   :  { %v9876_v24 = vpop.trf.xlu0 }
 0x964   :  { %9893 = vst.msk [vmem:[%s12857_s5 + $0x8] sm:$0xff] %vm9891_vm15, %v9876_v24 }
 0x967   :  { %v9877_v6 = vpop.trf.xlu0 }
 0x968   :  { %9894 = vst.msk [vmem:[%s12857_s5 + $0x10] sm:$0xff] %vm9891_vm15, %v9877_v6 }
 0x96b   :  { %v9878_v2 = vpop.trf.xlu0 }
 0x96c   :  { %9895 = vst.msk [vmem:[%s12857_s5 + $0x18] sm:$0xff] %vm9891_vm15, %v9878_v2 }
 0x96f   :  { %v9879_v7 = vpop.trf.xlu0 }
 0x970   :  { %9896 = vst.msk [vmem:[%s12857_s5 + $0x20] sm:$0xff] %vm9891_vm15, %v9879_v7 }
 0x973   :  { %v9880_v9 = vpop.trf.xlu0 }
 0x974   :  { %9897 = vst.msk [vmem:[%s12857_s5 + $0x28] sm:$0xff] %vm9891_vm15, %v9880_v9 }
 0x977   :  { %v9881_v48 = vpop.trf.xlu0 }
 0x978   :  { %9898 = vst.msk [vmem:[%s12857_s5 + $0x30] sm:$0xff] %vm9891_vm15, %v9881_v48 }
 0x97b   :  { %v9882_v10 = vpop.trf.xlu0 }
 0x97c   :  { %9899 = vst.msk [vmem:[%s12857_s5 + $0x38] sm:$0xff] %vm9891_vm15, %v9882_v10 }
 0x97d   :  { %9904 = vsyncmov [#allocation4] }
 0x980   :  { %s9905_s25 = vpop.sfrf %9904 }
 0x981   :  { %p10083_p2 = scmp.ne.s32.totalorder %s9905_s25, 0 }
 0x983   :  { %9909 = shalt.err (%p10083_p2)  }

</bundles_post_ra>
